<compile_context>
chip_gen: v5e
topology: v5e:2x2
jax: 0.10.0
libtpu: 0.0.40
codegen_flags: <defaults>
</compile_context>

<pallas_src>
import jax
import jax.numpy as jnp
from jax.experimental import pallas as pl
from jax.experimental.pallas import tpu as pltpu


# Rows reserved (zero padded) for layer-0's w_ih inside the packed weight
# array, so the following w_hh0 segment starts on an 8-row (sublane) boundary.
_WIH0_PAD_ROWS = 8


# ---------------------------------------------------------------------------
# Fused kernel (all LSTM layers + fc + tanh)
# ---------------------------------------------------------------------------
def make_fused_doa_kernel(seq_len, batch_pad, hidden, num_layers, wih0_rows):
    """Kernel closed over static shape parameters.

    Ref layout:
      x_ref   : (T*Bp, D_in)  time-major rows (row = t*Bp + b), zero padded rows
      w_ref   : (wih0_rows + H + (L-1)*2H, 4H) packed weights, gate order [i,f,o,g]
                  [0:wih0_rows)          layer-0 w_ih (first D_in rows real)
                  [wih0_rows:+H)         layer-0 w_hh
                  per layer l>=1: (2H)   stacked [w_ih_l ; w_hh_l]
      b_ref   : (L, 4H)       per-layer bias (b_ih + b_hh)
      fc_ref  : (H+1, O)      [fc_w ; fc_b]
      out_ref : (Bp, O)       output (padded batch rows included)
    """
    T, Bp, H, L = seq_len, batch_pad, hidden, num_layers

    def kernel(x_ref, w_ref, b_ref, fc_ref, out_ref):
        d_in = x_ref.shape[1]
        x2 = x_ref[...]                                        # (T*Bp, D_in)

        # ---- layer-0 input projection on the VPU (tiny K), bias folded once.
        b0 = b_ref[0:1, :]                                     # (1, 4H)
        gx0 = x2[:, 0:1] * w_ref[0:1, :] + b0                  # (T*Bp, 4H)
        for k in range(1, d_in):
            gx0 = gx0 + x2[:, k:k + 1] * w_ref[k:k + 1, :]

        # ---- recurrent weights (resident in VMEM).
        whh0 = w_ref[wih0_rows:wih0_rows + H, :]               # (H, 4H)
        w_stk = []
        off = wih0_rows + H
        for _ in range(1, L):
            w_stk.append(w_ref[off:off + 2 * H, :])            # (2H, 4H)
            off += 2 * H
        b_l = [b_ref[l:l + 1, :] for l in range(1, L)]

        hs = [jnp.zeros((Bp, H), jnp.float32) for _ in range(L)]
        cs = [jnp.zeros((Bp, H), jnp.float32) for _ in range(L)]

        def cell(g, c):
            # Gate order [i, f, o | g]: one wide sigmoid + one tanh per step.
            sig = jax.nn.sigmoid(g[:, :3 * H])                 # (Bp, 3H)
            g_g = jnp.tanh(g[:, 3 * H:])                       # (Bp, H)
            c_new = sig[:, H:2 * H] * c + sig[:, :H] * g_g
            h_new = sig[:, 2 * H:3 * H] * jnp.tanh(c_new)
            return h_new, c_new

        # Static unroll over T (small compile-time constant).  Layer l at time
        # t depends only on layer l-1 at time t and layer l at time t-1, so the
        # serial MXU chain is T + L - 1 matmuls deep (wavefront); independent
        # per-layer matmuls overlap in the scheduler.
        for t in range(T):
            g0 = gx0[t * Bp:(t + 1) * Bp, :] + jnp.dot(
                hs[0], whh0, preferred_element_type=jnp.float32)
            hs[0], cs[0] = cell(g0, cs[0])
            for l in range(1, L):
                hx = jnp.concatenate([hs[l - 1], hs[l]], axis=1)    # (Bp, 2H)
                g = jnp.dot(hx, w_stk[l - 1],
                            preferred_element_type=jnp.float32) + b_l[l - 1]
                hs[l], cs[l] = cell(g, cs[l])

        # ---- fc + tanh fused on the last layer's final hidden state.
        fc_w = fc_ref[0:H, :]
        fc_b = fc_ref[H:H + 1, :]
        out_ref[...] = jnp.tanh(
            jnp.dot(hs[L - 1], fc_w, preferred_element_type=jnp.float32) + fc_b)

    return kernel


def _vmem_spec():
    return pl.BlockSpec(memory_space=pltpu.MemorySpace.VMEM)


# ---------------------------------------------------------------------------
# Wrapper
# ---------------------------------------------------------------------------
@jax.jit
def doa_model_forward(x_btd, w_all, b_all, fc_all):
    """DoAModel forward.  x_btd: (B, T, input_dim), batch-first like PyTorch."""
    B, T, D = x_btd.shape
    H = fc_all.shape[0] - 1
    O = fc_all.shape[1]
    L = b_all.shape[0]
    Bp = max(8, ((B + 7) // 8) * 8)           # pad batch to f32 sublane tile

    # Batch-first -> time-major, zero-pad batch rows, flatten to 2D rows.
    x_tm = jnp.transpose(x_btd, (1, 0, 2)).astype(jnp.float32)   # (T, B, D)
    x_tm = jnp.pad(x_tm, ((0, 0), (0, Bp - B), (0, 0)))
    x2d = x_tm.reshape(T * Bp, D)

    kernel = make_fused_doa_kernel(T, Bp, H, L, _WIH0_PAD_ROWS)
    out_p = pl.pallas_call(
        kernel,
        out_shape=jax.ShapeDtypeStruct((Bp, O), jnp.float32),
        in_specs=[_vmem_spec(), _vmem_spec(), _vmem_spec(), _vmem_spec()],
        out_specs=_vmem_spec(),
    )(x2d, w_all, b_all, fc_all)
    return out_p[:B, :]                        # drop padded batch rows


# ---------------------------------------------------------------------------
# Parameter init + packing
#
# NOTE: parameters here use right-multiply (D, 4H) matrices with gate columns
# grouped [i, f, o, g].  Real PyTorch nn.LSTM checkpoints store (4H, D)
# row-major in [i, f, g, o] order and would need a transpose + column permute.
# ---------------------------------------------------------------------------
def init_params(key, input_dim, hidden_dim, output_dim, num_layers):
    H = hidden_dim
    bound = 1.0 / jnp.sqrt(jnp.float32(H))
    lstm_params = []
    for layer in range(num_layers):
        d_in = input_dim if layer == 0 else H
        key, k1, k2, k3, k4 = jax.random.split(key, 5)
        w_ih = jax.random.uniform(k1, (d_in, 4 * H), jnp.float32, -bound, bound)
        w_hh = jax.random.uniform(k2, (H, 4 * H), jnp.float32, -bound, bound)
        b_ih = jax.random.uniform(k3, (4 * H,), jnp.float32, -bound, bound)
        b_hh = jax.random.uniform(k4, (4 * H,), jnp.float32, -bound, bound)
        lstm_params.append((w_ih, w_hh, (b_ih + b_hh).reshape(1, 4 * H)))
    key, k5, k6 = jax.random.split(key, 3)
    fc_w = jax.random.uniform(k5, (H, output_dim), jnp.float32, -bound, bound)
    fc_b = jax.random.uniform(k6, (1, output_dim), jnp.float32, -bound, bound)
    return {"lstm": lstm_params, "fc_w": fc_w, "fc_b": fc_b}


def pack_params(params):
    """Pack per-layer weights into 3 arrays (one-time, outside the hot path)."""
    lstm = params["lstm"]
    H = lstm[0][1].shape[0]
    w_ih0, w_hh0, b0 = lstm[0]
    d_in = w_ih0.shape[0]
    wih0_pad = jnp.zeros((_WIH0_PAD_ROWS, 4 * H), jnp.float32).at[:d_in].set(w_ih0)
    blocks = [wih0_pad, w_hh0]
    biases = [b0]
    for (w_ih, w_hh, b) in lstm[1:]:
        blocks.append(jnp.concatenate([w_ih, w_hh], axis=0))    # (2H, 4H)
        biases.append(b)
    w_all = jnp.concatenate(blocks, axis=0)
    b_all = jnp.concatenate(biases, axis=0)                     # (L, 4H)
    fc_all = jnp.concatenate([params["fc_w"], params["fc_b"]], axis=0)  # (H+1, O)
    return w_all, b_all, fc_all


# ---------------------------------------------------------------------------
# Pure-JAX reference (same [i, f, o, g] layout) for correctness check
# ---------------------------------------------------------------------------
def reference_forward(x_btd, params):
    x = jnp.transpose(x_btd, (1, 0, 2)).astype(jnp.float32)     # (T, B, D)
    for (w_ih, w_hh, b) in params["lstm"]:
        H = w_hh.shape[0]
        B = x.shape[1]

        def step(carry, x_t):
            h, c = carry
            g = x_t @ w_ih + h @ w_hh + b
            i_g = jax.nn.sigmoid(g[:, 0 * H:1 * H])
            f_g = jax.nn.sigmoid(g[:, 1 * H:2 * H])
            o_g = jax.nn.sigmoid(g[:, 2 * H:3 * H])
            g_g = jnp.tanh(g[:, 3 * H:4 * H])
            c_new = f_g * c + i_g * g_g
            h_new = o_g * jnp.tanh(c_new)
            return (h_new, c_new), h_new

        init = (jnp.zeros((B, H), jnp.float32), jnp.zeros((B, H), jnp.float32))
        _, x = jax.lax.scan(step, init, x)
    last = x[-1]
    return jnp.tanh(last @ params["fc_w"] + params["fc_b"])


# ---------------------------------------------------------------------------
if __name__ == "__main__":
    # Shapes consistent with the module's class defaults:
    # x is (batch, seq, input_dim=2); hidden_dim=128, output_dim=2, num_layers=2.
    BATCH, SEQ, INPUT_DIM = 2, 8, 2
    HIDDEN_DIM, OUTPUT_DIM, NUM_LAYERS = 128, 2, 2

    key = jax.random.PRNGKey(0)
    key, kx = jax.random.split(key)
    x = jax.random.normal(kx, (BATCH, SEQ, INPUT_DIM), jnp.float32)

    params = init_params(key, INPUT_DIM, HIDDEN_DIM, OUTPUT_DIM, NUM_LAYERS)
    w_all, b_all, fc_all = pack_params(params)   # one-time packing

    out = jax.block_until_ready(doa_model_forward(x, w_all, b_all, fc_all))

    ref = jax.block_until_ready(reference_forward(x, params))
    assert out.shape == (BATCH, OUTPUT_DIM), out.shape
    assert jnp.allclose(out, ref, atol=2e-4, rtol=2e-4), (out, ref)

    print("KERNEL_OK")
</pallas_src>

<mosaic_0001>
module attributes {stable_mosaic.version = 11 : i64} {
  func.func @kernel(%arg0: memref<64x2xf32, #tpu.memory_space<vmem>>, %arg1: memref<392x512xf32, #tpu.memory_space<vmem>>, %arg2: memref<2x512xf32, #tpu.memory_space<vmem>>, %arg3: memref<129x2xf32, #tpu.memory_space<vmem>>, %arg4: memref<8x2xf32, #tpu.memory_space<vmem>>) attributes {dimension_semantics = [], scalar_prefetch = 0 : i64, scratch_operands = 0 : i64, tpu.core_type = #tpu.core_type<tc>} {
    %c0 = arith.constant 0 : index
    %c0_0 = arith.constant 0 : index
    %0 = vector.load %arg0[%c0, %c0_0] : memref<64x2xf32, #tpu.memory_space<vmem>>, vector<64x2xf32>
    %c0_1 = arith.constant 0 : index
    %c0_2 = arith.constant 0 : index
    %1 = vector.load %arg2[%c0_1, %c0_2] : memref<2x512xf32, #tpu.memory_space<vmem>>, vector<1x512xf32>
    %2 = vector.extract_strided_slice %0 {offsets = [0, 0], sizes = [64, 1], strides = [1, 1]} : vector<64x2xf32> to vector<64x1xf32>
    %c0_3 = arith.constant 0 : index
    %c0_4 = arith.constant 0 : index
    %3 = vector.load %arg1[%c0_3, %c0_4] : memref<392x512xf32, #tpu.memory_space<vmem>>, vector<1x512xf32>
    %4 = vector.broadcast %2 : vector<64x1xf32> to vector<64x512xf32>
    %5 = vector.broadcast %3 : vector<1x512xf32> to vector<64x512xf32>
    %6 = arith.mulf %4, %5 : vector<64x512xf32>
    %7 = vector.broadcast %1 : vector<1x512xf32> to vector<64x512xf32>
    %8 = arith.addf %6, %7 : vector<64x512xf32>
    %9 = vector.extract_strided_slice %0 {offsets = [0, 1], sizes = [64, 1], strides = [1, 1]} : vector<64x2xf32> to vector<64x1xf32>
    %c1 = arith.constant 1 : index
    %c0_5 = arith.constant 0 : index
    %10 = vector.load %arg1[%c1, %c0_5] : memref<392x512xf32, #tpu.memory_space<vmem>>, vector<1x512xf32>
    %11 = vector.broadcast %9 : vector<64x1xf32> to vector<64x512xf32>
    %12 = vector.broadcast %10 : vector<1x512xf32> to vector<64x512xf32>
    %13 = arith.mulf %11, %12 : vector<64x512xf32>
    %14 = arith.addf %8, %13 : vector<64x512xf32>
    %c8 = arith.constant 8 : index
    %c0_6 = arith.constant 0 : index
    %15 = vector.load %arg1[%c8, %c0_6] : memref<392x512xf32, #tpu.memory_space<vmem>>, vector<128x512xf32>
    %c136 = arith.constant 136 : index
    %c0_7 = arith.constant 0 : index
    %16 = vector.load %arg1[%c136, %c0_7] : memref<392x512xf32, #tpu.memory_space<vmem>>, vector<256x512xf32>
    %c1_8 = arith.constant 1 : index
    %c0_9 = arith.constant 0 : index
    %17 = vector.load %arg2[%c1_8, %c0_9] : memref<2x512xf32, #tpu.memory_space<vmem>>, vector<1x512xf32>
    %cst = arith.constant 0.000000e+00 : f32
    %18 = vector.broadcast %cst : f32 to vector<8x128xf32>
    %cst_10 = arith.constant 0.000000e+00 : f32
    %19 = vector.broadcast %cst_10 : f32 to vector<8x128xf32>
    %cst_11 = arith.constant 0.000000e+00 : f32
    %20 = vector.broadcast %cst_11 : f32 to vector<8x128xf32>
    %cst_12 = arith.constant 0.000000e+00 : f32
    %21 = vector.broadcast %cst_12 : f32 to vector<8x128xf32>
    %22 = vector.extract_strided_slice %14 {offsets = [0, 0], sizes = [8, 512], strides = [1, 1]} : vector<64x512xf32> to vector<8x512xf32>
    %cst_13 = arith.constant dense<0.000000e+00> : vector<8x512xf32>
    %23 = tpu.matmul %18, %15, %cst_13 {dimension_numbers = #tpu.dot_dimension_numbers<[1], [0], [0], [1], [0, 0, 1, 1], [], []>} : vector<8x128xf32>, vector<128x512xf32>, vector<8x512xf32> -> vector<8x512xf32>
    %24 = arith.addf %22, %23 : vector<8x512xf32>
    %25 = vector.extract_strided_slice %24 {offsets = [0, 0], sizes = [8, 384], strides = [1, 1]} : vector<8x512xf32> to vector<8x384xf32>
    %26 = arith.negf %25 : vector<8x384xf32>
    %27 = math.exp %26 : vector<8x384xf32>
    %cst_14 = arith.constant 1.000000e+00 : f32
    %28 = vector.broadcast %cst_14 : f32 to vector<8x384xf32>
    %29 = arith.addf %28, %27 : vector<8x384xf32>
    %30 = arith.divf %28, %29 : vector<8x384xf32>
    %31 = vector.extract_strided_slice %24 {offsets = [0, 384], sizes = [8, 128], strides = [1, 1]} : vector<8x512xf32> to vector<8x128xf32>
    %32 = math.tanh %31 : vector<8x128xf32>
    %33 = vector.extract_strided_slice %30 {offsets = [0, 128], sizes = [8, 128], strides = [1, 1]} : vector<8x384xf32> to vector<8x128xf32>
    %34 = arith.mulf %33, %20 : vector<8x128xf32>
    %35 = vector.extract_strided_slice %30 {offsets = [0, 0], sizes = [8, 128], strides = [1, 1]} : vector<8x384xf32> to vector<8x128xf32>
    %36 = arith.mulf %35, %32 : vector<8x128xf32>
    %37 = arith.addf %34, %36 : vector<8x128xf32>
    %38 = vector.extract_strided_slice %30 {offsets = [0, 256], sizes = [8, 128], strides = [1, 1]} : vector<8x384xf32> to vector<8x128xf32>
    %39 = math.tanh %37 : vector<8x128xf32>
    %40 = arith.mulf %38, %39 : vector<8x128xf32>
    %41 = tpu.concatenate %40, %19 in 1 : vector<8x128xf32>, vector<8x128xf32> -> vector<8x256xf32>
    %cst_15 = arith.constant dense<0.000000e+00> : vector<8x512xf32>
    %42 = tpu.matmul %41, %16, %cst_15 {dimension_numbers = #tpu.dot_dimension_numbers<[1], [0], [0], [1], [0, 0, 1, 1], [], []>} : vector<8x256xf32>, vector<256x512xf32>, vector<8x512xf32> -> vector<8x512xf32>
    %43 = vector.broadcast %17 : vector<1x512xf32> to vector<8x512xf32>
    %44 = arith.addf %42, %43 : vector<8x512xf32>
    %45 = vector.extract_strided_slice %44 {offsets = [0, 0], sizes = [8, 384], strides = [1, 1]} : vector<8x512xf32> to vector<8x384xf32>
    %46 = arith.negf %45 : vector<8x384xf32>
    %47 = math.exp %46 : vector<8x384xf32>
    %cst_16 = arith.constant 1.000000e+00 : f32
    %48 = vector.broadcast %cst_16 : f32 to vector<8x384xf32>
    %49 = arith.addf %48, %47 : vector<8x384xf32>
    %50 = arith.divf %48, %49 : vector<8x384xf32>
    %51 = vector.extract_strided_slice %44 {offsets = [0, 384], sizes = [8, 128], strides = [1, 1]} : vector<8x512xf32> to vector<8x128xf32>
    %52 = math.tanh %51 : vector<8x128xf32>
    %53 = vector.extract_strided_slice %50 {offsets = [0, 128], sizes = [8, 128], strides = [1, 1]} : vector<8x384xf32> to vector<8x128xf32>
    %54 = arith.mulf %53, %21 : vector<8x128xf32>
    %55 = vector.extract_strided_slice %50 {offsets = [0, 0], sizes = [8, 128], strides = [1, 1]} : vector<8x384xf32> to vector<8x128xf32>
    %56 = arith.mulf %55, %52 : vector<8x128xf32>
    %57 = arith.addf %54, %56 : vector<8x128xf32>
    %58 = vector.extract_strided_slice %50 {offsets = [0, 256], sizes = [8, 128], strides = [1, 1]} : vector<8x384xf32> to vector<8x128xf32>
    %59 = math.tanh %57 : vector<8x128xf32>
    %60 = arith.mulf %58, %59 : vector<8x128xf32>
    %61 = vector.extract_strided_slice %14 {offsets = [8, 0], sizes = [8, 512], strides = [1, 1]} : vector<64x512xf32> to vector<8x512xf32>
    %cst_17 = arith.constant dense<0.000000e+00> : vector<8x512xf32>
    %62 = tpu.matmul %40, %15, %cst_17 {dimension_numbers = #tpu.dot_dimension_numbers<[1], [0], [0], [1], [0, 0, 1, 1], [], []>} : vector<8x128xf32>, vector<128x512xf32>, vector<8x512xf32> -> vector<8x512xf32>
    %63 = arith.addf %61, %62 : vector<8x512xf32>
    %64 = vector.extract_strided_slice %63 {offsets = [0, 0], sizes = [8, 384], strides = [1, 1]} : vector<8x512xf32> to vector<8x384xf32>
    %65 = arith.negf %64 : vector<8x384xf32>
    %66 = math.exp %65 : vector<8x384xf32>
    %cst_18 = arith.constant 1.000000e+00 : f32
    %67 = vector.broadcast %cst_18 : f32 to vector<8x384xf32>
    %68 = arith.addf %67, %66 : vector<8x384xf32>
    %69 = arith.divf %67, %68 : vector<8x384xf32>
    %70 = vector.extract_strided_slice %63 {offsets = [0, 384], sizes = [8, 128], strides = [1, 1]} : vector<8x512xf32> to vector<8x128xf32>
    %71 = math.tanh %70 : vector<8x128xf32>
    %72 = vector.extract_strided_slice %69 {offsets = [0, 128], sizes = [8, 128], strides = [1, 1]} : vector<8x384xf32> to vector<8x128xf32>
    %73 = arith.mulf %72, %37 : vector<8x128xf32>
    %74 = vector.extract_strided_slice %69 {offsets = [0, 0], sizes = [8, 128], strides = [1, 1]} : vector<8x384xf32> to vector<8x128xf32>
    %75 = arith.mulf %74, %71 : vector<8x128xf32>
    %76 = arith.addf %73, %75 : vector<8x128xf32>
    %77 = vector.extract_strided_slice %69 {offsets = [0, 256], sizes = [8, 128], strides = [1, 1]} : vector<8x384xf32> to vector<8x128xf32>
    %78 = math.tanh %76 : vector<8x128xf32>
    %79 = arith.mulf %77, %78 : vector<8x128xf32>
    %80 = tpu.concatenate %79, %60 in 1 : vector<8x128xf32>, vector<8x128xf32> -> vector<8x256xf32>
    %cst_19 = arith.constant dense<0.000000e+00> : vector<8x512xf32>
    %81 = tpu.matmul %80, %16, %cst_19 {dimension_numbers = #tpu.dot_dimension_numbers<[1], [0], [0], [1], [0, 0, 1, 1], [], []>} : vector<8x256xf32>, vector<256x512xf32>, vector<8x512xf32> -> vector<8x512xf32>
    %82 = vector.broadcast %17 : vector<1x512xf32> to vector<8x512xf32>
    %83 = arith.addf %81, %82 : vector<8x512xf32>
    %84 = vector.extract_strided_slice %83 {offsets = [0, 0], sizes = [8, 384], strides = [1, 1]} : vector<8x512xf32> to vector<8x384xf32>
    %85 = arith.negf %84 : vector<8x384xf32>
    %86 = math.exp %85 : vector<8x384xf32>
    %cst_20 = arith.constant 1.000000e+00 : f32
    %87 = vector.broadcast %cst_20 : f32 to vector<8x384xf32>
    %88 = arith.addf %87, %86 : vector<8x384xf32>
    %89 = arith.divf %87, %88 : vector<8x384xf32>
    %90 = vector.extract_strided_slice %83 {offsets = [0, 384], sizes = [8, 128], strides = [1, 1]} : vector<8x512xf32> to vector<8x128xf32>
    %91 = math.tanh %90 : vector<8x128xf32>
    %92 = vector.extract_strided_slice %89 {offsets = [0, 128], sizes = [8, 128], strides = [1, 1]} : vector<8x384xf32> to vector<8x128xf32>
    %93 = arith.mulf %92, %57 : vector<8x128xf32>
    %94 = vector.extract_strided_slice %89 {offsets = [0, 0], sizes = [8, 128], strides = [1, 1]} : vector<8x384xf32> to vector<8x128xf32>
    %95 = arith.mulf %94, %91 : vector<8x128xf32>
    %96 = arith.addf %93, %95 : vector<8x128xf32>
    %97 = vector.extract_strided_slice %89 {offsets = [0, 256], sizes = [8, 128], strides = [1, 1]} : vector<8x384xf32> to vector<8x128xf32>
    %98 = math.tanh %96 : vector<8x128xf32>
    %99 = arith.mulf %97, %98 : vector<8x128xf32>
    %100 = vector.extract_strided_slice %14 {offsets = [16, 0], sizes = [8, 512], strides = [1, 1]} : vector<64x512xf32> to vector<8x512xf32>
    %cst_21 = arith.constant dense<0.000000e+00> : vector<8x512xf32>
    %101 = tpu.matmul %79, %15, %cst_21 {dimension_numbers = #tpu.dot_dimension_numbers<[1], [0], [0], [1], [0, 0, 1, 1], [], []>} : vector<8x128xf32>, vector<128x512xf32>, vector<8x512xf32> -> vector<8x512xf32>
    %102 = arith.addf %100, %101 : vector<8x512xf32>
    %103 = vector.extract_strided_slice %102 {offsets = [0, 0], sizes = [8, 384], strides = [1, 1]} : vector<8x512xf32> to vector<8x384xf32>
    %104 = arith.negf %103 : vector<8x384xf32>
    %105 = math.exp %104 : vector<8x384xf32>
    %cst_22 = arith.constant 1.000000e+00 : f32
    %106 = vector.broadcast %cst_22 : f32 to vector<8x384xf32>
    %107 = arith.addf %106, %105 : vector<8x384xf32>
    %108 = arith.divf %106, %107 : vector<8x384xf32>
    %109 = vector.extract_strided_slice %102 {offsets = [0, 384], sizes = [8, 128], strides = [1, 1]} : vector<8x512xf32> to vector<8x128xf32>
    %110 = math.tanh %109 : vector<8x128xf32>
    %111 = vector.extract_strided_slice %108 {offsets = [0, 128], sizes = [8, 128], strides = [1, 1]} : vector<8x384xf32> to vector<8x128xf32>
    %112 = arith.mulf %111, %76 : vector<8x128xf32>
    %113 = vector.extract_strided_slice %108 {offsets = [0, 0], sizes = [8, 128], strides = [1, 1]} : vector<8x384xf32> to vector<8x128xf32>
    %114 = arith.mulf %113, %110 : vector<8x128xf32>
    %115 = arith.addf %112, %114 : vector<8x128xf32>
    %116 = vector.extract_strided_slice %108 {offsets = [0, 256], sizes = [8, 128], strides = [1, 1]} : vector<8x384xf32> to vector<8x128xf32>
    %117 = math.tanh %115 : vector<8x128xf32>
    %118 = arith.mulf %116, %117 : vector<8x128xf32>
    %119 = tpu.concatenate %118, %99 in 1 : vector<8x128xf32>, vector<8x128xf32> -> vector<8x256xf32>
    %cst_23 = arith.constant dense<0.000000e+00> : vector<8x512xf32>
    %120 = tpu.matmul %119, %16, %cst_23 {dimension_numbers = #tpu.dot_dimension_numbers<[1], [0], [0], [1], [0, 0, 1, 1], [], []>} : vector<8x256xf32>, vector<256x512xf32>, vector<8x512xf32> -> vector<8x512xf32>
    %121 = vector.broadcast %17 : vector<1x512xf32> to vector<8x512xf32>
    %122 = arith.addf %120, %121 : vector<8x512xf32>
    %123 = vector.extract_strided_slice %122 {offsets = [0, 0], sizes = [8, 384], strides = [1, 1]} : vector<8x512xf32> to vector<8x384xf32>
    %124 = arith.negf %123 : vector<8x384xf32>
    %125 = math.exp %124 : vector<8x384xf32>
    %cst_24 = arith.constant 1.000000e+00 : f32
    %126 = vector.broadcast %cst_24 : f32 to vector<8x384xf32>
    %127 = arith.addf %126, %125 : vector<8x384xf32>
    %128 = arith.divf %126, %127 : vector<8x384xf32>
    %129 = vector.extract_strided_slice %122 {offsets = [0, 384], sizes = [8, 128], strides = [1, 1]} : vector<8x512xf32> to vector<8x128xf32>
    %130 = math.tanh %129 : vector<8x128xf32>
    %131 = vector.extract_strided_slice %128 {offsets = [0, 128], sizes = [8, 128], strides = [1, 1]} : vector<8x384xf32> to vector<8x128xf32>
    %132 = arith.mulf %131, %96 : vector<8x128xf32>
    %133 = vector.extract_strided_slice %128 {offsets = [0, 0], sizes = [8, 128], strides = [1, 1]} : vector<8x384xf32> to vector<8x128xf32>
    %134 = arith.mulf %133, %130 : vector<8x128xf32>
    %135 = arith.addf %132, %134 : vector<8x128xf32>
    %136 = vector.extract_strided_slice %128 {offsets = [0, 256], sizes = [8, 128], strides = [1, 1]} : vector<8x384xf32> to vector<8x128xf32>
    %137 = math.tanh %135 : vector<8x128xf32>
    %138 = arith.mulf %136, %137 : vector<8x128xf32>
    %139 = vector.extract_strided_slice %14 {offsets = [24, 0], sizes = [8, 512], strides = [1, 1]} : vector<64x512xf32> to vector<8x512xf32>
    %cst_25 = arith.constant dense<0.000000e+00> : vector<8x512xf32>
    %140 = tpu.matmul %118, %15, %cst_25 {dimension_numbers = #tpu.dot_dimension_numbers<[1], [0], [0], [1], [0, 0, 1, 1], [], []>} : vector<8x128xf32>, vector<128x512xf32>, vector<8x512xf32> -> vector<8x512xf32>
    %141 = arith.addf %139, %140 : vector<8x512xf32>
    %142 = vector.extract_strided_slice %141 {offsets = [0, 0], sizes = [8, 384], strides = [1, 1]} : vector<8x512xf32> to vector<8x384xf32>
    %143 = arith.negf %142 : vector<8x384xf32>
    %144 = math.exp %143 : vector<8x384xf32>
    %cst_26 = arith.constant 1.000000e+00 : f32
    %145 = vector.broadcast %cst_26 : f32 to vector<8x384xf32>
    %146 = arith.addf %145, %144 : vector<8x384xf32>
    %147 = arith.divf %145, %146 : vector<8x384xf32>
    %148 = vector.extract_strided_slice %141 {offsets = [0, 384], sizes = [8, 128], strides = [1, 1]} : vector<8x512xf32> to vector<8x128xf32>
    %149 = math.tanh %148 : vector<8x128xf32>
    %150 = vector.extract_strided_slice %147 {offsets = [0, 128], sizes = [8, 128], strides = [1, 1]} : vector<8x384xf32> to vector<8x128xf32>
    %151 = arith.mulf %150, %115 : vector<8x128xf32>
    %152 = vector.extract_strided_slice %147 {offsets = [0, 0], sizes = [8, 128], strides = [1, 1]} : vector<8x384xf32> to vector<8x128xf32>
    %153 = arith.mulf %152, %149 : vector<8x128xf32>
    %154 = arith.addf %151, %153 : vector<8x128xf32>
    %155 = vector.extract_strided_slice %147 {offsets = [0, 256], sizes = [8, 128], strides = [1, 1]} : vector<8x384xf32> to vector<8x128xf32>
    %156 = math.tanh %154 : vector<8x128xf32>
    %157 = arith.mulf %155, %156 : vector<8x128xf32>
    %158 = tpu.concatenate %157, %138 in 1 : vector<8x128xf32>, vector<8x128xf32> -> vector<8x256xf32>
    %cst_27 = arith.constant dense<0.000000e+00> : vector<8x512xf32>
    %159 = tpu.matmul %158, %16, %cst_27 {dimension_numbers = #tpu.dot_dimension_numbers<[1], [0], [0], [1], [0, 0, 1, 1], [], []>} : vector<8x256xf32>, vector<256x512xf32>, vector<8x512xf32> -> vector<8x512xf32>
    %160 = vector.broadcast %17 : vector<1x512xf32> to vector<8x512xf32>
    %161 = arith.addf %159, %160 : vector<8x512xf32>
    %162 = vector.extract_strided_slice %161 {offsets = [0, 0], sizes = [8, 384], strides = [1, 1]} : vector<8x512xf32> to vector<8x384xf32>
    %163 = arith.negf %162 : vector<8x384xf32>
    %164 = math.exp %163 : vector<8x384xf32>
    %cst_28 = arith.constant 1.000000e+00 : f32
    %165 = vector.broadcast %cst_28 : f32 to vector<8x384xf32>
    %166 = arith.addf %165, %164 : vector<8x384xf32>
    %167 = arith.divf %165, %166 : vector<8x384xf32>
    %168 = vector.extract_strided_slice %161 {offsets = [0, 384], sizes = [8, 128], strides = [1, 1]} : vector<8x512xf32> to vector<8x128xf32>
    %169 = math.tanh %168 : vector<8x128xf32>
    %170 = vector.extract_strided_slice %167 {offsets = [0, 128], sizes = [8, 128], strides = [1, 1]} : vector<8x384xf32> to vector<8x128xf32>
    %171 = arith.mulf %170, %135 : vector<8x128xf32>
    %172 = vector.extract_strided_slice %167 {offsets = [0, 0], sizes = [8, 128], strides = [1, 1]} : vector<8x384xf32> to vector<8x128xf32>
    %173 = arith.mulf %172, %169 : vector<8x128xf32>
    %174 = arith.addf %171, %173 : vector<8x128xf32>
    %175 = vector.extract_strided_slice %167 {offsets = [0, 256], sizes = [8, 128], strides = [1, 1]} : vector<8x384xf32> to vector<8x128xf32>
    %176 = math.tanh %174 : vector<8x128xf32>
    %177 = arith.mulf %175, %176 : vector<8x128xf32>
    %178 = vector.extract_strided_slice %14 {offsets = [32, 0], sizes = [8, 512], strides = [1, 1]} : vector<64x512xf32> to vector<8x512xf32>
    %cst_29 = arith.constant dense<0.000000e+00> : vector<8x512xf32>
    %179 = tpu.matmul %157, %15, %cst_29 {dimension_numbers = #tpu.dot_dimension_numbers<[1], [0], [0], [1], [0, 0, 1, 1], [], []>} : vector<8x128xf32>, vector<128x512xf32>, vector<8x512xf32> -> vector<8x512xf32>
    %180 = arith.addf %178, %179 : vector<8x512xf32>
    %181 = vector.extract_strided_slice %180 {offsets = [0, 0], sizes = [8, 384], strides = [1, 1]} : vector<8x512xf32> to vector<8x384xf32>
    %182 = arith.negf %181 : vector<8x384xf32>
    %183 = math.exp %182 : vector<8x384xf32>
    %cst_30 = arith.constant 1.000000e+00 : f32
    %184 = vector.broadcast %cst_30 : f32 to vector<8x384xf32>
    %185 = arith.addf %184, %183 : vector<8x384xf32>
    %186 = arith.divf %184, %185 : vector<8x384xf32>
    %187 = vector.extract_strided_slice %180 {offsets = [0, 384], sizes = [8, 128], strides = [1, 1]} : vector<8x512xf32> to vector<8x128xf32>
    %188 = math.tanh %187 : vector<8x128xf32>
    %189 = vector.extract_strided_slice %186 {offsets = [0, 128], sizes = [8, 128], strides = [1, 1]} : vector<8x384xf32> to vector<8x128xf32>
    %190 = arith.mulf %189, %154 : vector<8x128xf32>
    %191 = vector.extract_strided_slice %186 {offsets = [0, 0], sizes = [8, 128], strides = [1, 1]} : vector<8x384xf32> to vector<8x128xf32>
    %192 = arith.mulf %191, %188 : vector<8x128xf32>
    %193 = arith.addf %190, %192 : vector<8x128xf32>
    %194 = vector.extract_strided_slice %186 {offsets = [0, 256], sizes = [8, 128], strides = [1, 1]} : vector<8x384xf32> to vector<8x128xf32>
    %195 = math.tanh %193 : vector<8x128xf32>
    %196 = arith.mulf %194, %195 : vector<8x128xf32>
    %197 = tpu.concatenate %196, %177 in 1 : vector<8x128xf32>, vector<8x128xf32> -> vector<8x256xf32>
    %cst_31 = arith.constant dense<0.000000e+00> : vector<8x512xf32>
    %198 = tpu.matmul %197, %16, %cst_31 {dimension_numbers = #tpu.dot_dimension_numbers<[1], [0], [0], [1], [0, 0, 1, 1], [], []>} : vector<8x256xf32>, vector<256x512xf32>, vector<8x512xf32> -> vector<8x512xf32>
    %199 = vector.broadcast %17 : vector<1x512xf32> to vector<8x512xf32>
    %200 = arith.addf %198, %199 : vector<8x512xf32>
    %201 = vector.extract_strided_slice %200 {offsets = [0, 0], sizes = [8, 384], strides = [1, 1]} : vector<8x512xf32> to vector<8x384xf32>
    %202 = arith.negf %201 : vector<8x384xf32>
    %203 = math.exp %202 : vector<8x384xf32>
    %cst_32 = arith.constant 1.000000e+00 : f32
    %204 = vector.broadcast %cst_32 : f32 to vector<8x384xf32>
    %205 = arith.addf %204, %203 : vector<8x384xf32>
    %206 = arith.divf %204, %205 : vector<8x384xf32>
    %207 = vector.extract_strided_slice %200 {offsets = [0, 384], sizes = [8, 128], strides = [1, 1]} : vector<8x512xf32> to vector<8x128xf32>
    %208 = math.tanh %207 : vector<8x128xf32>
    %209 = vector.extract_strided_slice %206 {offsets = [0, 128], sizes = [8, 128], strides = [1, 1]} : vector<8x384xf32> to vector<8x128xf32>
    %210 = arith.mulf %209, %174 : vector<8x128xf32>
    %211 = vector.extract_strided_slice %206 {offsets = [0, 0], sizes = [8, 128], strides = [1, 1]} : vector<8x384xf32> to vector<8x128xf32>
    %212 = arith.mulf %211, %208 : vector<8x128xf32>
    %213 = arith.addf %210, %212 : vector<8x128xf32>
    %214 = vector.extract_strided_slice %206 {offsets = [0, 256], sizes = [8, 128], strides = [1, 1]} : vector<8x384xf32> to vector<8x128xf32>
    %215 = math.tanh %213 : vector<8x128xf32>
    %216 = arith.mulf %214, %215 : vector<8x128xf32>
    %217 = vector.extract_strided_slice %14 {offsets = [40, 0], sizes = [8, 512], strides = [1, 1]} : vector<64x512xf32> to vector<8x512xf32>
    %cst_33 = arith.constant dense<0.000000e+00> : vector<8x512xf32>
    %218 = tpu.matmul %196, %15, %cst_33 {dimension_numbers = #tpu.dot_dimension_numbers<[1], [0], [0], [1], [0, 0, 1, 1], [], []>} : vector<8x128xf32>, vector<128x512xf32>, vector<8x512xf32> -> vector<8x512xf32>
    %219 = arith.addf %217, %218 : vector<8x512xf32>
    %220 = vector.extract_strided_slice %219 {offsets = [0, 0], sizes = [8, 384], strides = [1, 1]} : vector<8x512xf32> to vector<8x384xf32>
    %221 = arith.negf %220 : vector<8x384xf32>
    %222 = math.exp %221 : vector<8x384xf32>
    %cst_34 = arith.constant 1.000000e+00 : f32
    %223 = vector.broadcast %cst_34 : f32 to vector<8x384xf32>
    %224 = arith.addf %223, %222 : vector<8x384xf32>
    %225 = arith.divf %223, %224 : vector<8x384xf32>
    %226 = vector.extract_strided_slice %219 {offsets = [0, 384], sizes = [8, 128], strides = [1, 1]} : vector<8x512xf32> to vector<8x128xf32>
    %227 = math.tanh %226 : vector<8x128xf32>
    %228 = vector.extract_strided_slice %225 {offsets = [0, 128], sizes = [8, 128], strides = [1, 1]} : vector<8x384xf32> to vector<8x128xf32>
    %229 = arith.mulf %228, %193 : vector<8x128xf32>
    %230 = vector.extract_strided_slice %225 {offsets = [0, 0], sizes = [8, 128], strides = [1, 1]} : vector<8x384xf32> to vector<8x128xf32>
    %231 = arith.mulf %230, %227 : vector<8x128xf32>
    %232 = arith.addf %229, %231 : vector<8x128xf32>
    %233 = vector.extract_strided_slice %225 {offsets = [0, 256], sizes = [8, 128], strides = [1, 1]} : vector<8x384xf32> to vector<8x128xf32>
    %234 = math.tanh %232 : vector<8x128xf32>
    %235 = arith.mulf %233, %234 : vector<8x128xf32>
    %236 = tpu.concatenate %235, %216 in 1 : vector<8x128xf32>, vector<8x128xf32> -> vector<8x256xf32>
    %cst_35 = arith.constant dense<0.000000e+00> : vector<8x512xf32>
    %237 = tpu.matmul %236, %16, %cst_35 {dimension_numbers = #tpu.dot_dimension_numbers<[1], [0], [0], [1], [0, 0, 1, 1], [], []>} : vector<8x256xf32>, vector<256x512xf32>, vector<8x512xf32> -> vector<8x512xf32>
    %238 = vector.broadcast %17 : vector<1x512xf32> to vector<8x512xf32>
    %239 = arith.addf %237, %238 : vector<8x512xf32>
    %240 = vector.extract_strided_slice %239 {offsets = [0, 0], sizes = [8, 384], strides = [1, 1]} : vector<8x512xf32> to vector<8x384xf32>
    %241 = arith.negf %240 : vector<8x384xf32>
    %242 = math.exp %241 : vector<8x384xf32>
    %cst_36 = arith.constant 1.000000e+00 : f32
    %243 = vector.broadcast %cst_36 : f32 to vector<8x384xf32>
    %244 = arith.addf %243, %242 : vector<8x384xf32>
    %245 = arith.divf %243, %244 : vector<8x384xf32>
    %246 = vector.extract_strided_slice %239 {offsets = [0, 384], sizes = [8, 128], strides = [1, 1]} : vector<8x512xf32> to vector<8x128xf32>
    %247 = math.tanh %246 : vector<8x128xf32>
    %248 = vector.extract_strided_slice %245 {offsets = [0, 128], sizes = [8, 128], strides = [1, 1]} : vector<8x384xf32> to vector<8x128xf32>
    %249 = arith.mulf %248, %213 : vector<8x128xf32>
    %250 = vector.extract_strided_slice %245 {offsets = [0, 0], sizes = [8, 128], strides = [1, 1]} : vector<8x384xf32> to vector<8x128xf32>
    %251 = arith.mulf %250, %247 : vector<8x128xf32>
    %252 = arith.addf %249, %251 : vector<8x128xf32>
    %253 = vector.extract_strided_slice %245 {offsets = [0, 256], sizes = [8, 128], strides = [1, 1]} : vector<8x384xf32> to vector<8x128xf32>
    %254 = math.tanh %252 : vector<8x128xf32>
    %255 = arith.mulf %253, %254 : vector<8x128xf32>
    %256 = vector.extract_strided_slice %14 {offsets = [48, 0], sizes = [8, 512], strides = [1, 1]} : vector<64x512xf32> to vector<8x512xf32>
    %cst_37 = arith.constant dense<0.000000e+00> : vector<8x512xf32>
    %257 = tpu.matmul %235, %15, %cst_37 {dimension_numbers = #tpu.dot_dimension_numbers<[1], [0], [0], [1], [0, 0, 1, 1], [], []>} : vector<8x128xf32>, vector<128x512xf32>, vector<8x512xf32> -> vector<8x512xf32>
    %258 = arith.addf %256, %257 : vector<8x512xf32>
    %259 = vector.extract_strided_slice %258 {offsets = [0, 0], sizes = [8, 384], strides = [1, 1]} : vector<8x512xf32> to vector<8x384xf32>
    %260 = arith.negf %259 : vector<8x384xf32>
    %261 = math.exp %260 : vector<8x384xf32>
    %cst_38 = arith.constant 1.000000e+00 : f32
    %262 = vector.broadcast %cst_38 : f32 to vector<8x384xf32>
    %263 = arith.addf %262, %261 : vector<8x384xf32>
    %264 = arith.divf %262, %263 : vector<8x384xf32>
    %265 = vector.extract_strided_slice %258 {offsets = [0, 384], sizes = [8, 128], strides = [1, 1]} : vector<8x512xf32> to vector<8x128xf32>
    %266 = math.tanh %265 : vector<8x128xf32>
    %267 = vector.extract_strided_slice %264 {offsets = [0, 128], sizes = [8, 128], strides = [1, 1]} : vector<8x384xf32> to vector<8x128xf32>
    %268 = arith.mulf %267, %232 : vector<8x128xf32>
    %269 = vector.extract_strided_slice %264 {offsets = [0, 0], sizes = [8, 128], strides = [1, 1]} : vector<8x384xf32> to vector<8x128xf32>
    %270 = arith.mulf %269, %266 : vector<8x128xf32>
    %271 = arith.addf %268, %270 : vector<8x128xf32>
    %272 = vector.extract_strided_slice %264 {offsets = [0, 256], sizes = [8, 128], strides = [1, 1]} : vector<8x384xf32> to vector<8x128xf32>
    %273 = math.tanh %271 : vector<8x128xf32>
    %274 = arith.mulf %272, %273 : vector<8x128xf32>
    %275 = tpu.concatenate %274, %255 in 1 : vector<8x128xf32>, vector<8x128xf32> -> vector<8x256xf32>
    %cst_39 = arith.constant dense<0.000000e+00> : vector<8x512xf32>
    %276 = tpu.matmul %275, %16, %cst_39 {dimension_numbers = #tpu.dot_dimension_numbers<[1], [0], [0], [1], [0, 0, 1, 1], [], []>} : vector<8x256xf32>, vector<256x512xf32>, vector<8x512xf32> -> vector<8x512xf32>
    %277 = vector.broadcast %17 : vector<1x512xf32> to vector<8x512xf32>
    %278 = arith.addf %276, %277 : vector<8x512xf32>
    %279 = vector.extract_strided_slice %278 {offsets = [0, 0], sizes = [8, 384], strides = [1, 1]} : vector<8x512xf32> to vector<8x384xf32>
    %280 = arith.negf %279 : vector<8x384xf32>
    %281 = math.exp %280 : vector<8x384xf32>
    %cst_40 = arith.constant 1.000000e+00 : f32
    %282 = vector.broadcast %cst_40 : f32 to vector<8x384xf32>
    %283 = arith.addf %282, %281 : vector<8x384xf32>
    %284 = arith.divf %282, %283 : vector<8x384xf32>
    %285 = vector.extract_strided_slice %278 {offsets = [0, 384], sizes = [8, 128], strides = [1, 1]} : vector<8x512xf32> to vector<8x128xf32>
    %286 = math.tanh %285 : vector<8x128xf32>
    %287 = vector.extract_strided_slice %284 {offsets = [0, 128], sizes = [8, 128], strides = [1, 1]} : vector<8x384xf32> to vector<8x128xf32>
    %288 = arith.mulf %287, %252 : vector<8x128xf32>
    %289 = vector.extract_strided_slice %284 {offsets = [0, 0], sizes = [8, 128], strides = [1, 1]} : vector<8x384xf32> to vector<8x128xf32>
    %290 = arith.mulf %289, %286 : vector<8x128xf32>
    %291 = arith.addf %288, %290 : vector<8x128xf32>
    %292 = vector.extract_strided_slice %284 {offsets = [0, 256], sizes = [8, 128], strides = [1, 1]} : vector<8x384xf32> to vector<8x128xf32>
    %293 = math.tanh %291 : vector<8x128xf32>
    %294 = arith.mulf %292, %293 : vector<8x128xf32>
    %295 = vector.extract_strided_slice %14 {offsets = [56, 0], sizes = [8, 512], strides = [1, 1]} : vector<64x512xf32> to vector<8x512xf32>
    %cst_41 = arith.constant dense<0.000000e+00> : vector<8x512xf32>
    %296 = tpu.matmul %274, %15, %cst_41 {dimension_numbers = #tpu.dot_dimension_numbers<[1], [0], [0], [1], [0, 0, 1, 1], [], []>} : vector<8x128xf32>, vector<128x512xf32>, vector<8x512xf32> -> vector<8x512xf32>
    %297 = arith.addf %295, %296 : vector<8x512xf32>
    %298 = vector.extract_strided_slice %297 {offsets = [0, 0], sizes = [8, 384], strides = [1, 1]} : vector<8x512xf32> to vector<8x384xf32>
    %299 = arith.negf %298 : vector<8x384xf32>
    %300 = math.exp %299 : vector<8x384xf32>
    %cst_42 = arith.constant 1.000000e+00 : f32
    %301 = vector.broadcast %cst_42 : f32 to vector<8x384xf32>
    %302 = arith.addf %301, %300 : vector<8x384xf32>
    %303 = arith.divf %301, %302 : vector<8x384xf32>
    %304 = vector.extract_strided_slice %297 {offsets = [0, 384], sizes = [8, 128], strides = [1, 1]} : vector<8x512xf32> to vector<8x128xf32>
    %305 = math.tanh %304 : vector<8x128xf32>
    %306 = vector.extract_strided_slice %303 {offsets = [0, 128], sizes = [8, 128], strides = [1, 1]} : vector<8x384xf32> to vector<8x128xf32>
    %307 = arith.mulf %306, %271 : vector<8x128xf32>
    %308 = vector.extract_strided_slice %303 {offsets = [0, 0], sizes = [8, 128], strides = [1, 1]} : vector<8x384xf32> to vector<8x128xf32>
    %309 = arith.mulf %308, %305 : vector<8x128xf32>
    %310 = arith.addf %307, %309 : vector<8x128xf32>
    %311 = vector.extract_strided_slice %303 {offsets = [0, 256], sizes = [8, 128], strides = [1, 1]} : vector<8x384xf32> to vector<8x128xf32>
    %312 = math.tanh %310 : vector<8x128xf32>
    %313 = arith.mulf %311, %312 : vector<8x128xf32>
    %314 = tpu.concatenate %313, %294 in 1 : vector<8x128xf32>, vector<8x128xf32> -> vector<8x256xf32>
    %cst_43 = arith.constant dense<0.000000e+00> : vector<8x512xf32>
    %315 = tpu.matmul %314, %16, %cst_43 {dimension_numbers = #tpu.dot_dimension_numbers<[1], [0], [0], [1], [0, 0, 1, 1], [], []>} : vector<8x256xf32>, vector<256x512xf32>, vector<8x512xf32> -> vector<8x512xf32>
    %316 = vector.broadcast %17 : vector<1x512xf32> to vector<8x512xf32>
    %317 = arith.addf %315, %316 : vector<8x512xf32>
    %318 = vector.extract_strided_slice %317 {offsets = [0, 0], sizes = [8, 384], strides = [1, 1]} : vector<8x512xf32> to vector<8x384xf32>
    %319 = arith.negf %318 : vector<8x384xf32>
    %320 = math.exp %319 : vector<8x384xf32>
    %cst_44 = arith.constant 1.000000e+00 : f32
    %321 = vector.broadcast %cst_44 : f32 to vector<8x384xf32>
    %322 = arith.addf %321, %320 : vector<8x384xf32>
    %323 = arith.divf %321, %322 : vector<8x384xf32>
    %324 = vector.extract_strided_slice %317 {offsets = [0, 384], sizes = [8, 128], strides = [1, 1]} : vector<8x512xf32> to vector<8x128xf32>
    %325 = math.tanh %324 : vector<8x128xf32>
    %326 = vector.extract_strided_slice %323 {offsets = [0, 128], sizes = [8, 128], strides = [1, 1]} : vector<8x384xf32> to vector<8x128xf32>
    %327 = arith.mulf %326, %291 : vector<8x128xf32>
    %328 = vector.extract_strided_slice %323 {offsets = [0, 0], sizes = [8, 128], strides = [1, 1]} : vector<8x384xf32> to vector<8x128xf32>
    %329 = arith.mulf %328, %325 : vector<8x128xf32>
    %330 = arith.addf %327, %329 : vector<8x128xf32>
    %331 = vector.extract_strided_slice %323 {offsets = [0, 256], sizes = [8, 128], strides = [1, 1]} : vector<8x384xf32> to vector<8x128xf32>
    %332 = math.tanh %330 : vector<8x128xf32>
    %333 = arith.mulf %331, %332 : vector<8x128xf32>
    %c0_45 = arith.constant 0 : index
    %c0_46 = arith.constant 0 : index
    %334 = vector.load %arg3[%c0_45, %c0_46] : memref<129x2xf32, #tpu.memory_space<vmem>>, vector<128x2xf32>
    %c128 = arith.constant 128 : index
    %c0_47 = arith.constant 0 : index
    %335 = vector.load %arg3[%c128, %c0_47] : memref<129x2xf32, #tpu.memory_space<vmem>>, vector<1x2xf32>
    %cst_48 = arith.constant dense<0.000000e+00> : vector<8x2xf32>
    %336 = tpu.matmul %333, %334, %cst_48 {dimension_numbers = #tpu.dot_dimension_numbers<[1], [0], [0], [1], [0, 0, 1, 1], [], []>} : vector<8x128xf32>, vector<128x2xf32>, vector<8x2xf32> -> vector<8x2xf32>
    %337 = vector.broadcast %335 : vector<1x2xf32> to vector<8x2xf32>
    %338 = arith.addf %336, %337 : vector<8x2xf32>
    %339 = math.tanh %338 : vector<8x2xf32>
    %c0_49 = arith.constant 0 : index
    %c0_50 = arith.constant 0 : index
    %340 = vector.load %arg4[%c0_49, %c0_50] : memref<8x2xf32, #tpu.memory_space<vmem>>, vector<8x2xf32>
    tpu.vector_store %arg4[%c0_49, %c0_50], %339 {strides = array<i32>} : memref<8x2xf32, #tpu.memory_space<vmem>>, vector<8x2xf32>,
    return
  }
}

</mosaic_0001>

<bundles_post_ra>
// kernel: doa_model_forward.1
= control target key start
LH: loop header
LB: loop body
LE: loop exit
PB: predicated region body
PF: predicated region fallthrough
CT: control target
= control target key end

     0   :  { %9 = vsyncpa [#allocation3], 0  ;;  %s4442_s18 = smov [#allocation2]   ;;  %s4443_s20 = smov 512   ;;  %s8254_s0 = inlined_call_operand.vmem [shape: f32[64,2], index: 0, kind: input, shape index: {}]   ;;  %s8255_s1 = inlined_call_operand.hbm [shape: f32[392,512], index: 1, kind: input, shape index: {}]   ;;  %s8256_s2 = inlined_call_operand.vmem [shape: f32[2,512], index: 2, kind: input, shape index: {}]   ;;  %s8257_s3 = inlined_call_operand.vmem [shape: f32[129,2], index: 3, kind: input, shape index: {}]   ;;  %s8258_s4 = inlined_call_operand.vmem [shape: f32[8,2], index: 4, kind: output, shape index: {}]  }
   0x1   :  { %s16_s17 = sshll.u32 %s8255_s1, 4  ;;  %s18_s19 = sshll.u32 %s4442_s18, 4  ;;  %s17_s17 = int_to_ptr.hbm [resolvable:$true] %s16_s17  ;;  %s19_s19 = int_to_ptr.vmem [resolvable:$true] %s18_s19 }
   0x2   :  { %s4444_s21 = smov 32  }
   0x3   :  { %24 = dma.hbm_to_vmem [thread:$0]  %s17_s17, 25088, %s19_s19, [#allocation3], %s4443_s20, %s4443_s20, %s4444_s21  }
   0x4   :  { %4440 = dma.done.wait [#allocation3], 25088  }
   0x5   :  { %4441 = vsyncadd [#allocation3], 4294942208  ;;  %v8259_v0 = vmov 0   ;;  %v332_v1 = vld [vmem:[#allocation2 + $0x200] sm:$0xff]  ;;  %v4479_v2 = vld [vmem:[#allocation2 + $0x208] sm:$0xff] }
   0x6   :  { %3536 = vset.pattern.permute.xlu0 %v8259_v0  ;;  %3538 = vset.pattern.permute.xlu1 %v8259_v0  ;;  %v334_v3 = vld [vmem:[#allocation2 + $0x210] sm:$0xff]  ;;  %v4482_v4 = vld [vmem:[#allocation2 + $0x218] sm:$0xff]  ;;  %v328_v5 = vld [vmem:[#allocation2 + $0x1e0] sm:$0xff] }
   0x7   :  { %3540 = vset.pattern.permute.xlu2 %v8259_v0  ;;  %466 = vmatpush.msra.mxu0 %v332_v1  ;;  %v4484_v6 = vld [vmem:[#allocation2 + $0x1e8] sm:$0xff]  ;;  %v330_v7 = vld [vmem:[#allocation2 + $0x1f0] sm:$0xff]  ;;  %v4487_v8 = vld [vmem:[#allocation2 + $0x1f8] sm:$0xff] }
   0x8   :  { %486 = vmatpush.msra.mxu1 %v4479_v2  ;;  %506 = vmatpush.msra.mxu2 %v334_v3  ;;  %v324_v9 = vld [vmem:[#allocation2 + $0x1c0] sm:$0xff]  ;;  %v4490_v10 = vld [vmem:[#allocation2 + $0x1c8] sm:$0xff]  ;;  %v326_v11 = vld [vmem:[#allocation2 + $0x1d0] sm:$0xff] }
   0x9   :  { %526 = vmatpush.msra.mxu3 %v4482_v4  ;;  %467 = vmatpush.msra.mxu0 %v328_v5  ;;  %v4492_v12 = vld [vmem:[#allocation2 + $0x1d8] sm:$0xff]  ;;  %v320_v13 = vld [vmem:[#allocation2 + $0x1a0] sm:$0xff]  ;;  %v4495_v14 = vld [vmem:[#allocation2 + $0x1a8] sm:$0xff]  ;;  %v8261_v5 = vmov 1  }
   0xa   :  { %487 = vmatpush.msra.mxu1 %v4484_v6  ;;  %507 = vmatpush.msra.mxu2 %v330_v7  ;;  %v322_v15 = vld [vmem:[#allocation2 + $0x1b0] sm:$0xff]  ;;  %v4498_v16 = vld [vmem:[#allocation2 + $0x1b8] sm:$0xff]  ;;  %v316_v17 = vld [vmem:[#allocation2 + $0x180] sm:$0xff] }
   0xb   :  { %527 = vmatpush.msra.mxu3 %v4487_v8  ;;  %468 = vmatpush.msra.mxu0 %v324_v9  ;;  %v4501_v18 = vld [vmem:[#allocation2 + $0x188] sm:$0xff]  ;;  %v318_v19 = vld [vmem:[#allocation2 + $0x190] sm:$0xff]  ;;  %v4504_v20 = vld [vmem:[#allocation2 + $0x198] sm:$0xff]  ;;  %v8263_v9 = vmov 0.0  }
   0xc   :  { %488 = vmatpush.msra.mxu1 %v4490_v10  ;;  %508 = vmatpush.msra.mxu2 %v326_v11  ;;  %v312_v21 = vld [vmem:[#allocation2 + $0x160] sm:$0xff]  ;;  %v4507_v22 = vld [vmem:[#allocation2 + $0x168] sm:$0xff]  ;;  %v314_v23 = vld [vmem:[#allocation2 + $0x170] sm:$0xff] }
   0xd   :  { %528 = vmatpush.msra.mxu3 %v4492_v12  ;;  %469 = vmatpush.msra.mxu0 %v320_v13  ;;  %v4510_v24 = vld [vmem:[#allocation2 + $0x178] sm:$0xff]  ;;  %v308_v25 = vld [vmem:[#allocation2 + $0x140] sm:$0xff]  ;;  %v4513_v26 = vld [vmem:[#allocation2 + $0x148] sm:$0xff] }
   0xe   :  { %489 = vmatpush.msra.mxu1 %v4495_v14  ;;  %509 = vmatpush.msra.mxu2 %v322_v15  ;;  %v310_v27 = vld [vmem:[#allocation2 + $0x150] sm:$0xff]  ;;  %v4516_v28 = vld [vmem:[#allocation2 + $0x158] sm:$0xff]  ;;  %v304_v29 = vld [vmem:[#allocation2 + $0x120] sm:$0xff] }
   0xf   :  { %529 = vmatpush.msra.mxu3 %v4498_v16  ;;  %470 = vmatpush.msra.mxu0 %v316_v17  ;;  %v4519_v30 = vld [vmem:[#allocation2 + $0x128] sm:$0xff]  ;;  %v306_v31 = vld [vmem:[#allocation2 + $0x130] sm:$0xff]  ;;  %v4522_v32 = vld [vmem:[#allocation2 + $0x138] sm:$0xff] }
  0x10   :  { %490 = vmatpush.msra.mxu1 %v4501_v18  ;;  %510 = vmatpush.msra.mxu2 %v318_v19  ;;  %v300_v33 = vld [vmem:[#allocation2 + $0x100] sm:$0xff]  ;;  %v4525_v34 = vld [vmem:[#allocation2 + $0x108] sm:$0xff]  ;;  %v302_v35 = vld [vmem:[#allocation2 + $0x110] sm:$0xff] }
  0x11   :  { %530 = vmatpush.msra.mxu3 %v4504_v20  ;;  %471 = vmatpush.msra.mxu0 %v312_v21  ;;  %v4528_v36 = vld [vmem:[#allocation2 + $0x118] sm:$0xff]  ;;  %v296_v37 = vld [vmem:[#allocation2 + $0xe0] sm:$0xff]  ;;  %v4531_v38 = vld [vmem:[#allocation2 + $0xe8] sm:$0xff] }
  0x12   :  { %491 = vmatpush.msra.mxu1 %v4507_v22  ;;  %511 = vmatpush.msra.mxu2 %v314_v23  ;;  %v298_v39 = vld [vmem:[#allocation2 + $0xf0] sm:$0xff]  ;;  %v4534_v40 = vld [vmem:[#allocation2 + $0xf8] sm:$0xff]  ;;  %v292_v41 = vld [vmem:[#allocation2 + $0xc0] sm:$0xff] }
  0x13   :  { %531 = vmatpush.msra.mxu3 %v4510_v24  ;;  %472 = vmatpush.msra.mxu0 %v308_v25  ;;  %v4537_v42 = vld [vmem:[#allocation2 + $0xc8] sm:$0xff]  ;;  %v294_v43 = vld [vmem:[#allocation2 + $0xd0] sm:$0xff]  ;;  %v4540_v44 = vld [vmem:[#allocation2 + $0xd8] sm:$0xff] }
  0x14   :  { %492 = vmatpush.msra.mxu1 %v4513_v26  ;;  %512 = vmatpush.msra.mxu2 %v310_v27  ;;  %v288_v45 = vld [vmem:[#allocation2 + $0xa0] sm:$0xff]  ;;  %v4543_v46 = vld [vmem:[#allocation2 + $0xa8] sm:$0xff]  ;;  %v290_v47 = vld [vmem:[#allocation2 + $0xb0] sm:$0xff] }
  0x15   :  { %532 = vmatpush.msra.mxu3 %v4516_v28  ;;  %473 = vmatpush.msra.mxu0 %v304_v29  ;;  %v4546_v48 = vld [vmem:[#allocation2 + $0xb8] sm:$0xff]  ;;  %v33_v49 = vld [vmem:[%s8254_s0] sm:$0xff]  ;;  %v4553_v51 = vld [vmem:[#allocation2 + $0x88] sm:$0xff] }
  0x16   :  { %493 = vmatpush.msra.mxu1 %v4519_v30  ;;  %513 = vmatpush.msra.mxu2 %v306_v31  ;;  %v284_v50 = vld [vmem:[#allocation2 + $0x80] sm:$0xff]  ;;  %v286_v52 = vld [vmem:[#allocation2 + $0x90] sm:$0xff]  ;;  %v4556_v53 = vld [vmem:[#allocation2 + $0x98] sm:$0xff] }
  0x17   :  { %533 = vmatpush.msra.mxu3 %v4522_v32  ;;  %474 = vmatpush.msra.mxu0 %v300_v33  ;;  %v280_v54 = vld [vmem:[#allocation2 + $0x60] sm:$0xff]  ;;  %v4558_v55 = vld [vmem:[#allocation2 + $0x68] sm:$0xff]  ;;  %v282_v56 = vld [vmem:[#allocation2 + $0x70] sm:$0xff] }
  0x18   :  { %494 = vmatpush.msra.mxu1 %v4525_v34  ;;  %514 = vmatpush.msra.mxu2 %v302_v35  ;;  %v4561_v57 = vld [vmem:[#allocation2 + $0x78] sm:$0xff]  ;;  %v276_v58 = vld [vmem:[#allocation2 + $0x40] sm:$0xff]  ;;  %v4564_v59 = vld [vmem:[#allocation2 + $0x48] sm:$0xff] }
  0x19   :  { %534 = vmatpush.msra.mxu3 %v4528_v36  ;;  %475 = vmatpush.msra.mxu0 %v296_v37  ;;  %v278_v60 = vld [vmem:[#allocation2 + $0x50] sm:$0xff]  ;;  %v4567_v61 = vld [vmem:[#allocation2 + $0x58] sm:$0xff]  ;;  %v272_v62 = vld [vmem:[#allocation2 + $0x20] sm:$0xff] }
  0x1a   :  { %495 = vmatpush.msra.mxu1 %v4531_v38  ;;  %515 = vmatpush.msra.mxu2 %v298_v39  ;;  %v4570_v63 = vld [vmem:[#allocation2 + $0x28] sm:$0xff]  ;;  %v274_v1 = vld [vmem:[#allocation2 + $0x30] sm:$0xff]  ;;  %v4573_v3 = vld [vmem:[#allocation2 + $0x38] sm:$0xff] }
  0x1b   :  { %535 = vmatpush.msra.mxu3 %v4534_v40  ;;  %476 = vmatpush.msra.mxu0 %v292_v41  ;;  %v4579_v7 = vld [vmem:[#allocation2 + $0x600] sm:$0xff]  ;;  %v4583_v11 = vld [vmem:[#allocation2 + $0x608] sm:$0xff] }
  0x1c   :  { %496 = vmatpush.msra.mxu1 %v4537_v42  ;;  %516 = vmatpush.msra.mxu2 %v294_v43  ;;  %v4587_v13 = vld [vmem:[#allocation2 + $0x5e0] sm:$0xff]  ;;  %v4590_v15 = vld [vmem:[#allocation2 + $0x5e8] sm:$0xff] }
  0x1d   :  { %536 = vmatpush.msra.mxu3 %v4540_v44  ;;  %477 = vmatpush.msra.mxu0 %v288_v45  ;;  %v4593_v17 = vld [vmem:[#allocation2 + $0x5c0] sm:$0xff]  ;;  %v4596_v19 = vld [vmem:[#allocation2 + $0x5c8] sm:$0xff] }
  0x1e   :  { %497 = vmatpush.msra.mxu1 %v4543_v46  ;;  %517 = vmatpush.msra.mxu2 %v290_v47  ;;  %v4599_v21 = vld [vmem:[#allocation2 + $0x5a0] sm:$0xff]  ;;  %v4602_v23 = vld [vmem:[#allocation2 + $0x5a8] sm:$0xff] }
  0x1f   :  { %537 = vmatpush.msra.mxu3 %v4546_v48  ;;  %45 = vperm.xlu0 %3536, %v33_v49   ;;  %v4605_v25 = vld [vmem:[#allocation2 + $0x580] sm:$0xff]  ;;  %v4608_v27 = vld [vmem:[#allocation2 + $0x588] sm:$0xff] }
  0x20   :  { %478 = vmatpush.msra.mxu0 %v284_v50  ;;  %498 = vmatpush.msra.mxu1 %v4553_v51  ;;  %v4611_v29 = vld [vmem:[#allocation2 + $0x560] sm:$0xff]  ;;  %v4614_v31 = vld [vmem:[#allocation2 + $0x568] sm:$0xff] }
  0x21   :  { %518 = vmatpush.msra.mxu2 %v286_v52  ;;  %538 = vmatpush.msra.mxu3 %v4556_v53  ;;  %v4618_v33 = vld [vmem:[#allocation2 + $0x540] sm:$0xff]  ;;  %v4621_v35 = vld [vmem:[#allocation2 + $0x548] sm:$0xff] }
  0x22   :  { %479 = vmatpush.msra.mxu0 %v280_v54  ;;  %499 = vmatpush.msra.mxu1 %v4558_v55  ;;  %v4624_v37 = vld [vmem:[#allocation2 + $0x520] sm:$0xff]  ;;  %v4627_v39 = vld [vmem:[#allocation2 + $0x528] sm:$0xff] }
  0x23   :  { %519 = vmatpush.msra.mxu2 %v282_v56  ;;  %539 = vmatpush.msra.mxu3 %v4561_v57  ;;  %v4630_v41 = vld [vmem:[#allocation2 + $0x500] sm:$0xff]  ;;  %v4633_v43 = vld [vmem:[#allocation2 + $0x508] sm:$0xff] }
  0x24   :  { %480 = vmatpush.msra.mxu0 %v276_v58  ;;  %500 = vmatpush.msra.mxu1 %v4564_v59  ;;  %v4636_v45 = vld [vmem:[#allocation2 + $0x4e0] sm:$0xff]  ;;  %v4639_v47 = vld [vmem:[#allocation2 + $0x4e8] sm:$0xff] }
  0x25   :  { %520 = vmatpush.msra.mxu2 %v278_v60  ;;  %540 = vmatpush.msra.mxu3 %v4567_v61  ;;  %8799 = vst [vmem:[#allocation5_spill] sm:$0xff] %v4636_v45  ;;  %v4645_v50 = vld [vmem:[#allocation2 + $0x4c8] sm:$0xff]  ;;  %v4648_v52 = vld [vmem:[#allocation2 + $0x4a0] sm:$0xff] }
  0x26   :  { %481 = vmatpush.msra.mxu0 %v272_v62  ;;  %501 = vmatpush.msra.mxu1 %v4570_v63  ;;  %8800 = vst [vmem:[#allocation6_spill] sm:$0xff] %v4639_v47  ;;  %v4651_v54 = vld [vmem:[#allocation2 + $0x4a8] sm:$0xff]  ;;  %v4654_v56 = vld [vmem:[#allocation2 + $0x480] sm:$0xff] }
  0x27   :  { %521 = vmatpush.msra.mxu2 %v274_v1  ;;  %541 = vmatpush.msra.mxu3 %v4573_v3  ;;  %8802 = vst [vmem:[#allocation8_spill] sm:$0xff] %v4645_v50  ;;  %v4657_v58 = vld [vmem:[#allocation2 + $0x488] sm:$0xff]  ;;  %v4660_v60 = vld [vmem:[#allocation2 + $0x460] sm:$0xff] }
  0x28   :  { %3537 = vset.pattern.permute.xlu0 %v8261_v5  ;;  %482 = vmatmul.f32.vlgmr.msra.gmra.mxu0 %v8263_v9  ;;  %8803 = vst [vmem:[#allocation9_spill] sm:$0xff] %v4648_v52  ;;  %v4663_v62 = vld [vmem:[#allocation2 + $0x468] sm:$0xff]  ;;  %v4666_v1 = vld [vmem:[#allocation2 + $0x440] sm:$0xff] }
  0x29   :  { %502 = vmatmul.f32.vlgmr.msra.gmra.mxu1 %v8263_v9  ;;  %522 = vmatmul.f32.vlgmr.msra.gmra.mxu2 %v8263_v9  ;;  %8804 = vst [vmem:[#allocation10_spill] sm:$0xff] %v4651_v54  ;;  %v4672_v5 = vld [vmem:[#allocation2 + $0x420] sm:$0xff] }
  0x2a   :  { %542 = vmatmul.f32.vlgmr.msra.gmra.mxu3 %v8263_v9  ;;  %168 = vperm.xlu0 %3537, %v33_v49   ;;  %v4642_v49 = vld [vmem:[#allocation2 + $0x4c0] sm:$0xff]  ;;  %8805 = vst [vmem:[#allocation11_spill] sm:$0xff] %v4654_v56  ;;  %v4675_v9 = vld [vmem:[#allocation2 + $0x428] sm:$0xff] }
  0x2b   :  { %642 = vmatpush.msrb.mxu1 %v4579_v7  ;;  %682 = vmatpush.msrb.mxu3 %v4583_v11  ;;  %8801 = vst [vmem:[#allocation7_spill] sm:$0xff] %v4642_v49 }
  0x2c   :  { %8806 = vst [vmem:[#allocation12_spill] sm:$0xff] %v4657_v58 }
  0x2d   :  { %643 = vmatpush.msrb.mxu1 %v4587_v13  ;;  %683 = vmatpush.msrb.mxu3 %v4590_v15  ;;  %8807 = vst [vmem:[#allocation13_spill] sm:$0xff] %v4660_v60 }
  0x2e   :  { %8808 = vst [vmem:[#allocation14_spill] sm:$0xff] %v4663_v62 }
  0x2f   :  { %644 = vmatpush.msrb.mxu1 %v4593_v17  ;;  %684 = vmatpush.msrb.mxu3 %v4596_v19  ;;  %8809 = vst [vmem:[#allocation15_spill] sm:$0xff] %v4666_v1 }
  0x30   :  { %8811 = vst [vmem:[#allocation17_spill] sm:$0xff] %v4672_v5 }
  0x31   :  { %645 = vmatpush.msrb.mxu1 %v4599_v21  ;;  %685 = vmatpush.msrb.mxu3 %v4602_v23  ;;  %8812 = vst [vmem:[#allocation18_spill] sm:$0xff] %v4675_v9 }
  0x32   :  { %3543 = vset.pattern.permute.xlu0 %v8259_v0  ;;  %v4669_v0 = vld [vmem:[#allocation2 + $0x448] sm:$0xff] }
  0x33   :  { %646 = vmatpush.msrb.mxu1 %v4605_v25  ;;  %686 = vmatpush.msrb.mxu3 %v4608_v27  ;;  %8810 = vst [vmem:[#allocation16_spill] sm:$0xff] %v4669_v0 }
  0x35   :  { %647 = vmatpush.msrb.mxu1 %v4611_v29  ;;  %687 = vmatpush.msrb.mxu3 %v4614_v31 }
  0x37   :  { %648 = vmatpush.msrb.mxu1 %v4618_v33  ;;  %688 = vmatpush.msrb.mxu3 %v4621_v35 }
  0x39   :  { %649 = vmatpush.msrb.mxu1 %v4624_v37  ;;  %689 = vmatpush.msrb.mxu3 %v4627_v39 }
  0x3b   :  { %650 = vmatpush.msrb.mxu1 %v4630_v41  ;;  %690 = vmatpush.msrb.mxu3 %v4633_v43 }
  0x3d   :  { %651 = vmatpush.msrb.mxu1 %v4636_v45  ;;  %691 = vmatpush.msrb.mxu3 %v4639_v47  ;;  %v4964_v45 = vld [vmem:[#allocation2 + $0x358] sm:$0xff] }
  0x3f   :  { %652 = vmatpush.msrb.mxu1 %v4642_v49  ;;  %692 = vmatpush.msrb.mxu3 %v4645_v50  ;;  %v4710_v50 = vld [vmem:[#allocation2 + $0x5d8] sm:$0xff]  ;;  %v4774_v49 = vld [vmem:[#allocation2 + $0x300] sm:$0xff] }
  0x40   :  { %8825 = vst [vmem:[#allocation30_spill] sm:$0xff] %v4710_v50 }
  0x41   :  { %653 = vmatpush.msrb.mxu1 %v4648_v52  ;;  %693 = vmatpush.msrb.mxu3 %v4651_v54  ;;  %v4700_v54 = vld [vmem:[#allocation2 + $0x5f8] sm:$0xff]  ;;  %v4702_v52 = vld [vmem:[#allocation2 + $0x3c0] sm:$0xff]  ;;  %8846 = vst [vmem:[#allocation51_spill] sm:$0xff] %v4774_v49 }
  0x42   :  { %8821 = vst [vmem:[#allocation26_spill] sm:$0xff] %v4700_v54 }
  0x43   :  { %654 = vmatpush.msrb.mxu1 %v4654_v56  ;;  %694 = vmatpush.msrb.mxu3 %v4657_v58  ;;  %v8813_v58 = vmov 0.0   ;;  %v4684_v56 = vld [vmem:[#allocation2 + $0x408] sm:$0xff]  ;;  %8822 = vst [vmem:[#allocation27_spill] sm:$0xff] %v4702_v52 }
  0x44   :  { %8815 = vst [vmem:[#allocation20_spill] sm:$0xff] %v4684_v56  ;;  %662 = vmatpush.msrb.mxu2 %v4684_v56  ;;  %v4706_v56 = vld [vmem:[#allocation2 + $0x3c8] sm:$0xff] }
  0x45   :  { %655 = vmatpush.msrb.mxu1 %v4660_v60  ;;  %695 = vmatpush.msrb.mxu3 %v4663_v62  ;;  %v4682_v60 = vld [vmem:[#allocation2 + $0x400] sm:$0xff]  ;;  %v4686_v62 = vld [vmem:[#allocation2 + $0x610] sm:$0xff]  ;;  %8823 = vst [vmem:[#allocation28_spill] sm:$0xff] %v4706_v56 }
  0x46   :  { %8814 = vst [vmem:[#allocation19_spill] sm:$0xff] %v4682_v60  ;;  %622 = vmatpush.msrb.mxu0 %v4682_v60  ;;  %v4708_v60 = vld [vmem:[#allocation2 + $0x5d0] sm:$0xff] }
  0x47   :  { %656 = vmatpush.msrb.mxu1 %v4666_v1  ;;  %696 = vmatpush.msrb.mxu3 %v4669_v0  ;;  %8816 = vst [vmem:[#allocation21_spill] sm:$0xff] %v4686_v62  ;;  %v4690_v1 = vld [vmem:[#allocation2 + $0x618] sm:$0xff]  ;;  %v4692_v0 = vld [vmem:[#allocation2 + $0x3e0] sm:$0xff] }
  0x48   :  { %8817 = vst [vmem:[#allocation22_spill] sm:$0xff] %v4690_v1  ;;  %623 = vmatpush.msrb.mxu0 %v4692_v0 }
  0x49   :  { %657 = vmatpush.msrb.mxu1 %v4672_v5  ;;  %697 = vmatpush.msrb.mxu3 %v4675_v9  ;;  %8818 = vst [vmem:[#allocation23_spill] sm:$0xff] %v4692_v0  ;;  %v4694_v5 = vld [vmem:[#allocation2 + $0x3e8] sm:$0xff]  ;;  %v4698_v9 = vld [vmem:[#allocation2 + $0x5f0] sm:$0xff] }
  0x4a   :  { %658 = vmatmul.f32.vlgmr.msrb.gmra.mxu1 %v8813_v58  ;;  %698 = vmatmul.f32.vlgmr.msrb.gmra.mxu3 %v8813_v58  ;;  %8819 = vst [vmem:[#allocation24_spill] sm:$0xff] %v4694_v5  ;;  %v4720_v0 = vld [vmem:[#allocation2 + $0x5b0] sm:$0xff] }
  0x4b   :  { %722 = vmatpush.msra.mxu1 %v4686_v62  ;;  %762 = vmatpush.msra.mxu3 %v4690_v1  ;;  %8820 = vst [vmem:[#allocation25_spill] sm:$0xff] %v4698_v9  ;;  %v4714_v1 = vld [vmem:[#allocation2 + $0x3a0] sm:$0xff]  ;;  %v4716_v62 = vld [vmem:[#allocation2 + $0x3a8] sm:$0xff] }
  0x4c   :  { %663 = vmatpush.msrb.mxu2 %v4694_v5  ;;  %8824 = vst [vmem:[#allocation29_spill] sm:$0xff] %v4708_v60  ;;  %624 = vmatpush.msrb.mxu0 %v4702_v52  ;;  %v4722_v5 = vld [vmem:[#allocation2 + $0x5b8] sm:$0xff]  ;;  %v4732_v52 = vld [vmem:[#allocation2 + $0x388] sm:$0xff] }
  0x4d   :  { %723 = vmatpush.msra.mxu1 %v4698_v9  ;;  %763 = vmatpush.msra.mxu3 %v4700_v54  ;;  %8826 = vst [vmem:[#allocation31_spill] sm:$0xff] %v4714_v1  ;;  %v4730_v54 = vld [vmem:[#allocation2 + $0x380] sm:$0xff]  ;;  %v4758_v9 = vld [vmem:[#allocation2 + $0x558] sm:$0xff] }
  0x4e   :  { %8827 = vst [vmem:[#allocation32_spill] sm:$0xff] %v4716_v62  ;;  %664 = vmatpush.msrb.mxu2 %v4706_v56  ;;  %625 = vmatpush.msrb.mxu0 %v4714_v1  ;;  %v4734_v56 = vld [vmem:[#allocation2 + $0x590] sm:$0xff]  ;;  %v4742_v1 = vld [vmem:[#allocation2 + $0x368] sm:$0xff] }
  0x4f   :  { %8828 = vst [vmem:[#allocation33_spill] sm:$0xff] %v4720_v0  ;;  %724 = vmatpush.msra.mxu1 %v4708_v60  ;;  %764 = vmatpush.msra.mxu3 %v4710_v50  ;;  %v4738_v60 = vld [vmem:[#allocation2 + $0x598] sm:$0xff]  ;;  %v4740_v50 = vld [vmem:[#allocation2 + $0x360] sm:$0xff] }
  0x50   :  { %8829 = vst [vmem:[#allocation34_spill] sm:$0xff] %v4722_v5  ;;  %665 = vmatpush.msrb.mxu2 %v4716_v62  ;;  %626 = vmatpush.msrb.mxu0 %v4730_v54  ;;  %v4746_v62 = vld [vmem:[#allocation2 + $0x570] sm:$0xff] }
  0x51   :  { %725 = vmatpush.msra.mxu1 %v4720_v0  ;;  %765 = vmatpush.msra.mxu3 %v4722_v5  ;;  %8830 = vst [vmem:[#allocation35_spill] sm:$0xff] %v4730_v54  ;;  %v4748_v5 = vld [vmem:[#allocation2 + $0x578] sm:$0xff]  ;;  %v4750_v0 = vld [vmem:[#allocation2 + $0x340] sm:$0xff]  ;;  %v4756_v54 = vld [vmem:[#allocation2 + $0x550] sm:$0xff] }
  0x52   :  { %8831 = vst [vmem:[#allocation36_spill] sm:$0xff] %v4732_v52  ;;  %666 = vmatpush.msrb.mxu2 %v4732_v52  ;;  %627 = vmatpush.msrb.mxu0 %v4740_v50  ;;  %v4754_v52 = vld [vmem:[#allocation2 + $0x348] sm:$0xff] }
  0x53   :  { %8832 = vst [vmem:[#allocation37_spill] sm:$0xff] %v4734_v56  ;;  %726 = vmatpush.msra.mxu1 %v4734_v56  ;;  %766 = vmatpush.msra.mxu3 %v4738_v60  ;;  %v4764_v56 = vld [vmem:[#allocation2 + $0x328] sm:$0xff] }
  0x54   :  { %8833 = vst [vmem:[#allocation38_spill] sm:$0xff] %v4738_v60  ;;  %667 = vmatpush.msrb.mxu2 %v4742_v1  ;;  %v4762_v60 = vld [vmem:[#allocation2 + $0x320] sm:$0xff]  ;;  %628 = vmatpush.msrb.mxu0 %v4750_v0 }
  0x55   :  { %8834 = vst [vmem:[#allocation39_spill] sm:$0xff] %v4740_v50  ;;  %727 = vmatpush.msra.mxu1 %v4746_v62  ;;  %767 = vmatpush.msra.mxu3 %v4748_v5  ;;  %v4768_v50 = vld [vmem:[#allocation2 + $0x530] sm:$0xff] }
  0x56   :  { %8835 = vst [vmem:[#allocation40_spill] sm:$0xff] %v4742_v1  ;;  %668 = vmatpush.msrb.mxu2 %v4754_v52  ;;  %v4770_v1 = vld [vmem:[#allocation2 + $0x538] sm:$0xff]  ;;  %629 = vmatpush.msrb.mxu0 %v4762_v60 }
  0x57   :  { %8836 = vst [vmem:[#allocation41_spill] sm:$0xff] %v4746_v62  ;;  %728 = vmatpush.msra.mxu1 %v4756_v54  ;;  %768 = vmatpush.msra.mxu3 %v4758_v9  ;;  %v4776_v62 = vld [vmem:[#allocation2 + $0x308] sm:$0xff] }
  0x58   :  { %8837 = vst [vmem:[#allocation42_spill] sm:$0xff] %v4748_v5  ;;  %669 = vmatpush.msrb.mxu2 %v4764_v56  ;;  %v4780_v5 = vld [vmem:[#allocation2 + $0x510] sm:$0xff]  ;;  %630 = vmatpush.msrb.mxu0 %v4774_v49  ;;  %v4804_v49 = vld [vmem:[#allocation2 + $0x2c8] sm:$0xff] }
  0x59   :  { %8838 = vst [vmem:[#allocation43_spill] sm:$0xff] %v4750_v0  ;;  %v4782_v0 = vld [vmem:[#allocation2 + $0x518] sm:$0xff]  ;;  %729 = vmatpush.msra.mxu1 %v4768_v50  ;;  %769 = vmatpush.msra.mxu3 %v4770_v1 }
  0x5a   :  { %8839 = vst [vmem:[#allocation44_spill] sm:$0xff] %v4754_v52  ;;  %670 = vmatpush.msrb.mxu2 %v4776_v62  ;;  %v4790_v52 = vld [vmem:[#allocation2 + $0x2e0] sm:$0xff] }
  0x5b   :  { %8840 = vst [vmem:[#allocation45_spill] sm:$0xff] %v4756_v54  ;;  %730 = vmatpush.msra.mxu1 %v4780_v5  ;;  %770 = vmatpush.msra.mxu3 %v4782_v0  ;;  %v4884_v54 = vld [vmem:[#allocation2 + $0x3f8] sm:$0xff] }
  0x5c   :  { %8841 = vst [vmem:[#allocation46_spill] sm:$0xff] %v4758_v9  ;;  %631 = vmatpush.msrb.mxu0 %v4790_v52  ;;  %v4877_v9 = vld [vmem:[#allocation2] ss:$8 sm:$0xf] }
  0x5d   :  { %8842 = vst [vmem:[#allocation47_spill] sm:$0xff] %v4762_v60  ;;  %v4792_v60 = vld [vmem:[#allocation2 + $0x2e8] sm:$0xff]  ;;  %v4951_v47 = vperm.slane %v4877_v9, 2 }
  0x5e   :  { %8843 = vst [vmem:[#allocation48_spill] sm:$0xff] %v4764_v56  ;;  %v4794_v56 = vld [vmem:[#allocation2 + $0x4f0] sm:$0xff]  ;;  %671 = vmatpush.msrb.mxu2 %v4792_v60 }
  0x5f   :  { %8844 = vst [vmem:[#allocation49_spill] sm:$0xff] %v4768_v50  ;;  %v4798_v50 = vld [vmem:[#allocation2 + $0x4f8] sm:$0xff]  ;;  %731 = vmatpush.msra.mxu1 %v4794_v56 }
  0x60   :  { %8845 = vst [vmem:[#allocation50_spill] sm:$0xff] %v4770_v1  ;;  %771 = vmatpush.msra.mxu3 %v4798_v50  ;;  %672 = vmatpush.msrb.mxu2 %v4804_v49  ;;  %v4871_v1 = vld [vmem:[#allocation2 + $0x438] sm:$0xff] }
  0x61   :  { %8847 = vst [vmem:[#allocation52_spill] sm:$0xff] %v4776_v62  ;;  %v4802_v62 = vld [vmem:[#allocation2 + $0x2c0] sm:$0xff] }
  0x62   :  { %8848 = vst [vmem:[#allocation53_spill] sm:$0xff] %v4780_v5  ;;  %632 = vmatpush.msrb.mxu0 %v4802_v62  ;;  %v4810_v5 = vld [vmem:[#allocation2 + $0x4d8] sm:$0xff] }
  0x63   :  { %8849 = vst [vmem:[#allocation54_spill] sm:$0xff] %v4782_v0  ;;  %v4806_v0 = vld [vmem:[#allocation2 + $0x4d0] sm:$0xff]  ;;  %772 = vmatpush.msra.mxu3 %v4810_v5 }
  0x64   :  { %8850 = vst [vmem:[#allocation55_spill] sm:$0xff] %v4790_v52  ;;  %732 = vmatpush.msra.mxu1 %v4806_v0  ;;  %v4816_v52 = vld [vmem:[#allocation2 + $0x2a8] sm:$0xff] }
  0x65   :  { %8851 = vst [vmem:[#allocation56_spill] sm:$0xff] %v4792_v60  ;;  %v4814_v60 = vld [vmem:[#allocation2 + $0x2a0] sm:$0xff]  ;;  %673 = vmatpush.msrb.mxu2 %v4816_v52 }
  0x66   :  { %8852 = vst [vmem:[#allocation57_spill] sm:$0xff] %v4794_v56  ;;  %633 = vmatpush.msrb.mxu0 %v4814_v60  ;;  %v4822_v56 = vld [vmem:[#allocation2 + $0x4b8] sm:$0xff] }
  0x67   :  { %8853 = vst [vmem:[#allocation58_spill] sm:$0xff] %v4798_v50  ;;  %v4818_v50 = vld [vmem:[#allocation2 + $0x4b0] sm:$0xff]  ;;  %773 = vmatpush.msra.mxu3 %v4822_v56 }
  0x68   :  { %8854 = vst [vmem:[#allocation59_spill] sm:$0xff] %v4802_v62  ;;  %733 = vmatpush.msra.mxu1 %v4818_v50  ;;  %v4828_v62 = vld [vmem:[#allocation2 + $0x288] sm:$0xff] }
  0x69   :  { %8855 = vst [vmem:[#allocation60_spill] sm:$0xff] %v4804_v49  ;;  %v4826_v49 = vld [vmem:[#allocation2 + $0x280] sm:$0xff]  ;;  %674 = vmatpush.msrb.mxu2 %v4828_v62 }
  0x6a   :  { %8856 = vst [vmem:[#allocation61_spill] sm:$0xff] %v4806_v0  ;;  %634 = vmatpush.msrb.mxu0 %v4826_v49  ;;  %v4834_v0 = vld [vmem:[#allocation2 + $0x498] sm:$0xff] }
  0x6b   :  { %8857 = vst [vmem:[#allocation62_spill] sm:$0xff] %v4810_v5  ;;  %v4830_v5 = vld [vmem:[#allocation2 + $0x490] sm:$0xff]  ;;  %774 = vmatpush.msra.mxu3 %v4834_v0 }
  0x6c   :  { %8858 = vst [vmem:[#allocation63_spill] sm:$0xff] %v4814_v60  ;;  %734 = vmatpush.msra.mxu1 %v4830_v5  ;;  %v4840_v60 = vld [vmem:[#allocation2 + $0x268] sm:$0xff] }
  0x6d   :  { %8859 = vst [vmem:[#allocation64_spill] sm:$0xff] %v4816_v52  ;;  %v4838_v52 = vld [vmem:[#allocation2 + $0x260] sm:$0xff]  ;;  %675 = vmatpush.msrb.mxu2 %v4840_v60 }
  0x6e   :  { %8860 = vst [vmem:[#allocation65_spill] sm:$0xff] %v4818_v50  ;;  %635 = vmatpush.msrb.mxu0 %v4838_v52  ;;  %v4846_v50 = vld [vmem:[#allocation2 + $0x478] sm:$0xff] }
  0x6f   :  { %8861 = vst [vmem:[#allocation66_spill] sm:$0xff] %v4822_v56  ;;  %v4842_v56 = vld [vmem:[#allocation2 + $0x470] sm:$0xff]  ;;  %775 = vmatpush.msra.mxu3 %v4846_v50 }
  0x70   :  { %8862 = vst [vmem:[#allocation67_spill] sm:$0xff] %v4826_v49  ;;  %735 = vmatpush.msra.mxu1 %v4842_v56  ;;  %v4852_v49 = vld [vmem:[#allocation2 + $0x248] sm:$0xff] }
  0x71   :  { %8863 = vst [vmem:[#allocation68_spill] sm:$0xff] %v4828_v62  ;;  %v4850_v62 = vld [vmem:[#allocation2 + $0x240] sm:$0xff]  ;;  %676 = vmatpush.msrb.mxu2 %v4852_v49 }
  0x72   :  { %8864 = vst [vmem:[#allocation69_spill] sm:$0xff] %v4830_v5  ;;  %636 = vmatpush.msrb.mxu0 %v4850_v62  ;;  %v4858_v5 = vld [vmem:[#allocation2 + $0x458] sm:$0xff] }
  0x73   :  { %8865 = vst [vmem:[#allocation70_spill] sm:$0xff] %v4834_v0  ;;  %v4854_v0 = vld [vmem:[#allocation2 + $0x450] sm:$0xff]  ;;  %776 = vmatpush.msra.mxu3 %v4858_v5 }
  0x74   :  { %8866 = vst [vmem:[#allocation71_spill] sm:$0xff] %v4838_v52  ;;  %736 = vmatpush.msra.mxu1 %v4854_v0  ;;  %v4863_v52 = vld [vmem:[#allocation2 + $0x228] sm:$0xff] }
  0x75   :  { %8867 = vst [vmem:[#allocation72_spill] sm:$0xff] %v4840_v60  ;;  %v4861_v60 = vld [vmem:[#allocation2 + $0x220] sm:$0xff]  ;;  %677 = vmatpush.msrb.mxu2 %v4863_v52  ;;  %777 = vmatpush.msra.mxu3 %v4871_v1 }
  0x76   :  { %8868 = vst [vmem:[#allocation73_spill] sm:$0xff] %v4842_v56  ;;  %v4865_v56 = vld [vmem:[#allocation2 + $0x430] sm:$0xff]  ;;  %637 = vmatpush.msrb.mxu0 %v4861_v60  ;;  %778 = vmatmul.f32.vlgmr.msra.gmra.mxu3 %v8813_v58 }
  0x77   :  { %8869 = vst [vmem:[#allocation74_spill] sm:$0xff] %v4846_v50  ;;  %737 = vmatpush.msra.mxu1 %v4865_v56  ;;  %905 = vmatpush.msrb.mxu3 %v4482_v4  ;;  %v4913_v4 = vld [vmem:[#allocation2 + $0x3b8] sm:$0xff] }
  0x78   :  { %8870 = vst [vmem:[#allocation75_spill] sm:$0xff] %v4850_v62  ;;  %v4873_v62 = vld [vmem:[#allocation2 + $0x410] sm:$0xff]  ;;  %738 = vmatmul.f32.vlgmr.msra.gmra.mxu1 %v8813_v58  ;;  %v5054_v58 = vld [vmem:[#allocation2 + $0x258] sm:$0xff] }
  0x79   :  { %8871 = vst [vmem:[#allocation76_spill] sm:$0xff] %v4852_v49  ;;  %v4875_v49 = vld [vmem:[#allocation2 + $0x418] sm:$0xff]  ;;  %702 = vmatpush.msra.mxu0 %v4873_v62  ;;  %865 = vmatpush.msrb.mxu1 %v4479_v2  ;;  %v4911_v2 = vld [vmem:[#allocation2 + $0x3b0] sm:$0xff] }
  0x7a   :  { %8872 = vst [vmem:[#allocation77_spill] sm:$0xff] %v4854_v0  ;;  %v4882_v0 = vld [vmem:[#allocation2 + $0x3f0] sm:$0xff]  ;;  %742 = vmatpush.msra.mxu2 %v4875_v49  ;;  %906 = vmatpush.msrb.mxu3 %v4487_v8 }
  0x7b   :  { %8873 = vst [vmem:[#allocation78_spill] sm:$0xff] %v4858_v5  ;;  %703 = vmatpush.msra.mxu0 %v4882_v0  ;;  %866 = vmatpush.msrb.mxu1 %v4484_v6  ;;  %v4924_v6 = vld [vmem:[#allocation2 + $0x390] sm:$0xff] }
  0x7c   :  { %8874 = vst [vmem:[#allocation79_spill] sm:$0xff] %v4861_v60  ;;  %v4889_v60 = vperm.slane %v4877_v9, 0  ;;  %743 = vmatpush.msra.mxu2 %v4884_v54  ;;  %907 = vmatpush.msrb.mxu3 %v4492_v12 }
  0x7d   :  { %8875 = vst [vmem:[#allocation80_spill] sm:$0xff] %v4863_v52  ;;  %v4893_v52 = vld [vmem:[#allocation2 + $0x3d0] sm:$0xff]  ;;  %867 = vmatpush.msrb.mxu1 %v4490_v10  ;;  %v4939_v10 = vld [vmem:[#allocation2 + $0x398] sm:$0xff] }
  0x7e   :  { %8876 = vst [vmem:[#allocation81_spill] sm:$0xff] %v4865_v56  ;;  %v4895_v56 = vld [vmem:[#allocation2 + $0x3d8] sm:$0xff]  ;;  %704 = vmatpush.msra.mxu0 %v4893_v52  ;;  %908 = vmatpush.msrb.mxu3 %v4498_v16 }
  0x7f   :  { %8877 = vst [vmem:[#allocation82_spill] sm:$0xff] %v4871_v1  ;;  %v4898_v1 = vperm.slane %v4877_v9, 1  ;;  %744 = vmatpush.msra.mxu2 %v4895_v56  ;;  %868 = vmatpush.msrb.mxu1 %v4495_v14 }
  0x80   :  { %8878 = vst [vmem:[#allocation83_spill] sm:$0xff] %v4873_v62  ;;  %v4903_v62 = vld [vmem:[%s8256_s2] ss:$2 sm:$0xf]  ;;  %705 = vmatpush.msra.mxu0 %v4911_v2  ;;  %909 = vmatpush.msrb.mxu3 %v4504_v20 }
  0x81   :  { %8879 = vst [vmem:[#allocation84_spill] sm:$0xff] %v4875_v49  ;;  %v4907_v49 = vld [vmem:[#allocation2 + $0x1] ss:$8 sm:$0xf]  ;;  %745 = vmatpush.msra.mxu2 %v4913_v4  ;;  %869 = vmatpush.msrb.mxu1 %v4501_v18  ;;  %v4977_v20 = vperm.slane %v4903_v62, 2 }
  0x82   :  { %8880 = vst [vmem:[#allocation85_spill] sm:$0xff] %v4882_v0  ;;  %v4920_v0 = vperm.slane %v4903_v62, 0  ;;  %706 = vmatpush.msra.mxu0 %v4924_v6  ;;  %910 = vmatpush.msrb.mxu3 %v4510_v24  ;;  %v4986_v24 = vld [vmem:[#allocation2 + $0x310] sm:$0xff] }
  0x83   :  { %8881 = vst [vmem:[#allocation86_spill] sm:$0xff] %v4884_v54  ;;  %v4929_v54 = vperm.slane %v4907_v49, 0  ;;  %746 = vmatpush.msra.mxu2 %v4939_v10  ;;  %870 = vmatpush.msrb.mxu1 %v4507_v22 }
  0x84   :  { %8882 = vst [vmem:[#allocation87_spill] sm:$0xff] %v4889_v60  ;;  %911 = vmatpush.msrb.mxu3 %v4516_v28 }
  0x85   :  { %8883 = vst [vmem:[#allocation88_spill] sm:$0xff] %v4893_v52  ;;  %v4948_v52 = vld [vmem:[#allocation2 + $0x378] sm:$0xff]  ;;  %871 = vmatpush.msrb.mxu1 %v4513_v26 }
  0x86   :  { %8884 = vst [vmem:[#allocation89_spill] sm:$0xff] %v4895_v56  ;;  %v4932_v56 = vperm.slane %v4903_v62, 1  ;;  %747 = vmatpush.msra.mxu2 %v4948_v52  ;;  %912 = vmatpush.msrb.mxu3 %v4522_v32  ;;  %v4996_v26 = vld [vmem:[#allocation2 + $0x2f8] sm:$0xff]  ;;  %v5013_v32 = vld [vmem:[#allocation2 + $0x2b0] sm:$0xff] }
  0x87   :  { %8885 = vst [vmem:[#allocation90_spill] sm:$0xff] %v4898_v1  ;;  %872 = vmatpush.msrb.mxu1 %v4519_v30  ;;  %v5007_v30 = vld [vmem:[#allocation2 + $0x2d8] sm:$0xff] }
  0x88   :  { %8886 = vst [vmem:[#allocation91_spill] sm:$0xff] %v4911_v2  ;;  %748 = vmatpush.msra.mxu2 %v4964_v45  ;;  %913 = vmatpush.msrb.mxu3 %v4528_v36 }
  0x89   :  { %8887 = vst [vmem:[#allocation92_spill] sm:$0xff] %v4913_v4  ;;  %873 = vmatpush.msrb.mxu1 %v4525_v34  ;;  %v5018_v34 = vperm.slane %v4877_v9, 3  ;;  %v5028_v9 = vld [vmem:[#allocation2 + $0x298] sm:$0xff] }
  0x8a   :  { %8888 = vst [vmem:[#allocation93_spill] sm:$0xff] %v4920_v0  ;;  %914 = vmatpush.msrb.mxu3 %v4534_v40  ;;  %v5026_v40 = vld [vmem:[#allocation2 + $0x290] sm:$0xff] }
  0x8b   :  { %8889 = vst [vmem:[#allocation94_spill] sm:$0xff] %v4924_v6  ;;  %v4962_v6 = vld [vmem:[#allocation2 + $0x350] sm:$0xff]  ;;  %874 = vmatpush.msrb.mxu1 %v4531_v38 }
  0x8c   :  { %8890 = vst [vmem:[#allocation95_spill] sm:$0xff] %v4929_v54  ;;  %915 = vmatpush.msrb.mxu3 %v4540_v44  ;;  %v5038_v44 = vperm.slane %v4907_v49, 3 }
  0x8d   :  { %8891 = vst [vmem:[#allocation96_spill] sm:$0xff] %v4932_v56  ;;  %875 = vmatpush.msrb.mxu1 %v4537_v42  ;;  %v5035_v42 = vperm.slane %v4903_v62, 3 }
  0x8e   :  { %8893 = vst [vmem:[#allocation98_spill] sm:$0xff] %v4948_v52  ;;  %916 = vmatpush.msrb.mxu3 %v4546_v48 }
  0x8f   :  { %8894 = vst [vmem:[#allocation99_spill] sm:$0xff] %v4951_v47  ;;  %876 = vmatpush.msrb.mxu1 %v4543_v46 }
  0x90   :  { %8895 = vst [vmem:[#allocation100_spill] sm:$0xff] %v4962_v6  ;;  %917 = vmatpush.msrb.mxu3 %v4556_v53  ;;  %v5069_v53 = vld [vmem:[#allocation2 + $0x230] sm:$0xff] }
  0x91   :  { %v4867_v50 = vpop.permute.xlu0 %45  ;;  %877 = vmatpush.msrb.mxu1 %v4553_v51  ;;  %v34_v51 = vld [vmem:[%s8254_s0 + $0x8] sm:$0xff] }
  0x92   :  { %v92_v5 = vmul.f32 %v4889_v60, %v4867_v50  ;;  %v93_v8 = vmul.f32 %v4898_v1, %v4867_v50  ;;  %v4935_v60 = vperm.slane %v4907_v49, 1  ;;  %v4946_v1 = vld [vmem:[#allocation2 + $0x370] sm:$0xff]  ;;  %v94_v18 = vmul.f32 %v4951_v47, %v4867_v50  ;;  %918 = vmatpush.msrb.mxu3 %v4561_v57  ;;  %50 = vperm.xlu1 %3538, %v34_v51  }
  0x93   :  { %707 = vmatpush.msra.mxu0 %v4946_v1  ;;  %878 = vmatpush.msrb.mxu1 %v4558_v55 }
  0x94   :  { %8892 = vst [vmem:[#allocation97_spill] sm:$0xff] %v4935_v60  ;;  %v133_v2 = vadd.f32 %v4920_v0, %v92_v5  ;;  %v134_v14 = vadd.f32 %v4932_v56, %v93_v8  ;;  %v4970_v5 = vld [vmem:[#allocation2 + $0x330] sm:$0xff]  ;;  %v4972_v8 = vld [vmem:[#allocation2 + $0x338] sm:$0xff]  ;;  %v135_v28 = vadd.f32 %v4977_v20, %v94_v18  ;;  %919 = vmatpush.msrb.mxu3 %v4567_v61 }
  0x95   :  { %708 = vmatpush.msra.mxu0 %v4962_v6  ;;  %749 = vmatpush.msra.mxu2 %v4972_v8  ;;  %v5042_v18 = vld [vmem:[#allocation2 + $0x270] sm:$0xff] }
  0x96   :  { %879 = vmatpush.msrb.mxu1 %v4564_v59  ;;  %920 = vmatpush.msrb.mxu3 %v4573_v3 }
  0x97   :  { %709 = vmatpush.msra.mxu0 %v4970_v5 }
  0x98   :  { %880 = vmatpush.msrb.mxu1 %v4570_v63  ;;  %1052 = vmatpush.msra.mxu3 %v4583_v11 }
  0x99   :  { %710 = vmatpush.msra.mxu0 %v4986_v24 }
  0x9a   :  { %1012 = vmatpush.msra.mxu1 %v4579_v7  ;;  %1053 = vmatpush.msra.mxu3 %v4590_v15 }
  0x9c   :  { %v4941_v12 = vpop.permute.xlu0 %168  ;;  %1013 = vmatpush.msra.mxu1 %v4587_v13  ;;  %1054 = vmatpush.msra.mxu3 %v4596_v19  ;;  %v8896_v13 = vmov 1  }
  0x9d   :  { %v208_v4 = vmul.f32 %v4929_v54, %v4941_v12  ;;  %v209_v16 = vmul.f32 %v4935_v60, %v4941_v12  ;;  %v4980_v54 = vperm.slane %v4907_v49, 2  ;;  %v4988_v60 = vld [vmem:[#allocation2 + $0x318] sm:$0xff]  ;;  %v5052_v49 = vld [vmem:[#allocation2 + $0x250] sm:$0xff]  ;;  %3539 = vset.pattern.permute.xlu1 %v8896_v13 }
  0x9e   :  { %750 = vmatpush.msra.mxu2 %v4988_v60  ;;  %1014 = vmatpush.msra.mxu1 %v4593_v17 }
  0x9f   :  { %v240_v22 = vadd.f32 %v208_v4, %v133_v2  ;;  %v241_v0 = vadd.f32 %v209_v16, %v134_v14  ;;  %v4994_v2 = vld [vmem:[#allocation2 + $0x2f0] sm:$0xff]  ;;  %v210_v4 = vmul.f32 %v4980_v54, %v4941_v12  ;;  %172 = vperm.xlu1 %3539, %v34_v51   ;;  %1055 = vmatpush.msra.mxu3 %v4602_v23 }
  0xa0   :  { %711 = vmatpush.msra.mxu0 %v4994_v2  ;;  %751 = vmatpush.msra.mxu2 %v4996_v26 }
  0xa1   :  { %v242_v36 = vadd.f32 %v210_v4, %v135_v28  ;;  %v211_v4 = vmul.f32 %v5038_v44, %v4941_v12  ;;  %1015 = vmatpush.msra.mxu1 %v4599_v21  ;;  %1056 = vmatpush.msra.mxu3 %v4608_v27 }
  0xa2   :  { %752 = vmatpush.msra.mxu2 %v5007_v30 }
  0xa3   :  { %1016 = vmatpush.msra.mxu1 %v4605_v25  ;;  %1057 = vmatpush.msra.mxu3 %v4614_v31 }
  0xa5   :  { %v483_v47 = vpop.f32.mrf.mxu0  ;;  %1017 = vmatpush.msra.mxu1 %v4611_v29  ;;  %1058 = vmatpush.msra.mxu3 %v4621_v35  ;;  %v8897_v29 = vmov 0   ;;  %v8898_v35 = vld [vmem:[#allocation5_spill] sm:$0xff] }
  0xa6   :  { %v503_v56 = vpop.f32.mrf.mxu1  ;;  %v546_v52 = vadd.f32 %v483_v47, %v240_v22  ;;  %v5044_v22 = vld [vmem:[#allocation2 + $0x278] sm:$0xff] }
  0xa7   :  { %v547_v6 = vadd.f32 %v503_v56, %v241_v0  ;;  %v5005_v0 = vld [vmem:[#allocation2 + $0x2d0] sm:$0xff]  ;;  %1018 = vmatpush.msra.mxu1 %v4618_v33  ;;  %1059 = vmatpush.msra.mxu3 %v4627_v39 }
  0xa8   :  { %v3482_v14 = vmul.f32 -1.442695, %v546_v52  ;;  %v5015_v52 = vld [vmem:[#allocation2 + $0x2b8] sm:$0xff]  ;;  %712 = vmatpush.msra.mxu0 %v5005_v0  ;;  %3542 = vset.pattern.permute.xlu1 %v8897_v29  ;;  %v5254_v29 = vld [vmem:[#allocation2 + $0x20] sm:$0xff] }
  0xa9   :  { %v3483_v47 = vmul.f32 -1.442695, %v547_v6  ;;  %753 = vmatpush.msra.mxu2 %v5015_v52  ;;  %v95_v6 = vmul.f32 %v5018_v34, %v4867_v50  ;;  %1019 = vmatpush.msra.mxu1 %v4624_v37  ;;  %v8899_v37 = vld [vmem:[#allocation6_spill] sm:$0xff] }
  0xaa   :  { %3550 = vpow2.f32 %v3482_v14  ;;  %713 = vmatpush.msra.mxu0 %v5013_v32  ;;  %v5074_v14 = vld [vmem:[#allocation2 + $0x238] sm:$0xff]  ;;  %1060 = vmatpush.msra.mxu3 %v4633_v43 }
  0xab   :  { %3552 = vpow2.f32 %v3483_v47  ;;  %754 = vmatpush.msra.mxu2 %v5028_v9  ;;  %v136_v28 = vadd.f32 %v5035_v42, %v95_v6  ;;  %1020 = vmatpush.msra.mxu1 %v4630_v41  ;;  %v8901_v41 = vld [vmem:[#allocation8_spill] sm:$0xff] }
  0xac   :  { %v523_v56 = vpop.f32.mrf.mxu2  ;;  %714 = vmatpush.msra.mxu0 %v5026_v40  ;;  %1061 = vmatpush.msra.mxu3 %v8899_v37  ;;  %v8915_v37 = vld [vmem:[#allocation26_spill] sm:$0xff] }
  0xad   :  { %v548_v38 = vadd.f32 %v523_v56, %v242_v36  ;;  %755 = vmatpush.msra.mxu2 %v5044_v22  ;;  %v543_v55 = vpop.f32.mrf.mxu3  ;;  %v243_v12 = vadd.f32 %v211_v4, %v136_v28  ;;  %1021 = vmatpush.msra.mxu1 %v8898_v35  ;;  %v5186_v35 = vld [vmem:[#allocation2 + $0x150] sm:$0xff] }
  0xae   :  { %715 = vmatpush.msra.mxu0 %v5042_v18  ;;  %1062 = vmatpush.msra.mxu3 %v8901_v41  ;;  %v8917_v41 = vld [vmem:[#allocation30_spill] sm:$0xff] }
  0xaf   :  { %v3484_v16 = vmul.f32 -1.442695, %v548_v38  ;;  %756 = vmatpush.msra.mxu2 %v5054_v58  ;;  %v549_v59 = vadd.f32 %v543_v55, %v243_v12 }
  0xb0   :  { %v3551_v46 = vpop.eup %3550  ;;  %716 = vmatpush.msra.mxu0 %v5052_v49 }
  0xb1   :  { %v3553_v48 = vpop.eup %3552  ;;  %v5048_v50 = vadd.f32 1.0, %v3551_v46  ;;  %3554 = vpow2.f32 %v3484_v16  ;;  %757 = vmatpush.msra.mxu2 %v5074_v14 }
  0xb2   :  { %v5056_v62 = vadd.f32 1.0, %v3553_v48  ;;  %717 = vmatpush.msra.mxu0 %v5069_v53 }
  0xb3   :  { %3556 = vrcp.f32 %v5048_v50  ;;  %v573_v7 = vand.u32 2147483648, %v5048_v50  ;;  %v571_v16 = vand.u32 2147483647, %v5048_v50  ;;  %vm567_vm2 = vweird.f32 %v5048_v50 }
  0xb4   :  { %3558 = vrcp.f32 %v5056_v62  ;;  %v588_v11 = vand.u32 2147483648, %v5056_v62  ;;  %v586_v17 = vand.u32 2147483647, %v5056_v62  ;;  %vm582_vm3 = vweird.f32 %v5056_v62 }
  0xb5   :  { %v574_v21 = vor.u32 1.1754944e-38, %v573_v7  ;;  %vm572_vm5 = vcmp.eq.f32.partialorder %v571_v16, 8.507059e+37  ;;  %v5138_v16 = vld [vmem:[#allocation2 + $0x210] sm:$0xff] }
  0xb6   :  { %v589_v4 = vor.u32 1.1754944e-38, %v588_v11  ;;  %vm587_vm7 = vcmp.eq.f32.partialorder %v586_v17, 8.507059e+37  ;;  %v8905_v11 = vld [vmem:[#allocation12_spill] sm:$0xff]  ;;  %v8906_v17 = vld [vmem:[#allocation13_spill] sm:$0xff] }
  0xb7   :  { %v3555_v57 = vpop.eup %3554 }
  0xb8   :  { %v5081_v47 = vadd.f32 1.0, %v3555_v57 }
  0xb9   :  { %v3557_v36 = vpop.eup %3556 }
  0xba   :  { %v3559_v61 = vpop.eup %3558  ;;  %v563_v56 = vmul.f32 %v3557_v36, %v5048_v50  ;;  %3560 = vrcp.f32 %v5081_v47  ;;  %vm568_vm0 = vweird.f32 %v3557_v36  ;;  %v603_v31 = vand.u32 2147483648, %v5081_v47 }
  0xbb   :  { %v578_v38 = vmul.f32 %v3559_v61, %v5056_v62  ;;  %3562 = vtanh.f32 %v549_v59  ;;  %vm583_vm1 = vweird.f32 %v3559_v61  ;;  %vm569_vm4 = vmor %vm567_vm2, %vm568_vm0  ;;  %vm597_vm9 = vweird.f32 %v5081_v47 }
  0xbc   :  { %v564_v63 = vsub.f32 1.0, %v563_v56  ;;  %vm584_vm6 = vmor %vm582_vm3, %vm583_vm1  ;;  %v601_v33 = vand.u32 2147483647, %v5081_v47  ;;  %v604_v56 = vor.u32 1.1754944e-38, %v603_v31  ;;  %v5182_v31 = vld [vmem:[#allocation2 + $0x140] sm:$0xff] }
  0xbd   :  { %v579_v3 = vsub.f32 1.0, %v578_v38  ;;  %v8902_v38 = vld [vmem:[#allocation9_spill] sm:$0xff] }
  0xbe   :  { %v565_v6 = vmul.f32 %v3557_v36, %v564_v63  ;;  %vm602_vm11 = vcmp.eq.f32.partialorder %v601_v33, 8.507059e+37  ;;  %v8914_v33 = vld [vmem:[#allocation25_spill] sm:$0xff] }
  0xbf   :  { %v580_v15 = vmul.f32 %v3559_v61, %v579_v3  ;;  %v8903_v3 = vld [vmem:[#allocation10_spill] sm:$0xff] }
  0xc0   :  { %v3561_v46 = vpop.eup %3560  ;;  %v566_v48 = vadd.f32 %v3557_v36, %v565_v6  ;;  %1063 = vmatpush.msra.mxu3 %v8903_v3  ;;  %v5134_v6 = vld [vmem:[#allocation2 + $0x200] sm:$0xff]  ;;  %v8919_v3 = vld [vmem:[#allocation34_spill] sm:$0xff]  ;;  %8937 = vst [vmem:[#allocation10_spill] sm:$0xff] %v5254_v29 }
  0xc1   :  { %v593_v19 = vmul.f32 %v3561_v46, %v5081_v47  ;;  %v581_v28 = vadd.f32 %v3559_v61, %v580_v15  ;;  %v3563_v23 = vpop.eup %3562  ;;  %vm598_vm8 = vweird.f32 %v3561_v46  ;;  %v8904_v47 = vld [vmem:[#allocation11_spill] sm:$0xff]  ;;  %v5142_v15 = vld [vmem:[#allocation2 + $0x1e0] sm:$0xff] }
  0xc2   :  { %v570_v51 = vsel %vm569_vm4, %v3557_v36, %v566_v48  ;;  %vm599_vm10 = vmor %vm597_vm9, %vm598_vm8  ;;  %1064 = vmatpush.msra.mxu3 %v8905_v11  ;;  %v8907_v48 = vld [vmem:[#allocation14_spill] sm:$0xff]  ;;  %v8920_v11 = vld [vmem:[#allocation37_spill] sm:$0xff] }
  0xc3   :  { %v594_v50 = vsub.f32 1.0, %v593_v19  ;;  %v575_v25 = vsel %vm572_vm5, %v574_v21, %v570_v51  ;;  %v585_v55 = vsel %vm584_vm6, %v3559_v61, %v581_v28  ;;  %v8900_v61 = vld [vmem:[#allocation7_spill] sm:$0xff]  ;;  %v5150_v19 = vld [vmem:[#allocation2 + $0x1c0] sm:$0xff] }
  0xc4   :  { %v590_v62 = vsel %vm587_vm7, %v589_v4, %v585_v55  ;;  %v609_v57 = vmul.f32 %v3563_v23, %v575_v25  ;;  %1022 = vmatpush.msra.mxu1 %v8900_v61  ;;  %1065 = vmatpush.msra.mxu3 %v8907_v48  ;;  %v8908_v21 = vld [vmem:[#allocation15_spill] sm:$0xff]  ;;  %v8909_v4 = vld [vmem:[#allocation16_spill] sm:$0xff]  ;;  %v5158_v51 = vld [vmem:[#allocation2 + $0x1a0] sm:$0xff] }
  0xc5   :  { %v595_v12 = vmul.f32 %v3561_v46, %v594_v50  ;;  %v608_v27 = vmul.f32 0.0, %v590_v62  ;;  %v5154_v28 = vld [vmem:[#allocation2 + $0x1d0] sm:$0xff]  ;;  %v8910_v23 = vld [vmem:[#allocation17_spill] sm:$0xff]  ;;  %v8911_v62 = vld [vmem:[#allocation18_spill] sm:$0xff] }
  0xc6   :  { %1023 = vmatpush.msra.mxu1 %v8902_v38  ;;  %1066 = vmatpush.msra.mxu3 %v8909_v4  ;;  %v5162_v50 = vld [vmem:[#allocation2 + $0x1b0] sm:$0xff]  ;;  %v5167_v25 = vld [vmem:[#allocation2 + $0x180] sm:$0xff]  ;;  %v8921_v48 = vld [vmem:[#allocation38_spill] sm:$0xff] }
  0xc7   :  { %v5112_v36 = vadd.f32 %v609_v57, %v608_v27  ;;  %v596_v59 = vadd.f32 %v3561_v46, %v595_v12  ;;  %v5170_v55 = vld [vmem:[#allocation2 + $0x190] sm:$0xff]  ;;  %v5174_v57 = vld [vmem:[#allocation2 + $0x160] sm:$0xff] }
  0xc8   :  { %1024 = vmatpush.msra.mxu1 %v8904_v47  ;;  %1067 = vmatpush.msra.mxu3 %v8911_v62  ;;  %v8912_v12 = vld [vmem:[#allocation21_spill] sm:$0xff]  ;;  %v5178_v27 = vld [vmem:[#allocation2 + $0x170] sm:$0xff]  ;;  %v8923_v62 = vld [vmem:[#allocation42_spill] sm:$0xff] }
  0xc9   :  { %3564 = vtanh.f32 %v5112_v36  ;;  %v600_v39 = vsel %vm599_vm10, %v3561_v46, %v596_v59  ;;  %v5146_v46 = vld [vmem:[#allocation2 + $0x1f0] sm:$0xff]  ;;  %v8913_v59 = vld [vmem:[#allocation22_spill] sm:$0xff]  ;;  %v8916_v61 = vld [vmem:[#allocation29_spill] sm:$0xff] }
  0xca   :  { %v605_v43 = vsel %vm602_vm11, %v604_v56, %v600_v39  ;;  %1025 = vmatpush.msra.mxu1 %v8906_v17  ;;  %v5190_v39 = vld [vmem:[#allocation2 + $0x120] sm:$0xff]  ;;  %v5194_v56 = vld [vmem:[#allocation2 + $0x130] sm:$0xff] }
  0xcb   :  { %v5198_v38 = vld [vmem:[#allocation2 + $0x100] sm:$0xff]  ;;  %v5210_v17 = vld [vmem:[#allocation2 + $0xf0] sm:$0xff] }
  0xcc   :  { %1026 = vmatpush.msra.mxu1 %v8908_v21  ;;  %v5206_v47 = vld [vmem:[#allocation2 + $0xe0] sm:$0xff] }
  0xcd   :  { %v5214_v21 = vld [vmem:[#allocation2 + $0xc0] sm:$0xff] }
  0xce   :  { %1027 = vmatpush.msra.mxu1 %v8910_v23  ;;  %v8922_v4 = vld [vmem:[#allocation41_spill] sm:$0xff]  ;;  %v5218_v23 = vld [vmem:[#allocation2 + $0xd0] sm:$0xff] }
  0xcf   :  { %v3565_v63 = vpop.eup %3564 }
  0xd0   :  { %v5128_v7 = vmul.f32 %v3565_v63, %v605_v43  ;;  %v8918_v63 = vld [vmem:[#allocation33_spill] sm:$0xff]  ;;  %v5202_v43 = vld [vmem:[#allocation2 + $0x110] sm:$0xff] }
  0xd2   :  { %638 = vmatmul.f32.vlgmr.msrb.gmra.mxu0 %v5128_v7  ;;  %678 = vmatmul.f32.vlgmr.msrb.gmra.mxu2 %v5128_v7 }
  0xd3   :  { %845 = vmatpush.msrb.mxu0 %v5134_v6  ;;  %881 = vmatmul.f32.vlgmr.msrb.gmra.mxu1 %v5128_v7 }
  0xd4   :  { %885 = vmatpush.msrb.mxu2 %v5138_v16  ;;  %921 = vmatmul.f32.vlgmr.msrb.gmra.mxu3 %v5128_v7 }
  0xd5   :  { %846 = vmatpush.msrb.mxu0 %v5142_v15  ;;  %1092 = vmatpush.msrb.mxu1 %v8912_v12  ;;  %v5222_v12 = vld [vmem:[#allocation2 + $0xa0] sm:$0xff] }
  0xd6   :  { %886 = vmatpush.msrb.mxu2 %v5146_v46  ;;  %1132 = vmatpush.msrb.mxu3 %v8913_v59  ;;  %v8924_v59 = vld [vmem:[#allocation45_spill] sm:$0xff] }
  0xd7   :  { %847 = vmatpush.msrb.mxu0 %v5150_v19  ;;  %1093 = vmatpush.msrb.mxu1 %v8914_v33  ;;  %v5226_v33 = vld [vmem:[#allocation2 + $0xb0] sm:$0xff] }
  0xd8   :  { %887 = vmatpush.msrb.mxu2 %v5154_v28  ;;  %1133 = vmatpush.msrb.mxu3 %v8915_v37  ;;  %v8925_v37 = vld [vmem:[#allocation46_spill] sm:$0xff] }
  0xd9   :  { %848 = vmatpush.msrb.mxu0 %v5158_v51  ;;  %1094 = vmatpush.msrb.mxu1 %v8916_v61  ;;  %v5230_v61 = vld [vmem:[#allocation2 + $0x80] sm:$0xff] }
  0xda   :  { %888 = vmatpush.msrb.mxu2 %v5162_v50  ;;  %718 = vmatmul.f32.vlgmr.msra.gmra.mxu0 %v5128_v7 }
  0xdb   :  { %758 = vmatmul.f32.vlgmr.msra.gmra.mxu2 %v5128_v7  ;;  %849 = vmatpush.msrb.mxu0 %v5167_v25 }
  0xdc   :  { %889 = vmatpush.msrb.mxu2 %v5170_v55  ;;  %1134 = vmatpush.msrb.mxu3 %v8917_v41  ;;  %v8926_v41 = vld [vmem:[#allocation49_spill] sm:$0xff] }
  0xdd   :  { %850 = vmatpush.msrb.mxu0 %v5174_v57  ;;  %1095 = vmatpush.msrb.mxu1 %v8918_v63  ;;  %v5234_v63 = vld [vmem:[#allocation2 + $0x90] sm:$0xff] }
  0xde   :  { %890 = vmatpush.msrb.mxu2 %v5178_v27  ;;  %1135 = vmatpush.msrb.mxu3 %v8919_v3  ;;  %8927 = vst [vmem:[#allocation5_spill] sm:$0xff] %v5234_v63  ;;  %v8928_v3 = vld [vmem:[#allocation50_spill] sm:$0xff] }
  0xdf   :  { %851 = vmatpush.msrb.mxu0 %v5182_v31  ;;  %1096 = vmatpush.msrb.mxu1 %v8920_v11  ;;  %v5238_v11 = vld [vmem:[#allocation2 + $0x60] sm:$0xff] }
  0xe0   :  { %891 = vmatpush.msrb.mxu2 %v5186_v35  ;;  %1136 = vmatpush.msrb.mxu3 %v8921_v48  ;;  %8929 = vst [vmem:[#allocation6_spill] sm:$0xff] %v5238_v11  ;;  %v8930_v48 = vld [vmem:[#allocation53_spill] sm:$0xff] }
  0xe1   :  { %852 = vmatpush.msrb.mxu0 %v5190_v39  ;;  %1097 = vmatpush.msrb.mxu1 %v8922_v4  ;;  %v5242_v4 = vld [vmem:[#allocation2 + $0x70] sm:$0xff] }
  0xe2   :  { %892 = vmatpush.msrb.mxu2 %v5194_v56  ;;  %1137 = vmatpush.msrb.mxu3 %v8923_v62  ;;  %8931 = vst [vmem:[#allocation7_spill] sm:$0xff] %v5242_v4  ;;  %v8932_v62 = vld [vmem:[#allocation54_spill] sm:$0xff] }
  0xe3   :  { %853 = vmatpush.msrb.mxu0 %v5198_v38  ;;  %1098 = vmatpush.msrb.mxu1 %v8924_v59  ;;  %v5246_v59 = vld [vmem:[#allocation2 + $0x40] sm:$0xff] }
  0xe4   :  { %893 = vmatpush.msrb.mxu2 %v5202_v43  ;;  %1138 = vmatpush.msrb.mxu3 %v8925_v37  ;;  %8933 = vst [vmem:[#allocation8_spill] sm:$0xff] %v5246_v59  ;;  %v8934_v37 = vld [vmem:[#allocation57_spill] sm:$0xff] }
  0xe5   :  { %854 = vmatpush.msrb.mxu0 %v5206_v47  ;;  %1099 = vmatpush.msrb.mxu1 %v8926_v41  ;;  %v5250_v41 = vld [vmem:[#allocation2 + $0x50] sm:$0xff] }
  0xe6   :  { %894 = vmatpush.msrb.mxu2 %v5210_v17  ;;  %1139 = vmatpush.msrb.mxu3 %v8928_v3  ;;  %8935 = vst [vmem:[#allocation9_spill] sm:$0xff] %v5250_v41  ;;  %v8936_v3 = vld [vmem:[#allocation58_spill] sm:$0xff] }
  0xe7   :  { %855 = vmatpush.msrb.mxu0 %v5214_v21  ;;  %1100 = vmatpush.msrb.mxu1 %v8930_v48  ;;  %v8938_v48 = vld [vmem:[#allocation61_spill] sm:$0xff] }
  0xe8   :  { %895 = vmatpush.msrb.mxu2 %v5218_v23  ;;  %1140 = vmatpush.msrb.mxu3 %v8932_v62  ;;  %v8940_v62 = vld [vmem:[#allocation19_spill] sm:$0xff] }
  0xe9   :  { %856 = vmatpush.msrb.mxu0 %v5222_v12  ;;  %1101 = vmatpush.msrb.mxu1 %v8934_v37  ;;  %v8941_v37 = vld [vmem:[#allocation20_spill] sm:$0xff] }
  0xea   :  { %896 = vmatpush.msrb.mxu2 %v5226_v33  ;;  %1141 = vmatpush.msrb.mxu3 %v8936_v3  ;;  %v8943_v3 = vld [vmem:[#allocation23_spill] sm:$0xff] }
  0xeb   :  { %857 = vmatpush.msrb.mxu0 %v5230_v61  ;;  %1102 = vmatpush.msrb.mxu1 %v8938_v48  ;;  %v8946_v48 = vld [vmem:[#allocation66_spill] sm:$0xff] }
  0xec   :  { %897 = vmatpush.msrb.mxu2 %v5234_v63  ;;  %v8949_v63 = vld [vmem:[#allocation28_spill] sm:$0xff] }
  0xed   :  { %858 = vmatpush.msrb.mxu0 %v5238_v11  ;;  %v8947_v11 = vld [vmem:[#allocation27_spill] sm:$0xff] }
  0xee   :  { %898 = vmatpush.msrb.mxu2 %v5242_v4  ;;  %v5258_v4 = vld [vmem:[#allocation2 + $0x30] sm:$0xff] }
  0xef   :  { %859 = vmatpush.msrb.mxu0 %v5246_v59  ;;  %8939 = vst [vmem:[#allocation11_spill] sm:$0xff] %v5258_v4  ;;  %v8944_v59 = vld [vmem:[#allocation65_spill] sm:$0xff] }
  0xf0   :  { %899 = vmatpush.msrb.mxu2 %v5250_v41  ;;  %v8942_v41 = vld [vmem:[#allocation62_spill] sm:$0xff]  ;;  %1103 = vmatpush.msrb.mxu1 %v8944_v59  ;;  %v8955_v59 = vld [vmem:[#allocation35_spill] sm:$0xff] }
  0xf1   :  { %860 = vmatpush.msrb.mxu0 %v5254_v29  ;;  %1142 = vmatpush.msrb.mxu3 %v8942_v41  ;;  %v8945_v29 = vld [vmem:[#allocation24_spill] sm:$0xff] }
  0xf2   :  { %900 = vmatpush.msrb.mxu2 %v5258_v4  ;;  %861 = vmatmul.f32.vlgmr.msrb.gmra.mxu0 %v5128_v7  ;;  %v8948_v4 = vld [vmem:[#allocation69_spill] sm:$0xff]  ;;  %v8953_v41 = vld [vmem:[#allocation32_spill] sm:$0xff] }
  0xf3   :  { %901 = vmatmul.f32.vlgmr.msrb.gmra.mxu2 %v5128_v7  ;;  %992 = vmatpush.msra.mxu0 %v8940_v62  ;;  %v8950_v7 = vld [vmem:[#allocation70_spill] sm:$0xff]  ;;  %v8951_v62 = vld [vmem:[#allocation31_spill] sm:$0xff] }
  0xf4   :  { %1032 = vmatpush.msra.mxu2 %v8941_v37  ;;  %1143 = vmatpush.msrb.mxu3 %v8946_v48  ;;  %v8952_v37 = vld [vmem:[#allocation73_spill] sm:$0xff]  ;;  %v8957_v48 = vld [vmem:[#allocation36_spill] sm:$0xff] }
  0xf5   :  { %993 = vmatpush.msra.mxu0 %v8943_v3  ;;  %1104 = vmatpush.msrb.mxu1 %v8948_v4  ;;  %v8954_v3 = vld [vmem:[#allocation74_spill] sm:$0xff]  ;;  %v8959_v4 = vld [vmem:[#allocation39_spill] sm:$0xff] }
  0xf6   :  { %1033 = vmatpush.msra.mxu2 %v8945_v29  ;;  %1144 = vmatpush.msrb.mxu3 %v8950_v7  ;;  %v8956_v29 = vld [vmem:[#allocation77_spill] sm:$0xff]  ;;  %v8961_v7 = vld [vmem:[#allocation40_spill] sm:$0xff] }
  0xf7   :  { %994 = vmatpush.msra.mxu0 %v8947_v11  ;;  %1105 = vmatpush.msrb.mxu1 %v8952_v37  ;;  %v8958_v11 = vld [vmem:[#allocation78_spill] sm:$0xff]  ;;  %v8963_v37 = vld [vmem:[#allocation43_spill] sm:$0xff] }
  0xf8   :  { %1034 = vmatpush.msra.mxu2 %v8949_v63  ;;  %1145 = vmatpush.msrb.mxu3 %v8954_v3  ;;  %v8960_v63 = vld [vmem:[#allocation81_spill] sm:$0xff]  ;;  %v8965_v3 = vld [vmem:[#allocation47_spill] sm:$0xff] }
  0xf9   :  { %995 = vmatpush.msra.mxu0 %v8951_v62  ;;  %1106 = vmatpush.msrb.mxu1 %v8956_v29  ;;  %v8962_v62 = vld [vmem:[#allocation82_spill] sm:$0xff]  ;;  %v8967_v29 = vld [vmem:[#allocation51_spill] sm:$0xff] }
  0xfa   :  { %1035 = vmatpush.msra.mxu2 %v8953_v41  ;;  %1146 = vmatpush.msrb.mxu3 %v8958_v11  ;;  %v8964_v41 = vld [vmem:[#allocation44_spill] sm:$0xff]  ;;  %v8969_v11 = vld [vmem:[#allocation55_spill] sm:$0xff] }
  0xfb   :  { %996 = vmatpush.msra.mxu0 %v8955_v59  ;;  %1107 = vmatpush.msrb.mxu1 %v8960_v63  ;;  %v8966_v59 = vld [vmem:[#allocation48_spill] sm:$0xff]  ;;  %v8971_v63 = vld [vmem:[#allocation59_spill] sm:$0xff] }
  0xfc   :  { %1036 = vmatpush.msra.mxu2 %v8957_v48  ;;  %1147 = vmatpush.msrb.mxu3 %v8962_v62  ;;  %v8968_v48 = vld [vmem:[#allocation52_spill] sm:$0xff]  ;;  %v8973_v62 = vld [vmem:[#allocation63_spill] sm:$0xff] }
  0xfd   :  { %997 = vmatpush.msra.mxu0 %v8959_v4  ;;  %v8970_v4 = vld [vmem:[#allocation56_spill] sm:$0xff] }
  0xfe   :  { %1037 = vmatpush.msra.mxu2 %v8961_v7  ;;  %v8972_v7 = vld [vmem:[#allocation60_spill] sm:$0xff] }
  0xff   :  { %998 = vmatpush.msra.mxu0 %v8963_v37  ;;  %v8974_v37 = vld [vmem:[#allocation64_spill] sm:$0xff] }
 0x100   :  { %1038 = vmatpush.msra.mxu2 %v8964_v41  ;;  %v8975_v41 = vld [vmem:[#allocation67_spill] sm:$0xff] }
 0x101   :  { %999 = vmatpush.msra.mxu0 %v8965_v3  ;;  %v8976_v3 = vld [vmem:[#allocation68_spill] sm:$0xff] }
 0x102   :  { %1039 = vmatpush.msra.mxu2 %v8966_v59  ;;  %v8977_v59 = vld [vmem:[#allocation71_spill] sm:$0xff] }
 0x103   :  { %1000 = vmatpush.msra.mxu0 %v8967_v29  ;;  %v8978_v29 = vld [vmem:[#allocation72_spill] sm:$0xff] }
 0x104   :  { %1040 = vmatpush.msra.mxu2 %v8968_v48  ;;  %v8979_v48 = vld [vmem:[#allocation75_spill] sm:$0xff] }
 0x105   :  { %1001 = vmatpush.msra.mxu0 %v8969_v11  ;;  %v8980_v11 = vld [vmem:[#allocation76_spill] sm:$0xff] }
 0x106   :  { %1041 = vmatpush.msra.mxu2 %v8970_v4  ;;  %v8981_v4 = vld [vmem:[#allocation79_spill] sm:$0xff] }
 0x107   :  { %1002 = vmatpush.msra.mxu0 %v8971_v63  ;;  %v8982_v63 = vld [vmem:[#allocation80_spill] sm:$0xff] }
 0x108   :  { %1042 = vmatpush.msra.mxu2 %v8972_v7  ;;  %v8983_v7 = vld [vmem:[#allocation83_spill] sm:$0xff] }
 0x109   :  { %1003 = vmatpush.msra.mxu0 %v8973_v62  ;;  %v8984_v62 = vld [vmem:[#allocation84_spill] sm:$0xff] }
 0x10a   :  { %1043 = vmatpush.msra.mxu2 %v8974_v37  ;;  %v8985_v37 = vld [vmem:[#allocation85_spill] sm:$0xff] }
 0x10b   :  { %1004 = vmatpush.msra.mxu0 %v8975_v41  ;;  %v8986_v41 = vld [vmem:[#allocation86_spill] sm:$0xff] }
 0x10c   :  { %1044 = vmatpush.msra.mxu2 %v8976_v3  ;;  %v8987_v3 = vld [vmem:[#allocation88_spill] sm:$0xff] }
 0x10d   :  { %1005 = vmatpush.msra.mxu0 %v8977_v59  ;;  %v8988_v59 = vld [vmem:[#allocation89_spill] sm:$0xff] }
 0x10e   :  { %1045 = vmatpush.msra.mxu2 %v8978_v29  ;;  %v8989_v29 = vld [vmem:[#allocation91_spill] sm:$0xff] }
 0x10f   :  { %1006 = vmatpush.msra.mxu0 %v8979_v48  ;;  %v8990_v48 = vld [vmem:[#allocation92_spill] sm:$0xff] }
 0x110   :  { %1046 = vmatpush.msra.mxu2 %v8980_v11  ;;  %v8991_v11 = vld [vmem:[#allocation94_spill] sm:$0xff] }
 0x111   :  { %1007 = vmatpush.msra.mxu0 %v8981_v4  ;;  %v8992_v4 = vld [vmem:[#allocation98_spill] sm:$0xff] }
 0x112   :  { %1047 = vmatpush.msra.mxu2 %v8982_v63  ;;  %v8993_v63 = vld [vmem:[#allocation100_spill] sm:$0xff] }
 0x113   :  { %1072 = vmatpush.msrb.mxu0 %v8983_v7 }
 0x114   :  { %1112 = vmatpush.msrb.mxu2 %v8984_v62  ;;  %v699_v62 = vpop.f32.mrf.mxu3 }
 0x115   :  { %1073 = vmatpush.msrb.mxu0 %v8985_v37 }
 0x116   :  { %1113 = vmatpush.msrb.mxu2 %v8986_v41 }
 0x117   :  { %1074 = vmatpush.msrb.mxu0 %v8987_v3 }
 0x118   :  { %1114 = vmatpush.msrb.mxu2 %v8988_v59 }
 0x119   :  { %1075 = vmatpush.msrb.mxu0 %v8989_v29 }
 0x11a   :  { %1115 = vmatpush.msrb.mxu2 %v8990_v48 }
 0x11b   :  { %1076 = vmatpush.msrb.mxu0 %v8991_v11 }
 0x11c   :  { %1116 = vmatpush.msrb.mxu2 %v4939_v10 }
 0x11d   :  { %1077 = vmatpush.msrb.mxu0 %v4946_v1  ;;  %v3481_v1 = vld [vmem:[%s8256_s2 + $0x1] ss:$2 sm:$0xf] }
 0x11e   :  { %1117 = vmatpush.msrb.mxu2 %v8992_v4 }
 0x11f   :  { %1078 = vmatpush.msrb.mxu0 %v8993_v63 }
 0x120   :  { %1118 = vmatpush.msrb.mxu2 %v4964_v45  ;;  %v659_v45 = vpop.f32.mrf.mxu1 }
 0x121   :  { %1079 = vmatpush.msrb.mxu0 %v4970_v5  ;;  %v5343_v5 = vperm.slane %v3481_v1, 0 }
 0x122   :  { %1119 = vmatpush.msrb.mxu2 %v4972_v8  ;;  %v8995_v8 = vld [vmem:[#allocation90_spill] sm:$0xff] }
 0x123   :  { %1080 = vmatpush.msrb.mxu0 %v4986_v24  ;;  %8994 = vst [vmem:[#allocation12_spill] sm:$0xff] %v5343_v5 }
 0x124   :  { %1120 = vmatpush.msrb.mxu2 %v4988_v60  ;;  %v5338_v60 = vpop.permute.xlu1 %50 }
 0x125   :  { %1081 = vmatpush.msrb.mxu0 %v4994_v2  ;;  %v97_v24 = vmul.f32 %v8995_v8, %v5338_v60 }
 0x126   :  { %1121 = vmatpush.msrb.mxu2 %v4996_v26 }
 0x127   :  { %1082 = vmatpush.msrb.mxu0 %v5005_v0 }
 0x128   :  { %1122 = vmatpush.msrb.mxu2 %v5007_v30  ;;  %v739_v10 = vpop.f32.mrf.mxu1  ;;  %v8996_v30 = vld [vmem:[#allocation96_spill] sm:$0xff] }
 0x129   :  { %1083 = vmatpush.msrb.mxu0 %v5013_v32  ;;  %v138_v32 = vadd.f32 %v8996_v30, %v97_v24 }
 0x12a   :  { %1123 = vmatpush.msrb.mxu2 %v5015_v52  ;;  %v8997_v52 = vld [vmem:[#allocation97_spill] sm:$0xff] }
 0x12b   :  { %1084 = vmatpush.msrb.mxu0 %v5026_v40 }
 0x12c   :  { %1124 = vmatpush.msrb.mxu2 %v5028_v9  ;;  %v5347_v2 = vpop.permute.xlu1 %172 }
 0x12d   :  { %1085 = vmatpush.msrb.mxu0 %v5042_v18  ;;  %v213_v40 = vmul.f32 %v8997_v52, %v5347_v2  ;;  %v5353_v18 = vperm.slane %v3481_v1, 1 }
 0x12e   :  { %1125 = vmatpush.msrb.mxu2 %v5044_v22 }
 0x12f   :  { %1086 = vmatpush.msrb.mxu0 %v5052_v49  ;;  %8998 = vst [vmem:[#allocation13_spill] sm:$0xff] %v5353_v18  ;;  %v5355_v49 = vperm.slane %v3481_v1, 2 }
 0x130   :  { %1126 = vmatpush.msrb.mxu2 %v5054_v58  ;;  %v245_v58 = vadd.f32 %v213_v40, %v138_v32 }
 0x131   :  { %1087 = vmatpush.msrb.mxu0 %v5069_v53  ;;  %8999 = vst [vmem:[#allocation14_spill] sm:$0xff] %v5355_v49 }
 0x132   :  { %1127 = vmatpush.msrb.mxu2 %v5074_v14 }
 0x14f   :  { %v639_v26 = vpop.f32.mrf.mxu0 }
 0x150   :  { %v640_v0 = vadd.f32 %v639_v26, %v5343_v5  ;;  %v882_v14 = vpop.f32.mrf.mxu1 }
 0x151   :  { %v926_v59 = vadd.f32 %v882_v14, %v245_v58 }
 0x152   :  { %v660_v9 = vadd.f32 %v659_v45, %v640_v0  ;;  %v5359_v0 = vperm.slane %v3481_v1, 3 }
 0x153   :  { %v3489_v45 = vmul.f32 -1.442695, %v926_v59 }
 0x154   :  { %v3485_v22 = vmul.f32 -1.442695, %v660_v9  ;;  %9000 = vst [vmem:[#allocation15_spill] sm:$0xff] %v5359_v0 }
 0x155   :  { %v679_v53 = vpop.f32.mrf.mxu2 }
 0x156   :  { %3566 = vpow2.f32 %v3485_v22  ;;  %v680_v7 = vadd.f32 %v679_v53, %v5353_v18  ;;  %v9001_v22 = vld [vmem:[#allocation87_spill] sm:$0xff] }
 0x157   :  { %v719_v37 = vpop.f32.mrf.mxu0  ;;  %v96_v58 = vmul.f32 %v9001_v22, %v5338_v60 }
 0x158   :  { %v700_v41 = vadd.f32 %v699_v62, %v680_v7  ;;  %v720_v3 = vadd.f32 %v719_v37, %v5355_v49  ;;  %v779_v37 = vpop.f32.mrf.mxu3 }
 0x15a   :  { %v3486_v29 = vmul.f32 -1.442695, %v700_v41  ;;  %v740_v48 = vadd.f32 %v739_v10, %v720_v3  ;;  %v9002_v3 = vld [vmem:[#allocation93_spill] sm:$0xff] }
 0x15b   :  { %v137_v59 = vadd.f32 %v9002_v3, %v96_v58 }
 0x15c   :  { %v3567_v11 = vpop.eup %3566  ;;  %3568 = vpow2.f32 %v3486_v29  ;;  %v3487_v4 = vmul.f32 -1.442695, %v740_v48  ;;  %v9003_v29 = vld [vmem:[#allocation95_spill] sm:$0xff] }
 0x15d   :  { %v791_v63 = vadd.f32 1.0, %v3567_v11  ;;  %v212_v48 = vmul.f32 %v9003_v29, %v5347_v2 }
 0x15e   :  { %v759_v32 = vpop.f32.mrf.mxu2 }
 0x15f   :  { %3570 = vrcp.f32 %v791_v63  ;;  %v760_v7 = vadd.f32 %v759_v32, %v5359_v0  ;;  %v805_v22 = vand.u32 2147483648, %v791_v63  ;;  %vm799_vm13 = vweird.f32 %v791_v63 }
 0x160   :  { %3572 = vpow2.f32 %v3487_v4 }
 0x161   :  { %3574 = vpow2.f32 %v3489_v45  ;;  %v780_v4 = vadd.f32 %v779_v37, %v760_v7 }
 0x162   :  { %v3569_v24 = vpop.eup %3568 }
 0x163   :  { %v792_v26 = vadd.f32 1.0, %v3569_v24 }
 0x165   :  { %v3571_v40 = vpop.eup %3570  ;;  %3576 = vrcp.f32 %v792_v26  ;;  %v820_v58 = vand.u32 2147483648, %v792_v26  ;;  %v818_v7 = vand.u32 2147483647, %v792_v26  ;;  %vm814_vm1 = vweird.f32 %v792_v26 }
 0x166   :  { %v3573_v9 = vpop.eup %3572  ;;  %v795_v10 = vmul.f32 %v3571_v40, %v791_v63  ;;  %vm800_vm12 = vweird.f32 %v3571_v40 }
 0x167   :  { %v3575_v53 = vpop.eup %3574  ;;  %v5363_v14 = vadd.f32 1.0, %v3573_v9  ;;  %v9004_v9 = vld [vmem:[#allocation99_spill] sm:$0xff]  ;;  %vm5375_vm14 = vmor %vm799_vm13, %vm800_vm12  ;;  %vm819_vm3 = vcmp.eq.f32.partialorder %v818_v7, 8.507059e+37  ;;  %v215_v7 = vmul.f32 %v5038_v44, %v5347_v2 }
 0x168   :  { %v796_v62 = vsub.f32 1.0, %v795_v10  ;;  %v5367_v41 = vadd.f32 1.0, %v3575_v53  ;;  %v98_v32 = vmul.f32 %v9004_v9, %v5338_v60  ;;  %v803_v10 = vand.u32 2147483647, %v791_v63 }
 0x169   :  { %3578 = vrcp.f32 %v5363_v14  ;;  %v806_v63 = vor.u32 1.1754944e-38, %v805_v22  ;;  %vm829_vm5 = vweird.f32 %v5363_v14 }
 0x16a   :  { %v797_v1 = vmul.f32 %v3571_v40, %v796_v62  ;;  %3580 = vrcp.f32 %v5367_v41  ;;  %v244_v62 = vadd.f32 %v212_v48, %v137_v59  ;;  %vm804_vm0 = vcmp.eq.f32.partialorder %v803_v10, 8.507059e+37 }
 0x16b   :  { %v3577_v11 = vpop.eup %3576  ;;  %3582 = vtanh.f32 %v780_v4  ;;  %v139_v59 = vadd.f32 %v4977_v20, %v98_v32  ;;  %v214_v48 = vmul.f32 %v4980_v54, %v5347_v2  ;;  %v821_v4 = vor.u32 1.1754944e-38, %v820_v58 }
 0x16c   :  { %v810_v45 = vmul.f32 %v3577_v11, %v792_v26  ;;  %v798_v24 = vadd.f32 %v3571_v40, %v797_v1  ;;  %vm815_vm15 = vweird.f32 %v3577_v11  ;;  %v99_v10 = vmul.f32 %v5018_v34, %v5338_v60 }
 0x16d   :  { %vm816_vm2 = vmor %vm814_vm1, %vm815_vm15  ;;  %v835_v60 = vand.u32 2147483648, %v5363_v14  ;;  %vm961_vm9 = vweird.f32 %v5367_v41 }
 0x16e   :  { %v811_v53 = vsub.f32 1.0, %v810_v45  ;;  %v802_v29 = vsel %vm5375_vm14, %v3571_v40, %v798_v24  ;;  %v246_v24 = vadd.f32 %v214_v48, %v139_v59 }
 0x16f   :  { %v3579_v0 = vpop.eup %3578  ;;  %v862_v37 = vpop.f32.mrf.mxu0  ;;  %v807_v30 = vsel %vm804_vm0, %v806_v63, %v802_v29  ;;  %v836_v48 = vor.u32 1.1754944e-38, %v835_v60 }
 0x170   :  { %v812_v1 = vmul.f32 %v3577_v11, %v811_v53  ;;  %v825_v9 = vmul.f32 %v3579_v0, %v5363_v14  ;;  %v925_v49 = vadd.f32 %v862_v37, %v244_v62  ;;  %v5386_v53 = vpop.eup %3580  ;;  %vm830_vm4 = vweird.f32 %v3579_v0 }
 0x171   :  { %v3583_v40 = vpop.eup %3582  ;;  %v957_v29 = vmul.f32 %v5386_v53, %v5367_v41  ;;  %vm831_vm6 = vmor %vm829_vm5, %vm830_vm4  ;;  %vm962_vm8 = vweird.f32 %v5386_v53 }
 0x172   :  { %v826_v45 = vsub.f32 1.0, %v825_v9  ;;  %v813_v18 = vadd.f32 %v3577_v11, %v812_v1  ;;  %v3488_v52 = vmul.f32 -1.442695, %v925_v49  ;;  %v841_v9 = vmul.f32 %v3583_v40, %v807_v30  ;;  %vm5428_vm10 = vmor %vm961_vm9, %vm962_vm8 }
 0x173   :  { %v833_v1 = vand.u32 2147483647, %v5363_v14  ;;  %v958_v63 = vsub.f32 1.0, %v957_v29  ;;  %v965_v29 = vand.u32 2147483647, %v5367_v41 }
 0x174   :  { %v817_v3 = vsel %vm816_vm2, %v3577_v11, %v813_v18  ;;  %3584 = vpow2.f32 %v3488_v52  ;;  %v827_v32 = vmul.f32 %v3579_v0, %v826_v45  ;;  %v140_v11 = vadd.f32 %v5035_v42, %v99_v10 }
 0x175   :  { %v822_v22 = vsel %vm819_vm3, %v821_v4, %v817_v3  ;;  %vm834_vm7 = vcmp.eq.f32.partialorder %v833_v1, 8.507059e+37  ;;  %v959_v4 = vmul.f32 %v5386_v53, %v958_v63  ;;  %v922_v3 = vpop.f32.mrf.mxu3  ;;  %v5437_v63 = vld [vmem:[#allocation2 + $0x1c8] sm:$0xff]  ;;  %vm966_vm12 = vcmp.eq.f32.partialorder %v965_v29, 8.507059e+37 }
 0x176   :  { %v840_v26 = vmul.f32 0.0, %v822_v22  ;;  %v902_v62 = vpop.f32.mrf.mxu2  ;;  %v828_v18 = vadd.f32 %v3579_v0, %v827_v32  ;;  %v247_v45 = vadd.f32 %v215_v7, %v140_v11 }
 0x177   :  { %v927_v49 = vadd.f32 %v902_v62, %v246_v24  ;;  %v960_v14 = vadd.f32 %v5386_v53, %v959_v4  ;;  %v5414_v62 = vld [vmem:[#allocation2 + $0x218] sm:$0xff]  ;;  %v5444_v4 = vld [vmem:[#allocation2 + $0x1a8] sm:$0xff] }
 0x178   :  { %v5392_v58 = vadd.f32 %v841_v9, %v840_v26  ;;  %v832_v59 = vsel %vm831_vm6, %v3579_v0, %v828_v18  ;;  %v928_v26 = vadd.f32 %v922_v3, %v247_v45  ;;  %v5411_v9 = vld [vmem:[#allocation2 + $0x208] sm:$0xff] }
 0x179   :  { %v3490_v37 = vmul.f32 -1.442695, %v927_v49  ;;  %v837_v40 = vsel %vm834_vm7, %v836_v48, %v832_v59  ;;  %v967_v49 = vand.u32 2147483648, %v5367_v41  ;;  %v5420_v18 = vld [vmem:[#allocation2 + $0x1e8] sm:$0xff]  ;;  %v964_v41 = vsel %vm5428_vm10, %v5386_v53, %v960_v14  ;;  %v5440_v59 = vld [vmem:[#allocation2 + $0x1d8] sm:$0xff] }
 0x17a   :  { %v3585_v52 = vpop.eup %3584  ;;  %3586 = vtanh.f32 %v5392_v58  ;;  %v5447_v53 = vld [vmem:[#allocation2 + $0x1b8] sm:$0xff]  ;;  %v5452_v14 = vld [vmem:[#allocation2 + $0x188] sm:$0xff] }
 0x17b   :  { %v5399_v30 = vadd.f32 1.0, %v3585_v52  ;;  %3588 = vpow2.f32 %v3490_v37  ;;  %v5423_v52 = vld [vmem:[#allocation2 + $0x1f8] sm:$0xff]  ;;  %v968_v48 = vor.u32 1.1754944e-38, %v967_v49 }
 0x17d   :  { %3590 = vrcp.f32 %v5399_v30  ;;  %v952_v7 = vand.u32 2147483648, %v5399_v30  ;;  %v950_v1 = vand.u32 2147483647, %v5399_v30  ;;  %vm946_vm13 = vweird.f32 %v5399_v30 }
 0x17e   :  { %v969_v3 = vsel %vm966_vm12, %v968_v48, %v964_v41 }
 0x17f   :  { %vm951_vm15 = vcmp.eq.f32.partialorder %v950_v1, 8.507059e+37  ;;  %v5470_v1 = vld [vmem:[#allocation2 + $0x158] sm:$0xff] }
 0x180   :  { %v3587_v2 = vpop.eup %3586 }
 0x181   :  { %v3589_v22 = vpop.eup %3588  ;;  %v844_v24 = vmul.f32 %v3587_v2, %v837_v40  ;;  %v953_v40 = vor.u32 1.1754944e-38, %v952_v7  ;;  %v5459_v7 = vld [vmem:[#allocation2 + $0x168] sm:$0xff] }
 0x182   :  { %v5405_v32 = vadd.f32 1.0, %v3589_v22 }
 0x183   :  { %v3591_v10 = vpop.eup %3590  ;;  %1028 = vmatmul.f32.vlgmr.msra.gmra.mxu1 %v844_v24  ;;  %1068 = vmatmul.f32.vlgmr.msra.gmra.mxu3 %v844_v24 }
 0x184   :  { %v942_v0 = vmul.f32 %v3591_v10, %v5399_v30  ;;  %3592 = vrcp.f32 %v5405_v32  ;;  %1235 = vmatpush.msra.mxu1 %v5411_v9  ;;  %1275 = vmatpush.msra.mxu3 %v5414_v62  ;;  %vm947_vm11 = vweird.f32 %v3591_v10  ;;  %v5455_v30 = vld [vmem:[#allocation2 + $0x198] sm:$0xff]  ;;  %v982_v48 = vand.u32 2147483648, %v5405_v32 }
 0x185   :  { %3594 = vtanh.f32 %v928_v26  ;;  %vm948_vm14 = vmor %vm946_vm13, %vm947_vm11  ;;  %vm976_vm1 = vweird.f32 %v5405_v32 }
 0x186   :  { %v943_v37 = vsub.f32 1.0, %v942_v0  ;;  %1236 = vmatpush.msra.mxu1 %v5420_v18  ;;  %1276 = vmatpush.msra.mxu3 %v5423_v52 }
 0x188   :  { %v944_v60 = vmul.f32 %v3591_v10, %v943_v37  ;;  %1237 = vmatpush.msra.mxu1 %v5437_v63  ;;  %1277 = vmatpush.msra.mxu3 %v5440_v59  ;;  %v987_v37 = vmul.f32 %v969_v3, %v5112_v36  ;;  %v5478_v3 = vld [vmem:[#allocation2 + $0x138] sm:$0xff] }
 0x18a   :  { %v3593_v45 = vpop.eup %3592  ;;  %v945_v2 = vadd.f32 %v3591_v10, %v944_v60  ;;  %1238 = vmatpush.msra.mxu1 %v5444_v4  ;;  %1278 = vmatpush.msra.mxu3 %v5447_v53  ;;  %v5467_v60 = vld [vmem:[#allocation2 + $0x148] sm:$0xff] }
 0x18b   :  { %v972_v22 = vmul.f32 %v3593_v45, %v5405_v32  ;;  %1108 = vmatmul.f32.vlgmr.msrb.gmra.mxu1 %v844_v24  ;;  %1148 = vmatmul.f32.vlgmr.msrb.gmra.mxu3 %v844_v24  ;;  %v3595_v0 = vpop.eup %3594  ;;  %v5462_v24 = vld [vmem:[#allocation2 + $0x178] sm:$0xff]  ;;  %vm977_vm0 = vweird.f32 %v3593_v45 }
 0x18c   :  { %v949_v26 = vsel %vm948_vm14, %v3591_v10, %v945_v2  ;;  %1239 = vmatpush.msra.mxu1 %v5452_v14  ;;  %1279 = vmatpush.msra.mxu3 %v5455_v30  ;;  %v5475_v2 = vld [vmem:[#allocation2 + $0x128] sm:$0xff]  ;;  %vm978_vm2 = vmor %vm976_vm1, %vm977_vm0 }
 0x18d   :  { %v954_v49 = vsel %vm951_vm15, %v953_v40, %v949_v26  ;;  %v973_v29 = vsub.f32 1.0, %v972_v22  ;;  %v980_v40 = vand.u32 2147483647, %v5405_v32  ;;  %v5483_v22 = vld [vmem:[#allocation2 + $0x108] sm:$0xff]  ;;  %v5486_v26 = vld [vmem:[#allocation2 + $0x118] sm:$0xff] }
 0x18e   :  { %v988_v11 = vmul.f32 %v3595_v0, %v954_v49  ;;  %1240 = vmatpush.msra.mxu1 %v5459_v7  ;;  %1280 = vmatpush.msra.mxu3 %v5462_v24  ;;  %9009 = vst [vmem:[#allocation16_spill] sm:$0xff] %v5483_v22  ;;  %v983_v49 = vor.u32 1.1754944e-38, %v982_v48  ;;  %v5506_v48 = vld [vmem:[#allocation2 + $0xb8] sm:$0xff] }
 0x18f   :  { %v974_v10 = vmul.f32 %v3593_v45, %v973_v29  ;;  %v5489_v29 = vld [vmem:[#allocation2 + $0xe8] sm:$0xff]  ;;  %vm981_vm3 = vcmp.eq.f32.partialorder %v980_v40, 8.507059e+37 }
 0x190   :  { %v5465_v41 = vadd.f32 %v988_v11, %v987_v37  ;;  %1241 = vmatpush.msra.mxu1 %v5467_v60  ;;  %1281 = vmatpush.msra.mxu3 %v5470_v1  ;;  %v5492_v37 = vld [vmem:[#allocation2 + $0xf8] sm:$0xff]  ;;  %v5513_v40 = vld [vmem:[#allocation2 + $0x88] sm:$0xff] }
 0x191   :  { %v975_v36 = vadd.f32 %v3593_v45, %v974_v10  ;;  %v5495_v10 = vld [vmem:[#allocation2 + $0xc8] sm:$0xff] }
 0x192   :  { %3596 = vtanh.f32 %v5465_v41  ;;  %1242 = vmatpush.msra.mxu1 %v5475_v2  ;;  %1282 = vmatpush.msra.mxu3 %v5478_v3 }
 0x193   :  { %v979_v0 = vsel %vm978_vm2, %v3593_v45, %v975_v36  ;;  %v5503_v36 = vld [vmem:[#allocation2 + $0xa8] sm:$0xff] }
 0x194   :  { %1243 = vmatpush.msra.mxu1 %v5483_v22  ;;  %1283 = vmatpush.msra.mxu3 %v5486_v26  ;;  %v984_v11 = vsel %vm981_vm3, %v983_v49, %v979_v0  ;;  %v5498_v22 = vld [vmem:[#allocation2 + $0xd8] sm:$0xff]  ;;  %v5521_v49 = vld [vmem:[#allocation2 + $0x68] sm:$0xff] }
 0x195   :  { %v5516_v0 = vld [vmem:[#allocation2 + $0x98] sm:$0xff] }
 0x196   :  { %1244 = vmatpush.msra.mxu1 %v5489_v29  ;;  %1284 = vmatpush.msra.mxu3 %v5492_v37 }
 0x198   :  { %v3597_v32 = vpop.eup %3596  ;;  %1245 = vmatpush.msra.mxu1 %v5495_v10  ;;  %1285 = vmatpush.msra.mxu3 %v5498_v22 }
 0x199   :  { %v5501_v45 = vmul.f32 %v3597_v32, %v984_v11  ;;  %v5524_v32 = vld [vmem:[#allocation2 + $0x78] sm:$0xff]  ;;  %v5618_v11 = vld [vmem:[#allocation2 + $0x520] sm:$0xff] }
 0x19a   :  { %1246 = vmatpush.msra.mxu1 %v5503_v36  ;;  %1286 = vmatpush.msra.mxu3 %v5506_v48  ;;  %9010 = vst [vmem:[#allocation17_spill] sm:$0xff] %v5524_v32 }
 0x19b   :  { %1008 = vmatmul.f32.vlgmr.msra.gmra.mxu0 %v5501_v45  ;;  %1048 = vmatmul.f32.vlgmr.msra.gmra.mxu2 %v5501_v45  ;;  %9034 = vst [vmem:[#allocation54_spill] sm:$0xff] %v5618_v11 }
 0x19c   :  { %1215 = vmatpush.msra.mxu0 %v5134_v6  ;;  %1255 = vmatpush.msra.mxu2 %v5138_v16  ;;  %v5529_v6 = vld [vmem:[#allocation2 + $0x48] sm:$0xff]  ;;  %v5532_v16 = vld [vmem:[#allocation2 + $0x58] sm:$0xff] }
 0x19d   :  { %1247 = vmatpush.msra.mxu1 %v5513_v40  ;;  %1287 = vmatpush.msra.mxu3 %v5516_v0  ;;  %9011 = vst [vmem:[#allocation18_spill] sm:$0xff] %v5529_v6 }
 0x19e   :  { %1216 = vmatpush.msra.mxu0 %v5142_v15  ;;  %1256 = vmatpush.msra.mxu2 %v5146_v46  ;;  %9012 = vst [vmem:[#allocation21_spill] sm:$0xff] %v5532_v16  ;;  %v5537_v15 = vld [vmem:[#allocation2 + $0x28] sm:$0xff]  ;;  %v5540_v46 = vld [vmem:[#allocation2 + $0x38] sm:$0xff] }
 0x19f   :  { %1248 = vmatpush.msra.mxu1 %v5521_v49  ;;  %1288 = vmatpush.msra.mxu3 %v5524_v32  ;;  %9013 = vst [vmem:[#allocation22_spill] sm:$0xff] %v5537_v15 }
 0x1a0   :  { %1217 = vmatpush.msra.mxu0 %v5150_v19  ;;  %1257 = vmatpush.msra.mxu2 %v5154_v28  ;;  %9014 = vst [vmem:[#allocation25_spill] sm:$0xff] %v5540_v46  ;;  %v35_v19 = vld [vmem:[%s8254_s0 + $0x10] sm:$0xff]  ;;  %v36_v28 = vld [vmem:[%s8254_s0 + $0x18] sm:$0xff] }
 0x1a1   :  { %1249 = vmatpush.msra.mxu1 %v5529_v6  ;;  %1289 = vmatpush.msra.mxu3 %v5532_v16 }
 0x1a2   :  { %1218 = vmatpush.msra.mxu0 %v5158_v51  ;;  %1258 = vmatpush.msra.mxu2 %v5162_v50  ;;  %v5558_v51 = vld [vmem:[#allocation2 + $0x600] sm:$0xff]  ;;  %v5562_v50 = vld [vmem:[#allocation2 + $0x608] sm:$0xff] }
 0x1a3   :  { %1250 = vmatpush.msra.mxu1 %v5537_v15  ;;  %1290 = vmatpush.msra.mxu3 %v5540_v46  ;;  %9015 = vst [vmem:[#allocation26_spill] sm:$0xff] %v5558_v51 }
 0x1a4   :  { %1088 = vmatmul.f32.vlgmr.msrb.gmra.mxu0 %v5501_v45  ;;  %1128 = vmatmul.f32.vlgmr.msrb.gmra.mxu2 %v5501_v45  ;;  %9016 = vst [vmem:[#allocation29_spill] sm:$0xff] %v5562_v50 }
 0x1a5   :  { %1219 = vmatpush.msra.mxu0 %v5167_v25  ;;  %1251 = vmatmul.f32.vlgmr.msra.gmra.mxu1 %v5501_v45  ;;  %v5566_v25 = vld [vmem:[#allocation2 + $0x5e0] sm:$0xff] }
 0x1a6   :  { %1259 = vmatpush.msra.mxu2 %v5170_v55  ;;  %1291 = vmatmul.f32.vlgmr.msra.gmra.mxu3 %v5501_v45  ;;  %9017 = vst [vmem:[#allocation30_spill] sm:$0xff] %v5566_v25  ;;  %v5570_v55 = vld [vmem:[#allocation2 + $0x5e8] sm:$0xff] }
 0x1a7   :  { %1220 = vmatpush.msra.mxu0 %v5174_v57  ;;  %55 = vperm.xlu2 %3540, %v35_v19   ;;  %9018 = vst [vmem:[#allocation33_spill] sm:$0xff] %v5570_v55  ;;  %v5574_v57 = vld [vmem:[#allocation2 + $0x5c0] sm:$0xff] }
 0x1a8   :  { %1260 = vmatpush.msra.mxu2 %v5178_v27  ;;  %60 = vperm.xlu1 %3542, %v36_v28   ;;  %9019 = vst [vmem:[#allocation34_spill] sm:$0xff] %v5574_v57  ;;  %v5578_v27 = vld [vmem:[#allocation2 + $0x5c8] sm:$0xff] }
 0x1a9   :  { %1221 = vmatpush.msra.mxu0 %v5182_v31  ;;  %1382 = vmatpush.msrb.mxu1 %v5558_v51  ;;  %9020 = vst [vmem:[#allocation37_spill] sm:$0xff] %v5578_v27  ;;  %v5585_v31 = vld [vmem:[#allocation2 + $0x5a0] sm:$0xff] }
 0x1aa   :  { %1261 = vmatpush.msra.mxu2 %v5186_v35  ;;  %1422 = vmatpush.msrb.mxu3 %v5562_v50  ;;  %9021 = vst [vmem:[#allocation38_spill] sm:$0xff] %v5585_v31  ;;  %v5589_v35 = vld [vmem:[#allocation2 + $0x5a8] sm:$0xff] }
 0x1ab   :  { %1222 = vmatpush.msra.mxu0 %v5190_v39  ;;  %1383 = vmatpush.msrb.mxu1 %v5566_v25  ;;  %9022 = vst [vmem:[#allocation41_spill] sm:$0xff] %v5589_v35  ;;  %v5593_v39 = vld [vmem:[#allocation2 + $0x580] sm:$0xff] }
 0x1ac   :  { %1262 = vmatpush.msra.mxu2 %v5194_v56  ;;  %1423 = vmatpush.msrb.mxu3 %v5570_v55  ;;  %9023 = vst [vmem:[#allocation42_spill] sm:$0xff] %v5593_v39  ;;  %v5597_v56 = vld [vmem:[#allocation2 + $0x588] sm:$0xff] }
 0x1ad   :  { %1223 = vmatpush.msra.mxu0 %v5198_v38  ;;  %1384 = vmatpush.msrb.mxu1 %v5574_v57  ;;  %9024 = vst [vmem:[#allocation45_spill] sm:$0xff] %v5597_v56  ;;  %v5601_v38 = vld [vmem:[#allocation2 + $0x560] sm:$0xff]  ;;  %v9154_v57 = vld [vmem:[#allocation14_spill] sm:$0xff] }
 0x1ae   :  { %1263 = vmatpush.msra.mxu2 %v5202_v43  ;;  %1424 = vmatpush.msrb.mxu3 %v5578_v27  ;;  %9025 = vst [vmem:[#allocation46_spill] sm:$0xff] %v5601_v38  ;;  %v9026_v43 = vld [vmem:[#allocation5_spill] sm:$0xff] }
 0x1af   :  { %1224 = vmatpush.msra.mxu0 %v5206_v47  ;;  %3541 = vset.pattern.permute.xlu2 %v8896_v13  ;;  %v5605_v47 = vld [vmem:[#allocation2 + $0x568] sm:$0xff] }
 0x1b0   :  { %1264 = vmatpush.msra.mxu2 %v5210_v17  ;;  %176 = vperm.xlu2 %3541, %v35_v19   ;;  %9027 = vst [vmem:[#allocation49_spill] sm:$0xff] %v5605_v47  ;;  %v9028_v17 = vld [vmem:[#allocation6_spill] sm:$0xff] }
 0x1b1   :  { %1225 = vmatpush.msra.mxu0 %v5214_v21  ;;  %1385 = vmatpush.msrb.mxu1 %v5585_v31  ;;  %v5609_v21 = vld [vmem:[#allocation2 + $0x540] sm:$0xff]  ;;  %v9035_v19 = vld [vmem:[#allocation10_spill] sm:$0xff] }
 0x1b2   :  { %1265 = vmatpush.msra.mxu2 %v5218_v23  ;;  %1425 = vmatpush.msrb.mxu3 %v5589_v35  ;;  %9029 = vst [vmem:[#allocation50_spill] sm:$0xff] %v5609_v21  ;;  %v9030_v23 = vld [vmem:[#allocation7_spill] sm:$0xff] }
 0x1b3   :  { %1226 = vmatpush.msra.mxu0 %v5222_v12  ;;  %1386 = vmatpush.msrb.mxu1 %v5593_v39  ;;  %v9031_v12 = vld [vmem:[#allocation8_spill] sm:$0xff] }
 0x1b4   :  { %1266 = vmatpush.msra.mxu2 %v5226_v33  ;;  %1426 = vmatpush.msrb.mxu3 %v5597_v56  ;;  %v5614_v33 = vld [vmem:[#allocation2 + $0x548] sm:$0xff]  ;;  %v9153_v56 = vld [vmem:[#allocation13_spill] sm:$0xff] }
 0x1b5   :  { %1227 = vmatpush.msra.mxu0 %v5230_v61  ;;  %1387 = vmatpush.msrb.mxu1 %v5601_v38  ;;  %9032 = vst [vmem:[#allocation53_spill] sm:$0xff] %v5614_v33  ;;  %v9033_v61 = vld [vmem:[#allocation9_spill] sm:$0xff] }
 0x1b6   :  { %1267 = vmatpush.msra.mxu2 %v9026_v43  ;;  %1427 = vmatpush.msrb.mxu3 %v5605_v47  ;;  %v5622_v43 = vld [vmem:[#allocation2 + $0x528] sm:$0xff] }
 0x1b7   :  { %1228 = vmatpush.msra.mxu0 %v9028_v17  ;;  %1388 = vmatpush.msrb.mxu1 %v5609_v21  ;;  %9036 = vst [vmem:[#allocation57_spill] sm:$0xff] %v5622_v43  ;;  %v9037_v17 = vld [vmem:[#allocation11_spill] sm:$0xff] }
 0x1b8   :  { %1268 = vmatpush.msra.mxu2 %v9030_v23  ;;  %180 = vperm.xlu2 %3541, %v36_v28   ;;  %v5628_v28 = vld [vmem:[#allocation2 + $0x500] sm:$0xff]  ;;  %v5631_v23 = vld [vmem:[#allocation2 + $0x508] sm:$0xff] }
 0x1b9   :  { %1229 = vmatpush.msra.mxu0 %v9031_v12  ;;  %1428 = vmatpush.msrb.mxu3 %v5614_v33  ;;  %9038 = vst [vmem:[#allocation58_spill] sm:$0xff] %v5628_v28  ;;  %v5634_v12 = vld [vmem:[#allocation2 + $0x400] sm:$0xff]  ;;  %v9151_v33 = vld [vmem:[#allocation96_spill] sm:$0xff] }
 0x1ba   :  { %1269 = vmatpush.msra.mxu2 %v9033_v61  ;;  %1389 = vmatpush.msrb.mxu1 %v5618_v11  ;;  %9039 = vst [vmem:[#allocation61_spill] sm:$0xff] %v5631_v23  ;;  %v5637_v61 = vld [vmem:[#allocation2 + $0x4e0] sm:$0xff] }
 0x1bb   :  { %1230 = vmatpush.msra.mxu0 %v9035_v19  ;;  %1429 = vmatpush.msrb.mxu3 %v5622_v43  ;;  %9040 = vst [vmem:[#allocation19_spill] sm:$0xff] %v5634_v12  ;;  %v5640_v19 = vld [vmem:[#allocation2 + $0x408] sm:$0xff] }
 0x1bc   :  { %1270 = vmatpush.msra.mxu2 %v9037_v17  ;;  %1231 = vmatmul.f32.vlgmr.msra.gmra.mxu0 %v5501_v45  ;;  %9041 = vst [vmem:[#allocation20_spill] sm:$0xff] %v5637_v61  ;;  %v5646_v17 = vld [vmem:[#allocation2 + $0x3e0] sm:$0xff] }
 0x1bd   :  { %1271 = vmatmul.f32.vlgmr.msra.gmra.mxu2 %v5501_v45  ;;  %1390 = vmatpush.msrb.mxu1 %v5628_v28  ;;  %9042 = vst [vmem:[#allocation62_spill] sm:$0xff] %v5640_v19  ;;  %v5643_v45 = vld [vmem:[#allocation2 + $0x4e8] sm:$0xff] }
 0x1be   :  { %1430 = vmatpush.msrb.mxu3 %v5631_v23  ;;  %1362 = vmatpush.msrb.mxu0 %v5634_v12  ;;  %9043 = vst [vmem:[#allocation23_spill] sm:$0xff] %v5643_v45  ;;  %v5649_v23 = vld [vmem:[#allocation2 + $0x4c0] sm:$0xff]  ;;  %v5652_v12 = vld [vmem:[#allocation2 + $0x3e8] sm:$0xff] }
 0x1bf   :  { %1391 = vmatpush.msrb.mxu1 %v5637_v61  ;;  %1402 = vmatpush.msrb.mxu2 %v5640_v19  ;;  %9044 = vst [vmem:[#allocation65_spill] sm:$0xff] %v5646_v17  ;;  %v5655_v61 = vld [vmem:[#allocation2 + $0x4c8] sm:$0xff]  ;;  %v5658_v19 = vld [vmem:[#allocation2 + $0x3c0] sm:$0xff] }
 0x1c0   :  { %1431 = vmatpush.msrb.mxu3 %v5643_v45  ;;  %1363 = vmatpush.msrb.mxu0 %v5646_v17  ;;  %9045 = vst [vmem:[#allocation24_spill] sm:$0xff] %v5649_v23  ;;  %v5661_v45 = vld [vmem:[#allocation2 + $0x4a0] sm:$0xff]  ;;  %v5664_v17 = vld [vmem:[#allocation2 + $0x3c8] sm:$0xff] }
 0x1c1   :  { %1392 = vmatpush.msrb.mxu1 %v5649_v23  ;;  %9046 = vst [vmem:[#allocation66_spill] sm:$0xff] %v5652_v12  ;;  %1403 = vmatpush.msrb.mxu2 %v5652_v12  ;;  %v5667_v23 = vld [vmem:[#allocation2 + $0x4a8] sm:$0xff]  ;;  %v5670_v12 = vld [vmem:[#allocation2 + $0x3a0] sm:$0xff] }
 0x1c2   :  { %9047 = vst [vmem:[#allocation27_spill] sm:$0xff] %v5655_v61  ;;  %1432 = vmatpush.msrb.mxu3 %v5655_v61  ;;  %1364 = vmatpush.msrb.mxu0 %v5658_v19  ;;  %v5673_v61 = vld [vmem:[#allocation2 + $0x480] sm:$0xff] }
 0x1c3   :  { %9048 = vst [vmem:[#allocation69_spill] sm:$0xff] %v5658_v19  ;;  %1393 = vmatpush.msrb.mxu1 %v5661_v45  ;;  %1404 = vmatpush.msrb.mxu2 %v5664_v17  ;;  %v5676_v19 = vld [vmem:[#allocation2 + $0x3a8] sm:$0xff] }
 0x1c4   :  { %9049 = vst [vmem:[#allocation28_spill] sm:$0xff] %v5661_v45  ;;  %1433 = vmatpush.msrb.mxu3 %v5667_v23  ;;  %1365 = vmatpush.msrb.mxu0 %v5670_v12  ;;  %v5679_v45 = vld [vmem:[#allocation2 + $0x488] sm:$0xff] }
 0x1c5   :  { %9050 = vst [vmem:[#allocation70_spill] sm:$0xff] %v5664_v17  ;;  %1394 = vmatpush.msrb.mxu1 %v5673_v61  ;;  %1405 = vmatpush.msrb.mxu2 %v5676_v19  ;;  %v5682_v17 = vld [vmem:[#allocation2 + $0x380] sm:$0xff] }
 0x1c6   :  { %9051 = vst [vmem:[#allocation31_spill] sm:$0xff] %v5667_v23  ;;  %1434 = vmatpush.msrb.mxu3 %v5679_v45  ;;  %1366 = vmatpush.msrb.mxu0 %v5682_v17  ;;  %v5685_v23 = vld [vmem:[#allocation2 + $0x460] sm:$0xff] }
 0x1c7   :  { %9052 = vst [vmem:[#allocation73_spill] sm:$0xff] %v5670_v12  ;;  %1395 = vmatpush.msrb.mxu1 %v5685_v23  ;;  %v5688_v12 = vld [vmem:[#allocation2 + $0x388] sm:$0xff]  ;;  %3544 = vset.pattern.permute.xlu1 %v8896_v13  ;;  %v5927_v13 = vld [vmem:[#allocation2 + $0x2f8] sm:$0xff] }
 0x1c8   :  { %9053 = vst [vmem:[#allocation32_spill] sm:$0xff] %v5673_v61  ;;  %1406 = vmatpush.msrb.mxu2 %v5688_v12  ;;  %v5691_v61 = vld [vmem:[#allocation2 + $0x468] sm:$0xff] }
 0x1c9   :  { %9054 = vst [vmem:[#allocation74_spill] sm:$0xff] %v5676_v19  ;;  %1435 = vmatpush.msrb.mxu3 %v5691_v61  ;;  %v5694_v19 = vld [vmem:[#allocation2 + $0x360] sm:$0xff] }
 0x1ca   :  { %9055 = vst [vmem:[#allocation35_spill] sm:$0xff] %v5679_v45  ;;  %1367 = vmatpush.msrb.mxu0 %v5694_v19  ;;  %v5697_v45 = vld [vmem:[#allocation2 + $0x440] sm:$0xff] }
 0x1cb   :  { %9056 = vst [vmem:[#allocation77_spill] sm:$0xff] %v5682_v17  ;;  %1396 = vmatpush.msrb.mxu1 %v5697_v45  ;;  %v5700_v17 = vld [vmem:[#allocation2 + $0x368] sm:$0xff] }
 0x1cc   :  { %9057 = vst [vmem:[#allocation36_spill] sm:$0xff] %v5685_v23  ;;  %1407 = vmatpush.msrb.mxu2 %v5700_v17  ;;  %v5703_v23 = vld [vmem:[#allocation2 + $0x448] sm:$0xff] }
 0x1cd   :  { %9058 = vst [vmem:[#allocation78_spill] sm:$0xff] %v5688_v12  ;;  %1436 = vmatpush.msrb.mxu3 %v5703_v23  ;;  %v5706_v12 = vld [vmem:[#allocation2 + $0x340] sm:$0xff] }
 0x1ce   :  { %9059 = vst [vmem:[#allocation39_spill] sm:$0xff] %v5691_v61  ;;  %1368 = vmatpush.msrb.mxu0 %v5706_v12  ;;  %v5709_v61 = vld [vmem:[#allocation2 + $0x420] sm:$0xff] }
 0x1cf   :  { %9060 = vst [vmem:[#allocation81_spill] sm:$0xff] %v5694_v19  ;;  %1397 = vmatpush.msrb.mxu1 %v5709_v61  ;;  %v5712_v19 = vld [vmem:[#allocation2 + $0x348] sm:$0xff] }
 0x1d0   :  { %9061 = vst [vmem:[#allocation40_spill] sm:$0xff] %v5697_v45  ;;  %1408 = vmatpush.msrb.mxu2 %v5712_v19  ;;  %v5715_v45 = vld [vmem:[#allocation2 + $0x428] sm:$0xff] }
 0x1d1   :  { %9062 = vst [vmem:[#allocation82_spill] sm:$0xff] %v5700_v17  ;;  %1437 = vmatpush.msrb.mxu3 %v5715_v45  ;;  %v5718_v17 = vld [vmem:[#allocation2 + $0x610] sm:$0xff] }
 0x1d2   :  { %9063 = vst [vmem:[#allocation43_spill] sm:$0xff] %v5703_v23  ;;  %1462 = vmatpush.msra.mxu1 %v5718_v17  ;;  %v5721_v23 = vld [vmem:[#allocation2 + $0x618] sm:$0xff] }
 0x1d3   :  { %9064 = vst [vmem:[#allocation44_spill] sm:$0xff] %v5706_v12  ;;  %1502 = vmatpush.msra.mxu3 %v5721_v23  ;;  %v5724_v12 = vld [vmem:[#allocation2 + $0x320] sm:$0xff] }
 0x1d4   :  { %9065 = vst [vmem:[#allocation47_spill] sm:$0xff] %v5709_v61  ;;  %1369 = vmatpush.msrb.mxu0 %v5724_v12  ;;  %v5727_v61 = vld [vmem:[#allocation2 + $0x5f0] sm:$0xff] }
 0x1d5   :  { %9066 = vst [vmem:[#allocation48_spill] sm:$0xff] %v5712_v19  ;;  %1463 = vmatpush.msra.mxu1 %v5727_v61  ;;  %v5730_v19 = vld [vmem:[#allocation2 + $0x328] sm:$0xff] }
 0x1d6   :  { %9067 = vst [vmem:[#allocation51_spill] sm:$0xff] %v5715_v45  ;;  %1409 = vmatpush.msrb.mxu2 %v5730_v19  ;;  %v5733_v45 = vld [vmem:[#allocation2 + $0x5f8] sm:$0xff] }
 0x1d7   :  { %9068 = vst [vmem:[#allocation52_spill] sm:$0xff] %v5718_v17  ;;  %1503 = vmatpush.msra.mxu3 %v5733_v45  ;;  %v5736_v17 = vld [vmem:[#allocation2 + $0x300] sm:$0xff] }
 0x1d8   :  { %9069 = vst [vmem:[#allocation55_spill] sm:$0xff] %v5721_v23  ;;  %1370 = vmatpush.msrb.mxu0 %v5736_v17  ;;  %v5739_v23 = vld [vmem:[#allocation2 + $0x5d0] sm:$0xff] }
 0x1d9   :  { %9070 = vst [vmem:[#allocation56_spill] sm:$0xff] %v5724_v12  ;;  %1464 = vmatpush.msra.mxu1 %v5739_v23  ;;  %v5742_v12 = vld [vmem:[#allocation2 + $0x308] sm:$0xff] }
 0x1da   :  { %9071 = vst [vmem:[#allocation59_spill] sm:$0xff] %v5727_v61  ;;  %1410 = vmatpush.msrb.mxu2 %v5742_v12  ;;  %v5745_v61 = vld [vmem:[#allocation2 + $0x5d8] sm:$0xff] }
 0x1db   :  { %9072 = vst [vmem:[#allocation60_spill] sm:$0xff] %v5730_v19  ;;  %1504 = vmatpush.msra.mxu3 %v5745_v61  ;;  %v5748_v19 = vld [vmem:[#allocation2 + $0x2e0] sm:$0xff] }
 0x1dc   :  { %9073 = vst [vmem:[#allocation63_spill] sm:$0xff] %v5733_v45  ;;  %1371 = vmatpush.msrb.mxu0 %v5748_v19  ;;  %v5751_v45 = vld [vmem:[#allocation2 + $0x5b0] sm:$0xff] }
 0x1dd   :  { %9074 = vst [vmem:[#allocation64_spill] sm:$0xff] %v5736_v17  ;;  %1465 = vmatpush.msra.mxu1 %v5751_v45  ;;  %v5754_v17 = vld [vmem:[#allocation2 + $0x2e8] sm:$0xff] }
 0x1de   :  { %9075 = vst [vmem:[#allocation67_spill] sm:$0xff] %v5739_v23  ;;  %1411 = vmatpush.msrb.mxu2 %v5754_v17  ;;  %v5757_v23 = vld [vmem:[#allocation2 + $0x5b8] sm:$0xff] }
 0x1df   :  { %9076 = vst [vmem:[#allocation68_spill] sm:$0xff] %v5742_v12  ;;  %1505 = vmatpush.msra.mxu3 %v5757_v23  ;;  %v5760_v12 = vld [vmem:[#allocation2 + $0x2c0] sm:$0xff] }
 0x1e0   :  { %9077 = vst [vmem:[#allocation71_spill] sm:$0xff] %v5745_v61  ;;  %1372 = vmatpush.msrb.mxu0 %v5760_v12  ;;  %v5763_v61 = vld [vmem:[#allocation2 + $0x590] sm:$0xff] }
 0x1e1   :  { %9078 = vst [vmem:[#allocation72_spill] sm:$0xff] %v5748_v19  ;;  %1466 = vmatpush.msra.mxu1 %v5763_v61  ;;  %v5766_v19 = vld [vmem:[#allocation2 + $0x2c8] sm:$0xff] }
 0x1e2   :  { %9079 = vst [vmem:[#allocation75_spill] sm:$0xff] %v5751_v45  ;;  %1412 = vmatpush.msrb.mxu2 %v5766_v19  ;;  %v5769_v45 = vld [vmem:[#allocation2 + $0x598] sm:$0xff] }
 0x1e3   :  { %9080 = vst [vmem:[#allocation76_spill] sm:$0xff] %v5754_v17  ;;  %1506 = vmatpush.msra.mxu3 %v5769_v45  ;;  %v5772_v17 = vld [vmem:[#allocation2 + $0x2a0] sm:$0xff] }
 0x1e4   :  { %9081 = vst [vmem:[#allocation79_spill] sm:$0xff] %v5757_v23  ;;  %1373 = vmatpush.msrb.mxu0 %v5772_v17  ;;  %v5775_v23 = vld [vmem:[#allocation2 + $0x570] sm:$0xff] }
 0x1e5   :  { %9082 = vst [vmem:[#allocation80_spill] sm:$0xff] %v5760_v12  ;;  %1467 = vmatpush.msra.mxu1 %v5775_v23  ;;  %v5778_v12 = vld [vmem:[#allocation2 + $0x2a8] sm:$0xff] }
 0x1e6   :  { %9083 = vst [vmem:[#allocation83_spill] sm:$0xff] %v5763_v61  ;;  %1413 = vmatpush.msrb.mxu2 %v5778_v12  ;;  %v5781_v61 = vld [vmem:[#allocation2 + $0x578] sm:$0xff] }
 0x1e7   :  { %9084 = vst [vmem:[#allocation84_spill] sm:$0xff] %v5766_v19  ;;  %1507 = vmatpush.msra.mxu3 %v5781_v61  ;;  %v5784_v19 = vld [vmem:[#allocation2 + $0x280] sm:$0xff] }
 0x1e8   :  { %9085 = vst [vmem:[#allocation85_spill] sm:$0xff] %v5769_v45  ;;  %1374 = vmatpush.msrb.mxu0 %v5784_v19  ;;  %v5787_v45 = vld [vmem:[#allocation2 + $0x550] sm:$0xff] }
 0x1e9   :  { %9086 = vst [vmem:[#allocation86_spill] sm:$0xff] %v5772_v17  ;;  %1468 = vmatpush.msra.mxu1 %v5787_v45  ;;  %v5790_v17 = vld [vmem:[#allocation2 + $0x288] sm:$0xff] }
 0x1ea   :  { %9087 = vst [vmem:[#allocation88_spill] sm:$0xff] %v5775_v23  ;;  %1414 = vmatpush.msrb.mxu2 %v5790_v17  ;;  %v5793_v23 = vld [vmem:[#allocation2 + $0x558] sm:$0xff] }
 0x1eb   :  { %9088 = vst [vmem:[#allocation89_spill] sm:$0xff] %v5778_v12  ;;  %1508 = vmatpush.msra.mxu3 %v5793_v23  ;;  %v5796_v12 = vld [vmem:[#allocation2 + $0x260] sm:$0xff] }
 0x1ec   :  { %9089 = vst [vmem:[#allocation91_spill] sm:$0xff] %v5781_v61  ;;  %1375 = vmatpush.msrb.mxu0 %v5796_v12  ;;  %v5799_v61 = vld [vmem:[#allocation2 + $0x530] sm:$0xff] }
 0x1ed   :  { %9090 = vst [vmem:[#allocation92_spill] sm:$0xff] %v5784_v19  ;;  %1469 = vmatpush.msra.mxu1 %v5799_v61  ;;  %v5802_v19 = vld [vmem:[#allocation2 + $0x268] sm:$0xff] }
 0x1ee   :  { %9091 = vst [vmem:[#allocation94_spill] sm:$0xff] %v5787_v45  ;;  %1415 = vmatpush.msrb.mxu2 %v5802_v19  ;;  %v5805_v45 = vld [vmem:[#allocation2 + $0x538] sm:$0xff] }
 0x1ef   :  { %9092 = vst [vmem:[#allocation98_spill] sm:$0xff] %v5790_v17  ;;  %1509 = vmatpush.msra.mxu3 %v5805_v45  ;;  %v5808_v17 = vld [vmem:[#allocation2 + $0x240] sm:$0xff] }
 0x1f0   :  { %9093 = vst [vmem:[#allocation100_spill] sm:$0xff] %v5793_v23  ;;  %1376 = vmatpush.msrb.mxu0 %v5808_v17  ;;  %v5811_v23 = vld [vmem:[#allocation2 + $0x510] sm:$0xff] }
 0x1f1   :  { %9094 = vst [vmem:[#allocation5_spill] sm:$0xff] %v5796_v12  ;;  %1470 = vmatpush.msra.mxu1 %v5811_v23  ;;  %v5814_v12 = vld [vmem:[#allocation2 + $0x248] sm:$0xff] }
 0x1f2   :  { %9095 = vst [vmem:[#allocation6_spill] sm:$0xff] %v5799_v61  ;;  %1416 = vmatpush.msrb.mxu2 %v5814_v12  ;;  %v5817_v61 = vld [vmem:[#allocation2 + $0x518] sm:$0xff] }
 0x1f3   :  { %9096 = vst [vmem:[#allocation7_spill] sm:$0xff] %v5802_v19  ;;  %1510 = vmatpush.msra.mxu3 %v5817_v61  ;;  %v5820_v19 = vld [vmem:[#allocation2 + $0x220] sm:$0xff] }
 0x1f4   :  { %9097 = vst [vmem:[#allocation8_spill] sm:$0xff] %v5805_v45  ;;  %1377 = vmatpush.msrb.mxu0 %v5820_v19  ;;  %v5823_v45 = vld [vmem:[#allocation2 + $0x4f0] sm:$0xff] }
 0x1f5   :  { %9098 = vst [vmem:[#allocation9_spill] sm:$0xff] %v5808_v17  ;;  %1471 = vmatpush.msra.mxu1 %v5823_v45  ;;  %v5826_v17 = vld [vmem:[#allocation2 + $0x228] sm:$0xff] }
 0x1f6   :  { %9099 = vst [vmem:[#allocation10_spill] sm:$0xff] %v5811_v23  ;;  %1417 = vmatpush.msrb.mxu2 %v5826_v17  ;;  %v5829_v23 = vld [vmem:[#allocation2 + $0x4f8] sm:$0xff] }
 0x1f7   :  { %9100 = vst [vmem:[#allocation11_spill] sm:$0xff] %v5814_v12  ;;  %1511 = vmatpush.msra.mxu3 %v5829_v23  ;;  %v5832_v12 = vld [vmem:[#allocation2 + $0x410] sm:$0xff] }
 0x1f8   :  { %9101 = vst [vmem:[#allocation101_spill] sm:$0xff] %v5817_v61  ;;  %1442 = vmatpush.msra.mxu0 %v5832_v12  ;;  %v5835_v61 = vld [vmem:[#allocation2 + $0x4d0] sm:$0xff] }
 0x1f9   :  { %9102 = vst [vmem:[#allocation102_spill] sm:$0xff] %v5820_v19  ;;  %1472 = vmatpush.msra.mxu1 %v5835_v61  ;;  %v5838_v19 = vld [vmem:[#allocation2 + $0x418] sm:$0xff] }
 0x1fa   :  { %9103 = vst [vmem:[#allocation103_spill] sm:$0xff] %v5823_v45  ;;  %1482 = vmatpush.msra.mxu2 %v5838_v19  ;;  %v5841_v45 = vld [vmem:[#allocation2 + $0x4d8] sm:$0xff] }
 0x1fb   :  { %9104 = vst [vmem:[#allocation104_spill] sm:$0xff] %v5826_v17  ;;  %1512 = vmatpush.msra.mxu3 %v5841_v45  ;;  %v5844_v17 = vld [vmem:[#allocation2 + $0x3f0] sm:$0xff] }
 0x1fc   :  { %9105 = vst [vmem:[#allocation105_spill] sm:$0xff] %v5829_v23  ;;  %1443 = vmatpush.msra.mxu0 %v5844_v17  ;;  %v5847_v23 = vld [vmem:[#allocation2 + $0x4b0] sm:$0xff] }
 0x1fd   :  { %9106 = vst [vmem:[#allocation106_spill] sm:$0xff] %v5832_v12  ;;  %1473 = vmatpush.msra.mxu1 %v5847_v23  ;;  %v5850_v12 = vld [vmem:[#allocation2 + $0x3f8] sm:$0xff] }
 0x1fe   :  { %9107 = vst [vmem:[#allocation107_spill] sm:$0xff] %v5835_v61  ;;  %1483 = vmatpush.msra.mxu2 %v5850_v12  ;;  %v5853_v61 = vld [vmem:[#allocation2 + $0x4b8] sm:$0xff] }
 0x1ff   :  { %9108 = vst [vmem:[#allocation108_spill] sm:$0xff] %v5838_v19  ;;  %1513 = vmatpush.msra.mxu3 %v5853_v61  ;;  %v5856_v19 = vld [vmem:[#allocation2 + $0x3d0] sm:$0xff] }
 0x200   :  { %9109 = vst [vmem:[#allocation109_spill] sm:$0xff] %v5841_v45  ;;  %1444 = vmatpush.msra.mxu0 %v5856_v19  ;;  %v5859_v45 = vld [vmem:[#allocation2 + $0x490] sm:$0xff] }
 0x201   :  { %9110 = vst [vmem:[#allocation110_spill] sm:$0xff] %v5844_v17  ;;  %1474 = vmatpush.msra.mxu1 %v5859_v45  ;;  %v5862_v17 = vld [vmem:[#allocation2 + $0x3d8] sm:$0xff] }
 0x202   :  { %9111 = vst [vmem:[#allocation111_spill] sm:$0xff] %v5847_v23  ;;  %1484 = vmatpush.msra.mxu2 %v5862_v17  ;;  %v5865_v23 = vld [vmem:[#allocation2 + $0x498] sm:$0xff] }
 0x203   :  { %9112 = vst [vmem:[#allocation112_spill] sm:$0xff] %v5850_v12  ;;  %1514 = vmatpush.msra.mxu3 %v5865_v23  ;;  %v5868_v12 = vld [vmem:[#allocation2 + $0x3b0] sm:$0xff] }
 0x204   :  { %9113 = vst [vmem:[#allocation113_spill] sm:$0xff] %v5853_v61  ;;  %1445 = vmatpush.msra.mxu0 %v5868_v12  ;;  %v5871_v61 = vld [vmem:[#allocation2 + $0x470] sm:$0xff] }
 0x205   :  { %9114 = vst [vmem:[#allocation114_spill] sm:$0xff] %v5856_v19  ;;  %1475 = vmatpush.msra.mxu1 %v5871_v61  ;;  %v5874_v19 = vld [vmem:[#allocation2 + $0x3b8] sm:$0xff] }
 0x206   :  { %9115 = vst [vmem:[#allocation115_spill] sm:$0xff] %v5859_v45  ;;  %1485 = vmatpush.msra.mxu2 %v5874_v19  ;;  %v5877_v45 = vld [vmem:[#allocation2 + $0x478] sm:$0xff]  ;;  %v1069_v31 = vpop.f32.mrf.mxu3 }
 0x207   :  { %9116 = vst [vmem:[#allocation116_spill] sm:$0xff] %v5862_v17  ;;  %1515 = vmatpush.msra.mxu3 %v5877_v45  ;;  %v5880_v17 = vld [vmem:[#allocation2 + $0x390] sm:$0xff] }
 0x208   :  { %9117 = vst [vmem:[#allocation117_spill] sm:$0xff] %v5865_v23  ;;  %1446 = vmatpush.msra.mxu0 %v5880_v17  ;;  %v5883_v23 = vld [vmem:[#allocation2 + $0x450] sm:$0xff] }
 0x209   :  { %9118 = vst [vmem:[#allocation118_spill] sm:$0xff] %v5868_v12  ;;  %1476 = vmatpush.msra.mxu1 %v5883_v23  ;;  %v5886_v12 = vld [vmem:[#allocation2 + $0x398] sm:$0xff] }
 0x20a   :  { %9119 = vst [vmem:[#allocation119_spill] sm:$0xff] %v5871_v61  ;;  %1486 = vmatpush.msra.mxu2 %v5886_v12  ;;  %v5889_v61 = vld [vmem:[#allocation2 + $0x458] sm:$0xff] }
 0x20b   :  { %9120 = vst [vmem:[#allocation120_spill] sm:$0xff] %v5874_v19  ;;  %1516 = vmatpush.msra.mxu3 %v5889_v61  ;;  %v5892_v19 = vld [vmem:[#allocation2 + $0x370] sm:$0xff] }
 0x20c   :  { %9121 = vst [vmem:[#allocation121_spill] sm:$0xff] %v5877_v45  ;;  %1447 = vmatpush.msra.mxu0 %v5892_v19  ;;  %v5895_v45 = vld [vmem:[#allocation2 + $0x430] sm:$0xff] }
 0x20d   :  { %9122 = vst [vmem:[#allocation122_spill] sm:$0xff] %v5880_v17  ;;  %1477 = vmatpush.msra.mxu1 %v5895_v45  ;;  %v5898_v17 = vld [vmem:[#allocation2 + $0x378] sm:$0xff] }
 0x20e   :  { %9123 = vst [vmem:[#allocation123_spill] sm:$0xff] %v5883_v23  ;;  %1487 = vmatpush.msra.mxu2 %v5898_v17  ;;  %v5901_v23 = vld [vmem:[#allocation2 + $0x438] sm:$0xff] }
 0x20f   :  { %9124 = vst [vmem:[#allocation124_spill] sm:$0xff] %v5886_v12  ;;  %1517 = vmatpush.msra.mxu3 %v5901_v23  ;;  %v5904_v12 = vld [vmem:[#allocation2 + $0x350] sm:$0xff] }
 0x210   :  { %9125 = vst [vmem:[#allocation125_spill] sm:$0xff] %v5889_v61  ;;  %1448 = vmatpush.msra.mxu0 %v5904_v12  ;;  %v5907_v61 = vld [vmem:[#allocation2 + $0x358] sm:$0xff] }
 0x211   :  { %9126 = vst [vmem:[#allocation126_spill] sm:$0xff] %v5892_v19  ;;  %1488 = vmatpush.msra.mxu2 %v5907_v61  ;;  %v5911_v19 = vld [vmem:[#allocation2 + $0x330] sm:$0xff] }
 0x212   :  { %9127 = vst [vmem:[#allocation127_spill] sm:$0xff] %v5895_v45  ;;  %1449 = vmatpush.msra.mxu0 %v5911_v19  ;;  %v9133_v45 = vmov 0  }
 0x213   :  { %9128 = vst [vmem:[#allocation128_spill] sm:$0xff] %v5898_v17  ;;  %3545 = vset.pattern.permute.xlu2 %v9133_v45  ;;  %v5915_v17 = vld [vmem:[#allocation2 + $0x338] sm:$0xff]  ;;  %v5930_v45 = vld [vmem:[#allocation2 + $0x2d0] sm:$0xff] }
 0x214   :  { %9129 = vst [vmem:[#allocation129_spill] sm:$0xff] %v5901_v23  ;;  %1489 = vmatpush.msra.mxu2 %v5915_v17  ;;  %v5918_v23 = vld [vmem:[#allocation2 + $0x310] sm:$0xff] }
 0x215   :  { %9130 = vst [vmem:[#allocation130_spill] sm:$0xff] %v5904_v12  ;;  %1450 = vmatpush.msra.mxu0 %v5918_v23  ;;  %v5921_v12 = vld [vmem:[#allocation2 + $0x318] sm:$0xff] }
 0x216   :  { %9131 = vst [vmem:[#allocation131_spill] sm:$0xff] %v5907_v61  ;;  %1490 = vmatpush.msra.mxu2 %v5921_v12  ;;  %v5924_v61 = vld [vmem:[#allocation2 + $0x2f0] sm:$0xff] }
 0x217   :  { %9132 = vst [vmem:[#allocation132_spill] sm:$0xff] %v5911_v19  ;;  %1451 = vmatpush.msra.mxu0 %v5924_v61  ;;  %v1029_v19 = vpop.f32.mrf.mxu1 }
 0x218   :  { %9134 = vst [vmem:[#allocation133_spill] sm:$0xff] %v5915_v17  ;;  %1491 = vmatpush.msra.mxu2 %v5927_v13  ;;  %v5933_v17 = vld [vmem:[#allocation2 + $0x2d8] sm:$0xff]  ;;  %v1009_v28 = vpop.f32.mrf.mxu0 }
 0x219   :  { %9135 = vst [vmem:[#allocation134_spill] sm:$0xff] %v5918_v23  ;;  %1452 = vmatpush.msra.mxu0 %v5930_v45  ;;  %v5936_v23 = vld [vmem:[#allocation2 + $0x2b0] sm:$0xff]  ;;  %v1010_v43 = vadd.f32 %v1009_v28, %v5343_v5 }
 0x21a   :  { %9136 = vst [vmem:[#allocation135_spill] sm:$0xff] %v5921_v12  ;;  %1492 = vmatpush.msra.mxu2 %v5933_v17  ;;  %v5939_v12 = vld [vmem:[#allocation2 + $0x2b8] sm:$0xff] }
 0x21b   :  { %9137 = vst [vmem:[#allocation136_spill] sm:$0xff] %v5924_v61  ;;  %1453 = vmatpush.msra.mxu0 %v5936_v23  ;;  %v5942_v61 = vld [vmem:[#allocation2 + $0x290] sm:$0xff]  ;;  %v1030_v11 = vadd.f32 %v1029_v19, %v1010_v43 }
 0x21c   :  { %9138 = vst [vmem:[#allocation137_spill] sm:$0xff] %v5927_v13  ;;  %1493 = vmatpush.msra.mxu2 %v5939_v12  ;;  %v5945_v13 = vld [vmem:[#allocation2 + $0x298] sm:$0xff] }
 0x21d   :  { %9139 = vst [vmem:[#allocation138_spill] sm:$0xff] %v5930_v45  ;;  %1454 = vmatpush.msra.mxu0 %v5942_v61  ;;  %v5948_v45 = vld [vmem:[#allocation2 + $0x270] sm:$0xff]  ;;  %v3491_v38 = vmul.f32 -1.442695, %v1030_v11 }
 0x21e   :  { %9140 = vst [vmem:[#allocation139_spill] sm:$0xff] %v5933_v17  ;;  %1494 = vmatpush.msra.mxu2 %v5945_v13  ;;  %v5951_v17 = vld [vmem:[#allocation2 + $0x278] sm:$0xff] }
 0x21f   :  { %9141 = vst [vmem:[#allocation140_spill] sm:$0xff] %v5936_v23  ;;  %1455 = vmatpush.msra.mxu0 %v5948_v45  ;;  %v5954_v23 = vld [vmem:[#allocation2 + $0x250] sm:$0xff]  ;;  %3598 = vpow2.f32 %v3491_v38 }
 0x220   :  { %9142 = vst [vmem:[#allocation141_spill] sm:$0xff] %v5939_v12  ;;  %1495 = vmatpush.msra.mxu2 %v5951_v17  ;;  %v5957_v12 = vld [vmem:[#allocation2 + $0x258] sm:$0xff] }
 0x221   :  { %9143 = vst [vmem:[#allocation142_spill] sm:$0xff] %v5942_v61  ;;  %1456 = vmatpush.msra.mxu0 %v5954_v23  ;;  %v5960_v61 = vld [vmem:[#allocation2 + $0x230] sm:$0xff]  ;;  %v1089_v27 = vpop.f32.mrf.mxu0 }
 0x222   :  { %9144 = vst [vmem:[#allocation143_spill] sm:$0xff] %v5945_v13  ;;  %1496 = vmatpush.msra.mxu2 %v5957_v12  ;;  %v5963_v13 = vld [vmem:[#allocation2 + $0x238] sm:$0xff]  ;;  %v1090_v55 = vadd.f32 %v1089_v27, %v9154_v57  ;;  %v9155_v27 = vld [vmem:[#allocation15_spill] sm:$0xff] }
 0x223   :  { %9145 = vst [vmem:[#allocation144_spill] sm:$0xff] %v5948_v45  ;;  %1457 = vmatpush.msra.mxu0 %v5960_v61  ;;  %v5966_v45 = vpop.permute.xlu2 %55  ;;  %v9158_v57 = vld [vmem:[#allocation95_spill] sm:$0xff] }
 0x224   :  { %9146 = vst [vmem:[#allocation145_spill] sm:$0xff] %v5951_v17  ;;  %1497 = vmatpush.msra.mxu2 %v5963_v13  ;;  %v101_v17 = vmul.f32 %v8995_v8, %v5966_v45 }
 0x225   :  { %9147 = vst [vmem:[#allocation146_spill] sm:$0xff] %v5954_v23  ;;  %v3599_v19 = vpop.eup %3598 }
 0x226   :  { %9148 = vst [vmem:[#allocation147_spill] sm:$0xff] %v5957_v12  ;;  %v1109_v12 = vpop.f32.mrf.mxu1  ;;  %v142_v21 = vadd.f32 %v9151_v33, %v101_v17  ;;  %v1161_v17 = vadd.f32 1.0, %v3599_v19  ;;  %v9157_v19 = vld [vmem:[#allocation93_spill] sm:$0xff] }
 0x227   :  { %9149 = vst [vmem:[#allocation148_spill] sm:$0xff] %v5960_v61  ;;  %v9152_v61 = vld [vmem:[#allocation97_spill] sm:$0xff]  ;;  %v1110_v43 = vadd.f32 %v1109_v12, %v1090_v55 }
 0x228   :  { %9150 = vst [vmem:[#allocation149_spill] sm:$0xff] %v5963_v13  ;;  %v1049_v13 = vpop.f32.mrf.mxu2  ;;  %vm1169_vm5 = vweird.f32 %v1161_v17  ;;  %v1173_v51 = vand.u32 2147483647, %v1161_v17 }
 0x229   :  { %v1050_v39 = vadd.f32 %v1049_v13, %v9153_v56  ;;  %v3493_v33 = vmul.f32 -1.442695, %v1110_v43 }
 0x22a   :  { %vm1174_vm9 = vcmp.eq.f32.partialorder %v1173_v51, 8.507059e+37  ;;  %v103_v51 = vmul.f32 %v5018_v34, %v5966_v45 }
 0x22b   :  { %v5970_v23 = vpop.permute.xlu2 %176  ;;  %v1070_v8 = vadd.f32 %v1069_v31, %v1050_v39 }
 0x22c   :  { %v217_v47 = vmul.f32 %v9152_v61, %v5970_v23  ;;  %v218_v46 = vmul.f32 %v4980_v54, %v5970_v23 }
 0x22d   :  { %v3492_v28 = vmul.f32 -1.442695, %v1070_v8  ;;  %v9156_v8 = vld [vmem:[#allocation87_spill] sm:$0xff] }
 0x22e   :  { %v249_v35 = vadd.f32 %v217_v47, %v142_v21  ;;  %v1252_v25 = vpop.f32.mrf.mxu1 }
 0x22f   :  { %3600 = vpow2.f32 %v3492_v28 }
 0x230   :  { %v1296_v5 = vadd.f32 %v1252_v25, %v249_v35  ;;  %3602 = vrcp.f32 %v1161_v17  ;;  %v1129_v47 = vpop.f32.mrf.mxu2  ;;  %v100_v25 = vmul.f32 %v9156_v8, %v5966_v45 }
 0x231   :  { %3604 = vpow2.f32 %v3493_v33  ;;  %v1130_v11 = vadd.f32 %v1129_v47, %v9155_v27  ;;  %v216_v47 = vmul.f32 %v9158_v57, %v5970_v23 }
 0x232   :  { %v3495_v61 = vmul.f32 -1.442695, %v1296_v5  ;;  %v1149_v5 = vpop.f32.mrf.mxu3 }
 0x233   :  { %v1150_v33 = vadd.f32 %v1149_v5, %v1130_v11 }
 0x234   :  { %3606 = vpow2.f32 %v3495_v61 }
 0x235   :  { %v3601_v38 = vpop.eup %3600 }
 0x236   :  { %v1162_v13 = vadd.f32 1.0, %v3601_v38  ;;  %v3603_v21 = vpop.eup %3602  ;;  %v141_v38 = vadd.f32 %v9157_v19, %v100_v25 }
 0x237   :  { %v3605_v31 = vpop.eup %3604  ;;  %v1165_v39 = vmul.f32 %v3603_v21, %v1161_v17  ;;  %vm1170_vm4 = vweird.f32 %v3603_v21 }
 0x238   :  { %3608 = vrcp.f32 %v1162_v13  ;;  %v5981_v55 = vadd.f32 1.0, %v3605_v31  ;;  %v9159_v31 = vld [vmem:[#allocation99_spill] sm:$0xff]  ;;  %vm5992_vm6 = vmor %vm1169_vm5, %vm1170_vm4  ;;  %v248_v5 = vadd.f32 %v216_v47, %v141_v38  ;;  %vm1184_vm8 = vweird.f32 %v1162_v13 }
 0x239   :  { %v1166_v12 = vsub.f32 1.0, %v1165_v39  ;;  %v102_v8 = vmul.f32 %v9159_v31, %v5966_v45  ;;  %v1175_v39 = vand.u32 2147483648, %v1161_v17  ;;  %v1232_v31 = vpop.f32.mrf.mxu0  ;;  %v219_v45 = vmul.f32 %v5038_v44, %v5970_v23 }
 0x23a   :  { %v3607_v35 = vpop.eup %3606  ;;  %3610 = vrcp.f32 %v5981_v55  ;;  %vm1199_vm13 = vweird.f32 %v5981_v55 }
 0x23b   :  { %v1167_v61 = vmul.f32 %v3603_v21, %v1166_v12  ;;  %v5984_v43 = vadd.f32 1.0, %v3607_v35  ;;  %3612 = vtanh.f32 %v1150_v33  ;;  %v1190_v12 = vand.u32 2147483648, %v1162_v13 }
 0x23c   :  { %v1188_v35 = vand.u32 2147483647, %v1162_v13  ;;  %v1176_v17 = vor.u32 1.1754944e-38, %v1175_v39  ;;  %v1295_v33 = vadd.f32 %v1232_v31, %v248_v5  ;;  %v143_v19 = vadd.f32 %v4977_v20, %v102_v8 }
 0x23d   :  { %v1168_v56 = vadd.f32 %v3603_v21, %v1167_v61  ;;  %3614 = vrcp.f32 %v5984_v43  ;;  %vm1331_vm1 = vweird.f32 %v5984_v43 }
 0x23e   :  { %v3609_v28 = vpop.eup %3608  ;;  %v3494_v47 = vmul.f32 -1.442695, %v1295_v33  ;;  %vm1189_vm11 = vcmp.eq.f32.partialorder %v1188_v35, 8.507059e+37  ;;  %v250_v25 = vadd.f32 %v218_v46, %v143_v19  ;;  %v144_v46 = vadd.f32 %v5035_v42, %v103_v51 }
 0x23f   :  { %v1180_v27 = vmul.f32 %v3609_v28, %v1162_v13  ;;  %vm1185_vm7 = vweird.f32 %v3609_v28 }
 0x240   :  { %v3611_v11 = vpop.eup %3610  ;;  %vm1186_vm10 = vmor %vm1184_vm8, %vm1185_vm7  ;;  %3616 = vpow2.f32 %v3494_v47  ;;  %v1272_v13 = vpop.f32.mrf.mxu2 }
 0x241   :  { %v1181_v50 = vsub.f32 1.0, %v1180_v27  ;;  %v1195_v57 = vmul.f32 %v3611_v11, %v5981_v55  ;;  %v1172_v27 = vsel %vm5992_vm6, %v3603_v21, %v1168_v56  ;;  %v3613_v6 = vpop.eup %3612  ;;  %vm1200_vm12 = vweird.f32 %v3611_v11 }
 0x242   :  { %v1177_v38 = vsel %vm1174_vm9, %v1176_v17, %v1172_v27  ;;  %vm1201_vm14 = vmor %vm1199_vm13, %vm1200_vm12  ;;  %v251_v17 = vadd.f32 %v219_v45, %v144_v46  ;;  %v6094_v45 = vld [vmem:[#allocation2 + $0x1a0] sm:$0xff] }
 0x243   :  { %v1182_v61 = vmul.f32 %v3609_v28, %v1181_v50  ;;  %v1196_v15 = vsub.f32 1.0, %v1195_v57  ;;  %v1191_v50 = vor.u32 1.1754944e-38, %v1190_v12  ;;  %v6002_v56 = vpop.eup %3614  ;;  %v1211_v39 = vmul.f32 %v3613_v6, %v1177_v38  ;;  %v1292_v38 = vpop.f32.mrf.mxu3 }
 0x244   :  { %v1297_v12 = vadd.f32 %v1272_v13, %v250_v25  ;;  %v1203_v6 = vand.u32 2147483647, %v5981_v55  ;;  %vm1332_vm0 = vweird.f32 %v6002_v56  ;;  %v1335_v25 = vand.u32 2147483647, %v5984_v43 }
 0x245   :  { %v1183_v16 = vadd.f32 %v3609_v28, %v1182_v61  ;;  %v1197_v31 = vmul.f32 %v3611_v11, %v1196_v15  ;;  %v1205_v15 = vand.u32 2147483648, %v5981_v55  ;;  %vm6031_vm2 = vmor %vm1331_vm1, %vm1332_vm0 }
 0x246   :  { %vm1204_vm15 = vcmp.eq.f32.partialorder %v1203_v6, 8.507059e+37  ;;  %vm1336_vm4 = vcmp.eq.f32.partialorder %v1335_v25, 8.507059e+37  ;;  %v9176_v25 = vld [vmem:[#allocation38_spill] sm:$0xff] }
 0x247   :  { %v1187_v32 = vsel %vm1186_vm10, %v3609_v28, %v1183_v16  ;;  %v1327_v16 = vmul.f32 %v6002_v56, %v5984_v43  ;;  %v1198_v28 = vadd.f32 %v3611_v11, %v1197_v31  ;;  %v1206_v61 = vor.u32 1.1754944e-38, %v1205_v15 }
 0x248   :  { %v1192_v21 = vsel %vm1189_vm11, %v1191_v50, %v1187_v32  ;;  %v3496_v32 = vmul.f32 -1.442695, %v1297_v12  ;;  %v1298_v31 = vadd.f32 %v1292_v38, %v251_v17  ;;  %v9170_v17 = vld [vmem:[#allocation26_spill] sm:$0xff]  ;;  %v6120_v38 = vld [vmem:[#allocation2 + $0x140] sm:$0xff] }
 0x249   :  { %v1210_v8 = vmul.f32 %v1192_v21, %v5392_v58  ;;  %v3617_v58 = vpop.eup %3616  ;;  %v1328_v35 = vsub.f32 1.0, %v1327_v16  ;;  %v1202_v5 = vsel %vm1201_vm14, %v3611_v11, %v1198_v28 }
 0x24a   :  { %v1308_v19 = vadd.f32 1.0, %v3617_v58  ;;  %v1207_v33 = vsel %vm1204_vm15, %v1206_v61, %v1202_v5  ;;  %v6104_v5 = vld [vmem:[#allocation2 + $0x180] sm:$0xff]  ;;  %v6108_v61 = vld [vmem:[#allocation2 + $0x190] sm:$0xff] }
 0x24b   :  { %v6007_v57 = vadd.f32 %v1211_v39, %v1210_v8  ;;  %v1329_v50 = vmul.f32 %v6002_v56, %v1328_v35  ;;  %v1337_v39 = vand.u32 2147483648, %v5984_v43  ;;  %v9169_v35 = vld [vmem:[#allocation25_spill] sm:$0xff] }
 0x24c   :  { %v1322_v13 = vand.u32 2147483648, %v1308_v19  ;;  %v1320_v51 = vand.u32 2147483647, %v1308_v19  ;;  %vm1316_vm5 = vweird.f32 %v1308_v19 }
 0x24d   :  { %3618 = vtanh.f32 %v6007_v57  ;;  %v1330_v11 = vadd.f32 %v6002_v56, %v1329_v50  ;;  %v1338_v12 = vor.u32 1.1754944e-38, %v1337_v39  ;;  %v9171_v50 = vld [vmem:[#allocation29_spill] sm:$0xff] }
 0x24e   :  { %3620 = vpow2.f32 %v3496_v32  ;;  %vm1321_vm7 = vcmp.eq.f32.partialorder %v1320_v51, 8.507059e+37  ;;  %v6136_v39 = vld [vmem:[#allocation2 + $0x100] sm:$0xff] }
 0x24f   :  { %3622 = vrcp.f32 %v1308_v19  ;;  %v9179_v51 = vld [vmem:[#allocation45_spill] sm:$0xff] }
 0x253   :  { %v3619_v27 = vpop.eup %3618 }
 0x254   :  { %v1214_v55 = vmul.f32 %v3619_v27, %v1207_v33  ;;  %v3621_v47 = vpop.eup %3620  ;;  %v6112_v27 = vld [vmem:[#allocation2 + $0x160] sm:$0xff]  ;;  %v6116_v33 = vld [vmem:[#allocation2 + $0x170] sm:$0xff] }
 0x255   :  { %v6019_v21 = vadd.f32 1.0, %v3621_v47  ;;  %v3623_v23 = vpop.eup %3622  ;;  %v6124_v47 = vld [vmem:[#allocation2 + $0x150] sm:$0xff] }
 0x256   :  { %1398 = vmatmul.f32.vlgmr.msrb.gmra.mxu1 %v1214_v55  ;;  %1438 = vmatmul.f32.vlgmr.msrb.gmra.mxu3 %v1214_v55  ;;  %v1312_v8 = vmul.f32 %v3623_v23, %v1308_v19  ;;  %vm1317_vm3 = vweird.f32 %v3623_v23  ;;  %v6097_v19 = vld [vmem:[#allocation2 + $0x1b0] sm:$0xff] }
 0x257   :  { %1605 = vmatpush.msrb.mxu1 %v5411_v9  ;;  %1645 = vmatpush.msrb.mxu3 %v5414_v62  ;;  %3624 = vrcp.f32 %v6019_v21  ;;  %vm1318_vm6 = vmor %vm1316_vm5, %vm1317_vm3  ;;  %vm1346_vm9 = vweird.f32 %v6019_v21  ;;  %v9177_v62 = vld [vmem:[#allocation41_spill] sm:$0xff] }
 0x258   :  { %v1313_v9 = vsub.f32 1.0, %v1312_v8  ;;  %3626 = vtanh.f32 %v1298_v31  ;;  %v9174_v31 = vld [vmem:[#allocation34_spill] sm:$0xff]  ;;  %v9175_v8 = vld [vmem:[#allocation37_spill] sm:$0xff] }
 0x259   :  { %1606 = vmatpush.msrb.mxu1 %v5420_v18  ;;  %1646 = vmatpush.msrb.mxu3 %v5423_v52  ;;  %v1334_v18 = vsel %vm6031_vm2, %v6002_v56, %v1330_v11  ;;  %v6132_v11 = vld [vmem:[#allocation2 + $0x130] sm:$0xff] }
 0x25a   :  { %v1314_v52 = vmul.f32 %v3623_v23, %v1313_v9  ;;  %v6140_v9 = vld [vmem:[#allocation2 + $0x110] sm:$0xff] }
 0x25b   :  { %1607 = vmatpush.msrb.mxu1 %v5437_v63  ;;  %1647 = vmatpush.msrb.mxu3 %v5440_v59  ;;  %v1339_v63 = vsel %vm1336_vm4, %v1338_v12, %v1334_v18  ;;  %v1323_v59 = vor.u32 1.1754944e-38, %v1322_v13  ;;  %v6144_v13 = vld [vmem:[#allocation2 + $0xe0] sm:$0xff]  ;;  %v9178_v18 = vld [vmem:[#allocation42_spill] sm:$0xff] }
 0x25c   :  { %v1315_v16 = vadd.f32 %v3623_v23, %v1314_v52  ;;  %v1357_v15 = vmul.f32 %v1339_v63, %v5465_v41  ;;  %v9164_v41 = vld [vmem:[#allocation16_spill] sm:$0xff]  ;;  %v6148_v52 = vld [vmem:[#allocation2 + $0xf0] sm:$0xff]  ;;  %v6152_v12 = vld [vmem:[#allocation2 + $0xc0] sm:$0xff] }
 0x25d   :  { %1608 = vmatpush.msrb.mxu1 %v5444_v4  ;;  %1648 = vmatpush.msrb.mxu3 %v5447_v53  ;;  %v3625_v43 = vpop.eup %3624  ;;  %v9181_v63 = vld [vmem:[#allocation49_spill] sm:$0xff] }
 0x25e   :  { %1478 = vmatmul.f32.vlgmr.msra.gmra.mxu1 %v1214_v55  ;;  %1518 = vmatmul.f32.vlgmr.msra.gmra.mxu3 %v1214_v55  ;;  %v1342_v28 = vmul.f32 %v3625_v43, %v6019_v21  ;;  %v1319_v56 = vsel %vm1318_vm6, %v3623_v23, %v1315_v16  ;;  %v3627_v4 = vpop.eup %3626  ;;  %vm1347_vm8 = vweird.f32 %v3625_v43  ;;  %v9172_v55 = vld [vmem:[#allocation30_spill] sm:$0xff]  ;;  %v6128_v23 = vld [vmem:[#allocation2 + $0x120] sm:$0xff]  ;;  %v6156_v16 = vld [vmem:[#allocation2 + $0xd0] sm:$0xff] }
 0x25f   :  { %1609 = vmatpush.msrb.mxu1 %v5452_v14  ;;  %1649 = vmatpush.msrb.mxu3 %v5455_v30  ;;  %v1324_v32 = vsel %vm1321_vm7, %v1323_v59, %v1319_v56  ;;  %vm1348_vm10 = vmor %vm1346_vm9, %vm1347_vm8  ;;  %v6160_v59 = vld [vmem:[#allocation2 + $0xa0] sm:$0xff]  ;;  %v6164_v56 = vld [vmem:[#allocation2 + $0xb0] sm:$0xff] }
 0x260   :  { %v1343_v53 = vsub.f32 1.0, %v1342_v28  ;;  %v1358_v58 = vmul.f32 %v3627_v4, %v1324_v32  ;;  %v9182_v28 = vld [vmem:[#allocation50_spill] sm:$0xff]  ;;  %v9183_v4 = vld [vmem:[#allocation53_spill] sm:$0xff] }
 0x261   :  { %1610 = vmatpush.msrb.mxu1 %v5459_v7  ;;  %1650 = vmatpush.msrb.mxu3 %v5462_v24  ;;  %v1352_v7 = vand.u32 2147483648, %v6019_v21  ;;  %v1350_v24 = vand.u32 2147483647, %v6019_v21  ;;  %v9173_v21 = vld [vmem:[#allocation33_spill] sm:$0xff] }
 0x262   :  { %v1344_v6 = vmul.f32 %v3625_v43, %v1343_v53  ;;  %v6050_v14 = vadd.f32 %v1358_v58, %v1357_v15  ;;  %v6168_v32 = vld [vmem:[#allocation2 + $0x80] sm:$0xff]  ;;  %v9184_v53 = vld [vmem:[#allocation54_spill] sm:$0xff]  ;;  %v6172_v15 = vld [vmem:[#allocation2 + $0x90] sm:$0xff] }
 0x263   :  { %1611 = vmatpush.msrb.mxu1 %v5467_v60  ;;  %1651 = vmatpush.msrb.mxu3 %v5470_v1  ;;  %v1353_v1 = vor.u32 1.1754944e-38, %v1352_v7  ;;  %vm1351_vm11 = vcmp.eq.f32.partialorder %v1350_v24, 8.507059e+37  ;;  %v9185_v58 = vld [vmem:[#allocation57_spill] sm:$0xff]  ;;  %v6180_v7 = vld [vmem:[#allocation2 + $0x70] sm:$0xff] }
 0x264   :  { %v1345_v30 = vadd.f32 %v3625_v43, %v1344_v6  ;;  %3628 = vtanh.f32 %v6050_v14  ;;  %v6176_v6 = vld [vmem:[#allocation2 + $0x60] sm:$0xff] }
 0x265   :  { %1612 = vmatpush.msrb.mxu1 %v5475_v2  ;;  %1652 = vmatpush.msrb.mxu3 %v5478_v3  ;;  %9186 = vst [vmem:[#allocation16_spill] sm:$0xff] %v6176_v6  ;;  %v9189_v24 = vld [vmem:[#allocation61_spill] sm:$0xff] }
 0x266   :  { %v1349_v60 = vsel %vm1348_vm10, %v3625_v43, %v1345_v30  ;;  %v9180_v43 = vld [vmem:[#allocation46_spill] sm:$0xff] }
 0x267   :  { %1613 = vmatpush.msrb.mxu1 %v9164_v41  ;;  %1653 = vmatpush.msrb.mxu3 %v5486_v26  ;;  %v1354_v3 = vsel %vm1351_vm11, %v1353_v1, %v1349_v60  ;;  %v6070_v26 = vld [vmem:[#allocation2 + $0x200] sm:$0xff]  ;;  %v9187_v30 = vld [vmem:[#allocation58_spill] sm:$0xff]  ;;  %v9191_v60 = vld [vmem:[#allocation20_spill] sm:$0xff] }
 0x268   :  { %v6184_v41 = vld [vmem:[#allocation2 + $0x40] sm:$0xff]  ;;  %v6188_v1 = vld [vmem:[#allocation2 + $0x50] sm:$0xff] }
 0x269   :  { %1614 = vmatpush.msrb.mxu1 %v5489_v29  ;;  %1654 = vmatpush.msrb.mxu3 %v5492_v37  ;;  %v6073_v29 = vld [vmem:[#allocation2 + $0x210] sm:$0xff] }
 0x26a   :  { %v3629_v2 = vpop.eup %3628  ;;  %v6081_v37 = vld [vmem:[#allocation2 + $0x1f0] sm:$0xff] }
 0x26b   :  { %1615 = vmatpush.msrb.mxu1 %v5495_v10  ;;  %1655 = vmatpush.msrb.mxu3 %v5498_v22  ;;  %v6064_v46 = vmul.f32 %v3629_v2, %v1354_v3  ;;  %v6078_v22 = vld [vmem:[#allocation2 + $0x1e0] sm:$0xff]  ;;  %v9193_v2 = vld [vmem:[#allocation23_spill] sm:$0xff] }
 0x26c   :  { %v9165_v10 = vld [vmem:[#allocation17_spill] sm:$0xff] }
 0x26d   :  { %1616 = vmatpush.msrb.mxu1 %v5503_v36  ;;  %1656 = vmatpush.msrb.mxu3 %v5506_v48  ;;  %v6086_v36 = vld [vmem:[#allocation2 + $0x1c0] sm:$0xff]  ;;  %v6089_v48 = vld [vmem:[#allocation2 + $0x1d0] sm:$0xff]  ;;  %9188 = vst [vmem:[#allocation17_spill] sm:$0xff] %v6180_v7 }
 0x26e   :  { %1378 = vmatmul.f32.vlgmr.msrb.gmra.mxu0 %v6064_v46  ;;  %1418 = vmatmul.f32.vlgmr.msrb.gmra.mxu2 %v6064_v46  ;;  %v6192_v3 = vld [vmem:[#allocation2 + $0x20] sm:$0xff] }
 0x26f   :  { %1585 = vmatpush.msrb.mxu0 %v6070_v26  ;;  %1625 = vmatpush.msrb.mxu2 %v6073_v29 }
 0x270   :  { %1617 = vmatpush.msrb.mxu1 %v5513_v40  ;;  %1657 = vmatpush.msrb.mxu3 %v5516_v0  ;;  %v9166_v40 = vld [vmem:[#allocation18_spill] sm:$0xff]  ;;  %v9167_v0 = vld [vmem:[#allocation21_spill] sm:$0xff] }
 0x271   :  { %1586 = vmatpush.msrb.mxu0 %v6078_v22  ;;  %1626 = vmatpush.msrb.mxu2 %v6081_v37  ;;  %9190 = vst [vmem:[#allocation18_spill] sm:$0xff] %v6184_v41 }
 0x272   :  { %1618 = vmatpush.msrb.mxu1 %v5521_v49  ;;  %1658 = vmatpush.msrb.mxu3 %v9165_v10  ;;  %v9168_v49 = vld [vmem:[#allocation22_spill] sm:$0xff]  ;;  %9192 = vst [vmem:[#allocation21_spill] sm:$0xff] %v6188_v1  ;;  %v9195_v10 = vld [vmem:[#allocation24_spill] sm:$0xff] }
 0x273   :  { %1587 = vmatpush.msrb.mxu0 %v6086_v36  ;;  %1627 = vmatpush.msrb.mxu2 %v6089_v48  ;;  %9194 = vst [vmem:[#allocation22_spill] sm:$0xff] %v6192_v3 }
 0x274   :  { %1619 = vmatpush.msrb.mxu1 %v9166_v40  ;;  %1659 = vmatpush.msrb.mxu3 %v9167_v0  ;;  %v6196_v40 = vld [vmem:[#allocation2 + $0x30] sm:$0xff] }
 0x275   :  { %1588 = vmatpush.msrb.mxu0 %v6094_v45  ;;  %1628 = vmatpush.msrb.mxu2 %v6097_v19  ;;  %9196 = vst [vmem:[#allocation25_spill] sm:$0xff] %v6196_v40  ;;  %v9197_v0 = vld [vmem:[#allocation27_spill] sm:$0xff] }
 0x276   :  { %1620 = vmatpush.msrb.mxu1 %v9168_v49  ;;  %1660 = vmatpush.msrb.mxu3 %v9169_v35  ;;  %v9198_v49 = vld [vmem:[#allocation28_spill] sm:$0xff]  ;;  %v9199_v35 = vld [vmem:[#allocation19_spill] sm:$0xff] }
 0x277   :  { %1458 = vmatmul.f32.vlgmr.msra.gmra.mxu0 %v6064_v46  ;;  %1498 = vmatmul.f32.vlgmr.msra.gmra.mxu2 %v6064_v46 }
 0x278   :  { %1589 = vmatpush.msrb.mxu0 %v6104_v5  ;;  %1621 = vmatmul.f32.vlgmr.msrb.gmra.mxu1 %v6064_v46 }
 0x279   :  { %1629 = vmatpush.msrb.mxu2 %v6108_v61  ;;  %1661 = vmatmul.f32.vlgmr.msrb.gmra.mxu3 %v6064_v46 }
 0x27a   :  { %1590 = vmatpush.msrb.mxu0 %v6112_v27  ;;  %1752 = vmatpush.msra.mxu1 %v9170_v17  ;;  %v9200_v17 = vld [vmem:[#allocation31_spill] sm:$0xff] }
 0x27b   :  { %1630 = vmatpush.msrb.mxu2 %v6116_v33  ;;  %1792 = vmatpush.msra.mxu3 %v9171_v50  ;;  %v9201_v50 = vld [vmem:[#allocation62_spill] sm:$0xff] }
 0x27c   :  { %1591 = vmatpush.msrb.mxu0 %v6120_v38  ;;  %1753 = vmatpush.msra.mxu1 %v9172_v55  ;;  %v9202_v55 = vld [vmem:[#allocation32_spill] sm:$0xff] }
 0x27d   :  { %1631 = vmatpush.msrb.mxu2 %v6124_v47  ;;  %1793 = vmatpush.msra.mxu3 %v9173_v21  ;;  %v9203_v21 = vld [vmem:[#allocation65_spill] sm:$0xff] }
 0x27e   :  { %1592 = vmatpush.msrb.mxu0 %v6128_v23  ;;  %1754 = vmatpush.msra.mxu1 %v9174_v31  ;;  %v9204_v31 = vld [vmem:[#allocation35_spill] sm:$0xff] }
 0x27f   :  { %1632 = vmatpush.msrb.mxu2 %v6132_v11  ;;  %1794 = vmatpush.msra.mxu3 %v9175_v8  ;;  %v9205_v8 = vld [vmem:[#allocation66_spill] sm:$0xff] }
 0x280   :  { %1593 = vmatpush.msrb.mxu0 %v6136_v39  ;;  %1755 = vmatpush.msra.mxu1 %v9176_v25  ;;  %v9206_v25 = vld [vmem:[#allocation36_spill] sm:$0xff] }
 0x281   :  { %1633 = vmatpush.msrb.mxu2 %v6140_v9  ;;  %1795 = vmatpush.msra.mxu3 %v9177_v62  ;;  %v9208_v62 = vld [vmem:[#allocation39_spill] sm:$0xff] }
 0x282   :  { %1594 = vmatpush.msrb.mxu0 %v6144_v13  ;;  %1756 = vmatpush.msra.mxu1 %v9178_v18  ;;  %v9209_v18 = vld [vmem:[#allocation70_spill] sm:$0xff] }
 0x283   :  { %1634 = vmatpush.msrb.mxu2 %v6148_v52  ;;  %1796 = vmatpush.msra.mxu3 %v9179_v51  ;;  %v9210_v51 = vld [vmem:[#allocation40_spill] sm:$0xff] }
 0x284   :  { %1595 = vmatpush.msrb.mxu0 %v6152_v12  ;;  %1757 = vmatpush.msra.mxu1 %v9180_v43  ;;  %v9211_v43 = vld [vmem:[#allocation73_spill] sm:$0xff] }
 0x285   :  { %1635 = vmatpush.msrb.mxu2 %v6156_v16  ;;  %1797 = vmatpush.msra.mxu3 %v9181_v63  ;;  %v9212_v63 = vld [vmem:[#allocation43_spill] sm:$0xff] }
 0x286   :  { %1596 = vmatpush.msrb.mxu0 %v6160_v59  ;;  %1758 = vmatpush.msra.mxu1 %v9182_v28  ;;  %v9213_v28 = vld [vmem:[#allocation74_spill] sm:$0xff] }
 0x287   :  { %1636 = vmatpush.msrb.mxu2 %v6164_v56  ;;  %1798 = vmatpush.msra.mxu3 %v9183_v4  ;;  %v9214_v4 = vld [vmem:[#allocation47_spill] sm:$0xff] }
 0x288   :  { %1597 = vmatpush.msrb.mxu0 %v6168_v32  ;;  %1759 = vmatpush.msra.mxu1 %v9184_v53  ;;  %v9215_v53 = vld [vmem:[#allocation77_spill] sm:$0xff] }
 0x289   :  { %1637 = vmatpush.msrb.mxu2 %v6172_v15  ;;  %1799 = vmatpush.msra.mxu3 %v9185_v58  ;;  %v9216_v58 = vld [vmem:[#allocation51_spill] sm:$0xff] }
 0x28a   :  { %1598 = vmatpush.msrb.mxu0 %v6176_v6  ;;  %1760 = vmatpush.msra.mxu1 %v9187_v30  ;;  %v9217_v30 = vld [vmem:[#allocation78_spill] sm:$0xff] }
 0x28b   :  { %1638 = vmatpush.msrb.mxu2 %v6180_v7  ;;  %1800 = vmatpush.msra.mxu3 %v9189_v24  ;;  %v9218_v24 = vld [vmem:[#allocation52_spill] sm:$0xff] }
 0x28c   :  { %1599 = vmatpush.msrb.mxu0 %v6184_v41  ;;  %1761 = vmatpush.msra.mxu1 %v9191_v60  ;;  %v9219_v60 = vld [vmem:[#allocation55_spill] sm:$0xff] }
 0x28d   :  { %1639 = vmatpush.msrb.mxu2 %v6188_v1  ;;  %1801 = vmatpush.msra.mxu3 %v9193_v2  ;;  %v9220_v2 = vld [vmem:[#allocation81_spill] sm:$0xff] }
 0x28e   :  { %1600 = vmatpush.msrb.mxu0 %v6192_v3  ;;  %1762 = vmatpush.msra.mxu1 %v9195_v10  ;;  %v9221_v10 = vld [vmem:[#allocation82_spill] sm:$0xff] }
 0x28f   :  { %1640 = vmatpush.msrb.mxu2 %v6196_v40  ;;  %1601 = vmatmul.f32.vlgmr.msrb.gmra.mxu0 %v6064_v46 }
 0x290   :  { %1641 = vmatmul.f32.vlgmr.msrb.gmra.mxu2 %v6064_v46  ;;  %1802 = vmatpush.msra.mxu3 %v9197_v0  ;;  %v9207_v46 = vld [vmem:[#allocation69_spill] sm:$0xff]  ;;  %v9222_v0 = vld [vmem:[#allocation59_spill] sm:$0xff] }
 0x291   :  { %1763 = vmatpush.msra.mxu1 %v9198_v49  ;;  %1732 = vmatpush.msra.mxu0 %v9199_v35  ;;  %v9223_v49 = vld [vmem:[#allocation63_spill] sm:$0xff]  ;;  %v9224_v35 = vld [vmem:[#allocation44_spill] sm:$0xff] }
 0x292   :  { %1803 = vmatpush.msra.mxu3 %v9200_v17  ;;  %1772 = vmatpush.msra.mxu2 %v9201_v50  ;;  %v9225_v17 = vld [vmem:[#allocation48_spill] sm:$0xff]  ;;  %v9226_v50 = vld [vmem:[#allocation67_spill] sm:$0xff] }
 0x293   :  { %1764 = vmatpush.msra.mxu1 %v9202_v55  ;;  %1733 = vmatpush.msra.mxu0 %v9203_v21  ;;  %v9227_v55 = vld [vmem:[#allocation71_spill] sm:$0xff]  ;;  %v9228_v21 = vld [vmem:[#allocation56_spill] sm:$0xff] }
 0x294   :  { %1804 = vmatpush.msra.mxu3 %v9204_v31  ;;  %1773 = vmatpush.msra.mxu2 %v9205_v8  ;;  %v9229_v31 = vld [vmem:[#allocation60_spill] sm:$0xff]  ;;  %v9230_v8 = vld [vmem:[#allocation75_spill] sm:$0xff] }
 0x295   :  { %1765 = vmatpush.msra.mxu1 %v9206_v25  ;;  %1734 = vmatpush.msra.mxu0 %v9207_v46  ;;  %v9231_v25 = vld [vmem:[#allocation79_spill] sm:$0xff]  ;;  %v9232_v46 = vld [vmem:[#allocation64_spill] sm:$0xff] }
 0x296   :  { %1805 = vmatpush.msra.mxu3 %v9208_v62  ;;  %1774 = vmatpush.msra.mxu2 %v9209_v18  ;;  %v9233_v62 = vld [vmem:[#allocation68_spill] sm:$0xff]  ;;  %v9234_v18 = vld [vmem:[#allocation83_spill] sm:$0xff] }
 0x297   :  { %1766 = vmatpush.msra.mxu1 %v9210_v51  ;;  %1735 = vmatpush.msra.mxu0 %v9211_v43  ;;  %v9235_v51 = vld [vmem:[#allocation85_spill] sm:$0xff]  ;;  %v9236_v43 = vld [vmem:[#allocation72_spill] sm:$0xff] }
 0x298   :  { %1806 = vmatpush.msra.mxu3 %v9212_v63  ;;  %1775 = vmatpush.msra.mxu2 %v9213_v28  ;;  %v9237_v63 = vld [vmem:[#allocation76_spill] sm:$0xff] }
 0x299   :  { %1767 = vmatpush.msra.mxu1 %v9214_v4  ;;  %1736 = vmatpush.msra.mxu0 %v9215_v53  ;;  %v9238_v28 = vld [vmem:[#allocation88_spill] sm:$0xff]  ;;  %v9239_v4 = vld [vmem:[#allocation91_spill] sm:$0xff] }
 0x29a   :  { %1807 = vmatpush.msra.mxu3 %v9216_v58  ;;  %1776 = vmatpush.msra.mxu2 %v9217_v30  ;;  %v9240_v53 = vld [vmem:[#allocation80_spill] sm:$0xff]  ;;  %v9242_v30 = vld [vmem:[#allocation94_spill] sm:$0xff] }
 0x29b   :  { %1832 = vmatpush.msrb.mxu1 %v9218_v24  ;;  %1737 = vmatpush.msra.mxu0 %v9220_v2  ;;  %v9241_v58 = vld [vmem:[#allocation84_spill] sm:$0xff]  ;;  %v9245_v2 = vld [vmem:[#allocation89_spill] sm:$0xff] }
 0x29c   :  { %1872 = vmatpush.msrb.mxu3 %v9219_v60  ;;  %1777 = vmatpush.msra.mxu2 %v9221_v10  ;;  %v9243_v24 = vld [vmem:[#allocation100_spill] sm:$0xff]  ;;  %v9244_v60 = vld [vmem:[#allocation86_spill] sm:$0xff] }
 0x29d   :  { %1833 = vmatpush.msrb.mxu1 %v9222_v0  ;;  %1738 = vmatpush.msra.mxu0 %v9224_v35  ;;  %v9246_v10 = vld [vmem:[#allocation6_spill] sm:$0xff]  ;;  %v9247_v0 = vld [vmem:[#allocation8_spill] sm:$0xff] }
 0x29e   :  { %1873 = vmatpush.msrb.mxu3 %v9223_v49  ;;  %1778 = vmatpush.msra.mxu2 %v9225_v17  ;;  %v9248_v49 = vld [vmem:[#allocation92_spill] sm:$0xff]  ;;  %v9249_v35 = vld [vmem:[#allocation98_spill] sm:$0xff] }
 0x29f   :  { %1834 = vmatpush.msrb.mxu1 %v9226_v50  ;;  %1739 = vmatpush.msra.mxu0 %v9228_v21  ;;  %v9250_v17 = vld [vmem:[#allocation10_spill] sm:$0xff]  ;;  %v9251_v50 = vld [vmem:[#allocation101_spill] sm:$0xff]  ;;  %v9253_v21 = vld [vmem:[#allocation7_spill] sm:$0xff] }
 0x2a0   :  { %1874 = vmatpush.msrb.mxu3 %v9227_v55  ;;  %1779 = vmatpush.msra.mxu2 %v9229_v31  ;;  %v9252_v55 = vld [vmem:[#allocation5_spill] sm:$0xff]  ;;  %v9254_v31 = vld [vmem:[#allocation103_spill] sm:$0xff] }
 0x2a1   :  { %1835 = vmatpush.msrb.mxu1 %v9230_v8  ;;  %1740 = vmatpush.msra.mxu0 %v9232_v46  ;;  %v9255_v8 = vld [vmem:[#allocation105_spill] sm:$0xff]  ;;  %v9257_v46 = vld [vmem:[#allocation11_spill] sm:$0xff] }
 0x2a2   :  { %1875 = vmatpush.msrb.mxu3 %v9231_v25  ;;  %1780 = vmatpush.msra.mxu2 %v9233_v62  ;;  %v9256_v25 = vld [vmem:[#allocation9_spill] sm:$0xff]  ;;  %v9258_v62 = vld [vmem:[#allocation107_spill] sm:$0xff] }
 0x2a3   :  { %1836 = vmatpush.msrb.mxu1 %v9234_v18  ;;  %1741 = vmatpush.msra.mxu0 %v9236_v43  ;;  %v9259_v18 = vld [vmem:[#allocation109_spill] sm:$0xff]  ;;  %v9261_v43 = vld [vmem:[#allocation104_spill] sm:$0xff] }
 0x2a4   :  { %1876 = vmatpush.msrb.mxu3 %v9235_v51  ;;  %1781 = vmatpush.msra.mxu2 %v9237_v63  ;;  %v9260_v51 = vld [vmem:[#allocation102_spill] sm:$0xff]  ;;  %v9262_v63 = vld [vmem:[#allocation111_spill] sm:$0xff] }
 0x2a5   :  { %1837 = vmatpush.msrb.mxu1 %v9238_v28  ;;  %1742 = vmatpush.msra.mxu0 %v9240_v53  ;;  %v9263_v28 = vld [vmem:[#allocation113_spill] sm:$0xff]  ;;  %v9265_v53 = vld [vmem:[#allocation108_spill] sm:$0xff] }
 0x2a6   :  { %1877 = vmatpush.msrb.mxu3 %v9239_v4  ;;  %1782 = vmatpush.msra.mxu2 %v9241_v58  ;;  %v9264_v4 = vld [vmem:[#allocation106_spill] sm:$0xff]  ;;  %v9266_v58 = vld [vmem:[#allocation115_spill] sm:$0xff] }
 0x2a7   :  { %1838 = vmatpush.msrb.mxu1 %v9242_v30  ;;  %1743 = vmatpush.msra.mxu0 %v9244_v60  ;;  %v9267_v30 = vld [vmem:[#allocation117_spill] sm:$0xff]  ;;  %v9269_v60 = vld [vmem:[#allocation112_spill] sm:$0xff] }
 0x2a8   :  { %1878 = vmatpush.msrb.mxu3 %v9243_v24  ;;  %1783 = vmatpush.msra.mxu2 %v9245_v2  ;;  %v9268_v24 = vld [vmem:[#allocation110_spill] sm:$0xff]  ;;  %v9270_v2 = vld [vmem:[#allocation119_spill] sm:$0xff] }
 0x2a9   :  { %1839 = vmatpush.msrb.mxu1 %v9246_v10  ;;  %1744 = vmatpush.msra.mxu0 %v9248_v49  ;;  %v9271_v10 = vld [vmem:[#allocation121_spill] sm:$0xff]  ;;  %v9273_v49 = vld [vmem:[#allocation116_spill] sm:$0xff] }
 0x2aa   :  { %1879 = vmatpush.msrb.mxu3 %v9247_v0  ;;  %1784 = vmatpush.msra.mxu2 %v9249_v35  ;;  %v9272_v0 = vld [vmem:[#allocation114_spill] sm:$0xff]  ;;  %v9274_v35 = vld [vmem:[#allocation123_spill] sm:$0xff] }
 0x2ab   :  { %1840 = vmatpush.msrb.mxu1 %v9250_v17  ;;  %1745 = vmatpush.msra.mxu0 %v9252_v55  ;;  %v9275_v17 = vld [vmem:[#allocation125_spill] sm:$0xff]  ;;  %v9277_v55 = vld [vmem:[#allocation120_spill] sm:$0xff] }
 0x2ac   :  { %1880 = vmatpush.msrb.mxu3 %v9251_v50  ;;  %1785 = vmatpush.msra.mxu2 %v9253_v21  ;;  %v9276_v50 = vld [vmem:[#allocation118_spill] sm:$0xff]  ;;  %v9278_v21 = vld [vmem:[#allocation127_spill] sm:$0xff] }
 0x2ad   :  { %1841 = vmatpush.msrb.mxu1 %v9254_v31  ;;  %1746 = vmatpush.msra.mxu0 %v9256_v25  ;;  %v9279_v31 = vld [vmem:[#allocation129_spill] sm:$0xff]  ;;  %v9281_v25 = vld [vmem:[#allocation124_spill] sm:$0xff] }
 0x2ae   :  { %1881 = vmatpush.msrb.mxu3 %v9255_v8  ;;  %1786 = vmatpush.msra.mxu2 %v9257_v46  ;;  %v9280_v8 = vld [vmem:[#allocation122_spill] sm:$0xff] }
 0x2af   :  { %1842 = vmatpush.msrb.mxu1 %v9258_v62  ;;  %1747 = vmatpush.msra.mxu0 %v9260_v51  ;;  %v9282_v46 = vld [vmem:[#allocation126_spill] sm:$0xff]  ;;  %v9283_v62 = vld [vmem:[#allocation128_spill] sm:$0xff]  ;;  %v9285_v51 = vld [vmem:[#allocation131_spill] sm:$0xff] }
 0x2b0   :  { %1882 = vmatpush.msrb.mxu3 %v9259_v18  ;;  %1787 = vmatpush.msra.mxu2 %v9261_v43  ;;  %v9284_v18 = vld [vmem:[#allocation130_spill] sm:$0xff]  ;;  %v9286_v43 = vld [vmem:[#allocation132_spill] sm:$0xff] }
 0x2b1   :  { %1843 = vmatpush.msrb.mxu1 %v9262_v63  ;;  %1812 = vmatpush.msrb.mxu0 %v9264_v4  ;;  %v9287_v63 = vld [vmem:[#allocation133_spill] sm:$0xff]  ;;  %v9289_v4 = vld [vmem:[#allocation135_spill] sm:$0xff] }
 0x2b2   :  { %1883 = vmatpush.msrb.mxu3 %v9263_v28  ;;  %1852 = vmatpush.msrb.mxu2 %v9265_v53  ;;  %v9288_v28 = vld [vmem:[#allocation134_spill] sm:$0xff]  ;;  %v9290_v53 = vld [vmem:[#allocation136_spill] sm:$0xff] }
 0x2b3   :  { %1844 = vmatpush.msrb.mxu1 %v9266_v58  ;;  %1813 = vmatpush.msrb.mxu0 %v9268_v24  ;;  %v9291_v58 = vld [vmem:[#allocation137_spill] sm:$0xff]  ;;  %v9293_v24 = vld [vmem:[#allocation139_spill] sm:$0xff] }
 0x2b4   :  { %1884 = vmatpush.msrb.mxu3 %v9267_v30  ;;  %1853 = vmatpush.msrb.mxu2 %v9269_v60  ;;  %v9292_v30 = vld [vmem:[#allocation138_spill] sm:$0xff]  ;;  %v9294_v60 = vld [vmem:[#allocation140_spill] sm:$0xff] }
 0x2b5   :  { %1845 = vmatpush.msrb.mxu1 %v9270_v2  ;;  %1814 = vmatpush.msrb.mxu0 %v9272_v0  ;;  %v9295_v2 = vld [vmem:[#allocation141_spill] sm:$0xff]  ;;  %v9297_v0 = vld [vmem:[#allocation143_spill] sm:$0xff] }
 0x2b6   :  { %1885 = vmatpush.msrb.mxu3 %v9271_v10  ;;  %1854 = vmatpush.msrb.mxu2 %v9273_v49  ;;  %v9296_v10 = vld [vmem:[#allocation142_spill] sm:$0xff]  ;;  %v9298_v49 = vld [vmem:[#allocation144_spill] sm:$0xff] }
 0x2b7   :  { %1846 = vmatpush.msrb.mxu1 %v9274_v35  ;;  %1815 = vmatpush.msrb.mxu0 %v9276_v50  ;;  %v9299_v35 = vld [vmem:[#allocation145_spill] sm:$0xff]  ;;  %v9301_v50 = vld [vmem:[#allocation147_spill] sm:$0xff] }
 0x2b8   :  { %1886 = vmatpush.msrb.mxu3 %v9275_v17  ;;  %1855 = vmatpush.msrb.mxu2 %v9277_v55  ;;  %v9300_v17 = vld [vmem:[#allocation146_spill] sm:$0xff]  ;;  %v9302_v55 = vld [vmem:[#allocation148_spill] sm:$0xff] }
 0x2b9   :  { %1847 = vmatpush.msrb.mxu1 %v9278_v21  ;;  %1816 = vmatpush.msrb.mxu0 %v9280_v8  ;;  %v9303_v21 = vld [vmem:[#allocation149_spill] sm:$0xff]  ;;  %v6308_v8 = vpop.permute.xlu1 %60 }
 0x2ba   :  { %1887 = vmatpush.msrb.mxu3 %v9279_v31  ;;  %1856 = vmatpush.msrb.mxu2 %v9281_v25 }
 0x2bb   :  { %1817 = vmatpush.msrb.mxu0 %v9282_v46  ;;  %v9304_v46 = vld [vmem:[#allocation90_spill] sm:$0xff] }
 0x2bc   :  { %1857 = vmatpush.msrb.mxu2 %v9283_v62  ;;  %v105_v62 = vmul.f32 %v9304_v46, %v6308_v8 }
 0x2bd   :  { %1818 = vmatpush.msrb.mxu0 %v9284_v18  ;;  %v9305_v18 = vld [vmem:[#allocation12_spill] sm:$0xff] }
 0x2be   :  { %1858 = vmatpush.msrb.mxu2 %v9285_v51 }
 0x2bf   :  { %1819 = vmatpush.msrb.mxu0 %v9286_v43  ;;  %v6313_v43 = vpop.permute.xlu2 %180 }
 0x2c0   :  { %1859 = vmatpush.msrb.mxu2 %v9287_v63  ;;  %v222_v3 = vmul.f32 %v4980_v54, %v6313_v43 }
 0x2c1   :  { %1820 = vmatpush.msrb.mxu0 %v9288_v28 }
 0x2c2   :  { %1860 = vmatpush.msrb.mxu2 %v9289_v4 }
 0x2c3   :  { %1821 = vmatpush.msrb.mxu0 %v9290_v53  ;;  %v9306_v53 = vld [vmem:[#allocation96_spill] sm:$0xff] }
 0x2c4   :  { %1861 = vmatpush.msrb.mxu2 %v9291_v58  ;;  %v146_v58 = vadd.f32 %v9306_v53, %v105_v62 }
 0x2c5   :  { %1822 = vmatpush.msrb.mxu0 %v9292_v30  ;;  %v9307_v30 = vld [vmem:[#allocation97_spill] sm:$0xff] }
 0x2c6   :  { %1862 = vmatpush.msrb.mxu2 %v9293_v24  ;;  %v221_v24 = vmul.f32 %v9307_v30, %v6313_v43 }
 0x2c7   :  { %1823 = vmatpush.msrb.mxu0 %v9294_v60 }
 0x2c8   :  { %1863 = vmatpush.msrb.mxu2 %v9295_v2  ;;  %v9308_v2 = vld [vmem:[#allocation13_spill] sm:$0xff] }
 0x2c9   :  { %1824 = vmatpush.msrb.mxu0 %v9296_v10 }
 0x2ca   :  { %1864 = vmatpush.msrb.mxu2 %v9297_v0 }
 0x2cb   :  { %1825 = vmatpush.msrb.mxu0 %v9298_v49 }
 0x2cc   :  { %1865 = vmatpush.msrb.mxu2 %v9299_v35 }
 0x2cd   :  { %1826 = vmatpush.msrb.mxu0 %v9300_v17  ;;  %v253_v17 = vadd.f32 %v221_v24, %v146_v58 }
 0x2ce   :  { %1866 = vmatpush.msrb.mxu2 %v9301_v50  ;;  %v9309_v50 = vld [vmem:[#allocation14_spill] sm:$0xff] }
 0x2cf   :  { %1827 = vmatpush.msrb.mxu0 %v9302_v55 }
 0x2d0   :  { %1867 = vmatpush.msrb.mxu2 %v9303_v21 }
 0x2d3   :  { %v1399_v31 = vpop.f32.mrf.mxu1 }
 0x2d9   :  { %v1439_v0 = vpop.f32.mrf.mxu3 }
 0x2db   :  { %v1479_v63 = vpop.f32.mrf.mxu1 }
 0x2eb   :  { %v1379_v25 = vpop.f32.mrf.mxu0 }
 0x2ec   :  { %v1380_v51 = vadd.f32 %v1379_v25, %v9305_v18 }
 0x2ee   :  { %v1400_v28 = vadd.f32 %v1399_v31, %v1380_v51 }
 0x2f0   :  { %v3497_v4 = vmul.f32 -1.442695, %v1400_v28 }
 0x2f1   :  { %v1419_v60 = vpop.f32.mrf.mxu2 }
 0x2f2   :  { %3630 = vpow2.f32 %v3497_v4  ;;  %v1420_v10 = vadd.f32 %v1419_v60, %v9308_v2 }
 0x2f4   :  { %v1440_v49 = vadd.f32 %v1439_v0, %v1420_v10  ;;  %v1459_v35 = vpop.f32.mrf.mxu0  ;;  %v9310_v0 = vld [vmem:[#allocation15_spill] sm:$0xff] }
 0x2f5   :  { %v1460_v55 = vadd.f32 %v1459_v35, %v9309_v50  ;;  %v1622_v21 = vpop.f32.mrf.mxu1  ;;  %v9313_v50 = vld [vmem:[#allocation95_spill] sm:$0xff] }
 0x2f6   :  { %v3498_v25 = vmul.f32 -1.442695, %v1440_v49  ;;  %v1666_v18 = vadd.f32 %v1622_v21, %v253_v17  ;;  %v9311_v49 = vld [vmem:[#allocation87_spill] sm:$0xff] }
 0x2f7   :  { %v1480_v31 = vadd.f32 %v1479_v63, %v1460_v55  ;;  %v104_v63 = vmul.f32 %v9311_v49, %v6308_v8 }
 0x2f8   :  { %v3631_v51 = vpop.eup %3630  ;;  %3632 = vpow2.f32 %v3498_v25  ;;  %v3501_v53 = vmul.f32 -1.442695, %v1666_v18  ;;  %v1519_v18 = vpop.f32.mrf.mxu3 }
 0x2f9   :  { %v1531_v62 = vadd.f32 1.0, %v3631_v51  ;;  %v3499_v28 = vmul.f32 -1.442695, %v1480_v31 }
 0x2fa   :  { %v1499_v2 = vpop.f32.mrf.mxu2 }
 0x2fb   :  { %3634 = vrcp.f32 %v1531_v62  ;;  %v1500_v35 = vadd.f32 %v1499_v2, %v9310_v0  ;;  %v220_v2 = vmul.f32 %v9313_v50, %v6313_v43  ;;  %vm1539_vm13 = vweird.f32 %v1531_v62 }
 0x2fc   :  { %3636 = vpow2.f32 %v3499_v28  ;;  %v9312_v28 = vld [vmem:[#allocation93_spill] sm:$0xff]  ;;  %v1543_v40 = vand.u32 2147483647, %v1531_v62 }
 0x2fd   :  { %3638 = vpow2.f32 %v3501_v53  ;;  %v1520_v25 = vadd.f32 %v1519_v18, %v1500_v35 }
 0x2fe   :  { %v3633_v4 = vpop.eup %3632  ;;  %vm1544_vm1 = vcmp.eq.f32.partialorder %v1543_v40, 8.507059e+37 }
 0x2ff   :  { %v1532_v60 = vadd.f32 1.0, %v3633_v4  ;;  %v145_v4 = vadd.f32 %v9312_v28, %v104_v63 }
 0x301   :  { %v3635_v10 = vpop.eup %3634  ;;  %3640 = vrcp.f32 %v1532_v60  ;;  %v252_v18 = vadd.f32 %v220_v2, %v145_v4  ;;  %vm1554_vm0 = vweird.f32 %v1532_v60 }
 0x302   :  { %v3637_v58 = vpop.eup %3636  ;;  %v1535_v24 = vmul.f32 %v3635_v10, %v1531_v62  ;;  %vm1540_vm12 = vweird.f32 %v3635_v10 }
 0x303   :  { %v6323_v17 = vadd.f32 1.0, %v3637_v58  ;;  %v3639_v55 = vpop.eup %3638  ;;  %v9314_v58 = vld [vmem:[#allocation99_spill] sm:$0xff]  ;;  %vm6334_vm14 = vmor %vm1539_vm13, %vm1540_vm12 }
 0x304   :  { %v1536_v21 = vsub.f32 1.0, %v1535_v24  ;;  %v6326_v51 = vadd.f32 1.0, %v3639_v55  ;;  %v106_v49 = vmul.f32 %v9314_v58, %v6308_v8  ;;  %v1545_v24 = vand.u32 2147483648, %v1531_v62 }
 0x305   :  { %3642 = vrcp.f32 %v6323_v17  ;;  %v1558_v55 = vand.u32 2147483647, %v1532_v60  ;;  %vm1569_vm5 = vweird.f32 %v6323_v17 }
 0x306   :  { %v1537_v53 = vmul.f32 %v3635_v10, %v1536_v21  ;;  %3644 = vtanh.f32 %v1520_v25  ;;  %v1560_v21 = vand.u32 2147483648, %v1532_v60  ;;  %v1546_v62 = vor.u32 1.1754944e-38, %v1545_v24 }
 0x307   :  { %v3641_v31 = vpop.eup %3640  ;;  %3646 = vrcp.f32 %v6326_v51  ;;  %v147_v28 = vadd.f32 %v4977_v20, %v106_v49  ;;  %vm1559_vm3 = vcmp.eq.f32.partialorder %v1558_v55, 8.507059e+37  ;;  %vm1701_vm9 = vweird.f32 %v6326_v51 }
 0x308   :  { %v1550_v0 = vmul.f32 %v3641_v31, %v1532_v60  ;;  %v1538_v30 = vadd.f32 %v3635_v10, %v1537_v53  ;;  %vm1555_vm15 = vweird.f32 %v3641_v31 }
 0x309   :  { %vm1556_vm2 = vmor %vm1554_vm0, %vm1555_vm15  ;;  %v254_v63 = vadd.f32 %v222_v3, %v147_v28 }
 0x30a   :  { %v1551_v46 = vsub.f32 1.0, %v1550_v0  ;;  %v1542_v0 = vsel %vm6334_vm14, %v3635_v10, %v1538_v30 }
 0x30b   :  { %v3643_v35 = vpop.eup %3642  ;;  %v1547_v4 = vsel %vm1544_vm1, %v1546_v62, %v1542_v0 }
 0x30c   :  { %v1552_v53 = vmul.f32 %v3641_v31, %v1551_v46  ;;  %v1565_v50 = vmul.f32 %v3643_v35, %v6323_v17  ;;  %v1602_v58 = vpop.f32.mrf.mxu0  ;;  %v1561_v46 = vor.u32 1.1754944e-38, %v1560_v21  ;;  %v3645_v7 = vpop.eup %3644  ;;  %vm1570_vm4 = vweird.f32 %v3643_v35 }
 0x30d   :  { %v1665_v25 = vadd.f32 %v1602_v58, %v252_v18  ;;  %v6344_v30 = vpop.eup %3646  ;;  %v1581_v24 = vmul.f32 %v3645_v7, %v1547_v4  ;;  %v1573_v7 = vand.u32 2147483647, %v6323_v17  ;;  %vm1571_vm6 = vmor %vm1569_vm5, %vm1570_vm4 }
 0x30e   :  { %v1566_v1 = vsub.f32 1.0, %v1565_v50  ;;  %v1553_v41 = vadd.f32 %v3641_v31, %v1552_v53  ;;  %v1697_v21 = vmul.f32 %v6344_v30, %v6326_v51  ;;  %vm1702_vm8 = vweird.f32 %v6344_v30 }
 0x30f   :  { %v3500_v2 = vmul.f32 -1.442695, %v1665_v25  ;;  %vm1574_vm7 = vcmp.eq.f32.partialorder %v1573_v7, 8.507059e+37  ;;  %vm6385_vm10 = vmor %vm1701_vm9, %vm1702_vm8  ;;  %v6393_v7 = vld [vmem:[#allocation2 + $0x1d8] sm:$0xff] }
 0x310   :  { %v1557_v6 = vsel %vm1556_vm2, %v3641_v31, %v1553_v41  ;;  %v1567_v58 = vmul.f32 %v3643_v35, %v1566_v1  ;;  %v107_v41 = vmul.f32 %v5018_v34, %v6308_v8  ;;  %v1575_v1 = vand.u32 2147483648, %v6323_v17  ;;  %v1662_v17 = vpop.f32.mrf.mxu3 }
 0x311   :  { %v1562_v10 = vsel %vm1559_vm3, %v1561_v46, %v1557_v6  ;;  %3648 = vpow2.f32 %v3500_v2  ;;  %v1698_v31 = vsub.f32 1.0, %v1697_v21  ;;  %v223_v8 = vmul.f32 %v5038_v44, %v6313_v43  ;;  %v6369_v43 = vld [vmem:[#allocation2 + $0x218] sm:$0xff] }
 0x312   :  { %v1580_v49 = vmul.f32 %v1562_v10, %v6007_v57  ;;  %v1568_v18 = vadd.f32 %v3643_v35, %v1567_v58  ;;  %v148_v55 = vadd.f32 %v5035_v42, %v107_v41  ;;  %v1576_v53 = vor.u32 1.1754944e-38, %v1575_v1  ;;  %v6380_v21 = vld [vmem:[#allocation2 + $0x1f8] sm:$0xff] }
 0x313   :  { %v1642_v60 = vpop.f32.mrf.mxu2  ;;  %v1699_v25 = vmul.f32 %v6344_v30, %v1698_v31 }
 0x314   :  { %v6347_v50 = vadd.f32 %v1581_v24, %v1580_v49  ;;  %v1667_v40 = vadd.f32 %v1642_v60, %v254_v63  ;;  %v1572_v28 = vsel %vm1571_vm6, %v3643_v35, %v1568_v18  ;;  %v255_v2 = vadd.f32 %v223_v8, %v148_v55  ;;  %v6366_v49 = vld [vmem:[#allocation2 + $0x208] sm:$0xff] }
 0x315   :  { %v1577_v62 = vsel %vm1574_vm7, %v1576_v53, %v1572_v28  ;;  %v1700_v24 = vadd.f32 %v6344_v30, %v1699_v25  ;;  %v1707_v60 = vand.u32 2147483648, %v6326_v51  ;;  %v1705_v18 = vand.u32 2147483647, %v6326_v51  ;;  %v6400_v8 = vld [vmem:[#allocation2 + $0x1a8] sm:$0xff]  ;;  %v6403_v53 = vld [vmem:[#allocation2 + $0x1b8] sm:$0xff] }
 0x316   :  { %3650 = vtanh.f32 %v6347_v50  ;;  %v3502_v6 = vmul.f32 -1.442695, %v1667_v40  ;;  %v1668_v58 = vadd.f32 %v1662_v17, %v255_v2  ;;  %v6377_v40 = vld [vmem:[#allocation2 + $0x1e8] sm:$0xff] }
 0x317   :  { %v3649_v57 = vpop.eup %3648  ;;  %v1704_v51 = vsel %vm6385_vm10, %v6344_v30, %v1700_v24  ;;  %v1708_v55 = vor.u32 1.1754944e-38, %v1707_v60  ;;  %vm1706_vm12 = vcmp.eq.f32.partialorder %v1705_v18, 8.507059e+37  ;;  %v37_v30 = vld [vmem:[%s8254_s0 + $0x20] sm:$0xff]  ;;  %v6415_v2 = vld [vmem:[#allocation2 + $0x188] sm:$0xff]  ;;  %v6424_v18 = vld [vmem:[#allocation2 + $0x178] sm:$0xff] }
 0x318   :  { %v6357_v3 = vadd.f32 1.0, %v3649_v57  ;;  %3652 = vpow2.f32 %v3502_v6  ;;  %v6390_v57 = vld [vmem:[#allocation2 + $0x1c8] sm:$0xff]  ;;  %65 = vperm.xlu0 %3543, %v37_v30   ;;  %184 = vperm.xlu1 %3544, %v37_v30  }
 0x319   :  { %v1709_v25 = vsel %vm1706_vm12, %v1708_v55, %v1704_v51  ;;  %v6421_v60 = vld [vmem:[#allocation2 + $0x168] sm:$0xff]  ;;  %v6432_v51 = vld [vmem:[#allocation2 + $0x158] sm:$0xff] }
 0x31a   :  { %3654 = vrcp.f32 %v6357_v3  ;;  %v1692_v1 = vand.u32 2147483648, %v6357_v3  ;;  %v1690_v28 = vand.u32 2147483647, %v6357_v3  ;;  %vm1686_vm13 = vweird.f32 %v6357_v3  ;;  %v6439_v55 = vld [vmem:[#allocation2 + $0x128] sm:$0xff] }
 0x31c   :  { %v3651_v0 = vpop.eup %3650  ;;  %v1693_v17 = vor.u32 1.1754944e-38, %v1692_v1  ;;  %vm1691_vm15 = vcmp.eq.f32.partialorder %v1690_v28, 8.507059e+37 }
 0x31d   :  { %v1584_v46 = vmul.f32 %v3651_v0, %v1577_v62 }
 0x31e   :  { %v3653_v4 = vpop.eup %3652 }
 0x31f   :  { %v6364_v10 = vadd.f32 1.0, %v3653_v4  ;;  %1768 = vmatmul.f32.vlgmr.msra.gmra.mxu1 %v1584_v46  ;;  %1808 = vmatmul.f32.vlgmr.msra.gmra.mxu3 %v1584_v46 }
 0x320   :  { %v3655_v35 = vpop.eup %3654  ;;  %1975 = vmatpush.msra.mxu1 %v6366_v49  ;;  %2015 = vmatpush.msra.mxu3 %v6369_v43 }
 0x321   :  { %v1682_v63 = vmul.f32 %v3655_v35, %v6357_v3  ;;  %3656 = vrcp.f32 %v6364_v10  ;;  %vm1687_vm11 = vweird.f32 %v3655_v35  ;;  %vm1716_vm1 = vweird.f32 %v6364_v10 }
 0x322   :  { %1976 = vmatpush.msra.mxu1 %v6377_v40  ;;  %2016 = vmatpush.msra.mxu3 %v6380_v21  ;;  %3658 = vtanh.f32 %v1668_v58  ;;  %vm1688_vm14 = vmor %vm1686_vm13, %vm1687_vm11  ;;  %v6418_v58 = vld [vmem:[#allocation2 + $0x198] sm:$0xff]  ;;  %v1720_v30 = vand.u32 2147483647, %v6364_v10 }
 0x323   :  { %v1683_v41 = vsub.f32 1.0, %v1682_v63 }
 0x324   :  { %1977 = vmatpush.msra.mxu1 %v6390_v57  ;;  %2017 = vmatpush.msra.mxu3 %v6393_v7  ;;  %vm1721_vm3 = vcmp.eq.f32.partialorder %v1720_v30, 8.507059e+37  ;;  %v6484_v30 = vld [vmem:[#allocation2 + $0x98] sm:$0xff] }
 0x325   :  { %v1684_v31 = vmul.f32 %v3655_v35, %v1683_v41  ;;  %v1727_v41 = vmul.f32 %v1709_v25, %v6050_v14  ;;  %v6442_v14 = vld [vmem:[#allocation2 + $0x138] sm:$0xff]  ;;  %v6449_v25 = vld [vmem:[#allocation2 + $0x108] sm:$0xff] }
 0x326   :  { %1978 = vmatpush.msra.mxu1 %v6400_v8  ;;  %2018 = vmatpush.msra.mxu3 %v6403_v53 }
 0x327   :  { %v6406_v0 = vpop.eup %3656  ;;  %v1685_v62 = vadd.f32 %v3655_v35, %v1684_v31  ;;  %1848 = vmatmul.f32.vlgmr.msrb.gmra.mxu1 %v1584_v46  ;;  %1888 = vmatmul.f32.vlgmr.msrb.gmra.mxu3 %v1584_v46 }
 0x328   :  { %v1712_v4 = vmul.f32 %v6406_v0, %v6364_v10  ;;  %1979 = vmatpush.msra.mxu1 %v6415_v2  ;;  %2019 = vmatpush.msra.mxu3 %v6418_v58  ;;  %v3659_v46 = vpop.eup %3658  ;;  %vm1717_vm0 = vweird.f32 %v6406_v0 }
 0x329   :  { %v1689_v3 = vsel %vm1688_vm14, %v3655_v35, %v1685_v62  ;;  %v6429_v35 = vld [vmem:[#allocation2 + $0x148] sm:$0xff]  ;;  %v1722_v62 = vand.u32 2147483648, %v6364_v10  ;;  %vm1718_vm2 = vmor %vm1716_vm1, %vm1717_vm0 }
 0x32a   :  { %v1694_v24 = vsel %vm1691_vm15, %v1693_v17, %v1689_v3  ;;  %v1713_v63 = vsub.f32 1.0, %v1712_v4  ;;  %1980 = vmatpush.msra.mxu1 %v6421_v60  ;;  %2020 = vmatpush.msra.mxu3 %v6424_v18  ;;  %v6452_v17 = vld [vmem:[#allocation2 + $0x118] sm:$0xff]  ;;  %v9319_v4 = vmov 1  }
 0x32b   :  { %v1728_v6 = vmul.f32 %v3659_v46, %v1694_v24  ;;  %3546 = vset.pattern.permute.xlu0 %v9319_v4  ;;  %v6457_v46 = vld [vmem:[#allocation2 + $0xe8] sm:$0xff]  ;;  %v6460_v24 = vld [vmem:[#allocation2 + $0xf8] sm:$0xff]  ;;  %v1723_v10 = vor.u32 1.1754944e-38, %v1722_v62 }
 0x32c   :  { %v1714_v1 = vmul.f32 %v6406_v0, %v1713_v63  ;;  %1981 = vmatpush.msra.mxu1 %v6429_v35  ;;  %2021 = vmatpush.msra.mxu3 %v6432_v51  ;;  %v6463_v63 = vld [vmem:[#allocation2 + $0xc8] sm:$0xff]  ;;  %v6474_v4 = vld [vmem:[#allocation2 + $0xb8] sm:$0xff] }
 0x32d   :  { %v6435_v31 = vadd.f32 %v1728_v6, %v1727_v41  ;;  %v6466_v41 = vld [vmem:[#allocation2 + $0xd8] sm:$0xff]  ;;  %v6481_v62 = vld [vmem:[#allocation2 + $0x88] sm:$0xff] }
 0x32e   :  { %v1715_v28 = vadd.f32 %v6406_v0, %v1714_v1  ;;  %1982 = vmatpush.msra.mxu1 %v6439_v55  ;;  %2022 = vmatpush.msra.mxu3 %v6442_v14 }
 0x32f   :  { %3660 = vtanh.f32 %v6435_v31 }
 0x330   :  { %1983 = vmatpush.msra.mxu1 %v6449_v25  ;;  %2023 = vmatpush.msra.mxu3 %v6452_v17  ;;  %v1719_v3 = vsel %vm1718_vm2, %v6406_v0, %v1715_v28  ;;  %v6471_v28 = vld [vmem:[#allocation2 + $0xa8] sm:$0xff] }
 0x331   :  { %v1724_v0 = vsel %vm1721_vm3, %v1723_v10, %v1719_v3  ;;  %v6489_v3 = vld [vmem:[#allocation2 + $0x68] sm:$0xff]  ;;  %v6492_v10 = vld [vmem:[#allocation2 + $0x78] sm:$0xff] }
 0x332   :  { %1984 = vmatpush.msra.mxu1 %v6457_v46  ;;  %2024 = vmatpush.msra.mxu3 %v6460_v24  ;;  %9320 = vst [vmem:[#allocation26_spill] sm:$0xff] %v6489_v3 }
 0x333   :  { %9321 = vst [vmem:[#allocation29_spill] sm:$0xff] %v6492_v10 }
 0x334   :  { %1985 = vmatpush.msra.mxu1 %v6463_v63  ;;  %2025 = vmatpush.msra.mxu3 %v6466_v41 }
 0x335   :  { %v3661_v6 = vpop.eup %3660 }
 0x336   :  { %v6469_v1 = vmul.f32 %v3661_v6, %v1724_v0  ;;  %1986 = vmatpush.msra.mxu1 %v6471_v28  ;;  %2026 = vmatpush.msra.mxu3 %v6474_v4  ;;  %v6591_v6 = vld [vmem:[#allocation2 + $0x508] sm:$0xff] }
 0x337   :  { %9347 = vst [vmem:[#allocation19_spill] sm:$0xff] %v6591_v6  ;;  %v9348_v0 = vld [vmem:[#allocation22_spill] sm:$0xff] }
 0x338   :  { %1748 = vmatmul.f32.vlgmr.msra.gmra.mxu0 %v6469_v1  ;;  %1788 = vmatmul.f32.vlgmr.msra.gmra.mxu2 %v6469_v1 }
 0x339   :  { %1955 = vmatpush.msra.mxu0 %v6070_v26  ;;  %1995 = vmatpush.msra.mxu2 %v6073_v29  ;;  %v6497_v26 = vld [vmem:[#allocation2 + $0x48] sm:$0xff]  ;;  %v6500_v29 = vld [vmem:[#allocation2 + $0x58] sm:$0xff] }
 0x33a   :  { %1987 = vmatpush.msra.mxu1 %v6481_v62  ;;  %2027 = vmatpush.msra.mxu3 %v6484_v30  ;;  %9322 = vst [vmem:[#allocation30_spill] sm:$0xff] %v6497_v26 }
 0x33b   :  { %1956 = vmatpush.msra.mxu0 %v6078_v22  ;;  %1996 = vmatpush.msra.mxu2 %v6081_v37  ;;  %9323 = vst [vmem:[#allocation33_spill] sm:$0xff] %v6500_v29  ;;  %v6505_v22 = vld [vmem:[#allocation2 + $0x28] sm:$0xff]  ;;  %v6508_v37 = vld [vmem:[#allocation2 + $0x38] sm:$0xff] }
 0x33c   :  { %1988 = vmatpush.msra.mxu1 %v6489_v3  ;;  %2028 = vmatpush.msra.mxu3 %v6492_v10  ;;  %9324 = vst [vmem:[#allocation34_spill] sm:$0xff] %v6505_v22 }
 0x33d   :  { %1957 = vmatpush.msra.mxu0 %v6086_v36  ;;  %1997 = vmatpush.msra.mxu2 %v6089_v48  ;;  %9325 = vst [vmem:[#allocation37_spill] sm:$0xff] %v6508_v37  ;;  %v38_v36 = vld [vmem:[%s8254_s0 + $0x28] sm:$0xff]  ;;  %v6523_v48 = vld [vmem:[#allocation2 + $0x600] sm:$0xff] }
 0x33e   :  { %1989 = vmatpush.msra.mxu1 %v6497_v26  ;;  %2029 = vmatpush.msra.mxu3 %v6500_v29  ;;  %9326 = vst [vmem:[#allocation38_spill] sm:$0xff] %v6523_v48 }
 0x33f   :  { %1958 = vmatpush.msra.mxu0 %v6094_v45  ;;  %1998 = vmatpush.msra.mxu2 %v6097_v19  ;;  %v6527_v45 = vld [vmem:[#allocation2 + $0x608] sm:$0xff]  ;;  %v6531_v19 = vld [vmem:[#allocation2 + $0x5e0] sm:$0xff] }
 0x340   :  { %1990 = vmatpush.msra.mxu1 %v6505_v22  ;;  %2030 = vmatpush.msra.mxu3 %v6508_v37  ;;  %9327 = vst [vmem:[#allocation41_spill] sm:$0xff] %v6527_v45 }
 0x341   :  { %1828 = vmatmul.f32.vlgmr.msrb.gmra.mxu0 %v6469_v1  ;;  %1868 = vmatmul.f32.vlgmr.msrb.gmra.mxu2 %v6469_v1  ;;  %9328 = vst [vmem:[#allocation42_spill] sm:$0xff] %v6531_v19 }
 0x342   :  { %1959 = vmatpush.msra.mxu0 %v6104_v5  ;;  %1991 = vmatmul.f32.vlgmr.msra.gmra.mxu1 %v6469_v1  ;;  %v6535_v5 = vld [vmem:[#allocation2 + $0x5e8] sm:$0xff] }
 0x343   :  { %1999 = vmatpush.msra.mxu2 %v6108_v61  ;;  %2031 = vmatmul.f32.vlgmr.msra.gmra.mxu3 %v6469_v1  ;;  %9329 = vst [vmem:[#allocation45_spill] sm:$0xff] %v6535_v5  ;;  %v6539_v61 = vld [vmem:[#allocation2 + $0x5c0] sm:$0xff] }
 0x344   :  { %1960 = vmatpush.msra.mxu0 %v6112_v27  ;;  %188 = vperm.xlu1 %3544, %v38_v36   ;;  %9330 = vst [vmem:[#allocation46_spill] sm:$0xff] %v6539_v61  ;;  %v6543_v27 = vld [vmem:[#allocation2 + $0x5c8] sm:$0xff] }
 0x345   :  { %2000 = vmatpush.msra.mxu2 %v6116_v33  ;;  %70 = vperm.xlu2 %3545, %v38_v36   ;;  %9331 = vst [vmem:[#allocation49_spill] sm:$0xff] %v6543_v27  ;;  %v6547_v33 = vld [vmem:[#allocation2 + $0x5a0] sm:$0xff] }
 0x346   :  { %1961 = vmatpush.msra.mxu0 %v6120_v38  ;;  %2122 = vmatpush.msrb.mxu1 %v6523_v48  ;;  %9332 = vst [vmem:[#allocation50_spill] sm:$0xff] %v6547_v33  ;;  %v6551_v38 = vld [vmem:[#allocation2 + $0x5a8] sm:$0xff]  ;;  %v6595_v36 = vld [vmem:[#allocation2 + $0x4e0] sm:$0xff] }
 0x347   :  { %2001 = vmatpush.msra.mxu2 %v6124_v47  ;;  %2162 = vmatpush.msrb.mxu3 %v6527_v45  ;;  %9333 = vst [vmem:[#allocation53_spill] sm:$0xff] %v6551_v38  ;;  %v6555_v47 = vld [vmem:[#allocation2 + $0x580] sm:$0xff] }
 0x348   :  { %1962 = vmatpush.msra.mxu0 %v6128_v23  ;;  %2123 = vmatpush.msrb.mxu1 %v6531_v19  ;;  %9334 = vst [vmem:[#allocation54_spill] sm:$0xff] %v6555_v47  ;;  %v6559_v23 = vld [vmem:[#allocation2 + $0x588] sm:$0xff] }
 0x349   :  { %2002 = vmatpush.msra.mxu2 %v6132_v11  ;;  %2163 = vmatpush.msrb.mxu3 %v6535_v5  ;;  %9335 = vst [vmem:[#allocation57_spill] sm:$0xff] %v6559_v23  ;;  %v6563_v11 = vld [vmem:[#allocation2 + $0x560] sm:$0xff]  ;;  %v9466_v5 = vld [vmem:[#allocation14_spill] sm:$0xff] }
 0x34a   :  { %1963 = vmatpush.msra.mxu0 %v6136_v39  ;;  %2124 = vmatpush.msrb.mxu1 %v6539_v61  ;;  %9336 = vst [vmem:[#allocation58_spill] sm:$0xff] %v6563_v11  ;;  %v6567_v39 = vld [vmem:[#allocation2 + $0x568] sm:$0xff] }
 0x34b   :  { %2003 = vmatpush.msra.mxu2 %v6140_v9  ;;  %2164 = vmatpush.msrb.mxu3 %v6543_v27  ;;  %9337 = vst [vmem:[#allocation61_spill] sm:$0xff] %v6567_v39  ;;  %v6571_v9 = vld [vmem:[#allocation2 + $0x540] sm:$0xff] }
 0x34c   :  { %1964 = vmatpush.msra.mxu0 %v6144_v13  ;;  %2125 = vmatpush.msrb.mxu1 %v6547_v33  ;;  %9338 = vst [vmem:[#allocation20_spill] sm:$0xff] %v6571_v9  ;;  %v6575_v13 = vld [vmem:[#allocation2 + $0x548] sm:$0xff] }
 0x34d   :  { %2004 = vmatpush.msra.mxu2 %v6148_v52  ;;  %2165 = vmatpush.msrb.mxu3 %v6551_v38  ;;  %9339 = vst [vmem:[#allocation23_spill] sm:$0xff] %v6575_v13  ;;  %v9340_v52 = vld [vmem:[#allocation16_spill] sm:$0xff] }
 0x34e   :  { %1965 = vmatpush.msra.mxu0 %v6152_v12  ;;  %2126 = vmatpush.msrb.mxu1 %v6555_v47  ;;  %v6579_v12 = vld [vmem:[#allocation2 + $0x520] sm:$0xff]  ;;  %9349 = vst [vmem:[#allocation31_spill] sm:$0xff] %v6595_v36 }
 0x34f   :  { %2005 = vmatpush.msra.mxu2 %v6156_v16  ;;  %2166 = vmatpush.msrb.mxu3 %v6559_v23  ;;  %9341 = vst [vmem:[#allocation24_spill] sm:$0xff] %v6579_v12  ;;  %v9342_v16 = vld [vmem:[#allocation17_spill] sm:$0xff] }
 0x350   :  { %1966 = vmatpush.msra.mxu0 %v6160_v59  ;;  %2127 = vmatpush.msrb.mxu1 %v6563_v11  ;;  %v6583_v59 = vld [vmem:[#allocation2 + $0x528] sm:$0xff]  ;;  %v9465_v47 = vld [vmem:[#allocation13_spill] sm:$0xff] }
 0x351   :  { %2006 = vmatpush.msra.mxu2 %v6164_v56  ;;  %2167 = vmatpush.msrb.mxu3 %v6567_v39  ;;  %9343 = vst [vmem:[#allocation27_spill] sm:$0xff] %v6583_v59  ;;  %v9344_v56 = vld [vmem:[#allocation18_spill] sm:$0xff] }
 0x352   :  { %1967 = vmatpush.msra.mxu0 %v6168_v32  ;;  %2128 = vmatpush.msrb.mxu1 %v6571_v9  ;;  %v6587_v32 = vld [vmem:[#allocation2 + $0x500] sm:$0xff]  ;;  %v9463_v9 = vld [vmem:[#allocation96_spill] sm:$0xff] }
 0x353   :  { %2007 = vmatpush.msra.mxu2 %v6172_v15  ;;  %2168 = vmatpush.msrb.mxu3 %v6575_v13  ;;  %9345 = vst [vmem:[#allocation28_spill] sm:$0xff] %v6587_v32  ;;  %v9346_v15 = vld [vmem:[#allocation21_spill] sm:$0xff] }
 0x354   :  { %1968 = vmatpush.msra.mxu0 %v9340_v52  ;;  %2129 = vmatpush.msrb.mxu1 %v6579_v12  ;;  %v9350_v52 = vld [vmem:[#allocation25_spill] sm:$0xff] }
 0x355   :  { %2008 = vmatpush.msra.mxu2 %v9342_v16  ;;  %2169 = vmatpush.msrb.mxu3 %v6583_v59  ;;  %v6601_v16 = vld [vmem:[#allocation2 + $0x4e8] sm:$0xff]  ;;  %v9462_v59 = vld [vmem:[#allocation12_spill] sm:$0xff] }
 0x356   :  { %1969 = vmatpush.msra.mxu0 %v9344_v56  ;;  %2130 = vmatpush.msrb.mxu1 %v6587_v32  ;;  %9351 = vst [vmem:[#allocation62_spill] sm:$0xff] %v6601_v16  ;;  %v6604_v56 = vld [vmem:[#allocation2 + $0x4c0] sm:$0xff] }
 0x357   :  { %2009 = vmatpush.msra.mxu2 %v9346_v15  ;;  %2170 = vmatpush.msrb.mxu3 %v6591_v6  ;;  %9352 = vst [vmem:[#allocation32_spill] sm:$0xff] %v6604_v56  ;;  %v6607_v15 = vld [vmem:[#allocation2 + $0x400] sm:$0xff] }
 0x358   :  { %1970 = vmatpush.msra.mxu0 %v9348_v0  ;;  %2131 = vmatpush.msrb.mxu1 %v6595_v36  ;;  %9353 = vst [vmem:[#allocation65_spill] sm:$0xff] %v6607_v15  ;;  %v6610_v0 = vld [vmem:[#allocation2 + $0x4c8] sm:$0xff]  ;;  %v6866_v36 = vld [vmem:[#allocation2 + $0x378] sm:$0xff] }
 0x359   :  { %2010 = vmatpush.msra.mxu2 %v9350_v52  ;;  %1971 = vmatmul.f32.vlgmr.msra.gmra.mxu0 %v6469_v1  ;;  %9354 = vst [vmem:[#allocation35_spill] sm:$0xff] %v6610_v0  ;;  %v6613_v52 = vld [vmem:[#allocation2 + $0x408] sm:$0xff] }
 0x35a   :  { %2011 = vmatmul.f32.vlgmr.msra.gmra.mxu2 %v6469_v1  ;;  %2171 = vmatpush.msrb.mxu3 %v6601_v16  ;;  %9355 = vst [vmem:[#allocation66_spill] sm:$0xff] %v6613_v52  ;;  %v6616_v1 = vld [vmem:[#allocation2 + $0x4a0] sm:$0xff] }
 0x35b   :  { %2132 = vmatpush.msrb.mxu1 %v6604_v56  ;;  %2102 = vmatpush.msrb.mxu0 %v6607_v15  ;;  %9356 = vst [vmem:[#allocation36_spill] sm:$0xff] %v6616_v1  ;;  %v6619_v16 = vld [vmem:[#allocation2 + $0x3e0] sm:$0xff]  ;;  %v6622_v56 = vld [vmem:[#allocation2 + $0x4a8] sm:$0xff] }
 0x35c   :  { %2172 = vmatpush.msrb.mxu3 %v6610_v0  ;;  %2142 = vmatpush.msrb.mxu2 %v6613_v52  ;;  %9357 = vst [vmem:[#allocation69_spill] sm:$0xff] %v6619_v16  ;;  %v6625_v15 = vld [vmem:[#allocation2 + $0x3e8] sm:$0xff]  ;;  %v6628_v0 = vld [vmem:[#allocation2 + $0x480] sm:$0xff] }
 0x35d   :  { %2133 = vmatpush.msrb.mxu1 %v6616_v1  ;;  %2103 = vmatpush.msrb.mxu0 %v6619_v16  ;;  %9358 = vst [vmem:[#allocation39_spill] sm:$0xff] %v6622_v56  ;;  %v6631_v52 = vld [vmem:[#allocation2 + $0x3c0] sm:$0xff]  ;;  %v6634_v1 = vld [vmem:[#allocation2 + $0x488] sm:$0xff] }
 0x35e   :  { %2173 = vmatpush.msrb.mxu3 %v6622_v56  ;;  %9359 = vst [vmem:[#allocation70_spill] sm:$0xff] %v6625_v15  ;;  %2143 = vmatpush.msrb.mxu2 %v6625_v15  ;;  %v6637_v16 = vld [vmem:[#allocation2 + $0x3c8] sm:$0xff]  ;;  %v6640_v56 = vld [vmem:[#allocation2 + $0x460] sm:$0xff] }
 0x35f   :  { %9360 = vst [vmem:[#allocation40_spill] sm:$0xff] %v6628_v0  ;;  %2134 = vmatpush.msrb.mxu1 %v6628_v0  ;;  %2104 = vmatpush.msrb.mxu0 %v6631_v52  ;;  %v6643_v15 = vld [vmem:[#allocation2 + $0x3a0] sm:$0xff]  ;;  %v6646_v0 = vld [vmem:[#allocation2 + $0x468] sm:$0xff] }
 0x360   :  { %9361 = vst [vmem:[#allocation73_spill] sm:$0xff] %v6631_v52  ;;  %2174 = vmatpush.msrb.mxu3 %v6634_v1  ;;  %2144 = vmatpush.msrb.mxu2 %v6637_v16  ;;  %v6649_v52 = vld [vmem:[#allocation2 + $0x3a8] sm:$0xff] }
 0x361   :  { %9362 = vst [vmem:[#allocation43_spill] sm:$0xff] %v6634_v1  ;;  %2135 = vmatpush.msrb.mxu1 %v6640_v56  ;;  %2105 = vmatpush.msrb.mxu0 %v6643_v15  ;;  %v6652_v1 = vld [vmem:[#allocation2 + $0x440] sm:$0xff] }
 0x362   :  { %9363 = vst [vmem:[#allocation74_spill] sm:$0xff] %v6637_v16  ;;  %2175 = vmatpush.msrb.mxu3 %v6646_v0  ;;  %2145 = vmatpush.msrb.mxu2 %v6649_v52  ;;  %v6655_v16 = vld [vmem:[#allocation2 + $0x380] sm:$0xff] }
 0x363   :  { %9364 = vst [vmem:[#allocation47_spill] sm:$0xff] %v6640_v56  ;;  %2136 = vmatpush.msrb.mxu1 %v6652_v1  ;;  %2106 = vmatpush.msrb.mxu0 %v6655_v16  ;;  %v6658_v56 = vld [vmem:[#allocation2 + $0x448] sm:$0xff] }
 0x364   :  { %9365 = vst [vmem:[#allocation77_spill] sm:$0xff] %v6643_v15  ;;  %2176 = vmatpush.msrb.mxu3 %v6658_v56  ;;  %v6661_v15 = vld [vmem:[#allocation2 + $0x388] sm:$0xff] }
 0x365   :  { %9366 = vst [vmem:[#allocation51_spill] sm:$0xff] %v6646_v0  ;;  %2146 = vmatpush.msrb.mxu2 %v6661_v15  ;;  %v6664_v0 = vld [vmem:[#allocation2 + $0x420] sm:$0xff] }
 0x366   :  { %9367 = vst [vmem:[#allocation78_spill] sm:$0xff] %v6649_v52  ;;  %2137 = vmatpush.msrb.mxu1 %v6664_v0  ;;  %v6667_v52 = vld [vmem:[#allocation2 + $0x360] sm:$0xff] }
 0x367   :  { %9368 = vst [vmem:[#allocation52_spill] sm:$0xff] %v6652_v1  ;;  %2107 = vmatpush.msrb.mxu0 %v6667_v52  ;;  %v6670_v1 = vld [vmem:[#allocation2 + $0x428] sm:$0xff] }
 0x368   :  { %9369 = vst [vmem:[#allocation55_spill] sm:$0xff] %v6655_v16  ;;  %2177 = vmatpush.msrb.mxu3 %v6670_v1  ;;  %v6673_v16 = vld [vmem:[#allocation2 + $0x610] sm:$0xff] }
 0x369   :  { %9370 = vst [vmem:[#allocation81_spill] sm:$0xff] %v6658_v56  ;;  %2202 = vmatpush.msra.mxu1 %v6673_v16  ;;  %v6676_v56 = vld [vmem:[#allocation2 + $0x618] sm:$0xff] }
 0x36a   :  { %9371 = vst [vmem:[#allocation82_spill] sm:$0xff] %v6661_v15  ;;  %2242 = vmatpush.msra.mxu3 %v6676_v56  ;;  %v6679_v15 = vld [vmem:[#allocation2 + $0x368] sm:$0xff] }
 0x36b   :  { %9372 = vst [vmem:[#allocation59_spill] sm:$0xff] %v6664_v0  ;;  %2147 = vmatpush.msrb.mxu2 %v6679_v15  ;;  %v6682_v0 = vld [vmem:[#allocation2 + $0x5f0] sm:$0xff] }
 0x36c   :  { %9373 = vst [vmem:[#allocation63_spill] sm:$0xff] %v6667_v52  ;;  %2203 = vmatpush.msra.mxu1 %v6682_v0  ;;  %v6685_v52 = vld [vmem:[#allocation2 + $0x340] sm:$0xff] }
 0x36d   :  { %9374 = vst [vmem:[#allocation44_spill] sm:$0xff] %v6670_v1  ;;  %2108 = vmatpush.msrb.mxu0 %v6685_v52  ;;  %v6688_v1 = vld [vmem:[#allocation2 + $0x5f8] sm:$0xff] }
 0x36e   :  { %9375 = vst [vmem:[#allocation48_spill] sm:$0xff] %v6673_v16  ;;  %2243 = vmatpush.msra.mxu3 %v6688_v1  ;;  %v6691_v16 = vld [vmem:[#allocation2 + $0x348] sm:$0xff] }
 0x36f   :  { %9376 = vst [vmem:[#allocation67_spill] sm:$0xff] %v6676_v56  ;;  %2148 = vmatpush.msrb.mxu2 %v6691_v16  ;;  %v6694_v56 = vld [vmem:[#allocation2 + $0x5d0] sm:$0xff] }
 0x370   :  { %9377 = vst [vmem:[#allocation71_spill] sm:$0xff] %v6679_v15  ;;  %2204 = vmatpush.msra.mxu1 %v6694_v56  ;;  %v6697_v15 = vld [vmem:[#allocation2 + $0x320] sm:$0xff] }
 0x371   :  { %9378 = vst [vmem:[#allocation56_spill] sm:$0xff] %v6682_v0  ;;  %2109 = vmatpush.msrb.mxu0 %v6697_v15  ;;  %v6700_v0 = vld [vmem:[#allocation2 + $0x5d8] sm:$0xff] }
 0x372   :  { %9379 = vst [vmem:[#allocation60_spill] sm:$0xff] %v6685_v52  ;;  %2244 = vmatpush.msra.mxu3 %v6700_v0  ;;  %v6703_v52 = vld [vmem:[#allocation2 + $0x328] sm:$0xff] }
 0x373   :  { %9380 = vst [vmem:[#allocation75_spill] sm:$0xff] %v6688_v1  ;;  %2149 = vmatpush.msrb.mxu2 %v6703_v52  ;;  %v6706_v1 = vld [vmem:[#allocation2 + $0x5b0] sm:$0xff] }
 0x374   :  { %9381 = vst [vmem:[#allocation79_spill] sm:$0xff] %v6691_v16  ;;  %2205 = vmatpush.msra.mxu1 %v6706_v1  ;;  %v6709_v16 = vld [vmem:[#allocation2 + $0x300] sm:$0xff] }
 0x375   :  { %9382 = vst [vmem:[#allocation64_spill] sm:$0xff] %v6694_v56  ;;  %2110 = vmatpush.msrb.mxu0 %v6709_v16  ;;  %v6712_v56 = vld [vmem:[#allocation2 + $0x5b8] sm:$0xff] }
 0x376   :  { %9383 = vst [vmem:[#allocation68_spill] sm:$0xff] %v6697_v15  ;;  %2245 = vmatpush.msra.mxu3 %v6712_v56  ;;  %v6715_v15 = vld [vmem:[#allocation2 + $0x308] sm:$0xff] }
 0x377   :  { %9384 = vst [vmem:[#allocation83_spill] sm:$0xff] %v6700_v0  ;;  %2150 = vmatpush.msrb.mxu2 %v6715_v15  ;;  %v6718_v0 = vld [vmem:[#allocation2 + $0x590] sm:$0xff] }
 0x378   :  { %9385 = vst [vmem:[#allocation85_spill] sm:$0xff] %v6703_v52  ;;  %2206 = vmatpush.msra.mxu1 %v6718_v0  ;;  %v6721_v52 = vld [vmem:[#allocation2 + $0x2e0] sm:$0xff] }
 0x379   :  { %9386 = vst [vmem:[#allocation72_spill] sm:$0xff] %v6706_v1  ;;  %2111 = vmatpush.msrb.mxu0 %v6721_v52  ;;  %v6724_v1 = vld [vmem:[#allocation2 + $0x598] sm:$0xff] }
 0x37a   :  { %9387 = vst [vmem:[#allocation76_spill] sm:$0xff] %v6709_v16  ;;  %2246 = vmatpush.msra.mxu3 %v6724_v1  ;;  %v6727_v16 = vld [vmem:[#allocation2 + $0x2e8] sm:$0xff] }
 0x37b   :  { %9388 = vst [vmem:[#allocation88_spill] sm:$0xff] %v6712_v56  ;;  %2151 = vmatpush.msrb.mxu2 %v6727_v16  ;;  %v6730_v56 = vld [vmem:[#allocation2 + $0x570] sm:$0xff] }
 0x37c   :  { %9389 = vst [vmem:[#allocation91_spill] sm:$0xff] %v6715_v15  ;;  %2207 = vmatpush.msra.mxu1 %v6730_v56  ;;  %v6733_v15 = vld [vmem:[#allocation2 + $0x2c0] sm:$0xff] }
 0x37d   :  { %9390 = vst [vmem:[#allocation80_spill] sm:$0xff] %v6718_v0  ;;  %2112 = vmatpush.msrb.mxu0 %v6733_v15  ;;  %v6736_v0 = vld [vmem:[#allocation2 + $0x578] sm:$0xff] }
 0x37e   :  { %9391 = vst [vmem:[#allocation84_spill] sm:$0xff] %v6721_v52  ;;  %2247 = vmatpush.msra.mxu3 %v6736_v0  ;;  %v6739_v52 = vld [vmem:[#allocation2 + $0x2c8] sm:$0xff] }
 0x37f   :  { %9392 = vst [vmem:[#allocation94_spill] sm:$0xff] %v6724_v1  ;;  %2152 = vmatpush.msrb.mxu2 %v6739_v52  ;;  %v6742_v1 = vld [vmem:[#allocation2 + $0x550] sm:$0xff] }
 0x380   :  { %9393 = vst [vmem:[#allocation100_spill] sm:$0xff] %v6727_v16  ;;  %2208 = vmatpush.msra.mxu1 %v6742_v1  ;;  %v6745_v16 = vld [vmem:[#allocation2 + $0x2a0] sm:$0xff] }
 0x381   :  { %9394 = vst [vmem:[#allocation86_spill] sm:$0xff] %v6730_v56  ;;  %2113 = vmatpush.msrb.mxu0 %v6745_v16  ;;  %v6748_v56 = vld [vmem:[#allocation2 + $0x558] sm:$0xff] }
 0x382   :  { %9395 = vst [vmem:[#allocation89_spill] sm:$0xff] %v6733_v15  ;;  %2248 = vmatpush.msra.mxu3 %v6748_v56  ;;  %v6751_v15 = vld [vmem:[#allocation2 + $0x2a8] sm:$0xff] }
 0x383   :  { %9396 = vst [vmem:[#allocation6_spill] sm:$0xff] %v6736_v0  ;;  %2153 = vmatpush.msrb.mxu2 %v6751_v15  ;;  %v6754_v0 = vld [vmem:[#allocation2 + $0x530] sm:$0xff] }
 0x384   :  { %9397 = vst [vmem:[#allocation8_spill] sm:$0xff] %v6739_v52  ;;  %2209 = vmatpush.msra.mxu1 %v6754_v0  ;;  %v6757_v52 = vld [vmem:[#allocation2 + $0x280] sm:$0xff] }
 0x385   :  { %9398 = vst [vmem:[#allocation92_spill] sm:$0xff] %v6742_v1  ;;  %2114 = vmatpush.msrb.mxu0 %v6757_v52  ;;  %v6760_v1 = vld [vmem:[#allocation2 + $0x538] sm:$0xff] }
 0x386   :  { %9399 = vst [vmem:[#allocation98_spill] sm:$0xff] %v6745_v16  ;;  %2249 = vmatpush.msra.mxu3 %v6760_v1  ;;  %v6763_v16 = vld [vmem:[#allocation2 + $0x288] sm:$0xff] }
 0x387   :  { %9400 = vst [vmem:[#allocation10_spill] sm:$0xff] %v6748_v56  ;;  %2154 = vmatpush.msrb.mxu2 %v6763_v16  ;;  %v6766_v56 = vld [vmem:[#allocation2 + $0x510] sm:$0xff] }
 0x388   :  { %9401 = vst [vmem:[#allocation101_spill] sm:$0xff] %v6751_v15  ;;  %2210 = vmatpush.msra.mxu1 %v6766_v56  ;;  %v6769_v15 = vld [vmem:[#allocation2 + $0x260] sm:$0xff] }
 0x389   :  { %9402 = vst [vmem:[#allocation5_spill] sm:$0xff] %v6754_v0  ;;  %2115 = vmatpush.msrb.mxu0 %v6769_v15  ;;  %v6772_v0 = vld [vmem:[#allocation2 + $0x518] sm:$0xff] }
 0x38a   :  { %9403 = vst [vmem:[#allocation7_spill] sm:$0xff] %v6757_v52  ;;  %2250 = vmatpush.msra.mxu3 %v6772_v0  ;;  %v6775_v52 = vld [vmem:[#allocation2 + $0x268] sm:$0xff] }
 0x38b   :  { %9404 = vst [vmem:[#allocation103_spill] sm:$0xff] %v6760_v1  ;;  %2155 = vmatpush.msrb.mxu2 %v6775_v52  ;;  %v6778_v1 = vld [vmem:[#allocation2 + $0x4f0] sm:$0xff] }
 0x38c   :  { %9405 = vst [vmem:[#allocation105_spill] sm:$0xff] %v6763_v16  ;;  %2211 = vmatpush.msra.mxu1 %v6778_v1  ;;  %v6781_v16 = vld [vmem:[#allocation2 + $0x240] sm:$0xff] }
 0x38d   :  { %9406 = vst [vmem:[#allocation9_spill] sm:$0xff] %v6766_v56  ;;  %2116 = vmatpush.msrb.mxu0 %v6781_v16  ;;  %v6784_v56 = vld [vmem:[#allocation2 + $0x4f8] sm:$0xff] }
 0x38e   :  { %9407 = vst [vmem:[#allocation11_spill] sm:$0xff] %v6769_v15  ;;  %2251 = vmatpush.msra.mxu3 %v6784_v56  ;;  %v6787_v15 = vld [vmem:[#allocation2 + $0x248] sm:$0xff] }
 0x38f   :  { %9408 = vst [vmem:[#allocation107_spill] sm:$0xff] %v6772_v0  ;;  %2156 = vmatpush.msrb.mxu2 %v6787_v15  ;;  %v6790_v0 = vld [vmem:[#allocation2 + $0x4d0] sm:$0xff] }
 0x390   :  { %9409 = vst [vmem:[#allocation109_spill] sm:$0xff] %v6775_v52  ;;  %2212 = vmatpush.msra.mxu1 %v6790_v0  ;;  %v6793_v52 = vld [vmem:[#allocation2 + $0x220] sm:$0xff] }
 0x391   :  { %9410 = vst [vmem:[#allocation102_spill] sm:$0xff] %v6778_v1  ;;  %2117 = vmatpush.msrb.mxu0 %v6793_v52  ;;  %v6796_v1 = vld [vmem:[#allocation2 + $0x4d8] sm:$0xff] }
 0x392   :  { %9411 = vst [vmem:[#allocation104_spill] sm:$0xff] %v6781_v16  ;;  %2252 = vmatpush.msra.mxu3 %v6796_v1  ;;  %v6799_v16 = vld [vmem:[#allocation2 + $0x228] sm:$0xff] }
 0x393   :  { %9412 = vst [vmem:[#allocation111_spill] sm:$0xff] %v6784_v56  ;;  %2157 = vmatpush.msrb.mxu2 %v6799_v16  ;;  %v6802_v56 = vld [vmem:[#allocation2 + $0x4b0] sm:$0xff] }
 0x394   :  { %9413 = vst [vmem:[#allocation113_spill] sm:$0xff] %v6787_v15  ;;  %2213 = vmatpush.msra.mxu1 %v6802_v56  ;;  %v6805_v15 = vld [vmem:[#allocation2 + $0x410] sm:$0xff] }
 0x395   :  { %9414 = vst [vmem:[#allocation106_spill] sm:$0xff] %v6790_v0  ;;  %2182 = vmatpush.msra.mxu0 %v6805_v15  ;;  %v6808_v0 = vld [vmem:[#allocation2 + $0x4b8] sm:$0xff] }
 0x396   :  { %9415 = vst [vmem:[#allocation108_spill] sm:$0xff] %v6793_v52  ;;  %2253 = vmatpush.msra.mxu3 %v6808_v0  ;;  %v6811_v52 = vld [vmem:[#allocation2 + $0x418] sm:$0xff] }
 0x397   :  { %9416 = vst [vmem:[#allocation115_spill] sm:$0xff] %v6796_v1  ;;  %2222 = vmatpush.msra.mxu2 %v6811_v52  ;;  %v6814_v1 = vld [vmem:[#allocation2 + $0x490] sm:$0xff] }
 0x398   :  { %9417 = vst [vmem:[#allocation117_spill] sm:$0xff] %v6799_v16  ;;  %2214 = vmatpush.msra.mxu1 %v6814_v1  ;;  %v6817_v16 = vld [vmem:[#allocation2 + $0x3f0] sm:$0xff] }
 0x399   :  { %9418 = vst [vmem:[#allocation110_spill] sm:$0xff] %v6802_v56  ;;  %2183 = vmatpush.msra.mxu0 %v6817_v16  ;;  %v6820_v56 = vld [vmem:[#allocation2 + $0x498] sm:$0xff] }
 0x39a   :  { %9419 = vst [vmem:[#allocation112_spill] sm:$0xff] %v6805_v15  ;;  %2254 = vmatpush.msra.mxu3 %v6820_v56  ;;  %v6823_v15 = vld [vmem:[#allocation2 + $0x3f8] sm:$0xff] }
 0x39b   :  { %9420 = vst [vmem:[#allocation119_spill] sm:$0xff] %v6808_v0  ;;  %2223 = vmatpush.msra.mxu2 %v6823_v15  ;;  %v6826_v0 = vld [vmem:[#allocation2 + $0x470] sm:$0xff] }
 0x39c   :  { %9421 = vst [vmem:[#allocation121_spill] sm:$0xff] %v6811_v52  ;;  %2215 = vmatpush.msra.mxu1 %v6826_v0  ;;  %v6829_v52 = vld [vmem:[#allocation2 + $0x3d0] sm:$0xff] }
 0x39d   :  { %9422 = vst [vmem:[#allocation114_spill] sm:$0xff] %v6814_v1  ;;  %2184 = vmatpush.msra.mxu0 %v6829_v52  ;;  %v6832_v1 = vld [vmem:[#allocation2 + $0x478] sm:$0xff] }
 0x39e   :  { %9423 = vst [vmem:[#allocation116_spill] sm:$0xff] %v6817_v16  ;;  %2255 = vmatpush.msra.mxu3 %v6832_v1  ;;  %v6835_v16 = vld [vmem:[#allocation2 + $0x3d8] sm:$0xff] }
 0x39f   :  { %9424 = vst [vmem:[#allocation123_spill] sm:$0xff] %v6820_v56  ;;  %2224 = vmatpush.msra.mxu2 %v6835_v16  ;;  %v6838_v56 = vld [vmem:[#allocation2 + $0x450] sm:$0xff] }
 0x3a0   :  { %9425 = vst [vmem:[#allocation125_spill] sm:$0xff] %v6823_v15  ;;  %2216 = vmatpush.msra.mxu1 %v6838_v56  ;;  %v6841_v15 = vld [vmem:[#allocation2 + $0x3b0] sm:$0xff] }
 0x3a1   :  { %9426 = vst [vmem:[#allocation118_spill] sm:$0xff] %v6826_v0  ;;  %2185 = vmatpush.msra.mxu0 %v6841_v15  ;;  %v6844_v0 = vld [vmem:[#allocation2 + $0x458] sm:$0xff] }
 0x3a2   :  { %9427 = vst [vmem:[#allocation120_spill] sm:$0xff] %v6829_v52  ;;  %2256 = vmatpush.msra.mxu3 %v6844_v0  ;;  %v6847_v52 = vld [vmem:[#allocation2 + $0x3b8] sm:$0xff]  ;;  %v1809_v27 = vpop.f32.mrf.mxu3 }
 0x3a3   :  { %9428 = vst [vmem:[#allocation127_spill] sm:$0xff] %v6832_v1  ;;  %2225 = vmatpush.msra.mxu2 %v6847_v52  ;;  %v6850_v1 = vld [vmem:[#allocation2 + $0x430] sm:$0xff] }
 0x3a4   :  { %9429 = vst [vmem:[#allocation129_spill] sm:$0xff] %v6835_v16  ;;  %2217 = vmatpush.msra.mxu1 %v6850_v1  ;;  %v6853_v16 = vld [vmem:[#allocation2 + $0x390] sm:$0xff] }
 0x3a5   :  { %9430 = vst [vmem:[#allocation122_spill] sm:$0xff] %v6838_v56  ;;  %2186 = vmatpush.msra.mxu0 %v6853_v16  ;;  %v6856_v56 = vld [vmem:[#allocation2 + $0x438] sm:$0xff] }
 0x3a6   :  { %9431 = vst [vmem:[#allocation124_spill] sm:$0xff] %v6841_v15  ;;  %2257 = vmatpush.msra.mxu3 %v6856_v56  ;;  %v6859_v15 = vld [vmem:[#allocation2 + $0x398] sm:$0xff] }
 0x3a7   :  { %9432 = vst [vmem:[#allocation126_spill] sm:$0xff] %v6844_v0  ;;  %2226 = vmatpush.msra.mxu2 %v6859_v15  ;;  %v6862_v0 = vld [vmem:[#allocation2 + $0x370] sm:$0xff] }
 0x3a8   :  { %9433 = vst [vmem:[#allocation128_spill] sm:$0xff] %v6847_v52  ;;  %2187 = vmatpush.msra.mxu0 %v6862_v0  ;;  %v9439_v52 = vmov 0  }
 0x3a9   :  { %9434 = vst [vmem:[#allocation130_spill] sm:$0xff] %v6850_v1  ;;  %3547 = vset.pattern.permute.xlu1 %v9439_v52  ;;  %2227 = vmatpush.msra.mxu2 %v6866_v36  ;;  %v6869_v1 = vld [vmem:[#allocation2 + $0x350] sm:$0xff] }
 0x3aa   :  { %9435 = vst [vmem:[#allocation131_spill] sm:$0xff] %v6853_v16  ;;  %2188 = vmatpush.msra.mxu0 %v6869_v1  ;;  %v6872_v16 = vld [vmem:[#allocation2 + $0x358] sm:$0xff]  ;;  %v6881_v52 = vld [vmem:[#allocation2 + $0x310] sm:$0xff] }
 0x3ab   :  { %9436 = vst [vmem:[#allocation132_spill] sm:$0xff] %v6856_v56  ;;  %2228 = vmatpush.msra.mxu2 %v6872_v16  ;;  %v6875_v56 = vld [vmem:[#allocation2 + $0x330] sm:$0xff] }
 0x3ac   :  { %9437 = vst [vmem:[#allocation133_spill] sm:$0xff] %v6859_v15  ;;  %2189 = vmatpush.msra.mxu0 %v6875_v56  ;;  %v6878_v15 = vld [vmem:[#allocation2 + $0x338] sm:$0xff] }
 0x3ad   :  { %9438 = vst [vmem:[#allocation134_spill] sm:$0xff] %v6862_v0  ;;  %2229 = vmatpush.msra.mxu2 %v6878_v15  ;;  %v6929_v0 = vpop.permute.xlu0 %65 }
 0x3ae   :  { %9440 = vst [vmem:[#allocation135_spill] sm:$0xff] %v6866_v36  ;;  %2190 = vmatpush.msra.mxu0 %v6881_v52  ;;  %v6884_v36 = vld [vmem:[#allocation2 + $0x318] sm:$0xff] }
 0x3af   :  { %9441 = vst [vmem:[#allocation136_spill] sm:$0xff] %v6869_v1  ;;  %2230 = vmatpush.msra.mxu2 %v6884_v36  ;;  %v6887_v1 = vld [vmem:[#allocation2 + $0x2f0] sm:$0xff] }
 0x3b0   :  { %9442 = vst [vmem:[#allocation137_spill] sm:$0xff] %v6872_v16  ;;  %2191 = vmatpush.msra.mxu0 %v6887_v1  ;;  %v6890_v16 = vld [vmem:[#allocation2 + $0x2f8] sm:$0xff] }
 0x3b1   :  { %9443 = vst [vmem:[#allocation138_spill] sm:$0xff] %v6875_v56  ;;  %2231 = vmatpush.msra.mxu2 %v6890_v16  ;;  %v6893_v56 = vld [vmem:[#allocation2 + $0x2d0] sm:$0xff] }
 0x3b2   :  { %9444 = vst [vmem:[#allocation139_spill] sm:$0xff] %v6878_v15  ;;  %2192 = vmatpush.msra.mxu0 %v6893_v56  ;;  %v6896_v15 = vld [vmem:[#allocation2 + $0x2d8] sm:$0xff] }
 0x3b3   :  { %9445 = vst [vmem:[#allocation140_spill] sm:$0xff] %v6881_v52  ;;  %2232 = vmatpush.msra.mxu2 %v6896_v15  ;;  %v6899_v52 = vld [vmem:[#allocation2 + $0x2b0] sm:$0xff] }
 0x3b4   :  { %9446 = vst [vmem:[#allocation141_spill] sm:$0xff] %v6884_v36  ;;  %2193 = vmatpush.msra.mxu0 %v6899_v52  ;;  %v6902_v36 = vld [vmem:[#allocation2 + $0x2b8] sm:$0xff] }
 0x3b5   :  { %9447 = vst [vmem:[#allocation142_spill] sm:$0xff] %v6887_v1  ;;  %2233 = vmatpush.msra.mxu2 %v6902_v36  ;;  %v6905_v1 = vld [vmem:[#allocation2 + $0x290] sm:$0xff]  ;;  %v1749_v32 = vpop.f32.mrf.mxu0 }
 0x3b6   :  { %9448 = vst [vmem:[#allocation143_spill] sm:$0xff] %v6890_v16  ;;  %2194 = vmatpush.msra.mxu0 %v6905_v1  ;;  %v6908_v16 = vld [vmem:[#allocation2 + $0x298] sm:$0xff]  ;;  %v1750_v12 = vadd.f32 %v1749_v32, %v9462_v59 }
 0x3b7   :  { %9449 = vst [vmem:[#allocation144_spill] sm:$0xff] %v6893_v56  ;;  %2234 = vmatpush.msra.mxu2 %v6908_v16  ;;  %v6911_v56 = vld [vmem:[#allocation2 + $0x270] sm:$0xff] }
 0x3b8   :  { %9450 = vst [vmem:[#allocation145_spill] sm:$0xff] %v6896_v15  ;;  %2195 = vmatpush.msra.mxu0 %v6911_v56  ;;  %v6914_v15 = vld [vmem:[#allocation2 + $0x278] sm:$0xff] }
 0x3b9   :  { %9451 = vst [vmem:[#allocation146_spill] sm:$0xff] %v6899_v52  ;;  %2235 = vmatpush.msra.mxu2 %v6914_v15  ;;  %v6917_v52 = vld [vmem:[#allocation2 + $0x250] sm:$0xff] }
 0x3ba   :  { %9452 = vst [vmem:[#allocation147_spill] sm:$0xff] %v6902_v36  ;;  %2196 = vmatpush.msra.mxu0 %v6917_v52  ;;  %v6920_v36 = vld [vmem:[#allocation2 + $0x258] sm:$0xff] }
 0x3bb   :  { %9453 = vst [vmem:[#allocation148_spill] sm:$0xff] %v6905_v1  ;;  %2236 = vmatpush.msra.mxu2 %v6920_v36  ;;  %v6923_v1 = vld [vmem:[#allocation2 + $0x230] sm:$0xff] }
 0x3bc   :  { %9454 = vst [vmem:[#allocation149_spill] sm:$0xff] %v6908_v16  ;;  %2197 = vmatpush.msra.mxu0 %v6923_v1  ;;  %v6926_v16 = vld [vmem:[#allocation2 + $0x238] sm:$0xff] }
 0x3bd   :  { %9455 = vst [vmem:[#allocation16_spill] sm:$0xff] %v6911_v56  ;;  %2237 = vmatpush.msra.mxu2 %v6926_v16  ;;  %v1769_v56 = vpop.f32.mrf.mxu1 }
 0x3be   :  { %9456 = vst [vmem:[#allocation17_spill] sm:$0xff] %v6914_v15  ;;  %v9461_v15 = vld [vmem:[#allocation90_spill] sm:$0xff]  ;;  %v1770_v13 = vadd.f32 %v1769_v56, %v1750_v12  ;;  %v1829_v61 = vpop.f32.mrf.mxu0 }
 0x3bf   :  { %9457 = vst [vmem:[#allocation18_spill] sm:$0xff] %v6917_v52  ;;  %v109_v6 = vmul.f32 %v9461_v15, %v6929_v0  ;;  %v6933_v52 = vpop.permute.xlu1 %184  ;;  %v1830_v19 = vadd.f32 %v1829_v61, %v9466_v5 }
 0x3c0   :  { %9458 = vst [vmem:[#allocation21_spill] sm:$0xff] %v6920_v36  ;;  %v3503_v23 = vmul.f32 -1.442695, %v1770_v13 }
 0x3c1   :  { %9459 = vst [vmem:[#allocation22_spill] sm:$0xff] %v6923_v1  ;;  %v150_v39 = vadd.f32 %v9463_v9, %v109_v6  ;;  %v9464_v1 = vld [vmem:[#allocation97_spill] sm:$0xff] }
 0x3c2   :  { %9460 = vst [vmem:[#allocation25_spill] sm:$0xff] %v6926_v16  ;;  %v225_v11 = vmul.f32 %v9464_v1, %v6933_v52  ;;  %v1789_v16 = vpop.f32.mrf.mxu2  ;;  %3662 = vpow2.f32 %v3503_v23 }
 0x3c3   :  { %v1790_v38 = vadd.f32 %v1789_v16, %v9465_v47 }
 0x3c4   :  { %v257_v33 = vadd.f32 %v225_v11, %v150_v39 }
 0x3c5   :  { %v1849_v36 = vpop.f32.mrf.mxu1  ;;  %v1810_v15 = vadd.f32 %v1809_v27, %v1790_v38  ;;  %v9467_v27 = vld [vmem:[#allocation87_spill] sm:$0xff] }
 0x3c6   :  { %v1850_v12 = vadd.f32 %v1849_v36, %v1830_v19  ;;  %v108_v38 = vmul.f32 %v9467_v27, %v6929_v0 }
 0x3c7   :  { %v3504_v32 = vmul.f32 -1.442695, %v1810_v15 }
 0x3c8   :  { %v3663_v56 = vpop.eup %3662  ;;  %v3505_v9 = vmul.f32 -1.442695, %v1850_v12 }
 0x3c9   :  { %3664 = vpow2.f32 %v3504_v32  ;;  %v1901_v6 = vadd.f32 1.0, %v3663_v56  ;;  %v9470_v32 = vld [vmem:[#allocation95_spill] sm:$0xff] }
 0x3ca   :  { %v1869_v11 = vpop.f32.mrf.mxu2  ;;  %v224_v12 = vmul.f32 %v9470_v32, %v6933_v52 }
 0x3cb   :  { %3666 = vrcp.f32 %v1901_v6  ;;  %vm1909_vm5 = vweird.f32 %v1901_v6  ;;  %v1913_v22 = vand.u32 2147483647, %v1901_v6 }
 0x3cc   :  { %3668 = vpow2.f32 %v3505_v9  ;;  %v9469_v9 = vld [vmem:[#allocation93_spill] sm:$0xff] }
 0x3cd   :  { %v1992_v45 = vpop.f32.mrf.mxu1  ;;  %vm1914_vm9 = vcmp.eq.f32.partialorder %v1913_v22, 8.507059e+37  ;;  %v111_v22 = vmul.f32 %v5018_v34, %v6929_v0 }
 0x3ce   :  { %v2036_v59 = vadd.f32 %v1992_v45, %v257_v33  ;;  %v9468_v45 = vld [vmem:[#allocation15_spill] sm:$0xff] }
 0x3cf   :  { %v3665_v23 = vpop.eup %3664  ;;  %v1870_v19 = vadd.f32 %v1869_v11, %v9468_v45  ;;  %v9471_v11 = vld [vmem:[#allocation99_spill] sm:$0xff] }
 0x3d0   :  { %v3507_v1 = vmul.f32 -1.442695, %v2036_v59  ;;  %v1902_v13 = vadd.f32 1.0, %v3665_v23  ;;  %v1889_v59 = vpop.f32.mrf.mxu3 }
 0x3d1   :  { %v3667_v39 = vpop.eup %3666  ;;  %v1890_v56 = vadd.f32 %v1889_v59, %v1870_v19 }
 0x3d2   :  { %3670 = vpow2.f32 %v3507_v1  ;;  %v3669_v61 = vpop.eup %3668  ;;  %v1905_v16 = vmul.f32 %v3667_v39, %v1901_v6  ;;  %v149_v1 = vadd.f32 %v9469_v9, %v108_v38  ;;  %vm1910_vm4 = vweird.f32 %v3667_v39 }
 0x3d3   :  { %3672 = vrcp.f32 %v1902_v13  ;;  %v6944_v33 = vadd.f32 1.0, %v3669_v61  ;;  %v110_v61 = vmul.f32 %v9471_v11, %v6929_v0  ;;  %v1930_v9 = vand.u32 2147483648, %v1902_v13  ;;  %vm6955_vm6 = vmor %vm1909_vm5, %vm1910_vm4 }
 0x3d4   :  { %v1906_v15 = vsub.f32 1.0, %v1905_v16  ;;  %v1915_v16 = vand.u32 2147483648, %v1901_v6  ;;  %v256_v45 = vadd.f32 %v224_v12, %v149_v1  ;;  %vm1924_vm8 = vweird.f32 %v1902_v13 }
 0x3d5   :  { %3674 = vrcp.f32 %v6944_v33  ;;  %vm1939_vm13 = vweird.f32 %v6944_v33  ;;  %v227_v0 = vmul.f32 %v5038_v44, %v6933_v52 }
 0x3d6   :  { %v1907_v23 = vmul.f32 %v3667_v39, %v1906_v15  ;;  %3676 = vtanh.f32 %v1890_v56  ;;  %v1916_v12 = vor.u32 1.1754944e-38, %v1915_v16  ;;  %v151_v56 = vadd.f32 %v4977_v20, %v110_v61 }
 0x3d8   :  { %v3671_v36 = vpop.eup %3670  ;;  %v1908_v48 = vadd.f32 %v3667_v39, %v1907_v23  ;;  %v226_v23 = vmul.f32 %v4980_v54, %v6933_v52 }
 0x3d9   :  { %v3673_v27 = vpop.eup %3672  ;;  %v6950_v5 = vadd.f32 1.0, %v3671_v36  ;;  %v1928_v36 = vand.u32 2147483647, %v1902_v13 }
 0x3da   :  { %v1920_v47 = vmul.f32 %v3673_v27, %v1902_v13  ;;  %vm1925_vm7 = vweird.f32 %v3673_v27  ;;  %v1912_v1 = vsel %vm6955_vm6, %v3667_v39, %v1908_v48  ;;  %v258_v19 = vadd.f32 %v226_v23, %v151_v56  ;;  %v2032_v23 = vpop.f32.mrf.mxu3 }
 0x3db   :  { %v3675_v38 = vpop.eup %3674  ;;  %3678 = vrcp.f32 %v6950_v5  ;;  %vm1926_vm10 = vmor %vm1924_vm8, %vm1925_vm7  ;;  %v1917_v29 = vsel %vm1914_vm9, %v1916_v12, %v1912_v1  ;;  %vm1929_vm11 = vcmp.eq.f32.partialorder %v1928_v36, 8.507059e+37  ;;  %vm2071_vm1 = vweird.f32 %v6950_v5 }
 0x3dc   :  { %v1921_v37 = vsub.f32 1.0, %v1920_v47  ;;  %v1935_v59 = vmul.f32 %v3675_v38, %v6944_v33  ;;  %v1972_v47 = vpop.f32.mrf.mxu0  ;;  %v3677_v10 = vpop.eup %3676  ;;  %vm1940_vm12 = vweird.f32 %v3675_v38 }
 0x3dd   :  { %v2035_v6 = vadd.f32 %v1972_v47, %v256_v45  ;;  %v1951_v16 = vmul.f32 %v3677_v10, %v1917_v29  ;;  %v2012_v13 = vpop.f32.mrf.mxu2  ;;  %v1943_v10 = vand.u32 2147483647, %v6944_v33  ;;  %v152_v29 = vadd.f32 %v5035_v42, %v111_v22  ;;  %vm1941_vm14 = vmor %vm1939_vm13, %vm1940_vm12 }
 0x3de   :  { %v1922_v15 = vmul.f32 %v3673_v27, %v1921_v37  ;;  %v1936_v11 = vsub.f32 1.0, %v1935_v59  ;;  %v1931_v37 = vor.u32 1.1754944e-38, %v1930_v9  ;;  %v2037_v9 = vadd.f32 %v2012_v13, %v258_v19 }
 0x3df   :  { %v3506_v26 = vmul.f32 -1.442695, %v2035_v6  ;;  %vm1944_vm15 = vcmp.eq.f32.partialorder %v1943_v10, 8.507059e+37  ;;  %v259_v12 = vadd.f32 %v227_v0, %v152_v29  ;;  %v2075_v19 = vand.u32 2147483647, %v6950_v5  ;;  %v7057_v29 = vld [vmem:[#allocation2 + $0x1a0] sm:$0xff] }
 0x3e0   :  { %v1923_v32 = vadd.f32 %v3673_v27, %v1922_v15  ;;  %v1937_v45 = vmul.f32 %v3675_v38, %v1936_v11  ;;  %v7060_v0 = vld [vmem:[#allocation2 + $0x1b0] sm:$0xff] }
 0x3e1   :  { %v6965_v48 = vpop.eup %3678  ;;  %3680 = vpow2.f32 %v3506_v26  ;;  %v1945_v26 = vand.u32 2147483648, %v6944_v33  ;;  %vm2076_vm4 = vcmp.eq.f32.partialorder %v2075_v19, 8.507059e+37  ;;  %v7104_v19 = vld [vmem:[#allocation2 + $0x110] sm:$0xff] }
 0x3e2   :  { %v1927_v3 = vsel %vm1926_vm10, %v3673_v27, %v1923_v32  ;;  %v2067_v27 = vmul.f32 %v6965_v48, %v6950_v5  ;;  %v1938_v32 = vadd.f32 %v3675_v38, %v1937_v45  ;;  %v2038_v45 = vadd.f32 %v2032_v23, %v259_v12  ;;  %v7078_v12 = vld [vmem:[#allocation2 + $0x160] sm:$0xff]  ;;  %v9482_v23 = vld [vmem:[#allocation38_spill] sm:$0xff] }
 0x3e3   :  { %v1932_v39 = vsel %vm1929_vm11, %v1931_v37, %v1927_v3  ;;  %v3508_v3 = vmul.f32 -1.442695, %v2037_v9  ;;  %v1946_v1 = vor.u32 1.1754944e-38, %v1945_v26  ;;  %vm2072_vm0 = vweird.f32 %v6965_v48 }
 0x3e4   :  { %v1950_v61 = vmul.f32 %v1932_v39, %v6347_v50  ;;  %v2068_v36 = vsub.f32 1.0, %v2067_v27  ;;  %v1942_v59 = vsel %vm1941_vm14, %v3675_v38, %v1938_v32  ;;  %vm6994_vm2 = vmor %vm2071_vm1, %vm2072_vm0 }
 0x3e5   :  { %v1947_v6 = vsel %vm1944_vm15, %v1946_v1, %v1942_v59  ;;  %v39_v59 = vld [vmem:[%s8254_s0 + $0x30] sm:$0xff]  ;;  %v7070_v1 = vld [vmem:[#allocation2 + $0x180] sm:$0xff] }
 0x3e6   :  { %v6970_v15 = vadd.f32 %v1951_v16, %v1950_v61  ;;  %v2069_v56 = vmul.f32 %v6965_v48, %v2068_v36  ;;  %v2077_v16 = vand.u32 2147483648, %v6950_v5  ;;  %v9481_v36 = vld [vmem:[#allocation37_spill] sm:$0xff]  ;;  %192 = vperm.xlu0 %3546, %v39_v59   ;;  %75 = vperm.xlu2 %3545, %v39_v59   ;;  %v9511_v59 = vld [vmem:[#allocation66_spill] sm:$0xff] }
 0x3e7   :  { %v3681_v50 = vpop.eup %3680 }
 0x3e8   :  { %3682 = vtanh.f32 %v6970_v15  ;;  %v2048_v11 = vadd.f32 1.0, %v3681_v50  ;;  %v2070_v38 = vadd.f32 %v6965_v48, %v2069_v56  ;;  %v2078_v9 = vor.u32 1.1754944e-38, %v2077_v16  ;;  %v7084_v56 = vld [vmem:[#allocation2 + $0x140] sm:$0xff]  ;;  %v9486_v16 = vld [vmem:[#allocation46_spill] sm:$0xff] }
 0x3e9   :  { %3684 = vpow2.f32 %v3508_v3 }
 0x3ea   :  { %3686 = vrcp.f32 %v2048_v11  ;;  %v2062_v13 = vand.u32 2147483648, %v2048_v11  ;;  %v2060_v22 = vand.u32 2147483647, %v2048_v11  ;;  %vm2056_vm5 = vweird.f32 %v2048_v11 }
 0x3ec   :  { %vm2061_vm7 = vcmp.eq.f32.partialorder %v2060_v22, 8.507059e+37  ;;  %v7116_v22 = vld [vmem:[#allocation2 + $0xc0] sm:$0xff] }
 0x3ee   :  { %v3683_v47 = vpop.eup %3682 }
 0x3ef   :  { %v1954_v33 = vmul.f32 %v3683_v47, %v1947_v6  ;;  %v3685_v37 = vpop.eup %3684  ;;  %v7074_v47 = vld [vmem:[#allocation2 + $0x190] sm:$0xff] }
 0x3f0   :  { %v6982_v39 = vadd.f32 1.0, %v3685_v37  ;;  %v3687_v52 = vpop.eup %3686  ;;  %v7081_v6 = vld [vmem:[#allocation2 + $0x170] sm:$0xff]  ;;  %v9483_v37 = vld [vmem:[#allocation41_spill] sm:$0xff] }
 0x3f1   :  { %2138 = vmatmul.f32.vlgmr.msrb.gmra.mxu1 %v1954_v33  ;;  %2178 = vmatmul.f32.vlgmr.msrb.gmra.mxu3 %v1954_v33  ;;  %v2052_v61 = vmul.f32 %v3687_v52, %v2048_v11  ;;  %vm2057_vm3 = vweird.f32 %v3687_v52  ;;  %v9480_v11 = vld [vmem:[#allocation34_spill] sm:$0xff] }
 0x3f2   :  { %2345 = vmatpush.msrb.mxu1 %v6366_v49  ;;  %2385 = vmatpush.msrb.mxu3 %v6369_v43  ;;  %3688 = vrcp.f32 %v6982_v39  ;;  %vm2058_vm6 = vmor %vm2056_vm5, %vm2057_vm3  ;;  %vm2086_vm9 = vweird.f32 %v6982_v39  ;;  %v7108_v43 = vld [vmem:[#allocation2 + $0xe0] sm:$0xff] }
 0x3f3   :  { %v2053_v49 = vsub.f32 1.0, %v2052_v61  ;;  %3690 = vtanh.f32 %v2038_v45  ;;  %v7096_v45 = vld [vmem:[#allocation2 + $0x130] sm:$0xff]  ;;  %v7100_v61 = vld [vmem:[#allocation2 + $0x100] sm:$0xff] }
 0x3f4   :  { %2346 = vmatpush.msrb.mxu1 %v6377_v40  ;;  %2386 = vmatpush.msrb.mxu3 %v6380_v21  ;;  %v2074_v40 = vsel %vm6994_vm2, %v6965_v48, %v2070_v38  ;;  %v9485_v38 = vld [vmem:[#allocation45_spill] sm:$0xff] }
 0x3f5   :  { %v2054_v21 = vmul.f32 %v3687_v52, %v2053_v49  ;;  %v9487_v49 = vld [vmem:[#allocation49_spill] sm:$0xff] }
 0x3f6   :  { %2347 = vmatpush.msrb.mxu1 %v6390_v57  ;;  %2387 = vmatpush.msrb.mxu3 %v6393_v7  ;;  %v2079_v57 = vsel %vm2076_vm4, %v2078_v9, %v2074_v40  ;;  %v2063_v7 = vor.u32 1.1754944e-38, %v2062_v13  ;;  %v9488_v13 = vld [vmem:[#allocation50_spill] sm:$0xff]  ;;  %v7112_v40 = vld [vmem:[#allocation2 + $0xf0] sm:$0xff] }
 0x3f7   :  { %v2055_v27 = vadd.f32 %v3687_v52, %v2054_v21  ;;  %v2097_v26 = vmul.f32 %v2079_v57, %v6435_v31  ;;  %v9489_v21 = vld [vmem:[#allocation53_spill] sm:$0xff]  ;;  %v9490_v9 = vld [vmem:[#allocation54_spill] sm:$0xff] }
 0x3f8   :  { %2348 = vmatpush.msrb.mxu1 %v6400_v8  ;;  %2388 = vmatpush.msrb.mxu3 %v6403_v53  ;;  %v3689_v5 = vpop.eup %3688  ;;  %v7124_v57 = vld [vmem:[#allocation2 + $0xa0] sm:$0xff] }
 0x3f9   :  { %2218 = vmatmul.f32.vlgmr.msra.gmra.mxu1 %v1954_v33  ;;  %2258 = vmatmul.f32.vlgmr.msra.gmra.mxu3 %v1954_v33  ;;  %v2082_v32 = vmul.f32 %v3689_v5, %v6982_v39  ;;  %v2059_v48 = vsel %vm2058_vm6, %v3687_v52, %v2055_v27  ;;  %v3691_v8 = vpop.eup %3690  ;;  %vm2087_vm8 = vweird.f32 %v3689_v5  ;;  %v7088_v33 = vld [vmem:[#allocation2 + $0x150] sm:$0xff]  ;;  %v9484_v52 = vld [vmem:[#allocation42_spill] sm:$0xff]  ;;  %v9491_v27 = vld [vmem:[#allocation57_spill] sm:$0xff] }
 0x3fa   :  { %2349 = vmatpush.msrb.mxu1 %v6415_v2  ;;  %2389 = vmatpush.msrb.mxu3 %v6418_v58  ;;  %v2064_v3 = vsel %vm2061_vm7, %v2063_v7, %v2059_v48  ;;  %vm2088_vm10 = vmor %vm2086_vm9, %vm2087_vm8  ;;  %v9492_v7 = vld [vmem:[#allocation58_spill] sm:$0xff]  ;;  %v9493_v48 = vld [vmem:[#allocation61_spill] sm:$0xff] }
 0x3fb   :  { %v2083_v53 = vsub.f32 1.0, %v2082_v32  ;;  %v2098_v50 = vmul.f32 %v3691_v8, %v2064_v3  ;;  %v7128_v32 = vld [vmem:[#allocation2 + $0xb0] sm:$0xff]  ;;  %v7132_v8 = vld [vmem:[#allocation2 + $0x80] sm:$0xff]  ;;  %v9494_v3 = vld [vmem:[#allocation20_spill] sm:$0xff] }
 0x3fc   :  { %2350 = vmatpush.msrb.mxu1 %v6421_v60  ;;  %2390 = vmatpush.msrb.mxu3 %v6424_v18  ;;  %v2092_v60 = vand.u32 2147483648, %v6982_v39  ;;  %v2090_v18 = vand.u32 2147483647, %v6982_v39  ;;  %v7092_v39 = vld [vmem:[#allocation2 + $0x120] sm:$0xff] }
 0x3fd   :  { %v2084_v10 = vmul.f32 %v3689_v5, %v2083_v53  ;;  %v7013_v2 = vadd.f32 %v2098_v50, %v2097_v26  ;;  %v7136_v53 = vld [vmem:[#allocation2 + $0x90] sm:$0xff]  ;;  %v7140_v50 = vld [vmem:[#allocation2 + $0x60] sm:$0xff] }
 0x3fe   :  { %2351 = vmatpush.msrb.mxu1 %v6429_v35  ;;  %2391 = vmatpush.msrb.mxu3 %v6432_v51  ;;  %v2093_v51 = vor.u32 1.1754944e-38, %v2092_v60  ;;  %vm2091_vm11 = vcmp.eq.f32.partialorder %v2090_v18, 8.507059e+37  ;;  %v9495_v26 = vld [vmem:[#allocation23_spill] sm:$0xff]  ;;  %v7148_v18 = vld [vmem:[#allocation2 + $0x40] sm:$0xff] }
 0x3ff   :  { %v2085_v58 = vadd.f32 %v3689_v5, %v2084_v10  ;;  %3692 = vtanh.f32 %v7013_v2  ;;  %v9497_v10 = vld [vmem:[#allocation24_spill] sm:$0xff]  ;;  %v9499_v60 = vld [vmem:[#allocation27_spill] sm:$0xff] }
 0x400   :  { %2352 = vmatpush.msrb.mxu1 %v6439_v55  ;;  %2392 = vmatpush.msrb.mxu3 %v6442_v14 }
 0x401   :  { %v2089_v35 = vsel %vm2088_vm10, %v3689_v5, %v2085_v58  ;;  %v7120_v5 = vld [vmem:[#allocation2 + $0xd0] sm:$0xff] }
 0x402   :  { %2353 = vmatpush.msrb.mxu1 %v6449_v25  ;;  %2393 = vmatpush.msrb.mxu3 %v6452_v17  ;;  %v2094_v55 = vsel %vm2091_vm11, %v2093_v51, %v2089_v35  ;;  %v7033_v25 = vld [vmem:[#allocation2 + $0x200] sm:$0xff]  ;;  %v7036_v17 = vld [vmem:[#allocation2 + $0x210] sm:$0xff]  ;;  %v9501_v35 = vld [vmem:[#allocation28_spill] sm:$0xff] }
 0x403   :  { %v7144_v58 = vld [vmem:[#allocation2 + $0x70] sm:$0xff] }
 0x404   :  { %2354 = vmatpush.msrb.mxu1 %v6457_v46  ;;  %2394 = vmatpush.msrb.mxu3 %v6460_v24  ;;  %v7041_v46 = vld [vmem:[#allocation2 + $0x1e0] sm:$0xff]  ;;  %v9476_v24 = vld [vmem:[#allocation26_spill] sm:$0xff]  ;;  %v7152_v51 = vld [vmem:[#allocation2 + $0x50] sm:$0xff] }
 0x405   :  { %v3693_v31 = vpop.eup %3692  ;;  %9496 = vst [vmem:[#allocation26_spill] sm:$0xff] %v7140_v50 }
 0x406   :  { %2355 = vmatpush.msrb.mxu1 %v6463_v63  ;;  %2395 = vmatpush.msrb.mxu3 %v6466_v41  ;;  %v7027_v14 = vmul.f32 %v3693_v31, %v2094_v55  ;;  %v9477_v63 = vld [vmem:[#allocation29_spill] sm:$0xff]  ;;  %v9503_v31 = vld [vmem:[#allocation19_spill] sm:$0xff] }
 0x407   :  { %v7049_v41 = vld [vmem:[#allocation2 + $0x1c0] sm:$0xff]  ;;  %9498 = vst [vmem:[#allocation29_spill] sm:$0xff] %v7144_v58 }
 0x408   :  { %2356 = vmatpush.msrb.mxu1 %v6471_v28  ;;  %2396 = vmatpush.msrb.mxu3 %v6474_v4  ;;  %v7044_v4 = vld [vmem:[#allocation2 + $0x1f0] sm:$0xff]  ;;  %v7156_v55 = vld [vmem:[#allocation2 + $0x20] sm:$0xff] }
 0x409   :  { %2118 = vmatmul.f32.vlgmr.msrb.gmra.mxu0 %v7027_v14  ;;  %2158 = vmatmul.f32.vlgmr.msrb.gmra.mxu2 %v7027_v14  ;;  %v7052_v28 = vld [vmem:[#allocation2 + $0x1d0] sm:$0xff]  ;;  %9504 = vst [vmem:[#allocation34_spill] sm:$0xff] %v7156_v55 }
 0x40a   :  { %2325 = vmatpush.msrb.mxu0 %v7033_v25  ;;  %2365 = vmatpush.msrb.mxu2 %v7036_v17 }
 0x40b   :  { %2357 = vmatpush.msrb.mxu1 %v6481_v62  ;;  %2397 = vmatpush.msrb.mxu3 %v6484_v30  ;;  %v9478_v62 = vld [vmem:[#allocation30_spill] sm:$0xff]  ;;  %v9479_v30 = vld [vmem:[#allocation33_spill] sm:$0xff] }
 0x40c   :  { %2326 = vmatpush.msrb.mxu0 %v7041_v46  ;;  %2366 = vmatpush.msrb.mxu2 %v7044_v4  ;;  %9500 = vst [vmem:[#allocation30_spill] sm:$0xff] %v7148_v18 }
 0x40d   :  { %2358 = vmatpush.msrb.mxu1 %v9476_v24  ;;  %2398 = vmatpush.msrb.mxu3 %v9477_v63  ;;  %9502 = vst [vmem:[#allocation33_spill] sm:$0xff] %v7152_v51  ;;  %v9505_v24 = vld [vmem:[#allocation31_spill] sm:$0xff] }
 0x40e   :  { %2327 = vmatpush.msrb.mxu0 %v7049_v41  ;;  %2367 = vmatpush.msrb.mxu2 %v7052_v28  ;;  %v7160_v63 = vld [vmem:[#allocation2 + $0x30] sm:$0xff] }
 0x40f   :  { %2359 = vmatpush.msrb.mxu1 %v9478_v62  ;;  %2399 = vmatpush.msrb.mxu3 %v9479_v30  ;;  %9506 = vst [vmem:[#allocation37_spill] sm:$0xff] %v7160_v63  ;;  %v9507_v62 = vld [vmem:[#allocation62_spill] sm:$0xff]  ;;  %v9508_v30 = vld [vmem:[#allocation32_spill] sm:$0xff] }
 0x410   :  { %2328 = vmatpush.msrb.mxu0 %v7057_v29  ;;  %2368 = vmatpush.msrb.mxu2 %v7060_v0 }
 0x411   :  { %2360 = vmatpush.msrb.mxu1 %v9480_v11  ;;  %2400 = vmatpush.msrb.mxu3 %v9481_v36  ;;  %v9509_v11 = vld [vmem:[#allocation65_spill] sm:$0xff]  ;;  %v9510_v36 = vld [vmem:[#allocation35_spill] sm:$0xff] }
 0x412   :  { %2198 = vmatmul.f32.vlgmr.msra.gmra.mxu0 %v7027_v14  ;;  %2238 = vmatmul.f32.vlgmr.msra.gmra.mxu2 %v7027_v14 }
 0x413   :  { %2329 = vmatpush.msrb.mxu0 %v7070_v1  ;;  %2361 = vmatmul.f32.vlgmr.msrb.gmra.mxu1 %v7027_v14 }
 0x414   :  { %2369 = vmatpush.msrb.mxu2 %v7074_v47  ;;  %2401 = vmatmul.f32.vlgmr.msrb.gmra.mxu3 %v7027_v14 }
 0x415   :  { %2330 = vmatpush.msrb.mxu0 %v7078_v12  ;;  %2492 = vmatpush.msra.mxu1 %v9482_v23  ;;  %v9512_v23 = vld [vmem:[#allocation36_spill] sm:$0xff] }
 0x416   :  { %2370 = vmatpush.msrb.mxu2 %v7081_v6  ;;  %2532 = vmatpush.msra.mxu3 %v9483_v37  ;;  %v9513_v37 = vld [vmem:[#allocation69_spill] sm:$0xff] }
 0x417   :  { %2331 = vmatpush.msrb.mxu0 %v7084_v56  ;;  %2493 = vmatpush.msra.mxu1 %v9484_v52  ;;  %v9514_v52 = vld [vmem:[#allocation39_spill] sm:$0xff] }
 0x418   :  { %2371 = vmatpush.msrb.mxu2 %v7088_v33  ;;  %2533 = vmatpush.msra.mxu3 %v9485_v38  ;;  %v9515_v38 = vld [vmem:[#allocation70_spill] sm:$0xff] }
 0x419   :  { %2332 = vmatpush.msrb.mxu0 %v7092_v39  ;;  %2494 = vmatpush.msra.mxu1 %v9486_v16  ;;  %v9516_v16 = vld [vmem:[#allocation40_spill] sm:$0xff] }
 0x41a   :  { %2372 = vmatpush.msrb.mxu2 %v7096_v45  ;;  %2534 = vmatpush.msra.mxu3 %v9487_v49  ;;  %v9518_v49 = vld [vmem:[#allocation43_spill] sm:$0xff] }
 0x41b   :  { %2333 = vmatpush.msrb.mxu0 %v7100_v61  ;;  %2495 = vmatpush.msra.mxu1 %v9488_v13  ;;  %v9519_v13 = vld [vmem:[#allocation74_spill] sm:$0xff] }
 0x41c   :  { %2373 = vmatpush.msrb.mxu2 %v7104_v19  ;;  %2535 = vmatpush.msra.mxu3 %v9489_v21  ;;  %v9520_v21 = vld [vmem:[#allocation47_spill] sm:$0xff] }
 0x41d   :  { %2334 = vmatpush.msrb.mxu0 %v7108_v43  ;;  %2496 = vmatpush.msra.mxu1 %v9490_v9  ;;  %v9521_v9 = vld [vmem:[#allocation77_spill] sm:$0xff] }
 0x41e   :  { %2374 = vmatpush.msrb.mxu2 %v7112_v40  ;;  %2536 = vmatpush.msra.mxu3 %v9491_v27  ;;  %v9522_v27 = vld [vmem:[#allocation51_spill] sm:$0xff] }
 0x41f   :  { %2335 = vmatpush.msrb.mxu0 %v7116_v22  ;;  %2497 = vmatpush.msra.mxu1 %v9492_v7  ;;  %v9523_v7 = vld [vmem:[#allocation78_spill] sm:$0xff] }
 0x420   :  { %2375 = vmatpush.msrb.mxu2 %v7120_v5  ;;  %2537 = vmatpush.msra.mxu3 %v9493_v48  ;;  %v9524_v48 = vld [vmem:[#allocation52_spill] sm:$0xff] }
 0x421   :  { %2336 = vmatpush.msrb.mxu0 %v7124_v57  ;;  %2498 = vmatpush.msra.mxu1 %v9494_v3  ;;  %v9525_v3 = vld [vmem:[#allocation55_spill] sm:$0xff] }
 0x422   :  { %2376 = vmatpush.msrb.mxu2 %v7128_v32  ;;  %2538 = vmatpush.msra.mxu3 %v9495_v26  ;;  %v9526_v26 = vld [vmem:[#allocation81_spill] sm:$0xff] }
 0x423   :  { %2337 = vmatpush.msrb.mxu0 %v7132_v8  ;;  %2499 = vmatpush.msra.mxu1 %v9497_v10  ;;  %v9527_v10 = vld [vmem:[#allocation82_spill] sm:$0xff] }
 0x424   :  { %2377 = vmatpush.msrb.mxu2 %v7136_v53  ;;  %2539 = vmatpush.msra.mxu3 %v9499_v60  ;;  %v9528_v60 = vld [vmem:[#allocation59_spill] sm:$0xff] }
 0x425   :  { %2338 = vmatpush.msrb.mxu0 %v7140_v50  ;;  %2500 = vmatpush.msra.mxu1 %v9501_v35  ;;  %v9529_v35 = vld [vmem:[#allocation63_spill] sm:$0xff] }
 0x426   :  { %2378 = vmatpush.msrb.mxu2 %v7144_v58  ;;  %2540 = vmatpush.msra.mxu3 %v9503_v31  ;;  %v9530_v31 = vld [vmem:[#allocation44_spill] sm:$0xff] }
 0x427   :  { %2339 = vmatpush.msrb.mxu0 %v7148_v18  ;;  %2501 = vmatpush.msra.mxu1 %v9505_v24  ;;  %v9531_v24 = vld [vmem:[#allocation48_spill] sm:$0xff] }
 0x428   :  { %2379 = vmatpush.msrb.mxu2 %v7152_v51  ;;  %2541 = vmatpush.msra.mxu3 %v9507_v62  ;;  %v9532_v62 = vld [vmem:[#allocation67_spill] sm:$0xff] }
 0x429   :  { %2340 = vmatpush.msrb.mxu0 %v7156_v55  ;;  %2502 = vmatpush.msra.mxu1 %v9508_v30  ;;  %v9533_v30 = vld [vmem:[#allocation71_spill] sm:$0xff] }
 0x42a   :  { %2380 = vmatpush.msrb.mxu2 %v7160_v63  ;;  %2341 = vmatmul.f32.vlgmr.msrb.gmra.mxu0 %v7027_v14 }
 0x42b   :  { %2381 = vmatmul.f32.vlgmr.msrb.gmra.mxu2 %v7027_v14  ;;  %2472 = vmatpush.msra.mxu0 %v9509_v11  ;;  %v9517_v14 = vld [vmem:[#allocation73_spill] sm:$0xff]  ;;  %v9534_v11 = vld [vmem:[#allocation56_spill] sm:$0xff] }
 0x42c   :  { %2542 = vmatpush.msra.mxu3 %v9510_v36  ;;  %2512 = vmatpush.msra.mxu2 %v9511_v59  ;;  %v9535_v36 = vld [vmem:[#allocation60_spill] sm:$0xff]  ;;  %v9536_v59 = vld [vmem:[#allocation75_spill] sm:$0xff] }
 0x42d   :  { %2503 = vmatpush.msra.mxu1 %v9512_v23  ;;  %2473 = vmatpush.msra.mxu0 %v9513_v37  ;;  %v9537_v23 = vld [vmem:[#allocation79_spill] sm:$0xff]  ;;  %v9538_v37 = vld [vmem:[#allocation64_spill] sm:$0xff] }
 0x42e   :  { %2543 = vmatpush.msra.mxu3 %v9514_v52  ;;  %2513 = vmatpush.msra.mxu2 %v9515_v38  ;;  %v9539_v52 = vld [vmem:[#allocation68_spill] sm:$0xff]  ;;  %v9540_v38 = vld [vmem:[#allocation83_spill] sm:$0xff] }
 0x42f   :  { %2504 = vmatpush.msra.mxu1 %v9516_v16  ;;  %2474 = vmatpush.msra.mxu0 %v9517_v14  ;;  %v9541_v16 = vld [vmem:[#allocation85_spill] sm:$0xff]  ;;  %v9542_v14 = vld [vmem:[#allocation72_spill] sm:$0xff] }
 0x430   :  { %2544 = vmatpush.msra.mxu3 %v9518_v49  ;;  %2514 = vmatpush.msra.mxu2 %v9519_v13  ;;  %v9543_v49 = vld [vmem:[#allocation76_spill] sm:$0xff] }
 0x431   :  { %2505 = vmatpush.msra.mxu1 %v9520_v21  ;;  %2475 = vmatpush.msra.mxu0 %v9521_v9  ;;  %v9544_v13 = vld [vmem:[#allocation88_spill] sm:$0xff]  ;;  %v9545_v21 = vld [vmem:[#allocation91_spill] sm:$0xff] }
 0x432   :  { %2545 = vmatpush.msra.mxu3 %v9522_v27  ;;  %2515 = vmatpush.msra.mxu2 %v9523_v7  ;;  %v9546_v9 = vld [vmem:[#allocation80_spill] sm:$0xff]  ;;  %v9548_v7 = vld [vmem:[#allocation94_spill] sm:$0xff] }
 0x433   :  { %2506 = vmatpush.msra.mxu1 %v9524_v48  ;;  %2476 = vmatpush.msra.mxu0 %v9525_v3  ;;  %v9547_v27 = vld [vmem:[#allocation84_spill] sm:$0xff]  ;;  %v9550_v3 = vld [vmem:[#allocation86_spill] sm:$0xff] }
 0x434   :  { %2546 = vmatpush.msra.mxu3 %v9526_v26  ;;  %2516 = vmatpush.msra.mxu2 %v9527_v10  ;;  %v9549_v48 = vld [vmem:[#allocation100_spill] sm:$0xff]  ;;  %v9551_v26 = vld [vmem:[#allocation89_spill] sm:$0xff]  ;;  %v9552_v10 = vld [vmem:[#allocation6_spill] sm:$0xff] }
 0x435   :  { %2507 = vmatpush.msra.mxu1 %v9528_v60  ;;  %2477 = vmatpush.msra.mxu0 %v9529_v35  ;;  %v9553_v60 = vld [vmem:[#allocation8_spill] sm:$0xff] }
 0x436   :  { %2547 = vmatpush.msra.mxu3 %v9530_v31  ;;  %2517 = vmatpush.msra.mxu2 %v9533_v30  ;;  %v9554_v35 = vld [vmem:[#allocation92_spill] sm:$0xff]  ;;  %v9555_v31 = vld [vmem:[#allocation98_spill] sm:$0xff]  ;;  %v9558_v30 = vld [vmem:[#allocation5_spill] sm:$0xff] }
 0x437   :  { %2572 = vmatpush.msrb.mxu1 %v9531_v24  ;;  %2478 = vmatpush.msra.mxu0 %v9535_v36  ;;  %v9556_v24 = vld [vmem:[#allocation10_spill] sm:$0xff]  ;;  %v9560_v36 = vld [vmem:[#allocation103_spill] sm:$0xff] }
 0x438   :  { %2612 = vmatpush.msrb.mxu3 %v9532_v62  ;;  %2518 = vmatpush.msra.mxu2 %v9537_v23  ;;  %v9557_v62 = vld [vmem:[#allocation101_spill] sm:$0xff] }
 0x439   :  { %2573 = vmatpush.msrb.mxu1 %v9534_v11  ;;  %2479 = vmatpush.msra.mxu0 %v9539_v52  ;;  %v9559_v11 = vld [vmem:[#allocation7_spill] sm:$0xff]  ;;  %v9562_v23 = vld [vmem:[#allocation9_spill] sm:$0xff] }
 0x43a   :  { %2613 = vmatpush.msrb.mxu3 %v9536_v59  ;;  %2519 = vmatpush.msra.mxu2 %v9541_v16  ;;  %v9561_v59 = vld [vmem:[#allocation105_spill] sm:$0xff]  ;;  %v9564_v52 = vld [vmem:[#allocation107_spill] sm:$0xff]  ;;  %v9566_v16 = vld [vmem:[#allocation102_spill] sm:$0xff] }
 0x43b   :  { %2574 = vmatpush.msrb.mxu1 %v9538_v37  ;;  %2480 = vmatpush.msra.mxu0 %v9543_v49  ;;  %v9563_v37 = vld [vmem:[#allocation11_spill] sm:$0xff] }
 0x43c   :  { %2614 = vmatpush.msrb.mxu3 %v9540_v38  ;;  %2520 = vmatpush.msra.mxu2 %v9545_v21  ;;  %v9565_v38 = vld [vmem:[#allocation109_spill] sm:$0xff]  ;;  %v9568_v49 = vld [vmem:[#allocation111_spill] sm:$0xff]  ;;  %v9570_v21 = vld [vmem:[#allocation106_spill] sm:$0xff] }
 0x43d   :  { %2575 = vmatpush.msrb.mxu1 %v9542_v14  ;;  %2481 = vmatpush.msra.mxu0 %v9547_v27  ;;  %v9567_v14 = vld [vmem:[#allocation104_spill] sm:$0xff]  ;;  %v9572_v27 = vld [vmem:[#allocation115_spill] sm:$0xff] }
 0x43e   :  { %2615 = vmatpush.msrb.mxu3 %v9544_v13  ;;  %2521 = vmatpush.msra.mxu2 %v9549_v48  ;;  %v9569_v13 = vld [vmem:[#allocation113_spill] sm:$0xff]  ;;  %v9574_v48 = vld [vmem:[#allocation110_spill] sm:$0xff] }
 0x43f   :  { %2576 = vmatpush.msrb.mxu1 %v9546_v9  ;;  %2482 = vmatpush.msra.mxu0 %v9551_v26  ;;  %v9571_v9 = vld [vmem:[#allocation108_spill] sm:$0xff]  ;;  %v9576_v26 = vld [vmem:[#allocation119_spill] sm:$0xff] }
 0x440   :  { %2616 = vmatpush.msrb.mxu3 %v9548_v7  ;;  %2522 = vmatpush.msra.mxu2 %v9553_v60  ;;  %v9573_v7 = vld [vmem:[#allocation117_spill] sm:$0xff]  ;;  %v9578_v60 = vld [vmem:[#allocation114_spill] sm:$0xff] }
 0x441   :  { %2577 = vmatpush.msrb.mxu1 %v9550_v3  ;;  %2483 = vmatpush.msra.mxu0 %v9555_v31  ;;  %v9575_v3 = vld [vmem:[#allocation112_spill] sm:$0xff]  ;;  %v9580_v31 = vld [vmem:[#allocation123_spill] sm:$0xff] }
 0x442   :  { %2617 = vmatpush.msrb.mxu3 %v9552_v10  ;;  %2523 = vmatpush.msra.mxu2 %v9557_v62  ;;  %v9577_v10 = vld [vmem:[#allocation121_spill] sm:$0xff]  ;;  %v9582_v62 = vld [vmem:[#allocation118_spill] sm:$0xff] }
 0x443   :  { %2578 = vmatpush.msrb.mxu1 %v9554_v35  ;;  %2484 = vmatpush.msra.mxu0 %v9559_v11  ;;  %v9579_v35 = vld [vmem:[#allocation116_spill] sm:$0xff]  ;;  %v9584_v11 = vld [vmem:[#allocation127_spill] sm:$0xff] }
 0x444   :  { %2618 = vmatpush.msrb.mxu3 %v9556_v24  ;;  %2524 = vmatpush.msra.mxu2 %v9561_v59  ;;  %v9581_v24 = vld [vmem:[#allocation125_spill] sm:$0xff]  ;;  %v9586_v59 = vld [vmem:[#allocation122_spill] sm:$0xff] }
 0x445   :  { %2579 = vmatpush.msrb.mxu1 %v9558_v30  ;;  %2485 = vmatpush.msra.mxu0 %v9563_v37  ;;  %v9583_v30 = vld [vmem:[#allocation120_spill] sm:$0xff]  ;;  %v9588_v37 = vld [vmem:[#allocation126_spill] sm:$0xff] }
 0x446   :  { %2619 = vmatpush.msrb.mxu3 %v9560_v36  ;;  %2525 = vmatpush.msra.mxu2 %v9565_v38  ;;  %v9585_v36 = vld [vmem:[#allocation129_spill] sm:$0xff]  ;;  %v9590_v38 = vld [vmem:[#allocation130_spill] sm:$0xff] }
 0x447   :  { %2580 = vmatpush.msrb.mxu1 %v9562_v23  ;;  %2486 = vmatpush.msra.mxu0 %v9567_v14  ;;  %v9587_v23 = vld [vmem:[#allocation124_spill] sm:$0xff] }
 0x448   :  { %2620 = vmatpush.msrb.mxu3 %v9564_v52  ;;  %2526 = vmatpush.msra.mxu2 %v9569_v13  ;;  %v9589_v52 = vld [vmem:[#allocation128_spill] sm:$0xff]  ;;  %v9594_v13 = vld [vmem:[#allocation134_spill] sm:$0xff] }
 0x449   :  { %2581 = vmatpush.msrb.mxu1 %v9566_v16  ;;  %2487 = vmatpush.msra.mxu0 %v9571_v9  ;;  %v9591_v16 = vld [vmem:[#allocation131_spill] sm:$0xff]  ;;  %v9592_v14 = vld [vmem:[#allocation132_spill] sm:$0xff] }
 0x44a   :  { %2621 = vmatpush.msrb.mxu3 %v9568_v49  ;;  %2527 = vmatpush.msra.mxu2 %v9573_v7  ;;  %v9593_v49 = vld [vmem:[#allocation133_spill] sm:$0xff]  ;;  %v9596_v9 = vld [vmem:[#allocation135_spill] sm:$0xff] }
 0x44b   :  { %2582 = vmatpush.msrb.mxu1 %v9570_v21  ;;  %2552 = vmatpush.msrb.mxu0 %v9575_v3  ;;  %v9595_v21 = vmov 1   ;;  %v9598_v7 = vld [vmem:[#allocation137_spill] sm:$0xff]  ;;  %v9600_v3 = vld [vmem:[#allocation139_spill] sm:$0xff] }
 0x44c   :  { %2622 = vmatpush.msrb.mxu3 %v9572_v27  ;;  %2592 = vmatpush.msrb.mxu2 %v9577_v10  ;;  %v9597_v27 = vld [vmem:[#allocation136_spill] sm:$0xff]  ;;  %v9602_v10 = vld [vmem:[#allocation141_spill] sm:$0xff] }
 0x44d   :  { %2583 = vmatpush.msrb.mxu1 %v9574_v48  ;;  %2553 = vmatpush.msrb.mxu0 %v9579_v35  ;;  %v9599_v48 = vld [vmem:[#allocation138_spill] sm:$0xff]  ;;  %v9604_v35 = vld [vmem:[#allocation143_spill] sm:$0xff] }
 0x44e   :  { %2623 = vmatpush.msrb.mxu3 %v9576_v26  ;;  %2593 = vmatpush.msrb.mxu2 %v9581_v24  ;;  %v9601_v26 = vld [vmem:[#allocation140_spill] sm:$0xff]  ;;  %v9606_v24 = vld [vmem:[#allocation145_spill] sm:$0xff] }
 0x44f   :  { %2584 = vmatpush.msrb.mxu1 %v9578_v60  ;;  %2554 = vmatpush.msrb.mxu0 %v9583_v30  ;;  %v9603_v60 = vld [vmem:[#allocation142_spill] sm:$0xff]  ;;  %v9608_v30 = vld [vmem:[#allocation147_spill] sm:$0xff] }
 0x450   :  { %2624 = vmatpush.msrb.mxu3 %v9580_v31  ;;  %2594 = vmatpush.msrb.mxu2 %v9585_v36  ;;  %v9605_v31 = vld [vmem:[#allocation144_spill] sm:$0xff]  ;;  %v9610_v36 = vld [vmem:[#allocation149_spill] sm:$0xff] }
 0x451   :  { %2585 = vmatpush.msrb.mxu1 %v9582_v62  ;;  %2555 = vmatpush.msrb.mxu0 %v9587_v23  ;;  %v9607_v62 = vld [vmem:[#allocation146_spill] sm:$0xff]  ;;  %v9612_v23 = vld [vmem:[#allocation17_spill] sm:$0xff] }
 0x452   :  { %2625 = vmatpush.msrb.mxu3 %v9584_v11  ;;  %2595 = vmatpush.msrb.mxu2 %v9589_v52  ;;  %v9609_v11 = vld [vmem:[#allocation148_spill] sm:$0xff]  ;;  %v9614_v52 = vld [vmem:[#allocation21_spill] sm:$0xff] }
 0x453   :  { %2586 = vmatpush.msrb.mxu1 %v9586_v59  ;;  %2556 = vmatpush.msrb.mxu0 %v9591_v16  ;;  %v9611_v59 = vld [vmem:[#allocation16_spill] sm:$0xff]  ;;  %v9616_v16 = vld [vmem:[#allocation25_spill] sm:$0xff] }
 0x454   :  { %2626 = vmatpush.msrb.mxu3 %v9588_v37  ;;  %2596 = vmatpush.msrb.mxu2 %v9593_v49  ;;  %v9613_v37 = vld [vmem:[#allocation18_spill] sm:$0xff]  ;;  %v7275_v49 = vpop.permute.xlu2 %70 }
 0x455   :  { %2587 = vmatpush.msrb.mxu1 %v9590_v38  ;;  %2557 = vmatpush.msrb.mxu0 %v9594_v13  ;;  %v9615_v38 = vld [vmem:[#allocation22_spill] sm:$0xff] }
 0x456   :  { %2627 = vmatpush.msrb.mxu3 %v9592_v14  ;;  %3548 = vset.pattern.permute.xlu2 %v9595_v21  ;;  %v9617_v21 = vld [vmem:[#allocation90_spill] sm:$0xff] }
 0x457   :  { %2597 = vmatpush.msrb.mxu2 %v9596_v9  ;;  %2558 = vmatpush.msrb.mxu0 %v9597_v27  ;;  %v113_v9 = vmul.f32 %v9617_v21, %v7275_v49  ;;  %v9618_v27 = vld [vmem:[#allocation12_spill] sm:$0xff] }
 0x459   :  { %2598 = vmatpush.msrb.mxu2 %v9598_v7  ;;  %2559 = vmatpush.msrb.mxu0 %v9599_v48  ;;  %v7280_v48 = vpop.permute.xlu1 %188 }
 0x45a   :  { %v230_v55 = vmul.f32 %v4980_v54, %v7280_v48 }
 0x45b   :  { %2599 = vmatpush.msrb.mxu2 %v9600_v3  ;;  %2560 = vmatpush.msrb.mxu0 %v9601_v26 }
 0x45d   :  { %2600 = vmatpush.msrb.mxu2 %v9602_v10  ;;  %2561 = vmatpush.msrb.mxu0 %v9603_v60  ;;  %v9619_v60 = vld [vmem:[#allocation96_spill] sm:$0xff] }
 0x45f   :  { %2601 = vmatpush.msrb.mxu2 %v9604_v35  ;;  %2562 = vmatpush.msrb.mxu0 %v9605_v31  ;;  %v154_v35 = vadd.f32 %v9619_v60, %v113_v9  ;;  %v9620_v31 = vld [vmem:[#allocation97_spill] sm:$0xff] }
 0x461   :  { %2602 = vmatpush.msrb.mxu2 %v9606_v24  ;;  %2563 = vmatpush.msrb.mxu0 %v9607_v62  ;;  %v229_v24 = vmul.f32 %v9620_v31, %v7280_v48 }
 0x463   :  { %2603 = vmatpush.msrb.mxu2 %v9608_v30  ;;  %2564 = vmatpush.msrb.mxu0 %v9609_v11  ;;  %v9621_v30 = vld [vmem:[#allocation13_spill] sm:$0xff] }
 0x465   :  { %2604 = vmatpush.msrb.mxu2 %v9610_v36  ;;  %2565 = vmatpush.msrb.mxu0 %v9611_v59 }
 0x467   :  { %2605 = vmatpush.msrb.mxu2 %v9612_v23  ;;  %2566 = vmatpush.msrb.mxu0 %v9613_v37  ;;  %v261_v37 = vadd.f32 %v229_v24, %v154_v35 }
 0x469   :  { %2606 = vmatpush.msrb.mxu2 %v9614_v52  ;;  %2567 = vmatpush.msrb.mxu0 %v9615_v38  ;;  %v9622_v52 = vld [vmem:[#allocation14_spill] sm:$0xff] }
 0x46b   :  { %2607 = vmatpush.msrb.mxu2 %v9616_v16 }
 0x46e   :  { %v2139_v14 = vpop.f32.mrf.mxu1 }
 0x474   :  { %v2179_v36 = vpop.f32.mrf.mxu3 }
 0x476   :  { %v2219_v3 = vpop.f32.mrf.mxu1 }
 0x486   :  { %v2119_v13 = vpop.f32.mrf.mxu0 }
 0x487   :  { %v2120_v7 = vadd.f32 %v2119_v13, %v9618_v27 }
 0x489   :  { %v2140_v26 = vadd.f32 %v2139_v14, %v2120_v7 }
 0x48b   :  { %v3509_v10 = vmul.f32 -1.442695, %v2140_v26 }
 0x48c   :  { %v2159_v62 = vpop.f32.mrf.mxu2 }
 0x48d   :  { %3694 = vpow2.f32 %v3509_v10  ;;  %v2160_v11 = vadd.f32 %v2159_v62, %v9621_v30 }
 0x48f   :  { %v2180_v59 = vadd.f32 %v2179_v36, %v2160_v11  ;;  %v2199_v23 = vpop.f32.mrf.mxu0  ;;  %v9623_v36 = vld [vmem:[#allocation15_spill] sm:$0xff] }
 0x490   :  { %v2200_v38 = vadd.f32 %v2199_v23, %v9622_v52  ;;  %v2362_v16 = vpop.f32.mrf.mxu1  ;;  %v9626_v52 = vld [vmem:[#allocation95_spill] sm:$0xff] }
 0x491   :  { %v3510_v13 = vmul.f32 -1.442695, %v2180_v59  ;;  %v2406_v27 = vadd.f32 %v2362_v16, %v261_v37  ;;  %v9624_v59 = vld [vmem:[#allocation87_spill] sm:$0xff] }
 0x492   :  { %v2220_v14 = vadd.f32 %v2219_v3, %v2200_v38  ;;  %v112_v3 = vmul.f32 %v9624_v59, %v7275_v49 }
 0x493   :  { %v3695_v7 = vpop.eup %3694  ;;  %3696 = vpow2.f32 %v3510_v13  ;;  %v3513_v60 = vmul.f32 -1.442695, %v2406_v27  ;;  %v2259_v27 = vpop.f32.mrf.mxu3 }
 0x494   :  { %v2271_v9 = vadd.f32 1.0, %v3695_v7  ;;  %v3511_v26 = vmul.f32 -1.442695, %v2220_v14 }
 0x495   :  { %v2239_v30 = vpop.f32.mrf.mxu2 }
 0x496   :  { %3698 = vrcp.f32 %v2271_v9  ;;  %v2240_v23 = vadd.f32 %v2239_v30, %v9623_v36  ;;  %v228_v30 = vmul.f32 %v9626_v52, %v7280_v48  ;;  %vm2279_vm13 = vweird.f32 %v2271_v9 }
 0x497   :  { %3700 = vpow2.f32 %v3511_v26  ;;  %v9625_v26 = vld [vmem:[#allocation93_spill] sm:$0xff]  ;;  %v2283_v63 = vand.u32 2147483647, %v2271_v9 }
 0x498   :  { %3702 = vpow2.f32 %v3513_v60  ;;  %v2260_v13 = vadd.f32 %v2259_v27, %v2240_v23 }
 0x499   :  { %v3697_v10 = vpop.eup %3696  ;;  %vm2284_vm1 = vcmp.eq.f32.partialorder %v2283_v63, 8.507059e+37 }
 0x49a   :  { %v2272_v62 = vadd.f32 1.0, %v3697_v10  ;;  %v153_v10 = vadd.f32 %v9625_v26, %v112_v3 }
 0x49c   :  { %v3699_v11 = vpop.eup %3698  ;;  %3704 = vrcp.f32 %v2272_v62  ;;  %v260_v27 = vadd.f32 %v228_v30, %v153_v10  ;;  %vm2294_vm0 = vweird.f32 %v2272_v62 }
 0x49d   :  { %v3701_v35 = vpop.eup %3700  ;;  %v2275_v24 = vmul.f32 %v3699_v11, %v2271_v9  ;;  %vm2280_vm12 = vweird.f32 %v3699_v11 }
 0x49e   :  { %v7290_v37 = vadd.f32 1.0, %v3701_v35  ;;  %v3703_v38 = vpop.eup %3702  ;;  %v9627_v35 = vld [vmem:[#allocation99_spill] sm:$0xff]  ;;  %vm7301_vm14 = vmor %vm2279_vm13, %vm2280_vm12 }
 0x49f   :  { %v2276_v16 = vsub.f32 1.0, %v2275_v24  ;;  %v7293_v7 = vadd.f32 1.0, %v3703_v38  ;;  %v114_v59 = vmul.f32 %v9627_v35, %v7275_v49  ;;  %v2285_v24 = vand.u32 2147483648, %v2271_v9 }
 0x4a0   :  { %3706 = vrcp.f32 %v7290_v37  ;;  %v2298_v38 = vand.u32 2147483647, %v2272_v62  ;;  %vm2309_vm5 = vweird.f32 %v7290_v37 }
 0x4a1   :  { %v2277_v60 = vmul.f32 %v3699_v11, %v2276_v16  ;;  %3708 = vtanh.f32 %v2260_v13  ;;  %v2300_v16 = vand.u32 2147483648, %v2272_v62  ;;  %v2286_v9 = vor.u32 1.1754944e-38, %v2285_v24 }
 0x4a2   :  { %v3705_v14 = vpop.eup %3704  ;;  %3710 = vrcp.f32 %v7293_v7  ;;  %v155_v52 = vadd.f32 %v4977_v20, %v114_v59  ;;  %vm2299_vm3 = vcmp.eq.f32.partialorder %v2298_v38, 8.507059e+37  ;;  %vm2441_vm9 = vweird.f32 %v7293_v7 }
 0x4a3   :  { %v2290_v36 = vmul.f32 %v3705_v14, %v2272_v62  ;;  %v2278_v31 = vadd.f32 %v3699_v11, %v2277_v60  ;;  %vm2295_vm15 = vweird.f32 %v3705_v14 }
 0x4a4   :  { %vm2296_vm2 = vmor %vm2294_vm0, %vm2295_vm15  ;;  %v262_v3 = vadd.f32 %v230_v55, %v155_v52 }
 0x4a5   :  { %v2291_v21 = vsub.f32 1.0, %v2290_v36  ;;  %v2282_v36 = vsel %vm7301_vm14, %v3699_v11, %v2278_v31 }
 0x4a6   :  { %v3707_v23 = vpop.eup %3706  ;;  %v2287_v10 = vsel %vm2284_vm1, %v2286_v9, %v2282_v36 }
 0x4a7   :  { %v2292_v60 = vmul.f32 %v3705_v14, %v2291_v21  ;;  %v2305_v26 = vmul.f32 %v3707_v23, %v7290_v37  ;;  %v2342_v35 = vpop.f32.mrf.mxu0  ;;  %v2301_v21 = vor.u32 1.1754944e-38, %v2300_v16  ;;  %v3709_v58 = vpop.eup %3708  ;;  %vm2310_vm4 = vweird.f32 %v3707_v23 }
 0x4a8   :  { %v2405_v13 = vadd.f32 %v2342_v35, %v260_v27  ;;  %v7311_v31 = vpop.eup %3710  ;;  %v2321_v24 = vmul.f32 %v3709_v58, %v2287_v10  ;;  %v2313_v58 = vand.u32 2147483647, %v7290_v37  ;;  %vm2311_vm6 = vmor %vm2309_vm5, %vm2310_vm4 }
 0x4a9   :  { %v2306_v51 = vsub.f32 1.0, %v2305_v26  ;;  %v2293_v18 = vadd.f32 %v3705_v14, %v2292_v60  ;;  %v2437_v16 = vmul.f32 %v7311_v31, %v7293_v7  ;;  %vm2442_vm8 = vweird.f32 %v7311_v31 }
 0x4aa   :  { %v3512_v30 = vmul.f32 -1.442695, %v2405_v13  ;;  %vm2314_vm7 = vcmp.eq.f32.partialorder %v2313_v58, 8.507059e+37  ;;  %vm7352_vm10 = vmor %vm2441_vm9, %vm2442_vm8  ;;  %v7360_v58 = vld [vmem:[#allocation2 + $0x1d8] sm:$0xff] }
 0x4ab   :  { %v2297_v50 = vsel %vm2296_vm2, %v3705_v14, %v2293_v18  ;;  %v2307_v35 = vmul.f32 %v3707_v23, %v2306_v51  ;;  %v115_v18 = vmul.f32 %v5018_v34, %v7275_v49  ;;  %v2315_v51 = vand.u32 2147483648, %v7290_v37  ;;  %v2402_v37 = vpop.f32.mrf.mxu3 }
 0x4ac   :  { %v2302_v11 = vsel %vm2299_vm3, %v2301_v21, %v2297_v50  ;;  %3712 = vpow2.f32 %v3512_v30  ;;  %v2438_v52 = vsub.f32 1.0, %v2437_v16  ;;  %v231_v49 = vmul.f32 %v5038_v44, %v7280_v48  ;;  %v7336_v48 = vld [vmem:[#allocation2 + $0x218] sm:$0xff] }
 0x4ad   :  { %v2320_v59 = vmul.f32 %v2302_v11, %v6970_v15  ;;  %v2308_v27 = vadd.f32 %v3707_v23, %v2307_v35  ;;  %v156_v38 = vadd.f32 %v5035_v42, %v115_v18  ;;  %v2316_v60 = vor.u32 1.1754944e-38, %v2315_v51  ;;  %v7347_v16 = vld [vmem:[#allocation2 + $0x1f8] sm:$0xff] }
 0x4ae   :  { %v2382_v62 = vpop.f32.mrf.mxu2  ;;  %v2439_v13 = vmul.f32 %v7311_v31, %v2438_v52 }
 0x4af   :  { %v7314_v26 = vadd.f32 %v2321_v24, %v2320_v59  ;;  %v2407_v63 = vadd.f32 %v2382_v62, %v262_v3  ;;  %v2312_v14 = vsel %vm2311_vm6, %v3707_v23, %v2308_v27  ;;  %v263_v30 = vadd.f32 %v231_v49, %v156_v38  ;;  %v7333_v59 = vld [vmem:[#allocation2 + $0x208] sm:$0xff] }
 0x4b0   :  { %v2317_v9 = vsel %vm2314_vm7, %v2316_v60, %v2312_v14  ;;  %v2440_v24 = vadd.f32 %v7311_v31, %v2439_v13  ;;  %v2447_v62 = vand.u32 2147483648, %v7293_v7  ;;  %v2445_v27 = vand.u32 2147483647, %v7293_v7  ;;  %v7367_v49 = vld [vmem:[#allocation2 + $0x1a8] sm:$0xff]  ;;  %v7370_v60 = vld [vmem:[#allocation2 + $0x1b8] sm:$0xff] }
 0x4b1   :  { %3714 = vtanh.f32 %v7314_v26  ;;  %v3514_v50 = vmul.f32 -1.442695, %v2407_v63  ;;  %v2408_v35 = vadd.f32 %v2402_v37, %v263_v30  ;;  %v7344_v63 = vld [vmem:[#allocation2 + $0x1e8] sm:$0xff]  ;;  %v7378_v30 = vld [vmem:[#allocation2 + $0x198] sm:$0xff] }
 0x4b2   :  { %v3713_v15 = vpop.eup %3712  ;;  %v2444_v7 = vsel %vm7352_vm10, %v7311_v31, %v2440_v24  ;;  %v2448_v38 = vor.u32 1.1754944e-38, %v2447_v62  ;;  %vm2446_vm12 = vcmp.eq.f32.partialorder %v2445_v27, 8.507059e+37  ;;  %v7381_v62 = vld [vmem:[#allocation2 + $0x168] sm:$0xff] }
 0x4b3   :  { %v7324_v55 = vadd.f32 1.0, %v3713_v15  ;;  %3716 = vpow2.f32 %v3514_v50  ;;  %v7357_v15 = vld [vmem:[#allocation2 + $0x1c8] sm:$0xff] }
 0x4b4   :  { %v2449_v31 = vsel %vm2446_vm12, %v2448_v38, %v2444_v7  ;;  %v7399_v38 = vld [vmem:[#allocation2 + $0x138] sm:$0xff] }
 0x4b5   :  { %3718 = vrcp.f32 %v7324_v55  ;;  %v2432_v51 = vand.u32 2147483648, %v7324_v55  ;;  %v2430_v14 = vand.u32 2147483647, %v7324_v55  ;;  %vm2426_vm13 = vweird.f32 %v7324_v55 }
 0x4b6   :  { %v2467_v27 = vmul.f32 %v2449_v31, %v7013_v2  ;;  %v7406_v31 = vld [vmem:[#allocation2 + $0x108] sm:$0xff] }
 0x4b7   :  { %v3715_v36 = vpop.eup %3714  ;;  %v2433_v13 = vor.u32 1.1754944e-38, %v2432_v51  ;;  %vm2431_vm15 = vcmp.eq.f32.partialorder %v2430_v14, 8.507059e+37  ;;  %v7388_v51 = vld [vmem:[#allocation2 + $0x148] sm:$0xff] }
 0x4b8   :  { %v2324_v21 = vmul.f32 %v3715_v36, %v2317_v9  ;;  %v7396_v14 = vld [vmem:[#allocation2 + $0x128] sm:$0xff] }
 0x4b9   :  { %v3717_v10 = vpop.eup %3716 }
 0x4ba   :  { %v7331_v11 = vadd.f32 1.0, %v3717_v10  ;;  %2508 = vmatmul.f32.vlgmr.msra.gmra.mxu1 %v2324_v21  ;;  %2548 = vmatmul.f32.vlgmr.msra.gmra.mxu3 %v2324_v21  ;;  %v7375_v10 = vld [vmem:[#allocation2 + $0x188] sm:$0xff] }
 0x4bb   :  { %v3719_v23 = vpop.eup %3718  ;;  %2715 = vmatpush.msra.mxu1 %v7333_v59  ;;  %2755 = vmatpush.msra.mxu3 %v7336_v48 }
 0x4bc   :  { %v2422_v3 = vmul.f32 %v3719_v23, %v7324_v55  ;;  %3720 = vrcp.f32 %v7331_v11  ;;  %vm2427_vm11 = vweird.f32 %v3719_v23  ;;  %v2462_v2 = vand.u32 2147483648, %v7331_v11 }
 0x4bd   :  { %2716 = vmatpush.msra.mxu1 %v7344_v63  ;;  %2756 = vmatpush.msra.mxu3 %v7347_v16  ;;  %3722 = vtanh.f32 %v2408_v35  ;;  %vm2428_vm14 = vmor %vm2426_vm13, %vm2427_vm11  ;;  %vm2456_vm1 = vweird.f32 %v7331_v11 }
 0x4be   :  { %v2423_v18 = vsub.f32 1.0, %v2422_v3 }
 0x4bf   :  { %2717 = vmatpush.msra.mxu1 %v7357_v15  ;;  %2757 = vmatpush.msra.mxu3 %v7360_v58 }
 0x4c0   :  { %v2424_v52 = vmul.f32 %v3719_v23, %v2423_v18 }
 0x4c1   :  { %2718 = vmatpush.msra.mxu1 %v7367_v49  ;;  %2758 = vmatpush.msra.mxu3 %v7370_v60 }
 0x4c2   :  { %v3721_v36 = vpop.eup %3720  ;;  %v2425_v9 = vadd.f32 %v3719_v23, %v2424_v52  ;;  %2588 = vmatmul.f32.vlgmr.msrb.gmra.mxu1 %v2324_v21  ;;  %2628 = vmatmul.f32.vlgmr.msrb.gmra.mxu3 %v2324_v21  ;;  %v7384_v21 = vld [vmem:[#allocation2 + $0x178] sm:$0xff] }
 0x4c3   :  { %v2452_v37 = vmul.f32 %v3721_v36, %v7331_v11  ;;  %2719 = vmatpush.msra.mxu1 %v7375_v10  ;;  %2759 = vmatpush.msra.mxu3 %v7378_v30  ;;  %v3723_v24 = vpop.eup %3722  ;;  %vm2457_vm0 = vweird.f32 %v3721_v36 }
 0x4c4   :  { %v2429_v35 = vsel %vm2428_vm14, %v3719_v23, %v2425_v9  ;;  %v7391_v23 = vld [vmem:[#allocation2 + $0x158] sm:$0xff]  ;;  %v2460_v9 = vand.u32 2147483647, %v7331_v11  ;;  %vm2458_vm2 = vmor %vm2456_vm1, %vm2457_vm0  ;;  %v7418_v11 = vld [vmem:[#allocation2 + $0xc8] sm:$0xff] }
 0x4c5   :  { %v2434_v3 = vsel %vm2431_vm15, %v2433_v13, %v2429_v35  ;;  %v2453_v55 = vsub.f32 1.0, %v2452_v37  ;;  %2720 = vmatpush.msra.mxu1 %v7381_v62  ;;  %2760 = vmatpush.msra.mxu3 %v7384_v21  ;;  %v7409_v13 = vld [vmem:[#allocation2 + $0x118] sm:$0xff]  ;;  %v7412_v35 = vld [vmem:[#allocation2 + $0xe8] sm:$0xff] }
 0x4c6   :  { %v2468_v18 = vmul.f32 %v3723_v24, %v2434_v3  ;;  %v7415_v24 = vld [vmem:[#allocation2 + $0xf8] sm:$0xff]  ;;  %v2463_v3 = vor.u32 1.1754944e-38, %v2462_v2  ;;  %vm2461_vm3 = vcmp.eq.f32.partialorder %v2460_v9, 8.507059e+37  ;;  %v7436_v2 = vld [vmem:[#allocation2 + $0x88] sm:$0xff] }
 0x4c7   :  { %v2454_v50 = vmul.f32 %v3721_v36, %v2453_v55  ;;  %2721 = vmatpush.msra.mxu1 %v7388_v51  ;;  %2761 = vmatpush.msra.mxu3 %v7391_v23  ;;  %v7421_v55 = vld [vmem:[#allocation2 + $0xd8] sm:$0xff] }
 0x4c8   :  { %v7394_v7 = vadd.f32 %v2468_v18, %v2467_v27  ;;  %v7439_v9 = vld [vmem:[#allocation2 + $0x98] sm:$0xff] }
 0x4c9   :  { %v2455_v52 = vadd.f32 %v3721_v36, %v2454_v50  ;;  %2722 = vmatpush.msra.mxu1 %v7396_v14  ;;  %2762 = vmatpush.msra.mxu3 %v7399_v38  ;;  %v7426_v50 = vld [vmem:[#allocation2 + $0xa8] sm:$0xff] }
 0x4ca   :  { %3724 = vtanh.f32 %v7394_v7 }
 0x4cb   :  { %2723 = vmatpush.msra.mxu1 %v7406_v31  ;;  %2763 = vmatpush.msra.mxu3 %v7409_v13  ;;  %v2459_v37 = vsel %vm2458_vm2, %v3721_v36, %v2455_v52  ;;  %v7429_v52 = vld [vmem:[#allocation2 + $0xb8] sm:$0xff] }
 0x4cc   :  { %v2464_v36 = vsel %vm2461_vm3, %v2463_v3, %v2459_v37  ;;  %v7444_v37 = vld [vmem:[#allocation2 + $0x68] sm:$0xff]  ;;  %v7447_v3 = vld [vmem:[#allocation2 + $0x78] sm:$0xff] }
 0x4cd   :  { %2724 = vmatpush.msra.mxu1 %v7412_v35  ;;  %2764 = vmatpush.msra.mxu3 %v7415_v24  ;;  %9632 = vst [vmem:[#allocation38_spill] sm:$0xff] %v7444_v37 }
 0x4ce   :  { %9633 = vst [vmem:[#allocation41_spill] sm:$0xff] %v7447_v3 }
 0x4cf   :  { %2725 = vmatpush.msra.mxu1 %v7418_v11  ;;  %2765 = vmatpush.msra.mxu3 %v7421_v55 }
 0x4d0   :  { %v3725_v27 = vpop.eup %3724 }
 0x4d1   :  { %v7424_v18 = vmul.f32 %v3725_v27, %v2464_v36  ;;  %2726 = vmatpush.msra.mxu1 %v7426_v50  ;;  %2766 = vmatpush.msra.mxu3 %v7429_v52  ;;  %v7545_v27 = vld [vmem:[#allocation2 + $0x4e0] sm:$0xff]  ;;  %v7549_v36 = vld [vmem:[#allocation2 + $0x4e8] sm:$0xff] }
 0x4d2   :  { %9659 = vst [vmem:[#allocation36_spill] sm:$0xff] %v7545_v27 }
 0x4d3   :  { %2488 = vmatmul.f32.vlgmr.msra.gmra.mxu0 %v7424_v18  ;;  %2528 = vmatmul.f32.vlgmr.msra.gmra.mxu2 %v7424_v18  ;;  %9661 = vst [vmem:[#allocation69_spill] sm:$0xff] %v7549_v36 }
 0x4d4   :  { %2695 = vmatpush.msra.mxu0 %v7033_v25  ;;  %2735 = vmatpush.msra.mxu2 %v7036_v17  ;;  %v7452_v25 = vld [vmem:[#allocation2 + $0x48] sm:$0xff]  ;;  %v7455_v17 = vld [vmem:[#allocation2 + $0x58] sm:$0xff] }
 0x4d5   :  { %2727 = vmatpush.msra.mxu1 %v7436_v2  ;;  %2767 = vmatpush.msra.mxu3 %v7439_v9  ;;  %9634 = vst [vmem:[#allocation42_spill] sm:$0xff] %v7452_v25 }
 0x4d6   :  { %2696 = vmatpush.msra.mxu0 %v7041_v46  ;;  %2736 = vmatpush.msra.mxu2 %v7044_v4  ;;  %9635 = vst [vmem:[#allocation45_spill] sm:$0xff] %v7455_v17  ;;  %v7460_v46 = vld [vmem:[#allocation2 + $0x28] sm:$0xff]  ;;  %v7463_v4 = vld [vmem:[#allocation2 + $0x38] sm:$0xff] }
 0x4d7   :  { %2728 = vmatpush.msra.mxu1 %v7444_v37  ;;  %2768 = vmatpush.msra.mxu3 %v7447_v3  ;;  %9636 = vst [vmem:[#allocation46_spill] sm:$0xff] %v7460_v46 }
 0x4d8   :  { %2697 = vmatpush.msra.mxu0 %v7049_v41  ;;  %2737 = vmatpush.msra.mxu2 %v7052_v28  ;;  %9637 = vst [vmem:[#allocation49_spill] sm:$0xff] %v7463_v4  ;;  %v7473_v41 = vld [vmem:[#allocation2 + $0x600] sm:$0xff]  ;;  %v7477_v28 = vld [vmem:[#allocation2 + $0x608] sm:$0xff] }
 0x4d9   :  { %2729 = vmatpush.msra.mxu1 %v7452_v25  ;;  %2769 = vmatpush.msra.mxu3 %v7455_v17  ;;  %9638 = vst [vmem:[#allocation50_spill] sm:$0xff] %v7473_v41 }
 0x4da   :  { %2698 = vmatpush.msra.mxu0 %v7057_v29  ;;  %2738 = vmatpush.msra.mxu2 %v7060_v0  ;;  %9639 = vst [vmem:[#allocation53_spill] sm:$0xff] %v7477_v28  ;;  %v7481_v29 = vld [vmem:[#allocation2 + $0x5e0] sm:$0xff]  ;;  %v7485_v0 = vld [vmem:[#allocation2 + $0x5e8] sm:$0xff] }
 0x4db   :  { %2730 = vmatpush.msra.mxu1 %v7460_v46  ;;  %2770 = vmatpush.msra.mxu3 %v7463_v4  ;;  %9640 = vst [vmem:[#allocation54_spill] sm:$0xff] %v7481_v29 }
 0x4dc   :  { %2568 = vmatmul.f32.vlgmr.msrb.gmra.mxu0 %v7424_v18  ;;  %2608 = vmatmul.f32.vlgmr.msrb.gmra.mxu2 %v7424_v18  ;;  %9641 = vst [vmem:[#allocation57_spill] sm:$0xff] %v7485_v0 }
 0x4dd   :  { %2699 = vmatpush.msra.mxu0 %v7070_v1  ;;  %2731 = vmatmul.f32.vlgmr.msra.gmra.mxu1 %v7424_v18  ;;  %v7489_v1 = vld [vmem:[#allocation2 + $0x5c0] sm:$0xff] }
 0x4de   :  { %2739 = vmatpush.msra.mxu2 %v7074_v47  ;;  %2771 = vmatmul.f32.vlgmr.msra.gmra.mxu3 %v7424_v18  ;;  %9642 = vst [vmem:[#allocation58_spill] sm:$0xff] %v7489_v1  ;;  %v7493_v47 = vld [vmem:[#allocation2 + $0x5c8] sm:$0xff] }
 0x4df   :  { %2700 = vmatpush.msra.mxu0 %v7078_v12  ;;  %2862 = vmatpush.msrb.mxu1 %v7473_v41  ;;  %9643 = vst [vmem:[#allocation61_spill] sm:$0xff] %v7493_v47  ;;  %v7497_v12 = vld [vmem:[#allocation2 + $0x5a0] sm:$0xff] }
 0x4e0   :  { %2740 = vmatpush.msra.mxu2 %v7081_v6  ;;  %2902 = vmatpush.msrb.mxu3 %v7477_v28  ;;  %9644 = vst [vmem:[#allocation20_spill] sm:$0xff] %v7497_v12  ;;  %v7501_v6 = vld [vmem:[#allocation2 + $0x5a8] sm:$0xff] }
 0x4e1   :  { %2701 = vmatpush.msra.mxu0 %v7084_v56  ;;  %2863 = vmatpush.msrb.mxu1 %v7481_v29  ;;  %9645 = vst [vmem:[#allocation23_spill] sm:$0xff] %v7501_v6  ;;  %v7505_v56 = vld [vmem:[#allocation2 + $0x580] sm:$0xff] }
 0x4e2   :  { %2741 = vmatpush.msra.mxu2 %v7088_v33  ;;  %2903 = vmatpush.msrb.mxu3 %v7485_v0  ;;  %9646 = vst [vmem:[#allocation24_spill] sm:$0xff] %v7505_v56  ;;  %v7509_v33 = vld [vmem:[#allocation2 + $0x588] sm:$0xff] }
 0x4e3   :  { %2702 = vmatpush.msra.mxu0 %v7092_v39  ;;  %2864 = vmatpush.msrb.mxu1 %v7489_v1  ;;  %9647 = vst [vmem:[#allocation27_spill] sm:$0xff] %v7509_v33  ;;  %v7513_v39 = vld [vmem:[#allocation2 + $0x560] sm:$0xff]  ;;  %v9777_v0 = vld [vmem:[#allocation14_spill] sm:$0xff] }
 0x4e4   :  { %2742 = vmatpush.msra.mxu2 %v7096_v45  ;;  %2904 = vmatpush.msrb.mxu3 %v7493_v47  ;;  %9648 = vst [vmem:[#allocation28_spill] sm:$0xff] %v7513_v39  ;;  %v7517_v45 = vld [vmem:[#allocation2 + $0x568] sm:$0xff] }
 0x4e5   :  { %2703 = vmatpush.msra.mxu0 %v7100_v61  ;;  %2865 = vmatpush.msrb.mxu1 %v7497_v12  ;;  %9649 = vst [vmem:[#allocation19_spill] sm:$0xff] %v7517_v45  ;;  %v7521_v61 = vld [vmem:[#allocation2 + $0x540] sm:$0xff] }
 0x4e6   :  { %2743 = vmatpush.msra.mxu2 %v7104_v19  ;;  %2905 = vmatpush.msrb.mxu3 %v7501_v6  ;;  %9650 = vst [vmem:[#allocation31_spill] sm:$0xff] %v7521_v61  ;;  %v7525_v19 = vld [vmem:[#allocation2 + $0x548] sm:$0xff] }
 0x4e7   :  { %2704 = vmatpush.msra.mxu0 %v7108_v43  ;;  %2866 = vmatpush.msrb.mxu1 %v7505_v56  ;;  %9651 = vst [vmem:[#allocation62_spill] sm:$0xff] %v7525_v19  ;;  %v7529_v43 = vld [vmem:[#allocation2 + $0x520] sm:$0xff] }
 0x4e8   :  { %2744 = vmatpush.msra.mxu2 %v7112_v40  ;;  %2906 = vmatpush.msrb.mxu3 %v7509_v33  ;;  %9652 = vst [vmem:[#allocation32_spill] sm:$0xff] %v7529_v43  ;;  %v7533_v40 = vld [vmem:[#allocation2 + $0x528] sm:$0xff]  ;;  %v9776_v56 = vld [vmem:[#allocation13_spill] sm:$0xff] }
 0x4e9   :  { %2705 = vmatpush.msra.mxu0 %v7116_v22  ;;  %2867 = vmatpush.msrb.mxu1 %v7513_v39  ;;  %9653 = vst [vmem:[#allocation65_spill] sm:$0xff] %v7533_v40  ;;  %v9654_v22 = vld [vmem:[#allocation26_spill] sm:$0xff]  ;;  %v9775_v39 = vld [vmem:[#allocation96_spill] sm:$0xff] }
 0x4ea   :  { %2745 = vmatpush.msra.mxu2 %v7120_v5  ;;  %2907 = vmatpush.msrb.mxu3 %v7517_v45  ;;  %v7537_v5 = vld [vmem:[#allocation2 + $0x500] sm:$0xff] }
 0x4eb   :  { %2706 = vmatpush.msra.mxu0 %v7124_v57  ;;  %2868 = vmatpush.msrb.mxu1 %v7521_v61  ;;  %9655 = vst [vmem:[#allocation35_spill] sm:$0xff] %v7537_v5  ;;  %v9656_v57 = vld [vmem:[#allocation29_spill] sm:$0xff] }
 0x4ec   :  { %2746 = vmatpush.msra.mxu2 %v7128_v32  ;;  %2908 = vmatpush.msrb.mxu3 %v7525_v19  ;;  %v7541_v32 = vld [vmem:[#allocation2 + $0x508] sm:$0xff]  ;;  %v9774_v61 = vld [vmem:[#allocation97_spill] sm:$0xff] }
 0x4ed   :  { %2707 = vmatpush.msra.mxu0 %v7132_v8  ;;  %2869 = vmatpush.msrb.mxu1 %v7529_v43  ;;  %9657 = vst [vmem:[#allocation66_spill] sm:$0xff] %v7541_v32  ;;  %v9658_v8 = vld [vmem:[#allocation30_spill] sm:$0xff]  ;;  %v7885_v43 = vpop.permute.xlu0 %192 }
 0x4ee   :  { %2747 = vmatpush.msra.mxu2 %v7136_v53  ;;  %2909 = vmatpush.msrb.mxu3 %v7533_v40  ;;  %v9660_v53 = vld [vmem:[#allocation33_spill] sm:$0xff] }
 0x4ef   :  { %2708 = vmatpush.msra.mxu0 %v9654_v22  ;;  %2870 = vmatpush.msrb.mxu1 %v7537_v5  ;;  %v9662_v22 = vld [vmem:[#allocation34_spill] sm:$0xff]  ;;  %v7553_v5 = vld [vmem:[#allocation2 + $0x4c0] sm:$0xff] }
 0x4f0   :  { %2748 = vmatpush.msra.mxu2 %v9656_v57  ;;  %2910 = vmatpush.msrb.mxu3 %v7541_v32  ;;  %9663 = vst [vmem:[#allocation39_spill] sm:$0xff] %v7553_v5  ;;  %v9664_v57 = vld [vmem:[#allocation37_spill] sm:$0xff] }
 0x4f1   :  { %2709 = vmatpush.msra.mxu0 %v9658_v8  ;;  %2871 = vmatpush.msrb.mxu1 %v7545_v27  ;;  %v7559_v8 = vld [vmem:[#allocation2 + $0x4c8] sm:$0xff] }
 0x4f2   :  { %2749 = vmatpush.msra.mxu2 %v9660_v53  ;;  %2911 = vmatpush.msrb.mxu3 %v7549_v36  ;;  %9665 = vst [vmem:[#allocation70_spill] sm:$0xff] %v7559_v8  ;;  %v7562_v53 = vld [vmem:[#allocation2 + $0x4a0] sm:$0xff]  ;;  %v9772_v27 = vld [vmem:[#allocation90_spill] sm:$0xff] }
 0x4f3   :  { %2710 = vmatpush.msra.mxu0 %v9662_v22  ;;  %2872 = vmatpush.msrb.mxu1 %v7553_v5  ;;  %9666 = vst [vmem:[#allocation40_spill] sm:$0xff] %v7562_v53  ;;  %v7565_v36 = vld [vmem:[#allocation2 + $0x400] sm:$0xff]  ;;  %v7568_v22 = vld [vmem:[#allocation2 + $0x4a8] sm:$0xff]  ;;  %v7880_v5 = vpop.permute.xlu2 %75 }
 0x4f4   :  { %2750 = vmatpush.msra.mxu2 %v9664_v57  ;;  %2711 = vmatmul.f32.vlgmr.msra.gmra.mxu0 %v7424_v18  ;;  %9667 = vst [vmem:[#allocation73_spill] sm:$0xff] %v7565_v36  ;;  %v7571_v57 = vld [vmem:[#allocation2 + $0x408] sm:$0xff]  ;;  %v117_v32 = vmul.f32 %v9772_v27, %v7880_v5 }
 0x4f5   :  { %2751 = vmatmul.f32.vlgmr.msra.gmra.mxu2 %v7424_v18  ;;  %2912 = vmatpush.msrb.mxu3 %v7559_v8  ;;  %9668 = vst [vmem:[#allocation43_spill] sm:$0xff] %v7568_v22  ;;  %v7574_v18 = vld [vmem:[#allocation2 + $0x480] sm:$0xff] }
 0x4f6   :  { %2873 = vmatpush.msrb.mxu1 %v7562_v53  ;;  %2842 = vmatpush.msrb.mxu0 %v7565_v36  ;;  %9669 = vst [vmem:[#allocation74_spill] sm:$0xff] %v7571_v57  ;;  %v7577_v8 = vld [vmem:[#allocation2 + $0x3e0] sm:$0xff]  ;;  %v7580_v53 = vld [vmem:[#allocation2 + $0x488] sm:$0xff]  ;;  %v158_v33 = vadd.f32 %v9775_v39, %v117_v32 }
 0x4f7   :  { %2913 = vmatpush.msrb.mxu3 %v7568_v22  ;;  %2882 = vmatpush.msrb.mxu2 %v7571_v57  ;;  %9670 = vst [vmem:[#allocation47_spill] sm:$0xff] %v7574_v18  ;;  %v7583_v36 = vld [vmem:[#allocation2 + $0x3e8] sm:$0xff]  ;;  %v7586_v22 = vld [vmem:[#allocation2 + $0x460] sm:$0xff] }
 0x4f8   :  { %2874 = vmatpush.msrb.mxu1 %v7574_v18  ;;  %9671 = vst [vmem:[#allocation77_spill] sm:$0xff] %v7577_v8  ;;  %2843 = vmatpush.msrb.mxu0 %v7577_v8  ;;  %v7589_v57 = vld [vmem:[#allocation2 + $0x3c0] sm:$0xff]  ;;  %v7592_v18 = vld [vmem:[#allocation2 + $0x468] sm:$0xff] }
 0x4f9   :  { %9672 = vst [vmem:[#allocation51_spill] sm:$0xff] %v7580_v53  ;;  %2914 = vmatpush.msrb.mxu3 %v7580_v53  ;;  %2883 = vmatpush.msrb.mxu2 %v7583_v36  ;;  %v7595_v8 = vld [vmem:[#allocation2 + $0x3c8] sm:$0xff]  ;;  %v7598_v53 = vld [vmem:[#allocation2 + $0x440] sm:$0xff] }
 0x4fa   :  { %9673 = vst [vmem:[#allocation78_spill] sm:$0xff] %v7583_v36  ;;  %2875 = vmatpush.msrb.mxu1 %v7586_v22  ;;  %2844 = vmatpush.msrb.mxu0 %v7589_v57  ;;  %v7601_v36 = vld [vmem:[#allocation2 + $0x3a0] sm:$0xff] }
 0x4fb   :  { %9674 = vst [vmem:[#allocation52_spill] sm:$0xff] %v7586_v22  ;;  %2915 = vmatpush.msrb.mxu3 %v7592_v18  ;;  %2884 = vmatpush.msrb.mxu2 %v7595_v8  ;;  %v7604_v22 = vld [vmem:[#allocation2 + $0x448] sm:$0xff] }
 0x4fc   :  { %9675 = vst [vmem:[#allocation55_spill] sm:$0xff] %v7589_v57  ;;  %2876 = vmatpush.msrb.mxu1 %v7598_v53  ;;  %2845 = vmatpush.msrb.mxu0 %v7601_v36  ;;  %v7607_v57 = vld [vmem:[#allocation2 + $0x3a8] sm:$0xff] }
 0x4fd   :  { %9676 = vst [vmem:[#allocation81_spill] sm:$0xff] %v7592_v18  ;;  %2916 = vmatpush.msrb.mxu3 %v7604_v22  ;;  %2885 = vmatpush.msrb.mxu2 %v7607_v57  ;;  %v7610_v18 = vld [vmem:[#allocation2 + $0x420] sm:$0xff] }
 0x4fe   :  { %9677 = vst [vmem:[#allocation82_spill] sm:$0xff] %v7595_v8  ;;  %2877 = vmatpush.msrb.mxu1 %v7610_v18  ;;  %v7613_v8 = vld [vmem:[#allocation2 + $0x380] sm:$0xff] }
 0x4ff   :  { %9678 = vst [vmem:[#allocation59_spill] sm:$0xff] %v7598_v53  ;;  %2846 = vmatpush.msrb.mxu0 %v7613_v8  ;;  %v7616_v53 = vld [vmem:[#allocation2 + $0x428] sm:$0xff] }
 0x500   :  { %9679 = vst [vmem:[#allocation63_spill] sm:$0xff] %v7601_v36  ;;  %2917 = vmatpush.msrb.mxu3 %v7616_v53  ;;  %v7619_v36 = vld [vmem:[#allocation2 + $0x388] sm:$0xff] }
 0x501   :  { %9680 = vst [vmem:[#allocation44_spill] sm:$0xff] %v7604_v22  ;;  %2886 = vmatpush.msrb.mxu2 %v7619_v36  ;;  %v7622_v22 = vld [vmem:[#allocation2 + $0x610] sm:$0xff] }
 0x502   :  { %9681 = vst [vmem:[#allocation48_spill] sm:$0xff] %v7607_v57  ;;  %2942 = vmatpush.msra.mxu1 %v7622_v22  ;;  %v7625_v57 = vld [vmem:[#allocation2 + $0x618] sm:$0xff] }
 0x503   :  { %9682 = vst [vmem:[#allocation67_spill] sm:$0xff] %v7610_v18  ;;  %2982 = vmatpush.msra.mxu3 %v7625_v57  ;;  %v7628_v18 = vld [vmem:[#allocation2 + $0x360] sm:$0xff] }
 0x504   :  { %9683 = vst [vmem:[#allocation71_spill] sm:$0xff] %v7613_v8  ;;  %2847 = vmatpush.msrb.mxu0 %v7628_v18  ;;  %v7631_v8 = vld [vmem:[#allocation2 + $0x368] sm:$0xff] }
 0x505   :  { %9684 = vst [vmem:[#allocation56_spill] sm:$0xff] %v7616_v53  ;;  %2887 = vmatpush.msrb.mxu2 %v7631_v8  ;;  %v7634_v53 = vld [vmem:[#allocation2 + $0x5f0] sm:$0xff] }
 0x506   :  { %9685 = vst [vmem:[#allocation60_spill] sm:$0xff] %v7619_v36  ;;  %2943 = vmatpush.msra.mxu1 %v7634_v53  ;;  %v7637_v36 = vld [vmem:[#allocation2 + $0x5f8] sm:$0xff] }
 0x507   :  { %9686 = vst [vmem:[#allocation75_spill] sm:$0xff] %v7622_v22  ;;  %2983 = vmatpush.msra.mxu3 %v7637_v36  ;;  %v7640_v22 = vld [vmem:[#allocation2 + $0x340] sm:$0xff] }
 0x508   :  { %9687 = vst [vmem:[#allocation79_spill] sm:$0xff] %v7625_v57  ;;  %2848 = vmatpush.msrb.mxu0 %v7640_v22  ;;  %v7643_v57 = vld [vmem:[#allocation2 + $0x348] sm:$0xff] }
 0x509   :  { %9688 = vst [vmem:[#allocation64_spill] sm:$0xff] %v7628_v18  ;;  %2888 = vmatpush.msrb.mxu2 %v7643_v57  ;;  %v7646_v18 = vld [vmem:[#allocation2 + $0x5d0] sm:$0xff] }
 0x50a   :  { %9689 = vst [vmem:[#allocation68_spill] sm:$0xff] %v7631_v8  ;;  %2944 = vmatpush.msra.mxu1 %v7646_v18  ;;  %v7649_v8 = vld [vmem:[#allocation2 + $0x5d8] sm:$0xff] }
 0x50b   :  { %9690 = vst [vmem:[#allocation83_spill] sm:$0xff] %v7634_v53  ;;  %2984 = vmatpush.msra.mxu3 %v7649_v8  ;;  %v7652_v53 = vld [vmem:[#allocation2 + $0x320] sm:$0xff] }
 0x50c   :  { %9691 = vst [vmem:[#allocation85_spill] sm:$0xff] %v7637_v36  ;;  %2849 = vmatpush.msrb.mxu0 %v7652_v53  ;;  %v7655_v36 = vld [vmem:[#allocation2 + $0x328] sm:$0xff] }
 0x50d   :  { %9692 = vst [vmem:[#allocation72_spill] sm:$0xff] %v7640_v22  ;;  %2889 = vmatpush.msrb.mxu2 %v7655_v36  ;;  %v7658_v22 = vld [vmem:[#allocation2 + $0x5b0] sm:$0xff] }
 0x50e   :  { %9693 = vst [vmem:[#allocation76_spill] sm:$0xff] %v7643_v57  ;;  %2945 = vmatpush.msra.mxu1 %v7658_v22  ;;  %v7661_v57 = vld [vmem:[#allocation2 + $0x5b8] sm:$0xff] }
 0x50f   :  { %9694 = vst [vmem:[#allocation88_spill] sm:$0xff] %v7646_v18  ;;  %2985 = vmatpush.msra.mxu3 %v7661_v57  ;;  %v7664_v18 = vld [vmem:[#allocation2 + $0x300] sm:$0xff] }
 0x510   :  { %9695 = vst [vmem:[#allocation91_spill] sm:$0xff] %v7649_v8  ;;  %2850 = vmatpush.msrb.mxu0 %v7664_v18  ;;  %v7667_v8 = vld [vmem:[#allocation2 + $0x308] sm:$0xff] }
 0x511   :  { %9696 = vst [vmem:[#allocation80_spill] sm:$0xff] %v7652_v53  ;;  %2890 = vmatpush.msrb.mxu2 %v7667_v8  ;;  %v7670_v53 = vld [vmem:[#allocation2 + $0x590] sm:$0xff] }
 0x512   :  { %9697 = vst [vmem:[#allocation84_spill] sm:$0xff] %v7655_v36  ;;  %2946 = vmatpush.msra.mxu1 %v7670_v53  ;;  %v7673_v36 = vld [vmem:[#allocation2 + $0x598] sm:$0xff] }
 0x513   :  { %9698 = vst [vmem:[#allocation94_spill] sm:$0xff] %v7658_v22  ;;  %2986 = vmatpush.msra.mxu3 %v7673_v36  ;;  %v7676_v22 = vld [vmem:[#allocation2 + $0x2e0] sm:$0xff] }
 0x514   :  { %9699 = vst [vmem:[#allocation100_spill] sm:$0xff] %v7661_v57  ;;  %2851 = vmatpush.msrb.mxu0 %v7676_v22  ;;  %v7679_v57 = vld [vmem:[#allocation2 + $0x2e8] sm:$0xff] }
 0x515   :  { %9700 = vst [vmem:[#allocation86_spill] sm:$0xff] %v7664_v18  ;;  %2891 = vmatpush.msrb.mxu2 %v7679_v57  ;;  %v7682_v18 = vld [vmem:[#allocation2 + $0x570] sm:$0xff] }
 0x516   :  { %9701 = vst [vmem:[#allocation89_spill] sm:$0xff] %v7667_v8  ;;  %2947 = vmatpush.msra.mxu1 %v7682_v18  ;;  %v7685_v8 = vld [vmem:[#allocation2 + $0x578] sm:$0xff] }
 0x517   :  { %9702 = vst [vmem:[#allocation6_spill] sm:$0xff] %v7670_v53  ;;  %2987 = vmatpush.msra.mxu3 %v7685_v8  ;;  %v7688_v53 = vld [vmem:[#allocation2 + $0x2c0] sm:$0xff] }
 0x518   :  { %9703 = vst [vmem:[#allocation8_spill] sm:$0xff] %v7673_v36  ;;  %2852 = vmatpush.msrb.mxu0 %v7688_v53  ;;  %v7691_v36 = vld [vmem:[#allocation2 + $0x2c8] sm:$0xff] }
 0x519   :  { %9704 = vst [vmem:[#allocation92_spill] sm:$0xff] %v7676_v22  ;;  %2892 = vmatpush.msrb.mxu2 %v7691_v36  ;;  %v7694_v22 = vld [vmem:[#allocation2 + $0x550] sm:$0xff] }
 0x51a   :  { %9705 = vst [vmem:[#allocation98_spill] sm:$0xff] %v7679_v57  ;;  %2948 = vmatpush.msra.mxu1 %v7694_v22  ;;  %v7697_v57 = vld [vmem:[#allocation2 + $0x558] sm:$0xff] }
 0x51b   :  { %9706 = vst [vmem:[#allocation10_spill] sm:$0xff] %v7682_v18  ;;  %2988 = vmatpush.msra.mxu3 %v7697_v57  ;;  %v7700_v18 = vld [vmem:[#allocation2 + $0x2a0] sm:$0xff] }
 0x51c   :  { %9707 = vst [vmem:[#allocation101_spill] sm:$0xff] %v7685_v8  ;;  %2853 = vmatpush.msrb.mxu0 %v7700_v18  ;;  %v7703_v8 = vld [vmem:[#allocation2 + $0x2a8] sm:$0xff] }
 0x51d   :  { %9708 = vst [vmem:[#allocation5_spill] sm:$0xff] %v7688_v53  ;;  %2893 = vmatpush.msrb.mxu2 %v7703_v8  ;;  %v7706_v53 = vld [vmem:[#allocation2 + $0x530] sm:$0xff] }
 0x51e   :  { %9709 = vst [vmem:[#allocation7_spill] sm:$0xff] %v7691_v36  ;;  %2949 = vmatpush.msra.mxu1 %v7706_v53  ;;  %v7709_v36 = vld [vmem:[#allocation2 + $0x538] sm:$0xff] }
 0x51f   :  { %9710 = vst [vmem:[#allocation103_spill] sm:$0xff] %v7694_v22  ;;  %2989 = vmatpush.msra.mxu3 %v7709_v36  ;;  %v7712_v22 = vld [vmem:[#allocation2 + $0x280] sm:$0xff] }
 0x520   :  { %9711 = vst [vmem:[#allocation105_spill] sm:$0xff] %v7697_v57  ;;  %2854 = vmatpush.msrb.mxu0 %v7712_v22  ;;  %v7715_v57 = vld [vmem:[#allocation2 + $0x288] sm:$0xff] }
 0x521   :  { %9712 = vst [vmem:[#allocation9_spill] sm:$0xff] %v7700_v18  ;;  %2894 = vmatpush.msrb.mxu2 %v7715_v57  ;;  %v7718_v18 = vld [vmem:[#allocation2 + $0x510] sm:$0xff] }
 0x522   :  { %9713 = vst [vmem:[#allocation11_spill] sm:$0xff] %v7703_v8  ;;  %2950 = vmatpush.msra.mxu1 %v7718_v18  ;;  %v7721_v8 = vld [vmem:[#allocation2 + $0x518] sm:$0xff] }
 0x523   :  { %9714 = vst [vmem:[#allocation107_spill] sm:$0xff] %v7706_v53  ;;  %2990 = vmatpush.msra.mxu3 %v7721_v8  ;;  %v7724_v53 = vld [vmem:[#allocation2 + $0x260] sm:$0xff] }
 0x524   :  { %9715 = vst [vmem:[#allocation109_spill] sm:$0xff] %v7709_v36  ;;  %2855 = vmatpush.msrb.mxu0 %v7724_v53  ;;  %v7727_v36 = vld [vmem:[#allocation2 + $0x268] sm:$0xff] }
 0x525   :  { %9716 = vst [vmem:[#allocation102_spill] sm:$0xff] %v7712_v22  ;;  %2895 = vmatpush.msrb.mxu2 %v7727_v36  ;;  %v7730_v22 = vld [vmem:[#allocation2 + $0x4f0] sm:$0xff] }
 0x526   :  { %9717 = vst [vmem:[#allocation104_spill] sm:$0xff] %v7715_v57  ;;  %2951 = vmatpush.msra.mxu1 %v7730_v22  ;;  %v7733_v57 = vld [vmem:[#allocation2 + $0x4f8] sm:$0xff] }
 0x527   :  { %9718 = vst [vmem:[#allocation111_spill] sm:$0xff] %v7718_v18  ;;  %2991 = vmatpush.msra.mxu3 %v7733_v57  ;;  %v7736_v18 = vld [vmem:[#allocation2 + $0x240] sm:$0xff] }
 0x528   :  { %9719 = vst [vmem:[#allocation113_spill] sm:$0xff] %v7721_v8  ;;  %2856 = vmatpush.msrb.mxu0 %v7736_v18  ;;  %v7739_v8 = vld [vmem:[#allocation2 + $0x248] sm:$0xff] }
 0x529   :  { %9720 = vst [vmem:[#allocation106_spill] sm:$0xff] %v7724_v53  ;;  %2896 = vmatpush.msrb.mxu2 %v7739_v8  ;;  %v7742_v53 = vld [vmem:[#allocation2 + $0x4d0] sm:$0xff] }
 0x52a   :  { %9721 = vst [vmem:[#allocation108_spill] sm:$0xff] %v7727_v36  ;;  %2952 = vmatpush.msra.mxu1 %v7742_v53  ;;  %v7745_v36 = vld [vmem:[#allocation2 + $0x4d8] sm:$0xff] }
 0x52b   :  { %9722 = vst [vmem:[#allocation115_spill] sm:$0xff] %v7730_v22  ;;  %2992 = vmatpush.msra.mxu3 %v7745_v36  ;;  %v7748_v22 = vld [vmem:[#allocation2 + $0x220] sm:$0xff] }
 0x52c   :  { %9723 = vst [vmem:[#allocation117_spill] sm:$0xff] %v7733_v57  ;;  %2857 = vmatpush.msrb.mxu0 %v7748_v22  ;;  %v7751_v57 = vld [vmem:[#allocation2 + $0x228] sm:$0xff] }
 0x52d   :  { %9724 = vst [vmem:[#allocation110_spill] sm:$0xff] %v7736_v18  ;;  %2897 = vmatpush.msrb.mxu2 %v7751_v57  ;;  %v7754_v18 = vld [vmem:[#allocation2 + $0x4b0] sm:$0xff] }
 0x52e   :  { %9725 = vst [vmem:[#allocation112_spill] sm:$0xff] %v7739_v8  ;;  %2953 = vmatpush.msra.mxu1 %v7754_v18  ;;  %v7757_v8 = vld [vmem:[#allocation2 + $0x4b8] sm:$0xff] }
 0x52f   :  { %9726 = vst [vmem:[#allocation119_spill] sm:$0xff] %v7742_v53  ;;  %2993 = vmatpush.msra.mxu3 %v7757_v8  ;;  %v7760_v53 = vld [vmem:[#allocation2 + $0x410] sm:$0xff] }
 0x530   :  { %9727 = vst [vmem:[#allocation121_spill] sm:$0xff] %v7745_v36  ;;  %2922 = vmatpush.msra.mxu0 %v7760_v53  ;;  %v7763_v36 = vld [vmem:[#allocation2 + $0x418] sm:$0xff] }
 0x531   :  { %9728 = vst [vmem:[#allocation114_spill] sm:$0xff] %v7748_v22  ;;  %2962 = vmatpush.msra.mxu2 %v7763_v36  ;;  %v7766_v22 = vld [vmem:[#allocation2 + $0x490] sm:$0xff] }
 0x532   :  { %9729 = vst [vmem:[#allocation116_spill] sm:$0xff] %v7751_v57  ;;  %2954 = vmatpush.msra.mxu1 %v7766_v22  ;;  %v7769_v57 = vld [vmem:[#allocation2 + $0x498] sm:$0xff] }
 0x533   :  { %9730 = vst [vmem:[#allocation123_spill] sm:$0xff] %v7754_v18  ;;  %2994 = vmatpush.msra.mxu3 %v7769_v57  ;;  %v7772_v18 = vld [vmem:[#allocation2 + $0x3f0] sm:$0xff] }
 0x534   :  { %9731 = vst [vmem:[#allocation125_spill] sm:$0xff] %v7757_v8  ;;  %2923 = vmatpush.msra.mxu0 %v7772_v18  ;;  %v7775_v8 = vld [vmem:[#allocation2 + $0x3f8] sm:$0xff] }
 0x535   :  { %9732 = vst [vmem:[#allocation118_spill] sm:$0xff] %v7760_v53  ;;  %2963 = vmatpush.msra.mxu2 %v7775_v8  ;;  %v7778_v53 = vld [vmem:[#allocation2 + $0x470] sm:$0xff] }
 0x536   :  { %9733 = vst [vmem:[#allocation120_spill] sm:$0xff] %v7763_v36  ;;  %2955 = vmatpush.msra.mxu1 %v7778_v53  ;;  %v7781_v36 = vld [vmem:[#allocation2 + $0x478] sm:$0xff] }
 0x537   :  { %9734 = vst [vmem:[#allocation127_spill] sm:$0xff] %v7766_v22  ;;  %2995 = vmatpush.msra.mxu3 %v7781_v36  ;;  %v7784_v22 = vld [vmem:[#allocation2 + $0x3d0] sm:$0xff] }
 0x538   :  { %9735 = vst [vmem:[#allocation129_spill] sm:$0xff] %v7769_v57  ;;  %2924 = vmatpush.msra.mxu0 %v7784_v22  ;;  %v7787_v57 = vld [vmem:[#allocation2 + $0x3d8] sm:$0xff] }
 0x539   :  { %9736 = vst [vmem:[#allocation122_spill] sm:$0xff] %v7772_v18  ;;  %2964 = vmatpush.msra.mxu2 %v7787_v57  ;;  %v7790_v18 = vld [vmem:[#allocation2 + $0x450] sm:$0xff] }
 0x53a   :  { %9737 = vst [vmem:[#allocation124_spill] sm:$0xff] %v7775_v8  ;;  %2956 = vmatpush.msra.mxu1 %v7790_v18  ;;  %v7793_v8 = vld [vmem:[#allocation2 + $0x458] sm:$0xff] }
 0x53b   :  { %9738 = vst [vmem:[#allocation126_spill] sm:$0xff] %v7778_v53  ;;  %2996 = vmatpush.msra.mxu3 %v7793_v8  ;;  %v7796_v53 = vld [vmem:[#allocation2 + $0x3b0] sm:$0xff] }
 0x53c   :  { %9739 = vst [vmem:[#allocation128_spill] sm:$0xff] %v7781_v36  ;;  %2925 = vmatpush.msra.mxu0 %v7796_v53  ;;  %v7799_v36 = vld [vmem:[#allocation2 + $0x3b8] sm:$0xff] }
 0x53d   :  { %9740 = vst [vmem:[#allocation130_spill] sm:$0xff] %v7784_v22  ;;  %2965 = vmatpush.msra.mxu2 %v7799_v36  ;;  %v7802_v22 = vld [vmem:[#allocation2 + $0x430] sm:$0xff]  ;;  %v2549_v12 = vpop.f32.mrf.mxu3 }
 0x53e   :  { %9741 = vst [vmem:[#allocation131_spill] sm:$0xff] %v7787_v57  ;;  %2957 = vmatpush.msra.mxu1 %v7802_v22  ;;  %v7805_v57 = vld [vmem:[#allocation2 + $0x438] sm:$0xff] }
 0x53f   :  { %9742 = vst [vmem:[#allocation132_spill] sm:$0xff] %v7790_v18  ;;  %2997 = vmatpush.msra.mxu3 %v7805_v57  ;;  %v7808_v18 = vld [vmem:[#allocation2 + $0x390] sm:$0xff] }
 0x540   :  { %9743 = vst [vmem:[#allocation133_spill] sm:$0xff] %v7793_v8  ;;  %2926 = vmatpush.msra.mxu0 %v7808_v18  ;;  %v7811_v8 = vld [vmem:[#allocation2 + $0x398] sm:$0xff] }
 0x541   :  { %9744 = vst [vmem:[#allocation134_spill] sm:$0xff] %v7796_v53  ;;  %2966 = vmatpush.msra.mxu2 %v7811_v8  ;;  %v7814_v53 = vld [vmem:[#allocation2 + $0x370] sm:$0xff] }
 0x542   :  { %9745 = vst [vmem:[#allocation135_spill] sm:$0xff] %v7799_v36  ;;  %2927 = vmatpush.msra.mxu0 %v7814_v53  ;;  %v7817_v36 = vld [vmem:[#allocation2 + $0x378] sm:$0xff] }
 0x543   :  { %9746 = vst [vmem:[#allocation136_spill] sm:$0xff] %v7802_v22  ;;  %2967 = vmatpush.msra.mxu2 %v7817_v36  ;;  %v7820_v22 = vld [vmem:[#allocation2 + $0x350] sm:$0xff] }
 0x544   :  { %9747 = vst [vmem:[#allocation137_spill] sm:$0xff] %v7805_v57  ;;  %2928 = vmatpush.msra.mxu0 %v7820_v22  ;;  %v7823_v57 = vld [vmem:[#allocation2 + $0x358] sm:$0xff] }
 0x545   :  { %9748 = vst [vmem:[#allocation138_spill] sm:$0xff] %v7808_v18  ;;  %2968 = vmatpush.msra.mxu2 %v7823_v57  ;;  %v7826_v18 = vld [vmem:[#allocation2 + $0x330] sm:$0xff] }
 0x546   :  { %9749 = vst [vmem:[#allocation139_spill] sm:$0xff] %v7811_v8  ;;  %2929 = vmatpush.msra.mxu0 %v7826_v18  ;;  %v7829_v8 = vld [vmem:[#allocation2 + $0x338] sm:$0xff] }
 0x547   :  { %9750 = vst [vmem:[#allocation140_spill] sm:$0xff] %v7814_v53  ;;  %2969 = vmatpush.msra.mxu2 %v7829_v8  ;;  %v7832_v53 = vld [vmem:[#allocation2 + $0x310] sm:$0xff] }
 0x548   :  { %9751 = vst [vmem:[#allocation141_spill] sm:$0xff] %v7817_v36  ;;  %2930 = vmatpush.msra.mxu0 %v7832_v53  ;;  %v7835_v36 = vld [vmem:[#allocation2 + $0x318] sm:$0xff] }
 0x549   :  { %9752 = vst [vmem:[#allocation142_spill] sm:$0xff] %v7820_v22  ;;  %2970 = vmatpush.msra.mxu2 %v7835_v36  ;;  %v7838_v22 = vld [vmem:[#allocation2 + $0x2f0] sm:$0xff] }
 0x54a   :  { %9753 = vst [vmem:[#allocation143_spill] sm:$0xff] %v7823_v57  ;;  %2931 = vmatpush.msra.mxu0 %v7838_v22  ;;  %v7841_v57 = vld [vmem:[#allocation2 + $0x2f8] sm:$0xff] }
 0x54b   :  { %9754 = vst [vmem:[#allocation144_spill] sm:$0xff] %v7826_v18  ;;  %2971 = vmatpush.msra.mxu2 %v7841_v57  ;;  %v7844_v18 = vld [vmem:[#allocation2 + $0x2d0] sm:$0xff] }
 0x54c   :  { %9755 = vst [vmem:[#allocation145_spill] sm:$0xff] %v7829_v8  ;;  %2932 = vmatpush.msra.mxu0 %v7844_v18  ;;  %v7847_v8 = vld [vmem:[#allocation2 + $0x2d8] sm:$0xff] }
 0x54d   :  { %9756 = vst [vmem:[#allocation146_spill] sm:$0xff] %v7832_v53  ;;  %2972 = vmatpush.msra.mxu2 %v7847_v8  ;;  %v7850_v53 = vld [vmem:[#allocation2 + $0x2b0] sm:$0xff] }
 0x54e   :  { %9757 = vst [vmem:[#allocation147_spill] sm:$0xff] %v7835_v36  ;;  %2933 = vmatpush.msra.mxu0 %v7850_v53  ;;  %v7853_v36 = vld [vmem:[#allocation2 + $0x2b8] sm:$0xff] }
 0x54f   :  { %9758 = vst [vmem:[#allocation148_spill] sm:$0xff] %v7838_v22  ;;  %2973 = vmatpush.msra.mxu2 %v7853_v36  ;;  %v7856_v22 = vld [vmem:[#allocation2 + $0x290] sm:$0xff] }
 0x550   :  { %9759 = vst [vmem:[#allocation149_spill] sm:$0xff] %v7841_v57  ;;  %2934 = vmatpush.msra.mxu0 %v7856_v22  ;;  %v7859_v57 = vld [vmem:[#allocation2 + $0x298] sm:$0xff] }
 0x551   :  { %9760 = vst [vmem:[#allocation16_spill] sm:$0xff] %v7844_v18  ;;  %2974 = vmatpush.msra.mxu2 %v7859_v57  ;;  %v7862_v18 = vld [vmem:[#allocation2 + $0x270] sm:$0xff] }
 0x552   :  { %9761 = vst [vmem:[#allocation17_spill] sm:$0xff] %v7847_v8  ;;  %2935 = vmatpush.msra.mxu0 %v7862_v18  ;;  %v7865_v8 = vld [vmem:[#allocation2 + $0x278] sm:$0xff] }
 0x553   :  { %9762 = vst [vmem:[#allocation18_spill] sm:$0xff] %v7850_v53  ;;  %2975 = vmatpush.msra.mxu2 %v7865_v8  ;;  %v7868_v53 = vld [vmem:[#allocation2 + $0x250] sm:$0xff] }
 0x554   :  { %9763 = vst [vmem:[#allocation21_spill] sm:$0xff] %v7853_v36  ;;  %2936 = vmatpush.msra.mxu0 %v7868_v53  ;;  %v7871_v36 = vld [vmem:[#allocation2 + $0x258] sm:$0xff] }
 0x555   :  { %9764 = vst [vmem:[#allocation22_spill] sm:$0xff] %v7856_v22  ;;  %2976 = vmatpush.msra.mxu2 %v7871_v36  ;;  %v7874_v22 = vld [vmem:[#allocation2 + $0x230] sm:$0xff] }
 0x556   :  { %9765 = vst [vmem:[#allocation25_spill] sm:$0xff] %v7859_v57  ;;  %2937 = vmatpush.msra.mxu0 %v7874_v22  ;;  %v7877_v57 = vld [vmem:[#allocation2 + $0x238] sm:$0xff] }
 0x557   :  { %9766 = vst [vmem:[#allocation26_spill] sm:$0xff] %v7862_v18  ;;  %2977 = vmatpush.msra.mxu2 %v7877_v57  ;;  %v2509_v18 = vpop.f32.mrf.mxu1 }
 0x558   :  { %9767 = vst [vmem:[#allocation29_spill] sm:$0xff] %v7865_v8  ;;  %v2489_v8 = vpop.f32.mrf.mxu0 }
 0x559   :  { %9768 = vst [vmem:[#allocation30_spill] sm:$0xff] %v7868_v53  ;;  %v9773_v53 = vld [vmem:[#allocation12_spill] sm:$0xff] }
 0x55a   :  { %9769 = vst [vmem:[#allocation33_spill] sm:$0xff] %v7871_v36  ;;  %v2490_v40 = vadd.f32 %v2489_v8, %v9773_v53 }
 0x55b   :  { %9770 = vst [vmem:[#allocation34_spill] sm:$0xff] %v7874_v22  ;;  %v233_v22 = vmul.f32 %v9774_v61, %v7885_v43 }
 0x55c   :  { %9771 = vst [vmem:[#allocation37_spill] sm:$0xff] %v7877_v57  ;;  %v2510_v19 = vadd.f32 %v2509_v18, %v2490_v40  ;;  %v2529_v57 = vpop.f32.mrf.mxu2 }
 0x55d   :  { %v2530_v6 = vadd.f32 %v2529_v57, %v9776_v56  ;;  %v265_v27 = vadd.f32 %v233_v22, %v158_v33 }
 0x55e   :  { %v3515_v45 = vmul.f32 -1.442695, %v2510_v19 }
 0x55f   :  { %v2589_v36 = vpop.f32.mrf.mxu1  ;;  %v2550_v47 = vadd.f32 %v2549_v12, %v2530_v6 }
 0x560   :  { %3726 = vpow2.f32 %v3515_v45  ;;  %v2569_v1 = vpop.f32.mrf.mxu0 }
 0x561   :  { %v2570_v8 = vadd.f32 %v2569_v1, %v9777_v0  ;;  %v3516_v29 = vmul.f32 -1.442695, %v2550_v47  ;;  %v9778_v1 = vld [vmem:[#allocation15_spill] sm:$0xff]  ;;  %v9781_v0 = vld [vmem:[#allocation93_spill] sm:$0xff] }
 0x562   :  { %v9779_v47 = vld [vmem:[#allocation87_spill] sm:$0xff] }
 0x563   :  { %v2590_v40 = vadd.f32 %v2589_v36, %v2570_v8  ;;  %3728 = vpow2.f32 %v3516_v29 }
 0x564   :  { %v2609_v57 = vpop.f32.mrf.mxu2 }
 0x565   :  { %v3517_v19 = vmul.f32 -1.442695, %v2590_v40  ;;  %v2610_v22 = vadd.f32 %v2609_v57, %v9778_v1 }
 0x566   :  { %v3727_v18 = vpop.eup %3726 }
 0x567   :  { %v2732_v53 = vpop.f32.mrf.mxu1  ;;  %v2641_v61 = vadd.f32 1.0, %v3727_v18  ;;  %v9780_v18 = vld [vmem:[#allocation95_spill] sm:$0xff] }
 0x568   :  { %v2776_v28 = vadd.f32 %v2732_v53, %v265_v27  ;;  %v116_v27 = vmul.f32 %v9779_v47, %v7880_v5 }
 0x569   :  { %3730 = vrcp.f32 %v2641_v61  ;;  %v3729_v45 = vpop.eup %3728  ;;  %vm2649_vm5 = vweird.f32 %v2641_v61  ;;  %v2653_v4 = vand.u32 2147483647, %v2641_v61 }
 0x56a   :  { %v3519_v41 = vmul.f32 -1.442695, %v2776_v28  ;;  %3732 = vpow2.f32 %v3517_v19  ;;  %v2642_v32 = vadd.f32 1.0, %v3729_v45  ;;  %v2629_v28 = vpop.f32.mrf.mxu3  ;;  %v232_v19 = vmul.f32 %v9780_v18, %v7885_v43 }
 0x56b   :  { %v2630_v8 = vadd.f32 %v2629_v28, %v2610_v22  ;;  %v157_v57 = vadd.f32 %v9781_v0, %v116_v27  ;;  %vm2654_vm9 = vcmp.eq.f32.partialorder %v2653_v4, 8.507059e+37 }
 0x56c   :  { %3734 = vpow2.f32 %v3519_v41  ;;  %v2668_v27 = vand.u32 2147483647, %v2642_v32  ;;  %vm2664_vm8 = vweird.f32 %v2642_v32 }
 0x56d   :  { %3736 = vrcp.f32 %v2642_v32  ;;  %v264_v28 = vadd.f32 %v232_v19, %v157_v57 }
 0x56e   :  { %vm2669_vm11 = vcmp.eq.f32.partialorder %v2668_v27, 8.507059e+37 }
 0x56f   :  { %v3731_v12 = vpop.eup %3730 }
 0x570   :  { %v3733_v6 = vpop.eup %3732  ;;  %v2645_v33 = vmul.f32 %v3731_v12, %v2641_v61  ;;  %vm2650_vm4 = vweird.f32 %v3731_v12 }
 0x571   :  { %v7895_v36 = vadd.f32 1.0, %v3733_v6  ;;  %v9782_v6 = vld [vmem:[#allocation99_spill] sm:$0xff]  ;;  %vm7906_vm6 = vmor %vm2649_vm5, %vm2650_vm4 }
 0x572   :  { %v3735_v29 = vpop.eup %3734  ;;  %v2646_v53 = vsub.f32 1.0, %v2645_v33  ;;  %v118_v47 = vmul.f32 %v9782_v6, %v7880_v5  ;;  %v2655_v33 = vand.u32 2147483648, %v2641_v61  ;;  %v2712_v6 = vpop.f32.mrf.mxu0  ;;  %v234_v61 = vmul.f32 %v4980_v54, %v7885_v43 }
 0x573   :  { %3738 = vrcp.f32 %v7895_v36  ;;  %v3737_v40 = vpop.eup %3736  ;;  %v7900_v45 = vadd.f32 1.0, %v3735_v29  ;;  %v2775_v18 = vadd.f32 %v2712_v6, %v264_v28  ;;  %vm2679_vm13 = vweird.f32 %v7895_v36 }
 0x574   :  { %v2647_v41 = vmul.f32 %v3731_v12, %v2646_v53  ;;  %v2660_v1 = vmul.f32 %v3737_v40, %v2642_v32  ;;  %3740 = vtanh.f32 %v2630_v8  ;;  %v2670_v53 = vand.u32 2147483648, %v2642_v32 }
 0x575   :  { %3742 = vrcp.f32 %v7900_v45  ;;  %vm2665_vm7 = vweird.f32 %v3737_v40  ;;  %v2656_v8 = vor.u32 1.1754944e-38, %v2655_v33  ;;  %v159_v46 = vadd.f32 %v4977_v20, %v118_v47 }
 0x576   :  { %v2648_v56 = vadd.f32 %v3731_v12, %v2647_v41  ;;  %v2661_v39 = vsub.f32 1.0, %v2660_v1  ;;  %vm2666_vm10 = vmor %vm2664_vm8, %vm2665_vm7  ;;  %v3518_v57 = vmul.f32 -1.442695, %v2775_v18  ;;  %v235_v28 = vmul.f32 %v5038_v44, %v7885_v43 }
 0x577   :  { %v266_v47 = vadd.f32 %v234_v61, %v159_v46  ;;  %vm2811_vm1 = vweird.f32 %v7900_v45 }
 0x578   :  { %v2662_v41 = vmul.f32 %v3737_v40, %v2661_v39  ;;  %v2652_v1 = vsel %vm7906_vm6, %v3731_v12, %v2648_v56  ;;  %v2671_v39 = vor.u32 1.1754944e-38, %v2670_v53  ;;  %3744 = vpow2.f32 %v3518_v57  ;;  %v2752_v32 = vpop.f32.mrf.mxu2 }
 0x579   :  { %v3739_v22 = vpop.eup %3738  ;;  %v2657_v19 = vsel %vm2654_vm9, %v2656_v8, %v2652_v1  ;;  %v2777_v4 = vadd.f32 %v2752_v32, %v266_v47  ;;  %v2815_v47 = vand.u32 2147483647, %v7900_v45 }
 0x57a   :  { %v2675_v0 = vmul.f32 %v3739_v22, %v7895_v36  ;;  %v2663_v25 = vadd.f32 %v3737_v40, %v2662_v41  ;;  %v3741_v3 = vpop.eup %3740  ;;  %vm2680_vm12 = vweird.f32 %v3739_v22 }
 0x57b   :  { %v7916_v56 = vpop.eup %3742  ;;  %v2691_v33 = vmul.f32 %v3741_v3, %v2657_v19  ;;  %v2683_v3 = vand.u32 2147483647, %v7895_v36  ;;  %vm2681_vm14 = vmor %vm2679_vm13, %vm2680_vm12  ;;  %vm2816_vm4 = vcmp.eq.f32.partialorder %v2815_v47, 8.507059e+37  ;;  %v4400_v47 = vld [vmem:[#allocation2 + $0x100] sm:$0xff] }
 0x57c   :  { %v2676_v17 = vsub.f32 1.0, %v2675_v0  ;;  %v2667_v37 = vsel %vm2666_vm10, %v3737_v40, %v2663_v25  ;;  %v2807_v53 = vmul.f32 %v7916_v56, %v7900_v45  ;;  %v119_v25 = vmul.f32 %v5018_v34, %v7880_v5 }
 0x57d   :  { %v2672_v12 = vsel %vm2669_vm11, %v2671_v39, %v2667_v37  ;;  %v3520_v37 = vmul.f32 -1.442695, %v2777_v4  ;;  %vm2684_vm15 = vcmp.eq.f32.partialorder %v2683_v3, 8.507059e+37  ;;  %v2772_v39 = vpop.f32.mrf.mxu3  ;;  %vm2812_vm0 = vweird.f32 %v7916_v56 }
 0x57e   :  { %v2677_v29 = vmul.f32 %v3739_v22, %v2676_v17  ;;  %v2690_v6 = vmul.f32 %v2672_v12, %v7314_v26  ;;  %v2685_v17 = vand.u32 2147483648, %v7895_v36  ;;  %v3745_v26 = vpop.eup %3744  ;;  %v2808_v40 = vsub.f32 1.0, %v2807_v53  ;;  %vm7945_vm2 = vmor %vm2811_vm1, %vm2812_vm0 }
 0x57f   :  { %v2788_v46 = vadd.f32 1.0, %v3745_v26  ;;  %v160_v5 = vadd.f32 %v5035_v42, %v119_v25 }
 0x580   :  { %v7919_v0 = vadd.f32 %v2691_v33, %v2690_v6  ;;  %v2678_v18 = vadd.f32 %v3739_v22, %v2677_v29  ;;  %v2686_v41 = vor.u32 1.1754944e-38, %v2685_v17  ;;  %v2809_v8 = vmul.f32 %v7916_v56, %v2808_v40  ;;  %v9789_v40 = vld [vmem:[#allocation42_spill] sm:$0xff] }
 0x581   :  { %v267_v57 = vadd.f32 %v235_v28, %v160_v5  ;;  %v2817_v33 = vand.u32 2147483648, %v7900_v45  ;;  %v2802_v32 = vand.u32 2147483648, %v2788_v46  ;;  %v2800_v4 = vand.u32 2147483647, %v2788_v46  ;;  %v4390_v28 = vld [vmem:[#allocation2 + $0x1a0] sm:$0xff] }
 0x582   :  { %3746 = vtanh.f32 %v7919_v0  ;;  %v2682_v27 = vsel %vm2681_vm14, %v3739_v22, %v2678_v18  ;;  %v2810_v43 = vadd.f32 %v7916_v56, %v2809_v8  ;;  %vm2796_vm5 = vweird.f32 %v2788_v46  ;;  %v9792_v5 = vld [vmem:[#allocation49_spill] sm:$0xff]  ;;  %v9793_v8 = vld [vmem:[#allocation50_spill] sm:$0xff] }
 0x583   :  { %3748 = vpow2.f32 %v3520_v37  ;;  %v2687_v61 = vsel %vm2684_vm15, %v2686_v41, %v2682_v27  ;;  %v2778_v29 = vadd.f32 %v2772_v39, %v267_v57  ;;  %v2818_v53 = vor.u32 1.1754944e-38, %v2817_v33  ;;  %v9790_v27 = vld [vmem:[#allocation45_spill] sm:$0xff]  ;;  %v4395_v39 = vld [vmem:[#allocation2 + $0x170] sm:$0xff]  ;;  %v9795_v57 = vld [vmem:[#allocation54_spill] sm:$0xff] }
 0x584   :  { %3750 = vrcp.f32 %v2788_v46  ;;  %vm2801_vm7 = vcmp.eq.f32.partialorder %v2800_v4, 8.507059e+37  ;;  %v4392_v41 = vld [vmem:[#allocation2 + $0x180] sm:$0xff]  ;;  %v4403_v4 = vld [vmem:[#allocation2 + $0xf0] sm:$0xff] }
 0x585   :  { %v9798_v33 = vld [vmem:[#allocation61_spill] sm:$0xff] }
 0x588   :  { %v3747_v1 = vpop.eup %3746 }
 0x589   :  { %v2694_v19 = vmul.f32 %v3747_v1, %v2687_v61  ;;  %v3749_v36 = vpop.eup %3748  ;;  %v4393_v1 = vld [vmem:[#allocation2 + $0x190] sm:$0xff]  ;;  %v4394_v61 = vld [vmem:[#allocation2 + $0x160] sm:$0xff] }
 0x58a   :  { %v7933_v12 = vadd.f32 1.0, %v3749_v36  ;;  %v3751_v22 = vpop.eup %3750  ;;  %v4396_v36 = vld [vmem:[#allocation2 + $0x140] sm:$0xff] }
 0x58b   :  { %2878 = vmatmul.f32.vlgmr.msrb.gmra.mxu1 %v2694_v19  ;;  %2918 = vmatmul.f32.vlgmr.msrb.gmra.mxu3 %v2694_v19  ;;  %v2792_v6 = vmul.f32 %v3751_v22, %v2788_v46  ;;  %vm2797_vm3 = vweird.f32 %v3751_v22 }
 0x58c   :  { %3085 = vmatpush.msrb.mxu1 %v7333_v59  ;;  %3125 = vmatpush.msrb.mxu3 %v7336_v48  ;;  %3752 = vrcp.f32 %v7933_v12  ;;  %vm2798_vm6 = vmor %vm2796_vm5, %vm2797_vm3  ;;  %vm2826_vm9 = vweird.f32 %v7933_v12  ;;  %v4401_v48 = vld [vmem:[#allocation2 + $0x110] sm:$0xff] }
 0x58d   :  { %v2793_v59 = vsub.f32 1.0, %v2792_v6  ;;  %3754 = vtanh.f32 %v2778_v29  ;;  %v4398_v29 = vld [vmem:[#allocation2 + $0x120] sm:$0xff]  ;;  %v4399_v6 = vld [vmem:[#allocation2 + $0x130] sm:$0xff] }
 0x58e   :  { %3086 = vmatpush.msrb.mxu1 %v7344_v63  ;;  %3126 = vmatpush.msrb.mxu3 %v7347_v16  ;;  %v2814_v63 = vsel %vm7945_vm2, %v7916_v56, %v2810_v43  ;;  %v2803_v56 = vor.u32 1.1754944e-38, %v2802_v32  ;;  %v9797_v43 = vld [vmem:[#allocation58_spill] sm:$0xff]  ;;  %v9800_v32 = vld [vmem:[#allocation23_spill] sm:$0xff] }
 0x58f   :  { %v2794_v16 = vmul.f32 %v3751_v22, %v2793_v59  ;;  %v9799_v59 = vld [vmem:[#allocation20_spill] sm:$0xff] }
 0x590   :  { %3087 = vmatpush.msrb.mxu1 %v7357_v15  ;;  %3127 = vmatpush.msrb.mxu3 %v7360_v58  ;;  %v40_v15 = vld [vmem:[%s8254_s0 + $0x38] sm:$0xff]  ;;  %v2819_v58 = vsel %vm2816_vm4, %v2818_v53, %v2814_v63  ;;  %v4402_v63 = vld [vmem:[#allocation2 + $0xe0] sm:$0xff]  ;;  %v9802_v53 = vld [vmem:[#allocation27_spill] sm:$0xff] }
 0x591   :  { %v2795_v18 = vadd.f32 %v3751_v22, %v2794_v16  ;;  %80 = vperm.xlu1 %3547, %v40_v15   ;;  %196 = vperm.xlu2 %3548, %v40_v15   ;;  %v2837_v26 = vmul.f32 %v2819_v58, %v7394_v7  ;;  %v9801_v16 = vld [vmem:[#allocation24_spill] sm:$0xff]  ;;  %v4405_v15 = vld [vmem:[#allocation2 + $0xd0] sm:$0xff] }
 0x592   :  { %3088 = vmatpush.msrb.mxu1 %v7367_v49  ;;  %3128 = vmatpush.msrb.mxu3 %v7370_v60  ;;  %v3753_v45 = vpop.eup %3752  ;;  %v9804_v58 = vld [vmem:[#allocation19_spill] sm:$0xff] }
 0x593   :  { %2958 = vmatmul.f32.vlgmr.msra.gmra.mxu1 %v2694_v19  ;;  %2998 = vmatmul.f32.vlgmr.msra.gmra.mxu3 %v2694_v19  ;;  %v2822_v25 = vmul.f32 %v3753_v45, %v7933_v12  ;;  %v2799_v49 = vsel %vm2798_vm6, %v3751_v22, %v2795_v18  ;;  %v3755_v60 = vpop.eup %3754  ;;  %vm2827_vm8 = vweird.f32 %v3753_v45  ;;  %v9794_v19 = vld [vmem:[#allocation53_spill] sm:$0xff]  ;;  %v9803_v18 = vld [vmem:[#allocation28_spill] sm:$0xff] }
 0x594   :  { %3089 = vmatpush.msrb.mxu1 %v7375_v10  ;;  %3129 = vmatpush.msrb.mxu3 %v7378_v30  ;;  %v2804_v37 = vsel %vm2801_vm7, %v2803_v56, %v2799_v49  ;;  %vm2828_vm10 = vmor %vm2826_vm9, %vm2827_vm8  ;;  %v9796_v22 = vld [vmem:[#allocation57_spill] sm:$0xff]  ;;  %v4407_v49 = vld [vmem:[#allocation2 + $0xb0] sm:$0xff] }
 0x595   :  { %v2823_v17 = vsub.f32 1.0, %v2822_v25  ;;  %v2838_v3 = vmul.f32 %v3755_v60, %v2804_v37  ;;  %v4406_v56 = vld [vmem:[#allocation2 + $0xa0] sm:$0xff]  ;;  %v9805_v25 = vld [vmem:[#allocation31_spill] sm:$0xff]  ;;  %v9806_v60 = vld [vmem:[#allocation62_spill] sm:$0xff] }
 0x596   :  { %3090 = vmatpush.msrb.mxu1 %v7381_v62  ;;  %3130 = vmatpush.msrb.mxu3 %v7384_v21  ;;  %v2832_v62 = vand.u32 2147483648, %v7933_v12  ;;  %v2830_v21 = vand.u32 2147483647, %v7933_v12  ;;  %v4397_v12 = vld [vmem:[#allocation2 + $0x150] sm:$0xff]  ;;  %v4408_v37 = vld [vmem:[#allocation2 + $0x80] sm:$0xff] }
 0x597   :  { %v2824_v46 = vmul.f32 %v3753_v45, %v2823_v17  ;;  %v7967_v10 = vadd.f32 %v2838_v3, %v2837_v26  ;;  %v9807_v17 = vld [vmem:[#allocation32_spill] sm:$0xff]  ;;  %v4409_v26 = vld [vmem:[#allocation2 + $0x90] sm:$0xff]  ;;  %v9808_v3 = vld [vmem:[#allocation65_spill] sm:$0xff] }
 0x598   :  { %3091 = vmatpush.msrb.mxu1 %v7388_v51  ;;  %3131 = vmatpush.msrb.mxu3 %v7391_v23  ;;  %v2833_v23 = vor.u32 1.1754944e-38, %v2832_v62  ;;  %vm2831_vm11 = vcmp.eq.f32.partialorder %v2830_v21, 8.507059e+37  ;;  %v4411_v62 = vld [vmem:[#allocation2 + $0x70] sm:$0xff]  ;;  %v9810_v21 = vld [vmem:[#allocation66_spill] sm:$0xff] }
 0x599   :  { %v2825_v30 = vadd.f32 %v3753_v45, %v2824_v46  ;;  %3756 = vtanh.f32 %v7967_v10  ;;  %v4410_v46 = vld [vmem:[#allocation2 + $0x60] sm:$0xff] }
 0x59a   :  { %3092 = vmatpush.msrb.mxu1 %v7396_v14  ;;  %3132 = vmatpush.msrb.mxu3 %v7399_v38 }
 0x59b   :  { %v2829_v51 = vsel %vm2828_vm10, %v3753_v45, %v2825_v30  ;;  %v4404_v45 = vld [vmem:[#allocation2 + $0xc0] sm:$0xff]  ;;  %v9809_v30 = vld [vmem:[#allocation35_spill] sm:$0xff] }
 0x59c   :  { %3093 = vmatpush.msrb.mxu1 %v7406_v31  ;;  %3133 = vmatpush.msrb.mxu3 %v7409_v13  ;;  %v2834_v14 = vsel %vm2831_vm11, %v2833_v23, %v2829_v51  ;;  %v4384_v31 = vld [vmem:[#allocation2 + $0x200] sm:$0xff]  ;;  %v4385_v13 = vld [vmem:[#allocation2 + $0x210] sm:$0xff]  ;;  %v9811_v23 = vld [vmem:[#allocation36_spill] sm:$0xff] }
 0x59d   :  { %v4412_v51 = vld [vmem:[#allocation2 + $0x40] sm:$0xff] }
 0x59e   :  { %3094 = vmatpush.msrb.mxu1 %v7412_v35  ;;  %3134 = vmatpush.msrb.mxu3 %v7415_v24  ;;  %v4386_v35 = vld [vmem:[#allocation2 + $0x1e0] sm:$0xff]  ;;  %v4387_v24 = vld [vmem:[#allocation2 + $0x1f0] sm:$0xff] }
 0x59f   :  { %v3757_v7 = vpop.eup %3756 }
 0x5a0   :  { %3095 = vmatpush.msrb.mxu1 %v7418_v11  ;;  %3135 = vmatpush.msrb.mxu3 %v7421_v55  ;;  %v7981_v38 = vmul.f32 %v3757_v7, %v2834_v14  ;;  %v9787_v11 = vld [vmem:[#allocation38_spill] sm:$0xff]  ;;  %v9788_v55 = vld [vmem:[#allocation41_spill] sm:$0xff]  ;;  %v4413_v7 = vld [vmem:[#allocation2 + $0x50] sm:$0xff] }
 0x5a1   :  { %v9812_v14 = vld [vmem:[#allocation69_spill] sm:$0xff] }
 0x5a2   :  { %3096 = vmatpush.msrb.mxu1 %v7426_v50  ;;  %3136 = vmatpush.msrb.mxu3 %v7429_v52  ;;  %v4388_v50 = vld [vmem:[#allocation2 + $0x1c0] sm:$0xff]  ;;  %v4389_v52 = vld [vmem:[#allocation2 + $0x1d0] sm:$0xff] }
 0x5a3   :  { %2858 = vmatmul.f32.vlgmr.msrb.gmra.mxu0 %v7981_v38  ;;  %2898 = vmatmul.f32.vlgmr.msrb.gmra.mxu2 %v7981_v38 }
 0x5a4   :  { %3065 = vmatpush.msrb.mxu0 %v4384_v31  ;;  %3105 = vmatpush.msrb.mxu2 %v4385_v13  ;;  %v4414_v31 = vld [vmem:[#allocation2 + $0x20] sm:$0xff]  ;;  %v9813_v13 = vld [vmem:[#allocation39_spill] sm:$0xff] }
 0x5a5   :  { %3097 = vmatpush.msrb.mxu1 %v7436_v2  ;;  %3137 = vmatpush.msrb.mxu3 %v7439_v9  ;;  %v4391_v2 = vld [vmem:[#allocation2 + $0x1b0] sm:$0xff]  ;;  %v9791_v9 = vld [vmem:[#allocation46_spill] sm:$0xff] }
 0x5a6   :  { %3066 = vmatpush.msrb.mxu0 %v4386_v35  ;;  %3106 = vmatpush.msrb.mxu2 %v4387_v24  ;;  %v4415_v35 = vld [vmem:[#allocation2 + $0x30] sm:$0xff]  ;;  %v9814_v24 = vld [vmem:[#allocation70_spill] sm:$0xff] }
 0x5a7   :  { %3098 = vmatpush.msrb.mxu1 %v9787_v11  ;;  %3138 = vmatpush.msrb.mxu3 %v9788_v55  ;;  %v9815_v11 = vld [vmem:[#allocation40_spill] sm:$0xff]  ;;  %v9816_v55 = vld [vmem:[#allocation73_spill] sm:$0xff] }
 0x5a8   :  { %3067 = vmatpush.msrb.mxu0 %v4388_v50  ;;  %3107 = vmatpush.msrb.mxu2 %v4389_v52  ;;  %v9817_v50 = vld [vmem:[#allocation43_spill] sm:$0xff]  ;;  %v9818_v52 = vld [vmem:[#allocation74_spill] sm:$0xff] }
 0x5a9   :  { %3099 = vmatpush.msrb.mxu1 %v9789_v40  ;;  %3139 = vmatpush.msrb.mxu3 %v9790_v27  ;;  %v9819_v40 = vld [vmem:[#allocation47_spill] sm:$0xff]  ;;  %v9820_v27 = vld [vmem:[#allocation77_spill] sm:$0xff] }
 0x5aa   :  { %3068 = vmatpush.msrb.mxu0 %v4390_v28  ;;  %3108 = vmatpush.msrb.mxu2 %v4391_v2  ;;  %v9821_v28 = vld [vmem:[#allocation51_spill] sm:$0xff]  ;;  %v9822_v2 = vld [vmem:[#allocation78_spill] sm:$0xff] }
 0x5ab   :  { %3100 = vmatpush.msrb.mxu1 %v9791_v9  ;;  %3140 = vmatpush.msrb.mxu3 %v9792_v5  ;;  %v9823_v9 = vld [vmem:[#allocation52_spill] sm:$0xff]  ;;  %v9825_v5 = vld [vmem:[#allocation81_spill] sm:$0xff] }
 0x5ac   :  { %2938 = vmatmul.f32.vlgmr.msra.gmra.mxu0 %v7981_v38  ;;  %2978 = vmatmul.f32.vlgmr.msra.gmra.mxu2 %v7981_v38 }
 0x5ad   :  { %3069 = vmatpush.msrb.mxu0 %v4392_v41  ;;  %3101 = vmatmul.f32.vlgmr.msrb.gmra.mxu1 %v7981_v38  ;;  %v9826_v41 = vld [vmem:[#allocation82_spill] sm:$0xff] }
 0x5ae   :  { %3109 = vmatpush.msrb.mxu2 %v4393_v1  ;;  %3141 = vmatmul.f32.vlgmr.msrb.gmra.mxu3 %v7981_v38  ;;  %v9827_v1 = vld [vmem:[#allocation59_spill] sm:$0xff] }
 0x5af   :  { %3070 = vmatpush.msrb.mxu0 %v4394_v61  ;;  %3232 = vmatpush.msra.mxu1 %v9793_v8  ;;  %v9828_v61 = vld [vmem:[#allocation63_spill] sm:$0xff]  ;;  %v9829_v8 = vld [vmem:[#allocation44_spill] sm:$0xff] }
 0x5b0   :  { %3110 = vmatpush.msrb.mxu2 %v4395_v39  ;;  %3272 = vmatpush.msra.mxu3 %v9794_v19  ;;  %v9830_v39 = vld [vmem:[#allocation48_spill] sm:$0xff]  ;;  %v9831_v19 = vld [vmem:[#allocation67_spill] sm:$0xff] }
 0x5b1   :  { %3071 = vmatpush.msrb.mxu0 %v4396_v36  ;;  %3233 = vmatpush.msra.mxu1 %v9795_v57  ;;  %v9832_v36 = vld [vmem:[#allocation71_spill] sm:$0xff]  ;;  %v9833_v57 = vld [vmem:[#allocation56_spill] sm:$0xff] }
 0x5b2   :  { %3111 = vmatpush.msrb.mxu2 %v4397_v12  ;;  %3273 = vmatpush.msra.mxu3 %v9796_v22  ;;  %v9834_v12 = vld [vmem:[#allocation60_spill] sm:$0xff]  ;;  %v9835_v22 = vld [vmem:[#allocation75_spill] sm:$0xff] }
 0x5b3   :  { %3072 = vmatpush.msrb.mxu0 %v4398_v29  ;;  %3234 = vmatpush.msra.mxu1 %v9797_v43  ;;  %v9836_v29 = vld [vmem:[#allocation79_spill] sm:$0xff]  ;;  %v9837_v43 = vld [vmem:[#allocation64_spill] sm:$0xff] }
 0x5b4   :  { %3112 = vmatpush.msrb.mxu2 %v4399_v6  ;;  %3274 = vmatpush.msra.mxu3 %v9798_v33  ;;  %v9838_v6 = vld [vmem:[#allocation68_spill] sm:$0xff]  ;;  %v9839_v33 = vld [vmem:[#allocation83_spill] sm:$0xff] }
 0x5b5   :  { %3073 = vmatpush.msrb.mxu0 %v4400_v47  ;;  %3235 = vmatpush.msra.mxu1 %v9799_v59  ;;  %v9840_v47 = vld [vmem:[#allocation85_spill] sm:$0xff]  ;;  %v9841_v59 = vld [vmem:[#allocation72_spill] sm:$0xff] }
 0x5b6   :  { %3113 = vmatpush.msrb.mxu2 %v4401_v48  ;;  %3275 = vmatpush.msra.mxu3 %v9800_v32  ;;  %v9842_v48 = vld [vmem:[#allocation76_spill] sm:$0xff] }
 0x5b7   :  { %3074 = vmatpush.msrb.mxu0 %v4402_v63  ;;  %3236 = vmatpush.msra.mxu1 %v9801_v16  ;;  %v9843_v32 = vld [vmem:[#allocation88_spill] sm:$0xff]  ;;  %v9844_v63 = vld [vmem:[#allocation91_spill] sm:$0xff] }
 0x5b8   :  { %3114 = vmatpush.msrb.mxu2 %v4403_v4  ;;  %3276 = vmatpush.msra.mxu3 %v9802_v53  ;;  %v9845_v16 = vld [vmem:[#allocation80_spill] sm:$0xff]  ;;  %v9847_v53 = vld [vmem:[#allocation94_spill] sm:$0xff] }
 0x5b9   :  { %3075 = vmatpush.msrb.mxu0 %v4404_v45  ;;  %3237 = vmatpush.msra.mxu1 %v9803_v18  ;;  %v9846_v4 = vld [vmem:[#allocation84_spill] sm:$0xff]  ;;  %v9849_v18 = vld [vmem:[#allocation86_spill] sm:$0xff] }
 0x5ba   :  { %3115 = vmatpush.msrb.mxu2 %v4405_v15  ;;  %3277 = vmatpush.msra.mxu3 %v9804_v58  ;;  %v9848_v45 = vld [vmem:[#allocation100_spill] sm:$0xff]  ;;  %v9850_v15 = vld [vmem:[#allocation89_spill] sm:$0xff]  ;;  %v9851_v58 = vld [vmem:[#allocation6_spill] sm:$0xff] }
 0x5bb   :  { %3076 = vmatpush.msrb.mxu0 %v4406_v56  ;;  %3238 = vmatpush.msra.mxu1 %v9805_v25  ;;  %v9852_v56 = vld [vmem:[#allocation8_spill] sm:$0xff] }
 0x5bc   :  { %3116 = vmatpush.msrb.mxu2 %v4407_v49  ;;  %3278 = vmatpush.msra.mxu3 %v9806_v60  ;;  %v9853_v25 = vld [vmem:[#allocation92_spill] sm:$0xff]  ;;  %v9854_v49 = vld [vmem:[#allocation98_spill] sm:$0xff] }
 0x5bd   :  { %3077 = vmatpush.msrb.mxu0 %v4408_v37  ;;  %3239 = vmatpush.msra.mxu1 %v9807_v17  ;;  %v9855_v60 = vld [vmem:[#allocation10_spill] sm:$0xff]  ;;  %v9856_v37 = vld [vmem:[#allocation101_spill] sm:$0xff] }
 0x5be   :  { %3117 = vmatpush.msrb.mxu2 %v4409_v26  ;;  %3279 = vmatpush.msra.mxu3 %v9808_v3  ;;  %v9857_v17 = vld [vmem:[#allocation5_spill] sm:$0xff]  ;;  %v9858_v26 = vld [vmem:[#allocation7_spill] sm:$0xff] }
 0x5bf   :  { %3078 = vmatpush.msrb.mxu0 %v4410_v46  ;;  %3240 = vmatpush.msra.mxu1 %v9809_v30  ;;  %v9859_v3 = vld [vmem:[#allocation103_spill] sm:$0xff]  ;;  %v9860_v46 = vld [vmem:[#allocation105_spill] sm:$0xff] }
 0x5c0   :  { %3118 = vmatpush.msrb.mxu2 %v4411_v62  ;;  %3280 = vmatpush.msra.mxu3 %v9810_v21  ;;  %v9861_v30 = vld [vmem:[#allocation9_spill] sm:$0xff]  ;;  %v9862_v62 = vld [vmem:[#allocation11_spill] sm:$0xff] }
 0x5c1   :  { %3079 = vmatpush.msrb.mxu0 %v4412_v51  ;;  %3241 = vmatpush.msra.mxu1 %v9811_v23  ;;  %v9863_v21 = vld [vmem:[#allocation107_spill] sm:$0xff]  ;;  %v9864_v51 = vld [vmem:[#allocation109_spill] sm:$0xff]  ;;  %v9865_v23 = vld [vmem:[#allocation102_spill] sm:$0xff] }
 0x5c2   :  { %3119 = vmatpush.msrb.mxu2 %v4413_v7  ;;  %3281 = vmatpush.msra.mxu3 %v9812_v14  ;;  %v9866_v7 = vld [vmem:[#allocation104_spill] sm:$0xff]  ;;  %v9867_v14 = vld [vmem:[#allocation111_spill] sm:$0xff] }
 0x5c3   :  { %3080 = vmatpush.msrb.mxu0 %v4414_v31  ;;  %3242 = vmatpush.msra.mxu1 %v9813_v13  ;;  %v9868_v31 = vld [vmem:[#allocation113_spill] sm:$0xff]  ;;  %v9869_v13 = vld [vmem:[#allocation106_spill] sm:$0xff] }
 0x5c4   :  { %3120 = vmatpush.msrb.mxu2 %v4415_v35  ;;  %3081 = vmatmul.f32.vlgmr.msrb.gmra.mxu0 %v7981_v38  ;;  %v9870_v35 = vld [vmem:[#allocation108_spill] sm:$0xff] }
 0x5c5   :  { %3121 = vmatmul.f32.vlgmr.msrb.gmra.mxu2 %v7981_v38  ;;  %3282 = vmatpush.msra.mxu3 %v9814_v24  ;;  %v9824_v38 = vld [vmem:[#allocation55_spill] sm:$0xff] }
 0x5c6   :  { %3243 = vmatpush.msra.mxu1 %v9815_v11  ;;  %3212 = vmatpush.msra.mxu0 %v9816_v55  ;;  %v9871_v24 = vld [vmem:[#allocation115_spill] sm:$0xff]  ;;  %v9872_v11 = vld [vmem:[#allocation117_spill] sm:$0xff]  ;;  %v9873_v55 = vld [vmem:[#allocation110_spill] sm:$0xff] }
 0x5c7   :  { %3283 = vmatpush.msra.mxu3 %v9817_v50  ;;  %3252 = vmatpush.msra.mxu2 %v9818_v52  ;;  %v9874_v50 = vld [vmem:[#allocation112_spill] sm:$0xff]  ;;  %v9875_v52 = vld [vmem:[#allocation119_spill] sm:$0xff] }
 0x5c8   :  { %3244 = vmatpush.msra.mxu1 %v9819_v40  ;;  %3213 = vmatpush.msra.mxu0 %v9820_v27  ;;  %v9876_v40 = vld [vmem:[#allocation121_spill] sm:$0xff]  ;;  %v9877_v27 = vld [vmem:[#allocation114_spill] sm:$0xff] }
 0x5c9   :  { %3284 = vmatpush.msra.mxu3 %v9821_v28  ;;  %3253 = vmatpush.msra.mxu2 %v9822_v2  ;;  %v9878_v28 = vld [vmem:[#allocation116_spill] sm:$0xff]  ;;  %v9879_v2 = vld [vmem:[#allocation123_spill] sm:$0xff] }
 0x5ca   :  { %3245 = vmatpush.msra.mxu1 %v9823_v9  ;;  %3214 = vmatpush.msra.mxu0 %v9824_v38  ;;  %v9880_v9 = vld [vmem:[#allocation125_spill] sm:$0xff]  ;;  %v9881_v38 = vld [vmem:[#allocation118_spill] sm:$0xff] }
 0x5cb   :  { %3285 = vmatpush.msra.mxu3 %v9825_v5  ;;  %3254 = vmatpush.msra.mxu2 %v9826_v41  ;;  %v9882_v5 = vld [vmem:[#allocation120_spill] sm:$0xff]  ;;  %v9883_v41 = vld [vmem:[#allocation127_spill] sm:$0xff] }
 0x5cc   :  { %3246 = vmatpush.msra.mxu1 %v9827_v1  ;;  %3215 = vmatpush.msra.mxu0 %v9828_v61  ;;  %v9884_v1 = vld [vmem:[#allocation129_spill] sm:$0xff]  ;;  %v9885_v61 = vld [vmem:[#allocation122_spill] sm:$0xff] }
 0x5cd   :  { %3286 = vmatpush.msra.mxu3 %v9829_v8  ;;  %3255 = vmatpush.msra.mxu2 %v9830_v39  ;;  %v9886_v8 = vld [vmem:[#allocation124_spill] sm:$0xff]  ;;  %v9887_v39 = vld [vmem:[#allocation126_spill] sm:$0xff] }
 0x5ce   :  { %3247 = vmatpush.msra.mxu1 %v9831_v19  ;;  %3216 = vmatpush.msra.mxu0 %v9832_v36  ;;  %v9888_v19 = vld [vmem:[#allocation128_spill] sm:$0xff]  ;;  %v9889_v36 = vld [vmem:[#allocation130_spill] sm:$0xff] }
 0x5cf   :  { %3287 = vmatpush.msra.mxu3 %v9833_v57  ;;  %3256 = vmatpush.msra.mxu2 %v9834_v12  ;;  %v9890_v57 = vld [vmem:[#allocation131_spill] sm:$0xff]  ;;  %v9891_v12 = vld [vmem:[#allocation132_spill] sm:$0xff] }
 0x5d0   :  { %3312 = vmatpush.msrb.mxu1 %v9835_v22  ;;  %3217 = vmatpush.msra.mxu0 %v9837_v43  ;;  %v9892_v22 = vld [vmem:[#allocation133_spill] sm:$0xff]  ;;  %v9894_v43 = vld [vmem:[#allocation135_spill] sm:$0xff] }
 0x5d1   :  { %3352 = vmatpush.msrb.mxu3 %v9836_v29  ;;  %3257 = vmatpush.msra.mxu2 %v9838_v6  ;;  %v9893_v29 = vld [vmem:[#allocation134_spill] sm:$0xff]  ;;  %v9895_v6 = vld [vmem:[#allocation136_spill] sm:$0xff] }
 0x5d2   :  { %3313 = vmatpush.msrb.mxu1 %v9839_v33  ;;  %3218 = vmatpush.msra.mxu0 %v9841_v59  ;;  %v9896_v33 = vld [vmem:[#allocation137_spill] sm:$0xff]  ;;  %v9898_v59 = vld [vmem:[#allocation139_spill] sm:$0xff] }
 0x5d3   :  { %3353 = vmatpush.msrb.mxu3 %v9840_v47  ;;  %3258 = vmatpush.msra.mxu2 %v9842_v48  ;;  %v9897_v47 = vld [vmem:[#allocation138_spill] sm:$0xff]  ;;  %v9899_v48 = vld [vmem:[#allocation140_spill] sm:$0xff] }
 0x5d4   :  { %3314 = vmatpush.msrb.mxu1 %v9843_v32  ;;  %3219 = vmatpush.msra.mxu0 %v9845_v16  ;;  %v9900_v32 = vld [vmem:[#allocation141_spill] sm:$0xff]  ;;  %v9902_v16 = vld [vmem:[#allocation143_spill] sm:$0xff] }
 0x5d5   :  { %3354 = vmatpush.msrb.mxu3 %v9844_v63  ;;  %3259 = vmatpush.msra.mxu2 %v9846_v4  ;;  %v9901_v63 = vld [vmem:[#allocation142_spill] sm:$0xff]  ;;  %v9903_v4 = vld [vmem:[#allocation144_spill] sm:$0xff] }
 0x5d6   :  { %3315 = vmatpush.msrb.mxu1 %v9847_v53  ;;  %3220 = vmatpush.msra.mxu0 %v9849_v18  ;;  %v9904_v53 = vld [vmem:[#allocation145_spill] sm:$0xff]  ;;  %v9906_v18 = vld [vmem:[#allocation147_spill] sm:$0xff] }
 0x5d7   :  { %3355 = vmatpush.msrb.mxu3 %v9848_v45  ;;  %3260 = vmatpush.msra.mxu2 %v9850_v15  ;;  %v9905_v45 = vld [vmem:[#allocation146_spill] sm:$0xff]  ;;  %v9907_v15 = vld [vmem:[#allocation148_spill] sm:$0xff] }
 0x5d8   :  { %3316 = vmatpush.msrb.mxu1 %v9851_v58  ;;  %3221 = vmatpush.msra.mxu0 %v9853_v25  ;;  %v9908_v58 = vld [vmem:[#allocation149_spill] sm:$0xff] }
 0x5d9   :  { %3356 = vmatpush.msrb.mxu3 %v9852_v56  ;;  %3261 = vmatpush.msra.mxu2 %v9854_v49  ;;  %v9909_v56 = vld [vmem:[#allocation16_spill] sm:$0xff]  ;;  %v9910_v25 = vld [vmem:[#allocation17_spill] sm:$0xff]  ;;  %v9911_v49 = vld [vmem:[#allocation18_spill] sm:$0xff] }
 0x5da   :  { %3317 = vmatpush.msrb.mxu1 %v9855_v60  ;;  %3222 = vmatpush.msra.mxu0 %v9857_v17  ;;  %v9912_v60 = vld [vmem:[#allocation21_spill] sm:$0xff] }
 0x5db   :  { %3357 = vmatpush.msrb.mxu3 %v9856_v37  ;;  %3262 = vmatpush.msra.mxu2 %v9858_v26  ;;  %v9913_v37 = vld [vmem:[#allocation22_spill] sm:$0xff]  ;;  %v9914_v17 = vld [vmem:[#allocation25_spill] sm:$0xff] }
 0x5dc   :  { %3318 = vmatpush.msrb.mxu1 %v9859_v3  ;;  %3223 = vmatpush.msra.mxu0 %v9861_v30  ;;  %v9915_v26 = vld [vmem:[#allocation26_spill] sm:$0xff]  ;;  %v9916_v3 = vld [vmem:[#allocation29_spill] sm:$0xff] }
 0x5dd   :  { %3358 = vmatpush.msrb.mxu3 %v9860_v46  ;;  %3263 = vmatpush.msra.mxu2 %v9862_v62  ;;  %v9917_v46 = vld [vmem:[#allocation30_spill] sm:$0xff]  ;;  %v9918_v30 = vld [vmem:[#allocation33_spill] sm:$0xff] }
 0x5de   :  { %3319 = vmatpush.msrb.mxu1 %v9863_v21  ;;  %3224 = vmatpush.msra.mxu0 %v9865_v23  ;;  %v9919_v62 = vld [vmem:[#allocation34_spill] sm:$0xff]  ;;  %v9920_v21 = vld [vmem:[#allocation37_spill] sm:$0xff] }
 0x5df   :  { %3359 = vmatpush.msrb.mxu3 %v9864_v51  ;;  %3264 = vmatpush.msra.mxu2 %v9866_v7  ;;  %v9921_v7 = vld [vmem:[#allocation90_spill] sm:$0xff] }
 0x5e0   :  { %3320 = vmatpush.msrb.mxu1 %v9867_v14  ;;  %3225 = vmatpush.msra.mxu0 %v9869_v13 }
 0x5e1   :  { %3360 = vmatpush.msrb.mxu3 %v9868_v31  ;;  %3265 = vmatpush.msra.mxu2 %v9870_v35  ;;  %v9922_v35 = vld [vmem:[#allocation12_spill] sm:$0xff] }
 0x5e2   :  { %3321 = vmatpush.msrb.mxu1 %v9871_v24  ;;  %3226 = vmatpush.msra.mxu0 %v9873_v55 }
 0x5e3   :  { %3361 = vmatpush.msrb.mxu3 %v9872_v11  ;;  %3266 = vmatpush.msra.mxu2 %v9874_v50  ;;  %v9923_v50 = vld [vmem:[#allocation97_spill] sm:$0xff] }
 0x5e4   :  { %3322 = vmatpush.msrb.mxu1 %v9875_v52  ;;  %3227 = vmatpush.msra.mxu0 %v9877_v27 }
 0x5e5   :  { %3362 = vmatpush.msrb.mxu3 %v9876_v40  ;;  %3267 = vmatpush.msra.mxu2 %v9878_v28  ;;  %v9924_v40 = vld [vmem:[#allocation96_spill] sm:$0xff] }
 0x5e6   :  { %3323 = vmatpush.msrb.mxu1 %v9879_v2  ;;  %3292 = vmatpush.msrb.mxu0 %v9881_v38 }
 0x5e7   :  { %3363 = vmatpush.msrb.mxu3 %v9880_v9  ;;  %3332 = vmatpush.msrb.mxu2 %v9882_v5  ;;  %v9925_v9 = vld [vmem:[#allocation13_spill] sm:$0xff] }
 0x5e8   :  { %3324 = vmatpush.msrb.mxu1 %v9883_v41  ;;  %3293 = vmatpush.msrb.mxu0 %v9885_v61 }
 0x5e9   :  { %3364 = vmatpush.msrb.mxu3 %v9884_v1  ;;  %3333 = vmatpush.msrb.mxu2 %v9886_v8  ;;  %v9926_v8 = vld [vmem:[#allocation14_spill] sm:$0xff] }
 0x5ea   :  { %3325 = vmatpush.msrb.mxu1 %v9887_v39  ;;  %3294 = vmatpush.msrb.mxu0 %v9889_v36 }
 0x5eb   :  { %3365 = vmatpush.msrb.mxu3 %v9888_v19  ;;  %3334 = vmatpush.msrb.mxu2 %v9890_v57  ;;  %v8133_v13 = vpop.permute.xlu2 %196 }
 0x5ec   :  { %3326 = vmatpush.msrb.mxu1 %v9891_v12  ;;  %3295 = vmatpush.msrb.mxu0 %v9893_v29  ;;  %v237_v52 = vmul.f32 %v9923_v50, %v8133_v13 }
 0x5ed   :  { %3366 = vmatpush.msrb.mxu3 %v9892_v22  ;;  %3335 = vmatpush.msrb.mxu2 %v9894_v43 }
 0x5ee   :  { %3327 = vmatpush.msrb.mxu1 %v9895_v6  ;;  %3296 = vmatpush.msrb.mxu0 %v9897_v47 }
 0x5ef   :  { %3367 = vmatpush.msrb.mxu3 %v9896_v33  ;;  %3336 = vmatpush.msrb.mxu2 %v9898_v59 }
 0x5f0   :  { %3297 = vmatpush.msrb.mxu0 %v9899_v48 }
 0x5f1   :  { %3337 = vmatpush.msrb.mxu2 %v9900_v32  ;;  %v9927_v32 = vld [vmem:[#allocation87_spill] sm:$0xff] }
 0x5f2   :  { %3298 = vmatpush.msrb.mxu0 %v9901_v63 }
 0x5f3   :  { %3338 = vmatpush.msrb.mxu2 %v9902_v16 }
 0x5f4   :  { %3299 = vmatpush.msrb.mxu0 %v9903_v4 }
 0x5f5   :  { %3339 = vmatpush.msrb.mxu2 %v9904_v53  ;;  %v9928_v53 = vld [vmem:[#allocation15_spill] sm:$0xff] }
 0x5f6   :  { %3300 = vmatpush.msrb.mxu0 %v9905_v45 }
 0x5f7   :  { %3340 = vmatpush.msrb.mxu2 %v9906_v18 }
 0x5f8   :  { %3301 = vmatpush.msrb.mxu0 %v9907_v15 }
 0x5f9   :  { %3341 = vmatpush.msrb.mxu2 %v9908_v58 }
 0x5fa   :  { %3302 = vmatpush.msrb.mxu0 %v9909_v56 }
 0x5fb   :  { %3342 = vmatpush.msrb.mxu2 %v9910_v25  ;;  %v9929_v25 = vld [vmem:[#allocation95_spill] sm:$0xff] }
 0x5fc   :  { %3303 = vmatpush.msrb.mxu0 %v9911_v49  ;;  %v236_v49 = vmul.f32 %v9929_v25, %v8133_v13 }
 0x5fd   :  { %3343 = vmatpush.msrb.mxu2 %v9912_v60  ;;  %v9930_v60 = vld [vmem:[#allocation93_spill] sm:$0xff] }
 0x5fe   :  { %3304 = vmatpush.msrb.mxu0 %v9913_v37 }
 0x5ff   :  { %3344 = vmatpush.msrb.mxu2 %v9914_v17 }
 0x600   :  { %3305 = vmatpush.msrb.mxu0 %v9915_v26 }
 0x601   :  { %3345 = vmatpush.msrb.mxu2 %v9916_v3 }
 0x602   :  { %3306 = vmatpush.msrb.mxu0 %v9917_v46 }
 0x603   :  { %3346 = vmatpush.msrb.mxu2 %v9918_v30  ;;  %v8129_v23 = vpop.permute.xlu1 %80 }
 0x604   :  { %3307 = vmatpush.msrb.mxu0 %v9919_v62  ;;  %v121_v14 = vmul.f32 %v9921_v7, %v8129_v23  ;;  %v120_v63 = vmul.f32 %v9927_v32, %v8129_v23 }
 0x605   :  { %3347 = vmatpush.msrb.mxu2 %v9920_v21  ;;  %v9931_v21 = vld [vmem:[#allocation99_spill] sm:$0xff] }
 0x606   :  { %v162_v27 = vadd.f32 %v9924_v40, %v121_v14  ;;  %v161_v37 = vadd.f32 %v9930_v60, %v120_v63 }
 0x608   :  { %v2879_v51 = vpop.f32.mrf.mxu1  ;;  %v269_v5 = vadd.f32 %v237_v52, %v162_v27  ;;  %v268_v14 = vadd.f32 %v236_v49, %v161_v37 }
 0x60e   :  { %v2919_v41 = vpop.f32.mrf.mxu3 }
 0x610   :  { %v2959_v11 = vpop.f32.mrf.mxu1 }
 0x616   :  { %v2999_v56 = vpop.f32.mrf.mxu3 }
 0x620   :  { %v2859_v31 = vpop.f32.mrf.mxu0 }
 0x621   :  { %v2860_v24 = vadd.f32 %v2859_v31, %v9922_v35 }
 0x623   :  { %v2880_v55 = vadd.f32 %v2879_v51, %v2860_v24  ;;  %v122_v51 = vmul.f32 %v9931_v21, %v8129_v23 }
 0x625   :  { %v3521_v28 = vmul.f32 -1.442695, %v2880_v55 }
 0x626   :  { %v2899_v2 = vpop.f32.mrf.mxu2 }
 0x627   :  { %3758 = vpow2.f32 %v3521_v28  ;;  %v2900_v38 = vadd.f32 %v2899_v2, %v9925_v9 }
 0x629   :  { %v2920_v1 = vadd.f32 %v2919_v41, %v2900_v38  ;;  %v2939_v61 = vpop.f32.mrf.mxu0  ;;  %v238_v38 = vmul.f32 %v4980_v54, %v8133_v13 }
 0x62a   :  { %v2940_v39 = vadd.f32 %v2939_v61, %v9926_v8  ;;  %v3102_v19 = vpop.f32.mrf.mxu1 }
 0x62b   :  { %v3522_v36 = vmul.f32 -1.442695, %v2920_v1  ;;  %v3146_v57 = vadd.f32 %v3102_v19, %v269_v5  ;;  %v163_v1 = vadd.f32 %v4977_v20, %v122_v51 }
 0x62c   :  { %v2960_v12 = vadd.f32 %v2959_v11, %v2940_v39 }
 0x62d   :  { %v3759_v22 = vpop.eup %3758  ;;  %3760 = vpow2.f32 %v3522_v36  ;;  %v3525_v6 = vmul.f32 -1.442695, %v3146_v57  ;;  %v270_v20 = vadd.f32 %v238_v38, %v163_v1 }
 0x62e   :  { %v3011_v29 = vadd.f32 1.0, %v3759_v22  ;;  %v3523_v43 = vmul.f32 -1.442695, %v2960_v12 }
 0x62f   :  { %v2979_v59 = vpop.f32.mrf.mxu2 }
 0x630   :  { %3762 = vrcp.f32 %v3011_v29  ;;  %v2980_v45 = vadd.f32 %v2979_v59, %v9928_v53  ;;  %v3025_v7 = vand.u32 2147483648, %v3011_v29  ;;  %vm3019_vm13 = vweird.f32 %v3011_v29 }
 0x631   :  { %3764 = vpow2.f32 %v3523_v43  ;;  %v3023_v24 = vand.u32 2147483647, %v3011_v29  ;;  %v123_v59 = vmul.f32 %v5018_v34, %v8129_v23  ;;  %v239_v34 = vmul.f32 %v5038_v44, %v8133_v13 }
 0x632   :  { %3766 = vpow2.f32 %v3525_v6  ;;  %v3000_v17 = vadd.f32 %v2999_v56, %v2980_v45  ;;  %v3026_v5 = vor.u32 1.1754944e-38, %v3025_v7 }
 0x633   :  { %v3761_v33 = vpop.eup %3760  ;;  %vm3024_vm1 = vcmp.eq.f32.partialorder %v3023_v24, 8.507059e+37  ;;  %v164_v23 = vadd.f32 %v5035_v42, %v123_v59  ;;  %v3447_v59 = vld [vmem:[%s8257_s3 + $0x60] sm:$0xff] }
 0x634   :  { %v3012_v47 = vadd.f32 1.0, %v3761_v33 }
 0x635   :  { %v271_v37 = vadd.f32 %v239_v34, %v164_v23  ;;  %v3443_v34 = vld [vmem:[%s8257_s3 + $0x40] sm:$0xff] }
 0x636   :  { %v3763_v48 = vpop.eup %3762  ;;  %3768 = vrcp.f32 %v3012_v47  ;;  %v3040_v55 = vand.u32 2147483648, %v3012_v47  ;;  %v3038_v52 = vand.u32 2147483647, %v3012_v47  ;;  %vm3034_vm0 = vweird.f32 %v3012_v47 }
 0x637   :  { %v3765_v16 = vpop.eup %3764  ;;  %v3015_v4 = vmul.f32 %v3763_v48, %v3011_v29  ;;  %vm3020_vm12 = vweird.f32 %v3763_v48 }
 0x638   :  { %v8144_v18 = vadd.f32 1.0, %v3765_v16  ;;  %v3767_v15 = vpop.eup %3766  ;;  %vm8155_vm14 = vmor %vm3019_vm13, %vm3020_vm12  ;;  %v3041_v19 = vor.u32 1.1754944e-38, %v3040_v55  ;;  %vm3039_vm3 = vcmp.eq.f32.partialorder %v3038_v52, 8.507059e+37 }
 0x639   :  { %v3016_v58 = vsub.f32 1.0, %v3015_v4  ;;  %v8150_v46 = vadd.f32 1.0, %v3767_v15 }
 0x63a   :  { %3770 = vrcp.f32 %v8144_v18  ;;  %v3055_v45 = vand.u32 2147483648, %v8144_v18  ;;  %vm3049_vm5 = vweird.f32 %v8144_v18  ;;  %v3053_v15 = vand.u32 2147483647, %v8144_v18 }
 0x63b   :  { %v3017_v26 = vmul.f32 %v3763_v48, %v3016_v58  ;;  %3772 = vtanh.f32 %v3000_v17  ;;  %v3187_v51 = vand.u32 2147483648, %v8150_v46  ;;  %vm3181_vm9 = vweird.f32 %v8150_v46 }
 0x63c   :  { %v3769_v3 = vpop.eup %3768  ;;  %3774 = vrcp.f32 %v8150_v46  ;;  %v3056_v49 = vor.u32 1.1754944e-38, %v3055_v45  ;;  %vm3054_vm7 = vcmp.eq.f32.partialorder %v3053_v15, 8.507059e+37  ;;  %v3185_v7 = vand.u32 2147483647, %v8150_v46 }
 0x63d   :  { %v3030_v30 = vmul.f32 %v3769_v3, %v3012_v47  ;;  %v3018_v62 = vadd.f32 %v3763_v48, %v3017_v26  ;;  %vm3035_vm15 = vweird.f32 %v3769_v3  ;;  %v3188_v52 = vor.u32 1.1754944e-38, %v3187_v51  ;;  %v3435_v51 = vld [vmem:[%s8257_s3] sm:$0xff] }
 0x63e   :  { %vm3036_vm2 = vmor %vm3034_vm0, %vm3035_vm15  ;;  %vm3186_vm12 = vcmp.eq.f32.partialorder %v3185_v7, 8.507059e+37 }
 0x63f   :  { %v3031_v31 = vsub.f32 1.0, %v3030_v30  ;;  %v3022_v28 = vsel %vm8155_vm14, %v3763_v48, %v3018_v62 }
 0x640   :  { %v3771_v11 = vpop.eup %3770  ;;  %v3027_v36 = vsel %vm3024_vm1, %v3026_v5, %v3022_v28 }
 0x641   :  { %v3032_v40 = vmul.f32 %v3769_v3, %v3031_v31  ;;  %v3045_v27 = vmul.f32 %v3771_v11, %v8144_v18  ;;  %v3082_v2 = vpop.f32.mrf.mxu0  ;;  %v3773_v12 = vpop.eup %3772  ;;  %vm3050_vm4 = vweird.f32 %v3771_v11 }
 0x642   :  { %v3145_v41 = vadd.f32 %v3082_v2, %v268_v14  ;;  %v8165_v29 = vpop.eup %3774  ;;  %v3061_v33 = vmul.f32 %v3773_v12, %v3027_v36  ;;  %vm3051_vm6 = vmor %vm3049_vm5, %vm3050_vm4 }
 0x643   :  { %v3046_v61 = vsub.f32 1.0, %v3045_v27  ;;  %v3033_v39 = vadd.f32 %v3769_v3, %v3032_v40  ;;  %v3177_v63 = vmul.f32 %v8165_v29, %v8150_v46  ;;  %vm3182_vm8 = vweird.f32 %v8165_v29 }
 0x644   :  { %v3524_v57 = vmul.f32 -1.442695, %v3145_v41  ;;  %vm8187_vm10 = vmor %vm3181_vm9, %vm3182_vm8 }
 0x645   :  { %v3037_v22 = vsel %vm3036_vm2, %v3769_v3, %v3033_v39  ;;  %v3047_v54 = vmul.f32 %v3771_v11, %v3046_v61  ;;  %v3178_v56 = vsub.f32 1.0, %v3177_v63  ;;  %v3142_v3 = vpop.f32.mrf.mxu3 }
 0x646   :  { %v3042_v43 = vsel %vm3039_vm3, %v3041_v19, %v3037_v22  ;;  %3776 = vpow2.f32 %v3524_v57  ;;  %v3148_v44 = vadd.f32 %v3142_v3, %v271_v37  ;;  %v3440_v3 = vld [vmem:[%s8257_s3 + $0x28] sm:$0xff] }
 0x647   :  { %v3060_v6 = vmul.f32 %v3042_v43, %v7919_v0  ;;  %v3048_v16 = vadd.f32 %v3771_v11, %v3047_v54  ;;  %v3179_v26 = vmul.f32 %v8165_v29, %v3178_v56  ;;  %v3442_v56 = vld [vmem:[%s8257_s3 + $0x38] sm:$0xff] }
 0x648   :  { %v3122_v47 = vpop.f32.mrf.mxu2 }
 0x649   :  { %v8170_v48 = vadd.f32 %v3061_v33, %v3060_v6  ;;  %v3147_v32 = vadd.f32 %v3122_v47, %v270_v20  ;;  %v3052_v25 = vsel %vm3051_vm6, %v3771_v11, %v3048_v16  ;;  %v3180_v13 = vadd.f32 %v8165_v29, %v3179_v26  ;;  %v3449_v20 = vld [vmem:[%s8257_s3 + $0x70] sm:$0xff]  ;;  %v3448_v47 = vld [vmem:[%s8257_s3 + $0x68] sm:$0xff] }
 0x64a   :  { %v3057_v17 = vsel %vm3054_vm7, %v3056_v49, %v3052_v25 }
 0x64b   :  { %3778 = vtanh.f32 %v8170_v48  ;;  %v3526_v4 = vmul.f32 -1.442695, %v3147_v32  ;;  %v3184_v11 = vsel %vm8187_vm10, %v8165_v29, %v3180_v13  ;;  %v3446_v32 = vld [vmem:[%s8257_s3 + $0x58] sm:$0xff]  ;;  %v3437_v13 = vld [vmem:[%s8257_s3 + $0x10] sm:$0xff] }
 0x64c   :  { %v3777_v0 = vpop.eup %3776  ;;  %v3189_v2 = vsel %vm3186_vm12, %v3188_v52, %v3184_v11 }
 0x64d   :  { %v3158_v58 = vadd.f32 1.0, %v3777_v0  ;;  %3780 = vpow2.f32 %v3526_v4  ;;  %v3207_v61 = vmul.f32 %v3189_v2, %v7967_v10  ;;  %v3450_v10 = vld [vmem:[%s8257_s3 + $0x78] sm:$0xff]  ;;  %v3445_v4 = vld [vmem:[%s8257_s3 + $0x50] sm:$0xff]  ;;  %v3444_v0 = vld [vmem:[%s8257_s3 + $0x48] sm:$0xff] }
 0x64f   :  { %3782 = vrcp.f32 %v3158_v58  ;;  %v3172_v24 = vand.u32 2147483648, %v3158_v58  ;;  %v3170_v50 = vand.u32 2147483647, %v3158_v58  ;;  %vm3166_vm13 = vweird.f32 %v3158_v58 }
 0x651   :  { %v3779_v60 = vpop.eup %3778  ;;  %v3173_v46 = vor.u32 1.1754944e-38, %v3172_v24  ;;  %vm3171_vm15 = vcmp.eq.f32.partialorder %v3170_v50, 8.507059e+37 }
 0x652   :  { %v3064_v18 = vmul.f32 %v3779_v60, %v3057_v17  ;;  %v3441_v60 = vld [vmem:[%s8257_s3 + $0x30] sm:$0xff] }
 0x653   :  { %v3781_v30 = vpop.eup %3780 }
 0x654   :  { %v3160_v62 = vadd.f32 1.0, %v3781_v30  ;;  %3248 = vmatmul.f32.vlgmr.msra.gmra.mxu1 %v3064_v18  ;;  %3288 = vmatmul.f32.vlgmr.msra.gmra.mxu3 %v3064_v18 }
 0x655   :  { %v3783_v42 = vpop.eup %3782 }
 0x656   :  { %v3162_v21 = vmul.f32 %v3783_v42, %v3158_v58  ;;  %3784 = vrcp.f32 %v3160_v62  ;;  %vm3167_vm11 = vweird.f32 %v3783_v42  ;;  %v3202_v12 = vand.u32 2147483648, %v3160_v62 }
 0x657   :  { %3786 = vtanh.f32 %v3148_v44  ;;  %vm3168_vm14 = vmor %vm3166_vm13, %vm3167_vm11  ;;  %vm3196_vm1 = vweird.f32 %v3160_v62  ;;  %v3200_v22 = vand.u32 2147483647, %v3160_v62 }
 0x658   :  { %v3163_v14 = vsub.f32 1.0, %v3162_v21  ;;  %v3203_v43 = vor.u32 1.1754944e-38, %v3202_v12  ;;  %v3436_v21 = vld [vmem:[%s8257_s3 + $0x8] sm:$0xff] }
 0x659   :  { %vm3201_vm3 = vcmp.eq.f32.partialorder %v3200_v22, 8.507059e+37 }
 0x65a   :  { %v3164_v55 = vmul.f32 %v3783_v42, %v3163_v14 }
 0x65c   :  { %v3785_v40 = vpop.eup %3784  ;;  %v3165_v27 = vadd.f32 %v3783_v42, %v3164_v55  ;;  %3328 = vmatmul.f32.vlgmr.msrb.gmra.mxu1 %v3064_v18  ;;  %3368 = vmatmul.f32.vlgmr.msrb.gmra.mxu3 %v3064_v18 }
 0x65d   :  { %v3192_v28 = vmul.f32 %v3785_v40, %v3160_v62  ;;  %v3787_v5 = vpop.eup %3786  ;;  %vm3197_vm0 = vweird.f32 %v3785_v40  ;;  %v3438_v62 = vld [vmem:[%s8257_s3 + $0x18] sm:$0xff] }
 0x65e   :  { %v3169_v38 = vsel %vm3168_vm14, %v3783_v42, %v3165_v27  ;;  %vm3198_vm2 = vmor %vm3196_vm1, %vm3197_vm0  ;;  %vm3474_vm0 = vcmask 15360  }
 0x65f   :  { %v3193_v41 = vsub.f32 1.0, %v3192_v28  ;;  %v3174_v1 = vsel %vm3171_vm15, %v3173_v46, %v3169_v38 }
 0x660   :  { %v3208_v39 = vmul.f32 %v3787_v5, %v3174_v1 }
 0x661   :  { %v3194_v19 = vmul.f32 %v3785_v40, %v3193_v41 }
 0x662   :  { %v3209_v36 = vadd.f32 %v3208_v39, %v3207_v61 }
 0x663   :  { %v3195_v57 = vadd.f32 %v3785_v40, %v3194_v19 }
 0x664   :  { %3788 = vtanh.f32 %v3209_v36 }
 0x665   :  { %v3199_v29 = vsel %vm3198_vm2, %v3785_v40, %v3195_v57 }
 0x666   :  { %v3204_v6 = vsel %vm3201_vm3, %v3203_v43, %v3199_v29 }
 0x66a   :  { %v3789_v54 = vpop.eup %3788 }
 0x66b   :  { %v3211_v33 = vmul.f32 %v3789_v54, %v3204_v6 }
 0x66d   :  { %3228 = vmatmul.f32.vlgmr.msra.gmra.mxu0 %v3211_v33  ;;  %3268 = vmatmul.f32.vlgmr.msra.gmra.mxu2 %v3211_v33 }
 0x66e   :  { %3453 = vmatpush.msra.mxu0 %v3450_v10 }
 0x670   :  { %3454 = vmatpush.msra.mxu0 %v3449_v20 }
 0x672   :  { %3455 = vmatpush.msra.mxu0 %v3448_v47 }
 0x674   :  { %3456 = vmatpush.msra.mxu0 %v3447_v59 }
 0x675   :  { %3308 = vmatmul.f32.vlgmr.msrb.gmra.mxu0 %v3211_v33  ;;  %3348 = vmatmul.f32.vlgmr.msrb.gmra.mxu2 %v3211_v33 }
 0x676   :  { %3457 = vmatpush.msra.mxu0 %v3446_v32 }
 0x678   :  { %3458 = vmatpush.msra.mxu0 %v3445_v4 }
 0x67a   :  { %3459 = vmatpush.msra.mxu0 %v3444_v0 }
 0x67c   :  { %3460 = vmatpush.msra.mxu0 %v3443_v34 }
 0x67e   :  { %3461 = vmatpush.msra.mxu0 %v3442_v56 }
 0x680   :  { %3462 = vmatpush.msra.mxu0 %v3441_v60 }
 0x682   :  { %3463 = vmatpush.msra.mxu0 %v3440_v3 }
 0x6d1   :  { %v3249_v63 = vpop.f32.mrf.mxu1 }
 0x6d7   :  { %v3289_v25 = vpop.f32.mrf.mxu3 }
 0x6d9   :  { %v3329_v26 = vpop.f32.mrf.mxu1 }
 0x6df   :  { %v3369_v27 = vpop.f32.mrf.mxu3 }
 0x6ea   :  { %v3229_v16 = vpop.f32.mrf.mxu0 }
 0x6eb   :  { %v3230_v45 = vadd.f32 %v3229_v16, %v9922_v35 }
 0x6ed   :  { %v3250_v15 = vadd.f32 %v3249_v63, %v3230_v45 }
 0x6ef   :  { %v3527_v23 = vmul.f32 -1.442695, %v3250_v15 }
 0x6f0   :  { %v3269_v58 = vpop.f32.mrf.mxu2 }
 0x6f1   :  { %3790 = vpow2.f32 %v3527_v23  ;;  %v3270_v35 = vadd.f32 %v3269_v58, %v9925_v9  ;;  %v3439_v9 = vld [vmem:[%s8257_s3 + $0x20] sm:$0xff] }
 0x6f2   :  { %v3309_v49 = vpop.f32.mrf.mxu0  ;;  %3464 = vmatpush.msra.mxu0 %v3439_v9 }
 0x6f3   :  { %v3290_v37 = vadd.f32 %v3289_v25, %v3270_v35  ;;  %v3310_v17 = vadd.f32 %v3309_v49, %v9926_v8 }
 0x6f4   :  { %3465 = vmatpush.msra.mxu0 %v3438_v62 }
 0x6f5   :  { %v3528_v18 = vmul.f32 -1.442695, %v3290_v37  ;;  %v3330_v30 = vadd.f32 %v3329_v26, %v3310_v17 }
 0x6f6   :  { %3466 = vmatpush.msra.mxu0 %v3437_v13 }
 0x6f7   :  { %v3791_v42 = vpop.eup %3790  ;;  %3792 = vpow2.f32 %v3528_v18  ;;  %v3529_v8 = vmul.f32 -1.442695, %v3330_v30 }
 0x6f8   :  { %v3381_v44 = vadd.f32 1.0, %v3791_v42  ;;  %3467 = vmatpush.msra.mxu0 %v3436_v21  ;;  %v3349_v24 = vpop.f32.mrf.mxu2 }
 0x6f9   :  { %3794 = vpow2.f32 %v3529_v8  ;;  %v3350_v52 = vadd.f32 %v3349_v24, %v9928_v53 }
 0x6fa   :  { %3796 = vrcp.f32 %v3381_v44  ;;  %3468 = vmatpush.msra.mxu0 %v3435_v51  ;;  %v3395_v1 = vand.u32 2147483648, %v3381_v44  ;;  %vm3389_vm5 = vweird.f32 %v3381_v44  ;;  %v3393_v19 = vand.u32 2147483647, %v3381_v44 }
 0x6fb   :  { %v3370_v2 = vadd.f32 %v3369_v27, %v3350_v52 }
 0x6fc   :  { %v3396_v29 = vor.u32 1.1754944e-38, %v3395_v1  ;;  %vm3394_vm9 = vcmp.eq.f32.partialorder %v3393_v19, 8.507059e+37 }
 0x6fd   :  { %v3793_v7 = vpop.eup %3792 }
 0x6fe   :  { %v3382_v14 = vadd.f32 1.0, %v3793_v7 }
 0x6ff   :  { %v3795_v31 = vpop.eup %3794 }
 0x700   :  { %v3797_v11 = vpop.eup %3796  ;;  %3798 = vrcp.f32 %v3382_v14  ;;  %v3383_v55 = vadd.f32 1.0, %v3795_v31  ;;  %v3410_v36 = vand.u32 2147483648, %v3382_v14  ;;  %v3408_v12 = vand.u32 2147483647, %v3382_v14 }
 0x701   :  { %v3385_v50 = vmul.f32 %v3797_v11, %v3381_v44  ;;  %vm3390_vm4 = vweird.f32 %v3797_v11  ;;  %vm3404_vm8 = vweird.f32 %v3382_v14 }
 0x702   :  { %3800 = vrcp.f32 %v3383_v55  ;;  %vm3391_vm6 = vmor %vm3389_vm5, %vm3390_vm4  ;;  %v3411_v54 = vor.u32 1.1754944e-38, %v3410_v36  ;;  %vm3409_vm11 = vcmp.eq.f32.partialorder %v3408_v12, 8.507059e+37  ;;  %v3425_v4 = vand.u32 2147483648, %v3383_v55 }
 0x703   :  { %v3386_v40 = vsub.f32 1.0, %v3385_v50  ;;  %3802 = vtanh.f32 %v3370_v2  ;;  %vm3419_vm13 = vweird.f32 %v3383_v55  ;;  %v3423_v45 = vand.u32 2147483647, %v3383_v55 }
 0x704   :  { %v3426_v15 = vor.u32 1.1754944e-38, %v3425_v4 }
 0x705   :  { %v3387_v46 = vmul.f32 %v3797_v11, %v3386_v40  ;;  %vm3424_vm15 = vcmp.eq.f32.partialorder %v3423_v45, 8.507059e+37 }
 0x706   :  { %v3799_v28 = vpop.eup %3798 }
 0x707   :  { %v3400_v38 = vmul.f32 %v3799_v28, %v3382_v14  ;;  %v3388_v5 = vadd.f32 %v3797_v11, %v3387_v46  ;;  %vm3405_vm7 = vweird.f32 %v3799_v28 }
 0x708   :  { %v3801_v41 = vpop.eup %3800  ;;  %vm3406_vm10 = vmor %vm3404_vm8, %vm3405_vm7 }
 0x709   :  { %v3401_v61 = vsub.f32 1.0, %v3400_v38  ;;  %v3415_v39 = vmul.f32 %v3801_v41, %v3383_v55  ;;  %v3392_v53 = vsel %vm3391_vm6, %v3797_v11, %v3388_v5  ;;  %v3803_v10 = vpop.eup %3802  ;;  %vm3420_vm12 = vweird.f32 %v3801_v41 }
 0x70a   :  { %v3397_v6 = vsel %vm3394_vm9, %v3396_v29, %v3392_v53  ;;  %vm3421_vm14 = vmor %vm3419_vm13, %vm3420_vm12 }
 0x70b   :  { %v3402_v57 = vmul.f32 %v3799_v28, %v3401_v61  ;;  %v3416_v22 = vsub.f32 1.0, %v3415_v39  ;;  %v3431_v32 = vmul.f32 %v3803_v10, %v3397_v6 }
 0x70d   :  { %v3403_v43 = vadd.f32 %v3799_v28, %v3402_v57  ;;  %v3417_v20 = vmul.f32 %v3801_v41, %v3416_v22 }
 0x70f   :  { %v3407_v33 = vsel %vm3406_vm10, %v3799_v28, %v3403_v43  ;;  %v3418_v16 = vadd.f32 %v3801_v41, %v3417_v20 }
 0x710   :  { %v3412_v47 = vsel %vm3409_vm11, %v3411_v54, %v3407_v33 }
 0x711   :  { %v3430_v59 = vmul.f32 %v3412_v47, %v8170_v48  ;;  %v3422_v0 = vsel %vm3421_vm14, %v3801_v41, %v3418_v16  ;;  %v3549_v48 = vld [vmem:[%s8257_s3 + $0x80] ss:$0 sm:$0xff] }
 0x712   :  { %v3427_v23 = vsel %vm3424_vm15, %v3426_v15, %v3422_v0 }
 0x713   :  { %v3432_v63 = vadd.f32 %v3431_v32, %v3430_v59 }
 0x715   :  { %3804 = vtanh.f32 %v3432_v63 }
 0x71b   :  { %v3805_v34 = vpop.eup %3804 }
 0x71c   :  { %v3434_v58 = vmul.f32 %v3805_v34, %v3427_v23 }
 0x71e   :  { %3469 = vmatmul.f32.vlgmr.msra.gmra.mxu0 %v3434_v58 }
 0x79b   :  { %v3470_v56 = vpop.f32.mrf.mxu0 }
 0x79c   :  { %v3471_v35 = vadd.f32 %v3549_v48, %v3470_v56 }
 0x79e   :  { %3806 = vtanh.f32 %v3471_v35 }
 0x7a4   :  { %v3807_v25 = vpop.eup %3806 }
 0x7a5   :  { %3475 = vst.msk [vmem:[%s8258_s4] sm:$0xff] %vm3474_vm0, %v3807_v25 }
 0x7a6   :  { %3480 = vsyncpa [#allocation3], 1 }

</bundles_post_ra>
